<compile_context>
chip_gen: v7x
topology: tpu7x:2x2x1
jax: 0.10.0
libtpu: 0.0.40
codegen_flags: <defaults>
</compile_context>

<pallas_src>
import functools

import jax
import jax.numpy as jnp
from jax import lax
from jax.experimental import pallas as pl
from jax.experimental.pallas import tpu as pltpu

LANES = 128          # TPU lane width: all kernel-visible channel dims padded to this
N_CLASSES = 10
NEG_BIAS = -1e30     # neutralizes padded logit columns inside the fused log_softmax


def _round_up(x, m):
    return ((x + m - 1) // m) * m


# ----------------------------- Pallas kernels ------------------------------ #

def _matmul_bias_relu_kernel(x_ref, w_ref, b_ref, o_ref):
    acc = jnp.dot(x_ref[...], w_ref[...], preferred_element_type=jnp.float32)
    o_ref[...] = jnp.maximum(acc + b_ref[...], 0.0).astype(o_ref.dtype)


def matmul_bias_relu(x, w, b_row, *, tile_m=512):
    """y = relu(x @ w + b).  Used for conv1 (im2col patches); w's output dim is
    already padded to a multiple of 128 so all stores are lane-dense."""
    M, K = x.shape
    Kw, N = w.shape
    assert K == Kw and N % LANES == 0
    tm = max(8, min(tile_m, _round_up(M, 8)))
    Mp = _round_up(M, tm)
    if Mp != M:
        x = jnp.pad(x, ((0, Mp - M), (0, 0)))
    out = pl.pallas_call(
        _matmul_bias_relu_kernel,
        out_shape=jax.ShapeDtypeStruct((Mp, N), jnp.float32),
        grid_spec=pltpu.PrefetchScalarGridSpec(
            num_scalar_prefetch=0,
            grid=(Mp // tm,),
            in_specs=[
                pl.BlockSpec((tm, K), lambda i: (i, 0)),   # activation tile
                pl.BlockSpec((K, N), lambda i: (0, 0)),    # resident weight
                pl.BlockSpec((1, N), lambda i: (0, 0)),    # bias row
            ],
            out_specs=pl.BlockSpec((tm, N), lambda i: (i, 0)),
        ),
        compiler_params=pltpu.CompilerParams(
            dimension_semantics=("parallel",)),
    )(x, w, b_row)
    return out[:M]


def _conv3x3_relu_kernel(x_ref, w_ref, b_ref, o_ref, *, ho, wo):
    ci = x_ref.shape[-1]
    co = o_ref.shape[-1]
    acc = jnp.zeros((ho * wo, co), jnp.float32)
    for idx in range(9):                      # 3x3 window unrolled at trace time
        dy, dx = idx // 3, idx % 3
        band = x_ref[0, dy:dy + ho, :, :]                 # (ho, W, ci) aligned load
        xs = band[:, dx:dx + wo, :].reshape(ho * wo, ci)  # shifted window, 8-aligned merge
        acc = acc + jnp.dot(xs, w_ref[idx], preferred_element_type=jnp.float32)
    acc = jnp.maximum(acc + b_ref[...], 0.0)
    o_ref[...] = acc.reshape(1, ho, wo, co).astype(o_ref.dtype)


def conv3x3_relu(x_nhwc, w9, b_row):
    """3x3 valid conv + bias + ReLU.  The window accumulation (9 shifted-slice
    matmuls) runs inside the kernel, so no 9x-expanded im2col tensor touches HBM."""
    N, H, W, C = x_nhwc.shape
    Ho, Wo = H - 2, W - 2
    Co = w9.shape[-1]
    assert w9.shape == (9, C, Co) and Co % LANES == 0
    return pl.pallas_call(
        functools.partial(_conv3x3_relu_kernel, ho=Ho, wo=Wo),
        out_shape=jax.ShapeDtypeStruct((N, Ho, Wo, Co), jnp.float32),
        grid_spec=pltpu.PrefetchScalarGridSpec(
            num_scalar_prefetch=0,
            grid=(N,),
            in_specs=[
                pl.BlockSpec((1, H, W, C), lambda n: (n, 0, 0, 0)),
                pl.BlockSpec((9, C, Co), lambda n: (0, 0, 0)),   # resident weight
                pl.BlockSpec((1, Co), lambda n: (0, 0)),
            ],
            out_specs=pl.BlockSpec((1, Ho, Wo, Co), lambda n: (n, 0, 0, 0)),
        ),
        compiler_params=pltpu.CompilerParams(
            dimension_semantics=("parallel",)),
    )(x_nhwc, w9, b_row)


def _max4_kernel(a_ref, b_ref, c_ref, d_ref, o_ref):
    o_ref[...] = jnp.maximum(jnp.maximum(a_ref[...], b_ref[...]),
                             jnp.maximum(c_ref[...], d_ref[...]))


def maxpool2x2(x_nhwc, *, tile_m=512):
    """2x2 / stride-2 max pool (F.max_pool2d(x, 2)); tiled lane-dense 4-way max."""
    N, H, W, C = x_nhwc.shape
    assert C % LANES == 0
    Ho, Wo = H // 2, W // 2
    M = N * Ho * Wo
    views = [x_nhwc[:, dy::2, dx::2, :].reshape(M, C)
             for dy in range(2) for dx in range(2)]
    # tile over rows; keep grid length >= 2 so both v7x TensorCores get work
    tm = max(8, min(tile_m, _round_up(pl.cdiv(M, 2), 8)))
    Mp = _round_up(M, tm)
    if Mp != M:
        views = [jnp.pad(v, ((0, Mp - M), (0, 0))) for v in views]
    out = pl.pallas_call(
        _max4_kernel,
        out_shape=jax.ShapeDtypeStruct((Mp, C), jnp.float32),
        grid_spec=pltpu.PrefetchScalarGridSpec(
            num_scalar_prefetch=0,
            grid=(Mp // tm,),
            in_specs=[pl.BlockSpec((tm, C), lambda i: (i, 0))] * 4,
            out_specs=pl.BlockSpec((tm, C), lambda i: (i, 0)),
        ),
        compiler_params=pltpu.CompilerParams(
            dimension_semantics=("parallel",)),
    )(*views)
    return out[:M].reshape(N, Ho, Wo, C)


def _fc_head_kernel(x_ref, w1_ref, b1_ref, w2_ref, b2_ref, o_ref):
    # fc1: bf16 MXU inputs, f32 accumulation, fused ReLU
    h = jnp.dot(x_ref[...].astype(jnp.bfloat16), w1_ref[...],
                preferred_element_type=jnp.float32) + b1_ref[...]
    h = jnp.maximum(h, 0.0)
    # fc2 on 128 padded logit columns; padded bias = -1e30 so log_softmax ignores them
    logits = jnp.dot(h, w2_ref[...], preferred_element_type=jnp.float32) + b2_ref[...]
    m = jnp.max(logits, axis=-1, keepdims=True)
    s = logits - m
    o_ref[...] = (s - jnp.log(jnp.sum(jnp.exp(s), axis=-1, keepdims=True))
                  ).astype(o_ref.dtype)


def fc_head(x, w1, b1_row, w2, b2_row, *, tile_m=128):
    """Fused fc1 + ReLU + fc2 + log_softmax in a single pallas_call; both weights
    stay VMEM-resident so the (M, 128) fc1 output never round-trips HBM."""
    M, K = x.shape
    HID = w1.shape[-1]
    NP = w2.shape[-1]
    assert w1.shape[0] == K and w2.shape[0] == HID and NP % LANES == 0
    tm = max(8, min(tile_m, _round_up(M, 8)))
    Mp = _round_up(M, tm)
    if Mp != M:
        x = jnp.pad(x, ((0, Mp - M), (0, 0)))
    out = pl.pallas_call(
        _fc_head_kernel,
        out_shape=jax.ShapeDtypeStruct((Mp, NP), jnp.float32),
        grid_spec=pltpu.PrefetchScalarGridSpec(
            num_scalar_prefetch=0,
            grid=(Mp // tm,),
            in_specs=[
                pl.BlockSpec((tm, K), lambda i: (i, 0)),
                pl.BlockSpec((K, HID), lambda i: (0, 0)),   # fc1 weight (bf16, resident)
                pl.BlockSpec((1, HID), lambda i: (0, 0)),
                pl.BlockSpec((HID, NP), lambda i: (0, 0)),  # fc2 weight (padded, resident)
                pl.BlockSpec((1, NP), lambda i: (0, 0)),
            ],
            out_specs=pl.BlockSpec((tm, NP), lambda i: (i, 0)),
        ),
        compiler_params=pltpu.CompilerParams(
            dimension_semantics=("parallel",),
            vmem_limit_bytes=48 * 1024 * 1024,   # 128-row f32 tiles + 4.7 MiB bf16 weight
        ),
    )(x, w1, b1_row, w2, b2_row)
    return out[:M]


# --------------------------------- glue ------------------------------------ #

def im2col(x, kh, kw):
    """x: (N,H,W,C) -> (N, H-kh+1, W-kw+1, kh*kw*C); K-order = (ky, kx, cin)."""
    N, H, W, C = x.shape
    Ho, Wo = H - kh + 1, W - kw + 1
    patches = [x[:, dy:dy + Ho, dx:dx + Wo, :]
               for dy in range(kh) for dx in range(kw)]
    return jnp.concatenate(patches, axis=-1)


def init_params(key):
    ks = jax.random.split(key, 8)

    def randn(k, shape, fan_in):
        return jax.random.normal(k, shape, jnp.float32) / jnp.sqrt(fan_in)

    return {
        "w1": randn(ks[0], (32, 1, 3, 3), 9.0),        # torch OIHW
        "b1": randn(ks[1], (32,), 9.0),
        "w2": randn(ks[2], (64, 32, 3, 3), 288.0),
        "b2": randn(ks[3], (64,), 288.0),
        "wfc1": randn(ks[4], (128, 9216), 9216.0),     # torch (out, in)
        "bfc1": randn(ks[5], (128,), 9216.0),
        "wfc2": randn(ks[6], (10, 128), 128.0),
        "bfc2": randn(ks[7], (10,), 128.0),
    }


def prepare_params(params):
    """One-time conversion of torch-layout weights into kernel layouts (done outside
    the per-forward path): conv weights as matmul operands with output channels
    zero-padded to 128 lanes; fc1 weight column-permuted to consume the NHWC
    channel-padded pooled activation directly (and cast to bf16); fc2 padded to 128
    logit columns with a -1e30 bias on the padding."""
    c1, c2 = params["w1"].shape[0], params["w2"].shape[0]      # 32, 64
    c1p, c2p = _round_up(c1, LANES), _round_up(c2, LANES)      # 128, 128

    # conv1: (ky*kx*cin=9, c1p)
    w1m = jnp.transpose(params["w1"], (2, 3, 1, 0)).reshape(9, c1)
    w1m = jnp.pad(w1m, ((0, 0), (0, c1p - c1))).astype(jnp.float32)
    b1r = jnp.pad(params["b1"], (0, c1p - c1)).reshape(1, c1p).astype(jnp.float32)

    # conv2: (9, cin_pad, cout_pad) for the in-kernel shifted-slice accumulation
    w2m = jnp.transpose(params["w2"], (2, 3, 1, 0))            # (3,3,32,64)
    w2m = jnp.pad(w2m, ((0, 0), (0, 0), (0, c1p - c1), (0, c2p - c2)))
    w2m = w2m.reshape(9, c1p, c2p).astype(jnp.float32)
    b2r = jnp.pad(params["b2"], (0, c2p - c2)).reshape(1, c2p).astype(jnp.float32)

    # fc1: torch flatten order is (c, h, w) over the 64x12x12 pooled map; permute the
    # input rows to (h, w, c_pad) so fc1 consumes the NHWC pooled tensor directly.
    hid = params["wfc1"].shape[0]                              # 128
    wfc1 = params["wfc1"].T.reshape(c2, 12, 12, hid)           # (c,h,w,out)
    wfc1 = jnp.transpose(wfc1, (1, 2, 0, 3))                   # (h,w,c,out)
    wfc1 = jnp.pad(wfc1, ((0, 0), (0, 0), (0, c2p - c2), (0, 0)))
    wfc1 = wfc1.reshape(12 * 12 * c2p, hid).astype(jnp.bfloat16)
    bfc1 = params["bfc1"].reshape(1, hid).astype(jnp.float32)

    # fc2: pad to 128 logit columns, neutralized via -1e30 bias
    nout = params["wfc2"].shape[0]                             # 10
    noutp = _round_up(nout, LANES)                             # 128
    wfc2 = jnp.pad(params["wfc2"].T, ((0, 0), (0, noutp - nout))).astype(jnp.float32)
    bfc2 = jnp.concatenate(
        [params["bfc2"].astype(jnp.float32),
         jnp.full((noutp - nout,), NEG_BIAS, jnp.float32)]).reshape(1, noutp)

    return {"w1m": w1m, "b1r": b1r, "w2m": w2m, "b2r": b2r,
            "wfc1": wfc1, "bfc1": bfc1, "wfc2": wfc2, "bfc2": bfc2}


def net_forward(x_nchw, kp):
    # TODO(synk): train-mode dropout (dropout1/dropout2 RNG masking) not implemented;
    # eval-mode dropout is identity and is elided.
    N, _, H, W = x_nchw.shape
    x = jnp.transpose(x_nchw, (0, 2, 3, 1)).astype(jnp.float32)       # NHWC (N,28,28,1)

    # conv1 (1->32, padded to 128 output lanes) + ReLU: 1-channel im2col + MXU matmul
    H1, W1 = H - 2, W - 2
    p = im2col(x, 3, 3).reshape(N * H1 * W1, 9)
    y = matmul_bias_relu(p, kp["w1m"], kp["b1r"]).reshape(N, H1, W1, LANES)

    # conv2 (32->64, padded to 128 lanes) + ReLU: 3x3 accumulated fully in-kernel
    y = conv3x3_relu(y, kp["w2m"], kp["b2r"])                          # (N, 24, 24, 128)

    # F.max_pool2d(x, 2): tiled lane-dense kernel
    y = maxpool2x2(y)                                                  # (N, 12, 12, 128)

    # NHWC channel-padded flatten; fc1's weight was pre-permuted to match this order,
    # so no per-forward activation transpose / weight transpose is needed.
    y = y.reshape(N, y.shape[1] * y.shape[2] * y.shape[3])             # (N, 18432)

    # fused fc1 + ReLU + fc2 + log_softmax
    y = fc_head(y, kp["wfc1"], kp["bfc1"], kp["wfc2"], kp["bfc2"])     # (N, 128)
    return y[:, :N_CLASSES]


def reference_forward(x_nchw, params):
    """Pure-JAX f32 reference (no Pallas) used only as a correctness check."""
    x = lax.conv_general_dilated(x_nchw, params["w1"], (1, 1), "VALID",
                                 dimension_numbers=("NCHW", "OIHW", "NCHW"))
    x = jax.nn.relu(x + params["b1"][None, :, None, None])
    x = lax.conv_general_dilated(x, params["w2"], (1, 1), "VALID",
                                 dimension_numbers=("NCHW", "OIHW", "NCHW"))
    x = jax.nn.relu(x + params["b2"][None, :, None, None])
    x = lax.reduce_window(x, -jnp.inf, lax.max, (1, 1, 2, 2), (1, 1, 2, 2), "VALID")
    x = x.reshape(x.shape[0], -1)
    x = jax.nn.relu(x @ params["wfc1"].T + params["bfc1"])
    x = x @ params["wfc2"].T + params["bfc2"]
    return jax.nn.log_softmax(x, axis=1)


if __name__ == "__main__":
    key = jax.random.PRNGKey(0)
    pkey, xkey = jax.random.split(key)
    params = init_params(pkey)
    kparams = prepare_params(params)
    x = jax.random.normal(xkey, (2, 1, 28, 28), jnp.float32)   # MNIST-shaped input

    out = jax.block_until_ready(jax.jit(net_forward)(x, kparams))
    ref = jax.block_until_ready(jax.jit(reference_forward)(x, params))

    assert out.shape == (2, 10), out.shape
    err = float(jnp.max(jnp.abs(out - ref)))
    # fc1 weight/activation run through the MXU in bf16 (f32 accumulation), so allow a
    # bf16-sized tolerance against the pure-f32 reference.
    assert err < 2e-2, f"max abs err = {err}"
    print("KERNEL_OK")
</pallas_src>

<mosaic_0001>
module attributes {stable_mosaic.version = 11 : i64} {
  func.func @_matmul_bias_relu_kernel(%arg0: i32, %arg1: memref<512x9xf32, #tpu.memory_space<vmem>>, %arg2: memref<9x128xf32, #tpu.memory_space<vmem>>, %arg3: memref<1x128xf32, #tpu.memory_space<vmem>>, %arg4: memref<512x128xf32, #tpu.memory_space<vmem>>) attributes {dimension_semantics = [#tpu.dimension_semantics<parallel>], iteration_bounds = array<i64: 3>, scalar_prefetch = 0 : i64, scratch_operands = 0 : i64, tpu.core_type = #tpu.core_type<tc>, window_params = [{transform_indices = @transform_0, window_bounds = array<i64: 512, 9>}, {pipeline_mode = #tpu.pipeline_mode<synchronous>, transform_indices = @transform_1, window_bounds = array<i64: 9, 128>}, {pipeline_mode = #tpu.pipeline_mode<synchronous>, transform_indices = @transform_2, window_bounds = array<i64: 1, 128>}, {transform_indices = @transform_3, window_bounds = array<i64: 512, 128>}]} {
    %c0 = arith.constant 0 : index
    %c0_0 = arith.constant 0 : index
    %0 = vector.load %arg1[%c0, %c0_0] : memref<512x9xf32, #tpu.memory_space<vmem>>, vector<512x9xf32>
    %c0_1 = arith.constant 0 : index
    %c0_2 = arith.constant 0 : index
    %1 = vector.load %arg2[%c0_1, %c0_2] : memref<9x128xf32, #tpu.memory_space<vmem>>, vector<9x128xf32>
    %cst = arith.constant dense<0.000000e+00> : vector<512x128xf32>
    %2 = tpu.matmul %0, %1, %cst {dimension_numbers = #tpu.dot_dimension_numbers<[1], [0], [0], [1], [0, 0, 1, 1], [], []>} : vector<512x9xf32>, vector<9x128xf32>, vector<512x128xf32> -> vector<512x128xf32>
    %c0_3 = arith.constant 0 : index
    %c0_4 = arith.constant 0 : index
    %3 = vector.load %arg3[%c0_3, %c0_4] : memref<1x128xf32, #tpu.memory_space<vmem>>, vector<1x128xf32>
    %4 = vector.broadcast %3 : vector<1x128xf32> to vector<512x128xf32>
    %5 = arith.addf %2, %4 : vector<512x128xf32>
    %cst_5 = arith.constant 0.000000e+00 : f32
    %6 = vector.broadcast %cst_5 : f32 to vector<512x128xf32>
    %7 = arith.maximumf %5, %6 : vector<512x128xf32>
    %c0_6 = arith.constant 0 : index
    %c0_7 = arith.constant 0 : index
    %8 = vector.load %arg4[%c0_6, %c0_7] : memref<512x128xf32, #tpu.memory_space<vmem>>, vector<512x128xf32>
    tpu.vector_store %arg4[%c0_6, %c0_7], %7 {strides = array<i32>} : memref<512x128xf32, #tpu.memory_space<vmem>>, vector<512x128xf32>,
    return
  }
  func.func @transform_0(%arg0: i32) -> (i32, i32) {
    %c0_i32 = arith.constant 0 : i32
    %c0_i32_0 = arith.constant 0 : i32
    return %arg0, %c0_i32 : i32, i32
  }
  func.func @transform_1(%arg0: i32) -> (i32, i32) {
    %c0_i32 = arith.constant 0 : i32
    %c0_i32_0 = arith.constant 0 : i32
    %c0_i32_1 = arith.constant 0 : i32
    return %c0_i32, %c0_i32_0 : i32, i32
  }
  func.func @transform_2(%arg0: i32) -> (i32, i32) {
    %c0_i32 = arith.constant 0 : i32
    %c0_i32_0 = arith.constant 0 : i32
    %c0_i32_1 = arith.constant 0 : i32
    return %c0_i32, %c0_i32_0 : i32, i32
  }
  func.func @transform_3(%arg0: i32) -> (i32, i32) {
    %c0_i32 = arith.constant 0 : i32
    %c0_i32_0 = arith.constant 0 : i32
    return %arg0, %c0_i32 : i32, i32
  }
}

module attributes {stable_mosaic.version = 11 : i64} {
  func.func @_conv3x3_relu_kernel(%arg0: i32, %arg1: memref<1x26x26x128xf32, #tpu.memory_space<vmem>>, %arg2: memref<9x128x128xf32, #tpu.memory_space<vmem>>, %arg3: memref<1x128xf32, #tpu.memory_space<vmem>>, %arg4: memref<1x24x24x128xf32, #tpu.memory_space<vmem>>) attributes {dimension_semantics = [#tpu.dimension_semantics<parallel>], iteration_bounds = array<i64: 2>, scalar_prefetch = 0 : i64, scratch_operands = 0 : i64, tpu.core_type = #tpu.core_type<tc>, window_params = [{transform_indices = @transform_0, window_bounds = array<i64: 1, 26, 26, 128>}, {pipeline_mode = #tpu.pipeline_mode<synchronous>, transform_indices = @transform_1, window_bounds = array<i64: 9, 128, 128>}, {pipeline_mode = #tpu.pipeline_mode<synchronous>, transform_indices = @transform_2, window_bounds = array<i64: 1, 128>}, {transform_indices = @transform_3, window_bounds = array<i64: 1, 24, 24, 128>}]} {
    %cst = arith.constant 0.000000e+00 : f32
    %0 = vector.broadcast %cst : f32 to vector<576x128xf32>
    %c0 = arith.constant 0 : index
    %c0_0 = arith.constant 0 : index
    %c0_1 = arith.constant 0 : index
    %c0_2 = arith.constant 0 : index
    %1 = vector.load %arg1[%c0, %c0_0, %c0_1, %c0_2] : memref<1x26x26x128xf32, #tpu.memory_space<vmem>>, vector<1x24x26x128xf32>
    %2 = vector.shape_cast %1 : vector<1x24x26x128xf32> to vector<24x26x128xf32>
    %3 = vector.extract_strided_slice %2 {offsets = [0, 0, 0], sizes = [24, 24, 128], strides = [1, 1, 1]} : vector<24x26x128xf32> to vector<24x24x128xf32>
    %4 = vector.shape_cast %3 : vector<24x24x128xf32> to vector<576x128xf32>
    %c0_3 = arith.constant 0 : index
    %c0_4 = arith.constant 0 : index
    %c0_5 = arith.constant 0 : index
    %5 = vector.load %arg2[%c0_3, %c0_4, %c0_5] : memref<9x128x128xf32, #tpu.memory_space<vmem>>, vector<1x128x128xf32>
    %6 = vector.shape_cast %5 : vector<1x128x128xf32> to vector<128x128xf32>
    %cst_6 = arith.constant dense<0.000000e+00> : vector<576x128xf32>
    %7 = tpu.matmul %4, %6, %cst_6 {dimension_numbers = #tpu.dot_dimension_numbers<[1], [0], [0], [1], [0, 0, 1, 1], [], []>} : vector<576x128xf32>, vector<128x128xf32>, vector<576x128xf32> -> vector<576x128xf32>
    %8 = arith.addf %0, %7 : vector<576x128xf32>
    %c0_7 = arith.constant 0 : index
    %c0_8 = arith.constant 0 : index
    %c0_9 = arith.constant 0 : index
    %c0_10 = arith.constant 0 : index
    %9 = vector.load %arg1[%c0_7, %c0_8, %c0_9, %c0_10] : memref<1x26x26x128xf32, #tpu.memory_space<vmem>>, vector<1x24x26x128xf32>
    %10 = vector.shape_cast %9 : vector<1x24x26x128xf32> to vector<24x26x128xf32>
    %11 = vector.extract_strided_slice %10 {offsets = [0, 1, 0], sizes = [24, 24, 128], strides = [1, 1, 1]} : vector<24x26x128xf32> to vector<24x24x128xf32>
    %12 = vector.shape_cast %11 : vector<24x24x128xf32> to vector<576x128xf32>
    %c1 = arith.constant 1 : index
    %c0_11 = arith.constant 0 : index
    %c0_12 = arith.constant 0 : index
    %13 = vector.load %arg2[%c1, %c0_11, %c0_12] : memref<9x128x128xf32, #tpu.memory_space<vmem>>, vector<1x128x128xf32>
    %14 = vector.shape_cast %13 : vector<1x128x128xf32> to vector<128x128xf32>
    %cst_13 = arith.constant dense<0.000000e+00> : vector<576x128xf32>
    %15 = tpu.matmul %12, %14, %cst_13 {dimension_numbers = #tpu.dot_dimension_numbers<[1], [0], [0], [1], [0, 0, 1, 1], [], []>} : vector<576x128xf32>, vector<128x128xf32>, vector<576x128xf32> -> vector<576x128xf32>
    %16 = arith.addf %8, %15 : vector<576x128xf32>
    %c0_14 = arith.constant 0 : index
    %c0_15 = arith.constant 0 : index
    %c0_16 = arith.constant 0 : index
    %c0_17 = arith.constant 0 : index
    %17 = vector.load %arg1[%c0_14, %c0_15, %c0_16, %c0_17] : memref<1x26x26x128xf32, #tpu.memory_space<vmem>>, vector<1x24x26x128xf32>
    %18 = vector.shape_cast %17 : vector<1x24x26x128xf32> to vector<24x26x128xf32>
    %19 = vector.extract_strided_slice %18 {offsets = [0, 2, 0], sizes = [24, 24, 128], strides = [1, 1, 1]} : vector<24x26x128xf32> to vector<24x24x128xf32>
    %20 = vector.shape_cast %19 : vector<24x24x128xf32> to vector<576x128xf32>
    %c2 = arith.constant 2 : index
    %c0_18 = arith.constant 0 : index
    %c0_19 = arith.constant 0 : index
    %21 = vector.load %arg2[%c2, %c0_18, %c0_19] : memref<9x128x128xf32, #tpu.memory_space<vmem>>, vector<1x128x128xf32>
    %22 = vector.shape_cast %21 : vector<1x128x128xf32> to vector<128x128xf32>
    %cst_20 = arith.constant dense<0.000000e+00> : vector<576x128xf32>
    %23 = tpu.matmul %20, %22, %cst_20 {dimension_numbers = #tpu.dot_dimension_numbers<[1], [0], [0], [1], [0, 0, 1, 1], [], []>} : vector<576x128xf32>, vector<128x128xf32>, vector<576x128xf32> -> vector<576x128xf32>
    %24 = arith.addf %16, %23 : vector<576x128xf32>
    %c0_21 = arith.constant 0 : index
    %c1_22 = arith.constant 1 : index
    %c0_23 = arith.constant 0 : index
    %c0_24 = arith.constant 0 : index
    %25 = vector.load %arg1[%c0_21, %c1_22, %c0_23, %c0_24] : memref<1x26x26x128xf32, #tpu.memory_space<vmem>>, vector<1x24x26x128xf32>
    %26 = vector.shape_cast %25 : vector<1x24x26x128xf32> to vector<24x26x128xf32>
    %27 = vector.extract_strided_slice %26 {offsets = [0, 0, 0], sizes = [24, 24, 128], strides = [1, 1, 1]} : vector<24x26x128xf32> to vector<24x24x128xf32>
    %28 = vector.shape_cast %27 : vector<24x24x128xf32> to vector<576x128xf32>
    %c3 = arith.constant 3 : index
    %c0_25 = arith.constant 0 : index
    %c0_26 = arith.constant 0 : index
    %29 = vector.load %arg2[%c3, %c0_25, %c0_26] : memref<9x128x128xf32, #tpu.memory_space<vmem>>, vector<1x128x128xf32>
    %30 = vector.shape_cast %29 : vector<1x128x128xf32> to vector<128x128xf32>
    %cst_27 = arith.constant dense<0.000000e+00> : vector<576x128xf32>
    %31 = tpu.matmul %28, %30, %cst_27 {dimension_numbers = #tpu.dot_dimension_numbers<[1], [0], [0], [1], [0, 0, 1, 1], [], []>} : vector<576x128xf32>, vector<128x128xf32>, vector<576x128xf32> -> vector<576x128xf32>
    %32 = arith.addf %24, %31 : vector<576x128xf32>
    %c0_28 = arith.constant 0 : index
    %c1_29 = arith.constant 1 : index
    %c0_30 = arith.constant 0 : index
    %c0_31 = arith.constant 0 : index
    %33 = vector.load %arg1[%c0_28, %c1_29, %c0_30, %c0_31] : memref<1x26x26x128xf32, #tpu.memory_space<vmem>>, vector<1x24x26x128xf32>
    %34 = vector.shape_cast %33 : vector<1x24x26x128xf32> to vector<24x26x128xf32>
    %35 = vector.extract_strided_slice %34 {offsets = [0, 1, 0], sizes = [24, 24, 128], strides = [1, 1, 1]} : vector<24x26x128xf32> to vector<24x24x128xf32>
    %36 = vector.shape_cast %35 : vector<24x24x128xf32> to vector<576x128xf32>
    %c4 = arith.constant 4 : index
    %c0_32 = arith.constant 0 : index
    %c0_33 = arith.constant 0 : index
    %37 = vector.load %arg2[%c4, %c0_32, %c0_33] : memref<9x128x128xf32, #tpu.memory_space<vmem>>, vector<1x128x128xf32>
    %38 = vector.shape_cast %37 : vector<1x128x128xf32> to vector<128x128xf32>
    %cst_34 = arith.constant dense<0.000000e+00> : vector<576x128xf32>
    %39 = tpu.matmul %36, %38, %cst_34 {dimension_numbers = #tpu.dot_dimension_numbers<[1], [0], [0], [1], [0, 0, 1, 1], [], []>} : vector<576x128xf32>, vector<128x128xf32>, vector<576x128xf32> -> vector<576x128xf32>
    %40 = arith.addf %32, %39 : vector<576x128xf32>
    %c0_35 = arith.constant 0 : index
    %c1_36 = arith.constant 1 : index
    %c0_37 = arith.constant 0 : index
    %c0_38 = arith.constant 0 : index
    %41 = vector.load %arg1[%c0_35, %c1_36, %c0_37, %c0_38] : memref<1x26x26x128xf32, #tpu.memory_space<vmem>>, vector<1x24x26x128xf32>
    %42 = vector.shape_cast %41 : vector<1x24x26x128xf32> to vector<24x26x128xf32>
    %43 = vector.extract_strided_slice %42 {offsets = [0, 2, 0], sizes = [24, 24, 128], strides = [1, 1, 1]} : vector<24x26x128xf32> to vector<24x24x128xf32>
    %44 = vector.shape_cast %43 : vector<24x24x128xf32> to vector<576x128xf32>
    %c5 = arith.constant 5 : index
    %c0_39 = arith.constant 0 : index
    %c0_40 = arith.constant 0 : index
    %45 = vector.load %arg2[%c5, %c0_39, %c0_40] : memref<9x128x128xf32, #tpu.memory_space<vmem>>, vector<1x128x128xf32>
    %46 = vector.shape_cast %45 : vector<1x128x128xf32> to vector<128x128xf32>
    %cst_41 = arith.constant dense<0.000000e+00> : vector<576x128xf32>
    %47 = tpu.matmul %44, %46, %cst_41 {dimension_numbers = #tpu.dot_dimension_numbers<[1], [0], [0], [1], [0, 0, 1, 1], [], []>} : vector<576x128xf32>, vector<128x128xf32>, vector<576x128xf32> -> vector<576x128xf32>
    %48 = arith.addf %40, %47 : vector<576x128xf32>
    %c0_42 = arith.constant 0 : index
    %c2_43 = arith.constant 2 : index
    %c0_44 = arith.constant 0 : index
    %c0_45 = arith.constant 0 : index
    %49 = vector.load %arg1[%c0_42, %c2_43, %c0_44, %c0_45] : memref<1x26x26x128xf32, #tpu.memory_space<vmem>>, vector<1x24x26x128xf32>
    %50 = vector.shape_cast %49 : vector<1x24x26x128xf32> to vector<24x26x128xf32>
    %51 = vector.extract_strided_slice %50 {offsets = [0, 0, 0], sizes = [24, 24, 128], strides = [1, 1, 1]} : vector<24x26x128xf32> to vector<24x24x128xf32>
    %52 = vector.shape_cast %51 : vector<24x24x128xf32> to vector<576x128xf32>
    %c6 = arith.constant 6 : index
    %c0_46 = arith.constant 0 : index
    %c0_47 = arith.constant 0 : index
    %53 = vector.load %arg2[%c6, %c0_46, %c0_47] : memref<9x128x128xf32, #tpu.memory_space<vmem>>, vector<1x128x128xf32>
    %54 = vector.shape_cast %53 : vector<1x128x128xf32> to vector<128x128xf32>
    %cst_48 = arith.constant dense<0.000000e+00> : vector<576x128xf32>
    %55 = tpu.matmul %52, %54, %cst_48 {dimension_numbers = #tpu.dot_dimension_numbers<[1], [0], [0], [1], [0, 0, 1, 1], [], []>} : vector<576x128xf32>, vector<128x128xf32>, vector<576x128xf32> -> vector<576x128xf32>
    %56 = arith.addf %48, %55 : vector<576x128xf32>
    %c0_49 = arith.constant 0 : index
    %c2_50 = arith.constant 2 : index
    %c0_51 = arith.constant 0 : index
    %c0_52 = arith.constant 0 : index
    %57 = vector.load %arg1[%c0_49, %c2_50, %c0_51, %c0_52] : memref<1x26x26x128xf32, #tpu.memory_space<vmem>>, vector<1x24x26x128xf32>
    %58 = vector.shape_cast %57 : vector<1x24x26x128xf32> to vector<24x26x128xf32>
    %59 = vector.extract_strided_slice %58 {offsets = [0, 1, 0], sizes = [24, 24, 128], strides = [1, 1, 1]} : vector<24x26x128xf32> to vector<24x24x128xf32>
    %60 = vector.shape_cast %59 : vector<24x24x128xf32> to vector<576x128xf32>
    %c7 = arith.constant 7 : index
    %c0_53 = arith.constant 0 : index
    %c0_54 = arith.constant 0 : index
    %61 = vector.load %arg2[%c7, %c0_53, %c0_54] : memref<9x128x128xf32, #tpu.memory_space<vmem>>, vector<1x128x128xf32>
    %62 = vector.shape_cast %61 : vector<1x128x128xf32> to vector<128x128xf32>
    %cst_55 = arith.constant dense<0.000000e+00> : vector<576x128xf32>
    %63 = tpu.matmul %60, %62, %cst_55 {dimension_numbers = #tpu.dot_dimension_numbers<[1], [0], [0], [1], [0, 0, 1, 1], [], []>} : vector<576x128xf32>, vector<128x128xf32>, vector<576x128xf32> -> vector<576x128xf32>
    %64 = arith.addf %56, %63 : vector<576x128xf32>
    %c0_56 = arith.constant 0 : index
    %c2_57 = arith.constant 2 : index
    %c0_58 = arith.constant 0 : index
    %c0_59 = arith.constant 0 : index
    %65 = vector.load %arg1[%c0_56, %c2_57, %c0_58, %c0_59] : memref<1x26x26x128xf32, #tpu.memory_space<vmem>>, vector<1x24x26x128xf32>
    %66 = vector.shape_cast %65 : vector<1x24x26x128xf32> to vector<24x26x128xf32>
    %67 = vector.extract_strided_slice %66 {offsets = [0, 2, 0], sizes = [24, 24, 128], strides = [1, 1, 1]} : vector<24x26x128xf32> to vector<24x24x128xf32>
    %68 = vector.shape_cast %67 : vector<24x24x128xf32> to vector<576x128xf32>
    %c8 = arith.constant 8 : index
    %c0_60 = arith.constant 0 : index
    %c0_61 = arith.constant 0 : index
    %69 = vector.load %arg2[%c8, %c0_60, %c0_61] : memref<9x128x128xf32, #tpu.memory_space<vmem>>, vector<1x128x128xf32>
    %70 = vector.shape_cast %69 : vector<1x128x128xf32> to vector<128x128xf32>
    %cst_62 = arith.constant dense<0.000000e+00> : vector<576x128xf32>
    %71 = tpu.matmul %68, %70, %cst_62 {dimension_numbers = #tpu.dot_dimension_numbers<[1], [0], [0], [1], [0, 0, 1, 1], [], []>} : vector<576x128xf32>, vector<128x128xf32>, vector<576x128xf32> -> vector<576x128xf32>
    %72 = arith.addf %64, %71 : vector<576x128xf32>
    %c0_63 = arith.constant 0 : index
    %c0_64 = arith.constant 0 : index
    %73 = vector.load %arg3[%c0_63, %c0_64] : memref<1x128xf32, #tpu.memory_space<vmem>>, vector<1x128xf32>
    %74 = vector.broadcast %73 : vector<1x128xf32> to vector<576x128xf32>
    %75 = arith.addf %72, %74 : vector<576x128xf32>
    %cst_65 = arith.constant 0.000000e+00 : f32
    %76 = vector.broadcast %cst_65 : f32 to vector<576x128xf32>
    %77 = arith.maximumf %75, %76 : vector<576x128xf32>
    %78 = vector.shape_cast %77 : vector<576x128xf32> to vector<1x24x24x128xf32>
    %c0_66 = arith.constant 0 : index
    %c0_67 = arith.constant 0 : index
    %c0_68 = arith.constant 0 : index
    %c0_69 = arith.constant 0 : index
    %79 = vector.load %arg4[%c0_66, %c0_67, %c0_68, %c0_69] : memref<1x24x24x128xf32, #tpu.memory_space<vmem>>, vector<1x24x24x128xf32>
    tpu.vector_store %arg4[%c0_66, %c0_67, %c0_68, %c0_69], %78 {strides = array<i32>} : memref<1x24x24x128xf32, #tpu.memory_space<vmem>>, vector<1x24x24x128xf32>,
    return
  }
  func.func @transform_0(%arg0: i32) -> (i32, i32, i32, i32) {
    %c0_i32 = arith.constant 0 : i32
    %c0_i32_0 = arith.constant 0 : i32
    %c0_i32_1 = arith.constant 0 : i32
    %c0_i32_2 = arith.constant 0 : i32
    return %arg0, %c0_i32, %c0_i32_0, %c0_i32_1 : i32, i32, i32, i32
  }
  func.func @transform_1(%arg0: i32) -> (i32, i32, i32) {
    %c0_i32 = arith.constant 0 : i32
    %c0_i32_0 = arith.constant 0 : i32
    %c0_i32_1 = arith.constant 0 : i32
    %c0_i32_2 = arith.constant 0 : i32
    return %c0_i32, %c0_i32_0, %c0_i32_1 : i32, i32, i32
  }
  func.func @transform_2(%arg0: i32) -> (i32, i32) {
    %c0_i32 = arith.constant 0 : i32
    %c0_i32_0 = arith.constant 0 : i32
    %c0_i32_1 = arith.constant 0 : i32
    return %c0_i32, %c0_i32_0 : i32, i32
  }
  func.func @transform_3(%arg0: i32) -> (i32, i32, i32, i32) {
    %c0_i32 = arith.constant 0 : i32
    %c0_i32_0 = arith.constant 0 : i32
    %c0_i32_1 = arith.constant 0 : i32
    %c0_i32_2 = arith.constant 0 : i32
    return %arg0, %c0_i32, %c0_i32_0, %c0_i32_1 : i32, i32, i32, i32
  }
}

module attributes {stable_mosaic.version = 11 : i64} {
  func.func @_max4_kernel(%arg0: i32, %arg1: memref<144x128xf32, #tpu.memory_space<vmem>>, %arg2: memref<144x128xf32, #tpu.memory_space<vmem>>, %arg3: memref<144x128xf32, #tpu.memory_space<vmem>>, %arg4: memref<144x128xf32, #tpu.memory_space<vmem>>, %arg5: memref<144x128xf32, #tpu.memory_space<vmem>>) attributes {dimension_semantics = [#tpu.dimension_semantics<parallel>], iteration_bounds = array<i64: 2>, scalar_prefetch = 0 : i64, scratch_operands = 0 : i64, tpu.core_type = #tpu.core_type<tc>, window_params = [{transform_indices = @transform_0, window_bounds = array<i64: 144, 128>}, {transform_indices = @transform_1, window_bounds = array<i64: 144, 128>}, {transform_indices = @transform_2, window_bounds = array<i64: 144, 128>}, {transform_indices = @transform_3, window_bounds = array<i64: 144, 128>}, {transform_indices = @transform_4, window_bounds = array<i64: 144, 128>}]} {
    %c0 = arith.constant 0 : index
    %c0_0 = arith.constant 0 : index
    %0 = vector.load %arg1[%c0, %c0_0] : memref<144x128xf32, #tpu.memory_space<vmem>>, vector<144x128xf32>
    %c0_1 = arith.constant 0 : index
    %c0_2 = arith.constant 0 : index
    %1 = vector.load %arg2[%c0_1, %c0_2] : memref<144x128xf32, #tpu.memory_space<vmem>>, vector<144x128xf32>
    %2 = arith.maximumf %0, %1 : vector<144x128xf32>
    %c0_3 = arith.constant 0 : index
    %c0_4 = arith.constant 0 : index
    %3 = vector.load %arg3[%c0_3, %c0_4] : memref<144x128xf32, #tpu.memory_space<vmem>>, vector<144x128xf32>
    %c0_5 = arith.constant 0 : index
    %c0_6 = arith.constant 0 : index
    %4 = vector.load %arg4[%c0_5, %c0_6] : memref<144x128xf32, #tpu.memory_space<vmem>>, vector<144x128xf32>
    %5 = arith.maximumf %3, %4 : vector<144x128xf32>
    %6 = arith.maximumf %2, %5 : vector<144x128xf32>
    %c0_7 = arith.constant 0 : index
    %c0_8 = arith.constant 0 : index
    %7 = vector.load %arg5[%c0_7, %c0_8] : memref<144x128xf32, #tpu.memory_space<vmem>>, vector<144x128xf32>
    tpu.vector_store %arg5[%c0_7, %c0_8], %6 {strides = array<i32>} : memref<144x128xf32, #tpu.memory_space<vmem>>, vector<144x128xf32>,
    return
  }
  func.func @transform_0(%arg0: i32) -> (i32, i32) {
    %c0_i32 = arith.constant 0 : i32
    %c0_i32_0 = arith.constant 0 : i32
    return %arg0, %c0_i32 : i32, i32
  }
  func.func @transform_1(%arg0: i32) -> (i32, i32) {
    %c0_i32 = arith.constant 0 : i32
    %c0_i32_0 = arith.constant 0 : i32
    return %arg0, %c0_i32 : i32, i32
  }
  func.func @transform_2(%arg0: i32) -> (i32, i32) {
    %c0_i32 = arith.constant 0 : i32
    %c0_i32_0 = arith.constant 0 : i32
    return %arg0, %c0_i32 : i32, i32
  }
  func.func @transform_3(%arg0: i32) -> (i32, i32) {
    %c0_i32 = arith.constant 0 : i32
    %c0_i32_0 = arith.constant 0 : i32
    return %arg0, %c0_i32 : i32, i32
  }
  func.func @transform_4(%arg0: i32) -> (i32, i32) {
    %c0_i32 = arith.constant 0 : i32
    %c0_i32_0 = arith.constant 0 : i32
    return %arg0, %c0_i32 : i32, i32
  }
}

module attributes {stable_mosaic.version = 11 : i64} {
  func.func @_fc_head_kernel(%arg0: i32, %arg1: memref<8x18432xf32, #tpu.memory_space<vmem>>, %arg2: memref<18432x128xbf16, #tpu.memory_space<vmem>>, %arg3: memref<1x128xf32, #tpu.memory_space<vmem>>, %arg4: memref<128x128xf32, #tpu.memory_space<vmem>>, %arg5: memref<1x128xf32, #tpu.memory_space<vmem>>, %arg6: memref<8x128xf32, #tpu.memory_space<vmem>>) attributes {dimension_semantics = [#tpu.dimension_semantics<parallel>], iteration_bounds = array<i64: 1>, scalar_prefetch = 0 : i64, scratch_operands = 0 : i64, tpu.core_type = #tpu.core_type<tc>, window_params = [{transform_indices = @transform_0, window_bounds = array<i64: 8, 18432>}, {pipeline_mode = #tpu.pipeline_mode<synchronous>, transform_indices = @transform_1, window_bounds = array<i64: 18432, 128>}, {pipeline_mode = #tpu.pipeline_mode<synchronous>, transform_indices = @transform_2, window_bounds = array<i64: 1, 128>}, {pipeline_mode = #tpu.pipeline_mode<synchronous>, transform_indices = @transform_3, window_bounds = array<i64: 128, 128>}, {pipeline_mode = #tpu.pipeline_mode<synchronous>, transform_indices = @transform_4, window_bounds = array<i64: 1, 128>}, {transform_indices = @transform_5, window_bounds = array<i64: 8, 128>}]} {
    %c0 = arith.constant 0 : index
    %c0_0 = arith.constant 0 : index
    %0 = vector.load %arg1[%c0, %c0_0] : memref<8x18432xf32, #tpu.memory_space<vmem>>, vector<8x18432xf32>
    %1 = arith.truncf %0 : vector<8x18432xf32> to vector<8x18432xbf16>
    %c0_1 = arith.constant 0 : index
    %c0_2 = arith.constant 0 : index
    %2 = vector.load %arg2[%c0_1, %c0_2] : memref<18432x128xbf16, #tpu.memory_space<vmem>>, vector<18432x128xbf16>
    %cst = arith.constant dense<0.000000e+00> : vector<8x128xf32>
    %3 = tpu.matmul %1, %2, %cst {dimension_numbers = #tpu.dot_dimension_numbers<[1], [0], [0], [1], [0, 0, 1, 1], [], []>} : vector<8x18432xbf16>, vector<18432x128xbf16>, vector<8x128xf32> -> vector<8x128xf32>
    %c0_3 = arith.constant 0 : index
    %c0_4 = arith.constant 0 : index
    %4 = vector.load %arg3[%c0_3, %c0_4] : memref<1x128xf32, #tpu.memory_space<vmem>>, vector<1x128xf32>
    %5 = vector.broadcast %4 : vector<1x128xf32> to vector<8x128xf32>
    %6 = arith.addf %3, %5 : vector<8x128xf32>
    %cst_5 = arith.constant 0.000000e+00 : f32
    %7 = vector.broadcast %cst_5 : f32 to vector<8x128xf32>
    %8 = arith.maximumf %6, %7 : vector<8x128xf32>
    %c0_6 = arith.constant 0 : index
    %c0_7 = arith.constant 0 : index
    %9 = vector.load %arg4[%c0_6, %c0_7] : memref<128x128xf32, #tpu.memory_space<vmem>>, vector<128x128xf32>
    %cst_8 = arith.constant dense<0.000000e+00> : vector<8x128xf32>
    %10 = tpu.matmul %8, %9, %cst_8 {dimension_numbers = #tpu.dot_dimension_numbers<[1], [0], [0], [1], [0, 0, 1, 1], [], []>} : vector<8x128xf32>, vector<128x128xf32>, vector<8x128xf32> -> vector<8x128xf32>
    %c0_9 = arith.constant 0 : index
    %c0_10 = arith.constant 0 : index
    %11 = vector.load %arg5[%c0_9, %c0_10] : memref<1x128xf32, #tpu.memory_space<vmem>>, vector<1x128xf32>
    %12 = vector.broadcast %11 : vector<1x128xf32> to vector<8x128xf32>
    %13 = arith.addf %10, %12 : vector<8x128xf32>
    %cst_11 = arith.constant dense<0xFF800000> : vector<8xf32>
    %14 = vector.multi_reduction <maximumf>, %13, %cst_11 [1] : vector<8x128xf32> to vector<8xf32>
    %15 = vector.shape_cast %14 : vector<8xf32> to vector<8x1xf32>
    %16 = vector.broadcast %15 : vector<8x1xf32> to vector<8x128xf32>
    %17 = arith.subf %13, %16 : vector<8x128xf32>
    %18 = math.exp %17 : vector<8x128xf32>
    %cst_12 = arith.constant dense<0.000000e+00> : vector<8xf32>
    %19 = vector.multi_reduction <add>, %18, %cst_12 [1] : vector<8x128xf32> to vector<8xf32>
    %20 = vector.shape_cast %19 : vector<8xf32> to vector<8x1xf32>
    %21 = math.log %20 : vector<8x1xf32>
    %22 = vector.broadcast %21 : vector<8x1xf32> to vector<8x128xf32>
    %23 = arith.subf %17, %22 : vector<8x128xf32>
    %c0_13 = arith.constant 0 : index
    %c0_14 = arith.constant 0 : index
    %24 = vector.load %arg6[%c0_13, %c0_14] : memref<8x128xf32, #tpu.memory_space<vmem>>, vector<8x128xf32>
    tpu.vector_store %arg6[%c0_13, %c0_14], %23 {strides = array<i32>} : memref<8x128xf32, #tpu.memory_space<vmem>>, vector<8x128xf32>,
    return
  }
  func.func @transform_0(%arg0: i32) -> (i32, i32) {
    %c0_i32 = arith.constant 0 : i32
    %c0_i32_0 = arith.constant 0 : i32
    return %arg0, %c0_i32 : i32, i32
  }
  func.func @transform_1(%arg0: i32) -> (i32, i32) {
    %c0_i32 = arith.constant 0 : i32
    %c0_i32_0 = arith.constant 0 : i32
    %c0_i32_1 = arith.constant 0 : i32
    return %c0_i32, %c0_i32_0 : i32, i32
  }
  func.func @transform_2(%arg0: i32) -> (i32, i32) {
    %c0_i32 = arith.constant 0 : i32
    %c0_i32_0 = arith.constant 0 : i32
    %c0_i32_1 = arith.constant 0 : i32
    return %c0_i32, %c0_i32_0 : i32, i32
  }
  func.func @transform_3(%arg0: i32) -> (i32, i32) {
    %c0_i32 = arith.constant 0 : i32
    %c0_i32_0 = arith.constant 0 : i32
    %c0_i32_1 = arith.constant 0 : i32
    return %c0_i32, %c0_i32_0 : i32, i32
  }
  func.func @transform_4(%arg0: i32) -> (i32, i32) {
    %c0_i32 = arith.constant 0 : i32
    %c0_i32_0 = arith.constant 0 : i32
    %c0_i32_1 = arith.constant 0 : i32
    return %c0_i32, %c0_i32_0 : i32, i32
  }
  func.func @transform_5(%arg0: i32) -> (i32, i32) {
    %c0_i32 = arith.constant 0 : i32
    %c0_i32_0 = arith.constant 0 : i32
    return %arg0, %c0_i32 : i32, i32
  }
}

</mosaic_0001>

<bundles_post_ra>
// kernel: net_forward.4
= control target key start
LH: loop header
LB: loop body
LE: loop exit
PB: predicated region body
PF: predicated region fallthrough
CT: control target
= control target key end

     0   :  { %8 = vsyncpa [#allocation3], 0  ;;  %s1813_s0 = inlined_call_operand.vmem [shape: f32[1536,9], index: 0, kind: input, shape index: {}]   ;;  %s1814_s1 = inlined_call_operand.hbm [shape: f32[9,128], index: 1, kind: input, shape index: {}]   ;;  %s1815_s2 = inlined_call_operand.hbm [shape: f32[1,128], index: 2, kind: input, shape index: {}]   ;;  %s1816_s3 = inlined_call_operand.vmem [shape: f32[1536,128], index: 3, kind: output, shape index: {}]  }
   0x1   :  { %9 = vsyncpa [#allocation5], 0  ;;  %s1447_s12 = smov 0  }
   0x2 LB: > { %s1063_s13 = sadd.s32 4294967295, %s1420_s12   ;;  %p1065_p0 = scmp.ge.s32.totalorder %s1420_s12, 1  ;;  %s1420_s12 = sphi %s1447_s12, %s15_s12  }
   0x3   : > { %p114_p1 = scmp.lt.s32.totalorder %s1420_s12, 4  ;;  %s1422_s14 = smov [#allocation2]  }
   0x4   : > { %s126_s15 = sshll.u32 %s1422_s14, 4  ;;  %p1461_p3 = scmp.eq.s32.totalorder %s1063_s13, 0  ;;  %s127_s15 = int_to_ptr.vmem [resolvable:$true] %s126_s15 }
   0x5   : > { %p1455_p2 = pnand %p1065_p0, %p114_p1  ;;  %s1423_s18 = smov [#allocation4]  }
   0x6   : > { %s1821_s17 = scalar_select %p1461_p3, 1, 0 }
   0x7   : > { %s1820_s16 = scalar_select %p1455_p2, 1, 0 }
   0x8   : > { %p1326_p4 = pneg %p1455_p2  ;;  %s140_s19 = sshll.u32 %s1423_s18, 4  ;;  %s1473_s19 = int_to_ptr.vmem [resolvable:$true] %s140_s19 }
   0x9   : > { %s1350_s23 = scalar_lea.hbm %s1814_s1, 256 }
   0xa   : > { %p1469_p5 = pnand %p1461_p3, %p1326_p4  ;;  %p1351_p6 = scmp.ne.s32.totalorder %s1814_s1, %s1350_s23 }
   0xb   : > { %p1357_p10 = scmp.lt.u32.totalorder %s1350_s23, %s1814_s1 }
   0xc   : > { %p1352_p7 = pneg %p1469_p5 }
   0xe   : > { %p1353_p8 = pnand %p1352_p7, %p1351_p6 }
  0x10   : > { %p1354_p9 = pneg %p1353_p8 }
  0x12   : > { %p1359_p11 = pnand %p1357_p10, %p1354_p9 }
  0x14   : > { %1362 = shalt.err (!%p1359_p11)
}
  0x15   : > { %s1363_s28 = scalar_lea.vmem %s127_s15, 256  ;;  %p1371_p1 = scmp.lt.s32.totalorder %s127_s15, %s127_s15 }
  0x16   : > { %p1364_p12 = scmp.ne.s32.totalorder %s127_s15, %s1363_s28  ;;  %p1372_p4 = scmp.lt.s32.totalorder %s1363_s28, %s1363_s28 }
  0x18   : > { %p1366_p13 = pnand %p1364_p12, %p1352_p7  ;;  %p1373_p3 = por %p1372_p4, %p1371_p1 }
  0x1a   : > { %p1367_p0 = pneg %p1366_p13 }
  0x1c   : > { %p1374_p2 = pnand %p1373_p3, %p1367_p0 }
  0x1e   : > { %1377 = shalt.err (!%p1374_p2)
}
  0x1f   : > { %s1424_s29 = smov 128   ;;  %s1425_s30 = smov 8  }
  0x20   : > { %1329 = dma.hbm_to_vmem [thread:$0]  (!%p1469_p5), %s1814_s1, 256, %s127_s15, [#allocation3], %s1424_s29, %s1424_s29, %s1425_s30  }
  0x21   : > { %s1378_s8 = scalar_lea.hbm %s1815_s2, 16 }
  0x22   : > { %p1379_p6 = scmp.ne.s32.totalorder %s1815_s2, %s1378_s8  ;;  %p1385_p8 = scmp.lt.u32.totalorder %s1378_s8, %s1815_s2 }
  0x24   : > { %p1381_p2 = pnand %p1379_p6, %p1352_p7 }
  0x26   : > { %p1382_p3 = pneg %p1381_p2 }
  0x28   : > { %p1387_p9 = pnand %p1385_p8, %p1382_p3 }
  0x2a   : > { %1390 = shalt.err (!%p1387_p9)
}
  0x2b   : > { %s1391_s15 = scalar_lea.vmem %s1473_s19, 16  ;;  %s1398_s18 = scalar_lea.vmem %s1473_s19, 32 }
  0x2c   : > { %p1392_p10 = scmp.ne.s32.totalorder %s1473_s19, %s1391_s15  ;;  %p1399_p13 = scmp.lt.s32.totalorder %s1473_s19, %s1473_s19 }
  0x2d   : > { %p1400_p0 = scmp.lt.s32.totalorder %s1398_s18, %s1391_s15 }
  0x2e   : > { %p1394_p11 = pnand %p1392_p10, %p1352_p7 }
  0x2f   : > { %p1401_p1 = por %p1400_p0, %p1399_p13 }
  0x30   : > { %p1395_p12 = pneg %p1394_p11 }
  0x32   : > { %p1402_p4 = pnand %p1401_p1, %p1395_p12 }
  0x34   : > { %1405 = shalt.err (!%p1402_p4)
}
  0x35   : > { %1332 = dma.hbm_to_vmem [thread:$0]  (!%p1469_p5), %s1815_s2, 16, %s1473_s19, [#allocation5]  }
  0x36   : > { %p1823_p6 = scmp.ne.s32.totalorder %s1820_s16, 0 }
  0x37   : > { %p1824_p7 = scmp.ne.s32.totalorder (!%p1823_p6), %s1821_s17, 0 }
  0x38   : > { %162 = sbr.rel (%p1823_p6) target bundleno = 353 (0x161), region = 32 }
  0x3f   : > { %1411 = dma.done.wait (%p1824_p7), [#allocation3], 256  }
  0x40   : > { %1413 = vsyncadd (%p1824_p7), [#allocation3], 4294967040 }
  0x41   : > { %1415 = dma.done.wait (%p1824_p7), [#allocation5], 16  }
  0x42   : > { %1417 = vsyncadd (%p1824_p7), [#allocation5], 4294967280  ;;  %s1072_s20 = sshll.u32 %s1063_s13, 6  ;;  %vm468_vm0 = vcmask 1040384   ;;  %vm275_vm1 = vcmask 72704   ;;  %vm1426_vm2 = vmmov 1  }
  0x43   : > { %p191_p2 = scmp.lt.s32.totalorder %s1072_s20, 191  ;;  %vm1311_vm3 = vmpackc.low %vm468_vm0, %vm1426_vm2  ;;  %v266_v0 = vld [vmem:[#allocation2] sm:$0xff]  ;;  %v267_v1 = vld [vmem:[#allocation2 + $0x8] sm:$0x1] }
  0x44   : > { %v1310_v3 = vpack.c.bf16 %v267_v1, %v266_v0 }
  0x45   : > { %s1826_s20 = smov (!%p191_p2, %s1072_s20), 191 }
  0x46   : > { %s1073_s16 = sshll.u32 %s1826_s20, 3  ;;  %1312 = vmatprep.subr.msk.bf16.mxu0 %vm1311_vm3, %v1310_v3  ;;  %1316 = vmatprep.subr.msk.bf16.mxu1 %vm1311_vm3, %v1310_v3 }
  0x47   : > { %s1543_s24 = scalar_lea.vmem %s1813_s0, %s1073_s16  ;;  %1315 = vmatpush3.bf16.msk.msra.mxu0 %vm1311_vm3, %v1310_v3  ;;  %1317 = vmatpush3.bf16.msk.msra.mxu1 %vm1311_vm3, %v1310_v3  ;;  %v1673_v3 = vld [vmem:[#allocation4] ss:$0 sm:$0xff]  ;;  %s1682_s25 = scalar_lea.vmem %s1816_s3, %s1073_s16 }
  0x48   : > { %v202_v2 = vld [vmem:[%s1543_s24] sm:$0xff]  ;;  %v203_v5 = vld [vmem:[%s1543_s24 + $0x8] sm:$0xff]  ;;  %v204_v7 = vld [vmem:[%s1543_s24 + $0x10] sm:$0xff] }
  0x49   : > { %1214 = vmatprep.mubr.msk.f32.mxu0 %vm275_vm1, %v202_v2  ;;  %v234_v4 = vld [vmem:[%s1543_s24 + $0x100] sm:$0xff]  ;;  %v235_v6 = vld [vmem:[%s1543_s24 + $0x108] sm:$0xff]  ;;  %v236_v8 = vld [vmem:[%s1543_s24 + $0x110] sm:$0xff] }
  0x4a   : > { %1262 = vmatprep.mubr.msk.f32.mxu1 %vm275_vm1, %v234_v4  ;;  %1215 = vmatmul.mubr.msk.f32.vlgmr.msra.gmra.mrb[0].mxu0 %vm275_vm1, %v203_v5  ;;  %v205_v9 = vld [vmem:[%s1543_s24 + $0x18] sm:$0xff]  ;;  %v206_v11 = vld [vmem:[%s1543_s24 + $0x20] sm:$0xff]  ;;  %v207_v13 = vld [vmem:[%s1543_s24 + $0x28] sm:$0xff] }
  0x4b   : > { %1263 = vmatmul.mubr.msk.f32.vlgmr.msra.gmra.mrb[0].mxu1 %vm275_vm1, %v235_v6  ;;  %1217 = vmatprep.mubr.msk.f32.mxu0 %vm275_vm1, %v204_v7  ;;  %v237_v10 = vld [vmem:[%s1543_s24 + $0x118] sm:$0xff]  ;;  %v238_v12 = vld [vmem:[%s1543_s24 + $0x120] sm:$0xff]  ;;  %v239_v14 = vld [vmem:[%s1543_s24 + $0x128] sm:$0xff] }
  0x4c   : > { %1265 = vmatprep.mubr.msk.f32.mxu1 %vm275_vm1, %v236_v8  ;;  %v208_v15 = vld [vmem:[%s1543_s24 + $0x30] sm:$0xff]  ;;  %v209_v17 = vld [vmem:[%s1543_s24 + $0x38] sm:$0xff]  ;;  %v210_v19 = vld [vmem:[%s1543_s24 + $0x40] sm:$0xff] }
  0x4d   : > { %v240_v16 = vld [vmem:[%s1543_s24 + $0x130] sm:$0xff]  ;;  %v241_v18 = vld [vmem:[%s1543_s24 + $0x138] sm:$0xff]  ;;  %v242_v20 = vld [vmem:[%s1543_s24 + $0x140] sm:$0xff] }
  0x4e   : > { %1218 = vmatmul.mubr.msk.f32.gmra.mrb[2].mxu0 %vm275_vm1, %v205_v9  ;;  %v211_v21 = vld [vmem:[%s1543_s24 + $0x48] sm:$0xff]  ;;  %v212_v23 = vld [vmem:[%s1543_s24 + $0x50] sm:$0xff]  ;;  %v213_v25 = vld [vmem:[%s1543_s24 + $0x58] sm:$0xff] }
  0x4f   : > { %1266 = vmatmul.mubr.msk.f32.gmra.mrb[2].mxu1 %vm275_vm1, %v237_v10  ;;  %1220 = vmatprep.mubr.msk.f32.mxu0 %vm275_vm1, %v206_v11  ;;  %v243_v22 = vld [vmem:[%s1543_s24 + $0x148] sm:$0xff]  ;;  %v244_v24 = vld [vmem:[%s1543_s24 + $0x150] sm:$0xff]  ;;  %v245_v26 = vld [vmem:[%s1543_s24 + $0x158] sm:$0xff] }
  0x50   : > { %1268 = vmatprep.mubr.msk.f32.mxu1 %vm275_vm1, %v238_v12  ;;  %v214_v27 = vld [vmem:[%s1543_s24 + $0x60] sm:$0xff]  ;;  %v215_v29 = vld [vmem:[%s1543_s24 + $0x68] sm:$0xff]  ;;  %v216_v31 = vld [vmem:[%s1543_s24 + $0x70] sm:$0xff] }
  0x51   : > { %v246_v28 = vld [vmem:[%s1543_s24 + $0x160] sm:$0xff]  ;;  %v247_v30 = vld [vmem:[%s1543_s24 + $0x168] sm:$0xff]  ;;  %v248_v32 = vld [vmem:[%s1543_s24 + $0x170] sm:$0xff] }
  0x52   : > { %1221 = vmatmul.mubr.msk.f32.gmra.mrb[4].mxu0 %vm275_vm1, %v207_v13  ;;  %v217_v33 = vld [vmem:[%s1543_s24 + $0x78] sm:$0xff]  ;;  %v218_v35 = vld [vmem:[%s1543_s24 + $0x80] sm:$0xff]  ;;  %v219_v37 = vld [vmem:[%s1543_s24 + $0x88] sm:$0xff] }
  0x53   : > { %1269 = vmatmul.mubr.msk.f32.gmra.mrb[4].mxu1 %vm275_vm1, %v239_v14  ;;  %1223 = vmatprep.mubr.msk.f32.mxu0 %vm275_vm1, %v208_v15  ;;  %v249_v34 = vld [vmem:[%s1543_s24 + $0x178] sm:$0xff]  ;;  %v250_v36 = vld [vmem:[%s1543_s24 + $0x180] sm:$0xff]  ;;  %v251_v38 = vld [vmem:[%s1543_s24 + $0x188] sm:$0xff] }
  0x54   : > { %1271 = vmatprep.mubr.msk.f32.mxu1 %vm275_vm1, %v240_v16  ;;  %v220_v39 = vld [vmem:[%s1543_s24 + $0x90] sm:$0xff]  ;;  %v221_v41 = vld [vmem:[%s1543_s24 + $0x98] sm:$0xff]  ;;  %v222_v43 = vld [vmem:[%s1543_s24 + $0xa0] sm:$0xff] }
  0x55   : > { %v252_v40 = vld [vmem:[%s1543_s24 + $0x190] sm:$0xff]  ;;  %v253_v42 = vld [vmem:[%s1543_s24 + $0x198] sm:$0xff]  ;;  %v254_v44 = vld [vmem:[%s1543_s24 + $0x1a0] sm:$0xff] }
  0x56   : > { %1224 = vmatmul.mubr.msk.f32.gmra.mrb[6].mxu0 %vm275_vm1, %v209_v17  ;;  %v223_v45 = vld [vmem:[%s1543_s24 + $0xa8] sm:$0xff]  ;;  %v224_v47 = vld [vmem:[%s1543_s24 + $0xb0] sm:$0xff]  ;;  %v225_v49 = vld [vmem:[%s1543_s24 + $0xb8] sm:$0xff] }
  0x57   : > { %1272 = vmatmul.mubr.msk.f32.gmra.mrb[6].mxu1 %vm275_vm1, %v241_v18  ;;  %1226 = vmatprep.mubr.msk.f32.mxu0 %vm275_vm1, %v210_v19  ;;  %v255_v46 = vld [vmem:[%s1543_s24 + $0x1a8] sm:$0xff]  ;;  %v256_v48 = vld [vmem:[%s1543_s24 + $0x1b0] sm:$0xff]  ;;  %v257_v50 = vld [vmem:[%s1543_s24 + $0x1b8] sm:$0xff] }
  0x58   : > { %1274 = vmatprep.mubr.msk.f32.mxu1 %vm275_vm1, %v242_v20  ;;  %v226_v51 = vld [vmem:[%s1543_s24 + $0xc0] sm:$0xff]  ;;  %v227_v53 = vld [vmem:[%s1543_s24 + $0xc8] sm:$0xff]  ;;  %v228_v55 = vld [vmem:[%s1543_s24 + $0xd0] sm:$0xff] }
  0x59   : > { %v258_v52 = vld [vmem:[%s1543_s24 + $0x1c0] sm:$0xff]  ;;  %v259_v54 = vld [vmem:[%s1543_s24 + $0x1c8] sm:$0xff]  ;;  %v260_v56 = vld [vmem:[%s1543_s24 + $0x1d0] sm:$0xff] }
  0x5a   : > { %1227 = vmatmul.mubr.msk.f32.gmra.mrb[8].mxu0 %vm275_vm1, %v211_v21  ;;  %v229_v57 = vld [vmem:[%s1543_s24 + $0xd8] sm:$0xff]  ;;  %v230_v59 = vld [vmem:[%s1543_s24 + $0xe0] sm:$0xff]  ;;  %v231_v61 = vld [vmem:[%s1543_s24 + $0xe8] sm:$0xff] }
  0x5b   : > { %1275 = vmatmul.mubr.msk.f32.gmra.mrb[8].mxu1 %vm275_vm1, %v243_v22  ;;  %1229 = vmatprep.mubr.msk.f32.mxu0 %vm275_vm1, %v212_v23  ;;  %v261_v58 = vld [vmem:[%s1543_s24 + $0x1d8] sm:$0xff]  ;;  %v262_v60 = vld [vmem:[%s1543_s24 + $0x1e0] sm:$0xff]  ;;  %v263_v62 = vld [vmem:[%s1543_s24 + $0x1e8] sm:$0xff] }
  0x5c   : > { %1277 = vmatprep.mubr.msk.f32.mxu1 %vm275_vm1, %v244_v24  ;;  %v232_v63 = vld [vmem:[%s1543_s24 + $0xf0] sm:$0xff]  ;;  %v233_v1 = vld [vmem:[%s1543_s24 + $0xf8] sm:$0xff] }
  0x5d   : > { %v264_v0 = vld [vmem:[%s1543_s24 + $0x1f0] sm:$0xff]  ;;  %v265_v2 = vld [vmem:[%s1543_s24 + $0x1f8] sm:$0xff] }
  0x5e   : > { %1230 = vmatmul.mubr.msk.f32.gmra.mrb[10].mxu0 %vm275_vm1, %v213_v25 }
  0x5f   : > { %1278 = vmatmul.mubr.msk.f32.gmra.mrb[10].mxu1 %vm275_vm1, %v245_v26  ;;  %1232 = vmatprep.mubr.msk.f32.mxu0 %vm275_vm1, %v214_v27 }
  0x60   : > { %1280 = vmatprep.mubr.msk.f32.mxu1 %vm275_vm1, %v246_v28 }
  0x62   : > { %1233 = vmatmul.mubr.msk.f32.gmra.mrb[12].mxu0 %vm275_vm1, %v215_v29 }
  0x63   : > { %1281 = vmatmul.mubr.msk.f32.gmra.mrb[12].mxu1 %vm275_vm1, %v247_v30  ;;  %1235 = vmatprep.mubr.msk.f32.mxu0 %vm275_vm1, %v216_v31 }
  0x64   : > { %1283 = vmatprep.mubr.msk.f32.mxu1 %vm275_vm1, %v248_v32 }
  0x66   : > { %1236 = vmatmul.mubr.msk.f32.gmra.mrb[14].mxu0 %vm275_vm1, %v217_v33 }
  0x67   : > { %1284 = vmatmul.mubr.msk.f32.gmra.mrb[14].mxu1 %vm275_vm1, %v249_v34  ;;  %1238 = vmatprep.mubr.msk.f32.mxu0 %vm275_vm1, %v218_v35 }
  0x68   : > { %1286 = vmatprep.mubr.msk.f32.mxu1 %vm275_vm1, %v250_v36 }
  0x6a   : > { %1239 = vmatmul.mubr.msk.f32.gmra.mrb[16].mxu0 %vm275_vm1, %v219_v37 }
  0x6b   : > { %1287 = vmatmul.mubr.msk.f32.gmra.mrb[16].mxu1 %vm275_vm1, %v251_v38  ;;  %1241 = vmatprep.mubr.msk.f32.mxu0 %vm275_vm1, %v220_v39 }
  0x6c   : > { %1289 = vmatprep.mubr.msk.f32.mxu1 %vm275_vm1, %v252_v40 }
  0x6e   : > { %1242 = vmatmul.mubr.msk.f32.gmra.mrb[18].mxu0 %vm275_vm1, %v221_v41 }
  0x6f   : > { %1290 = vmatmul.mubr.msk.f32.gmra.mrb[18].mxu1 %vm275_vm1, %v253_v42  ;;  %1244 = vmatprep.mubr.msk.f32.mxu0 %vm275_vm1, %v222_v43 }
  0x70   : > { %1292 = vmatprep.mubr.msk.f32.mxu1 %vm275_vm1, %v254_v44 }
  0x72   : > { %1245 = vmatmul.mubr.msk.f32.gmra.mrb[20].mxu0 %vm275_vm1, %v223_v45 }
  0x73   : > { %1293 = vmatmul.mubr.msk.f32.gmra.mrb[20].mxu1 %vm275_vm1, %v255_v46  ;;  %1247 = vmatprep.mubr.msk.f32.mxu0 %vm275_vm1, %v224_v47 }
  0x74   : > { %1295 = vmatprep.mubr.msk.f32.mxu1 %vm275_vm1, %v256_v48 }
  0x76   : > { %1248 = vmatmul.mubr.msk.f32.gmra.mrb[22].mxu0 %vm275_vm1, %v225_v49 }
  0x77   : > { %1296 = vmatmul.mubr.msk.f32.gmra.mrb[22].mxu1 %vm275_vm1, %v257_v50  ;;  %1250 = vmatprep.mubr.msk.f32.mxu0 %vm275_vm1, %v226_v51 }
  0x78   : > { %1298 = vmatprep.mubr.msk.f32.mxu1 %vm275_vm1, %v258_v52 }
  0x7a   : > { %1251 = vmatmul.mubr.msk.f32.gmra.mrb[24].mxu0 %vm275_vm1, %v227_v53 }
  0x7b   : > { %1299 = vmatmul.mubr.msk.f32.gmra.mrb[24].mxu1 %vm275_vm1, %v259_v54  ;;  %1253 = vmatprep.mubr.msk.f32.mxu0 %vm275_vm1, %v228_v55 }
  0x7c   : > { %1301 = vmatprep.mubr.msk.f32.mxu1 %vm275_vm1, %v260_v56 }
  0x7e   : > { %1254 = vmatmul.mubr.msk.f32.gmra.mrb[26].mxu0 %vm275_vm1, %v229_v57 }
  0x7f   : > { %1302 = vmatmul.mubr.msk.f32.gmra.mrb[26].mxu1 %vm275_vm1, %v261_v58  ;;  %1256 = vmatprep.mubr.msk.f32.mxu0 %vm275_vm1, %v230_v59 }
  0x80   : > { %1304 = vmatprep.mubr.msk.f32.mxu1 %vm275_vm1, %v262_v60 }
  0x82   : > { %1257 = vmatmul.mubr.msk.f32.gmra.mrb[28].mxu0 %vm275_vm1, %v231_v61 }
  0x83   : > { %1305 = vmatmul.mubr.msk.f32.gmra.mrb[28].mxu1 %vm275_vm1, %v263_v62  ;;  %1259 = vmatprep.mubr.msk.f32.mxu0 %vm275_vm1, %v232_v63 }
  0x84   : > { %1307 = vmatprep.mubr.msk.f32.mxu1 %vm275_vm1, %v264_v0 }
  0x86   : > { %1260 = vmatmul.mubr.msk.f32.gmra.mrb[30].mxu0 %vm275_vm1, %v233_v1 }
  0x87   : > { %1308 = vmatmul.mubr.msk.f32.gmra.mrb[30].mxu1 %vm275_vm1, %v265_v2 }
 0x11d   : > { %v1216_v4 = vpop.f32.mrb[0].mxu0 }
 0x11e   : > { %v1264_v5 = vpop.f32.mrb[0].mxu1  ;;  %v544_v6 = vadd.f32 %v1216_v4, %v1673_v3  ;;  %v538_v8 = vpop.f32.mrb[1].mxu0 }
 0x11f   : > { %v704_v7 = vadd.f32 %v1264_v5, %v1673_v3  ;;  %v698_v9 = vpop.f32.mrb[1].mxu1  ;;  %v539_v10 = vadd.f32 %v1673_v3, %v538_v8 }
 0x120   : > { %v699_v11 = vadd.f32 %v1673_v3, %v698_v9  ;;  %v858_v12 = vmax.f32 %v544_v6, 0.0 }
 0x121   : > { %v890_v13 = vmax.f32 %v704_v7, 0.0  ;;  %v857_v14 = vmax.f32 %v539_v10, 0.0  ;;  %v1219_v16 = vpop.f32.mrb[2].mxu0 }
 0x122   : > { %v889_v15 = vmax.f32 %v699_v11, 0.0  ;;  %v1267_v17 = vpop.f32.mrb[2].mxu1  ;;  %922 = vst [vmem:[%s1682_s25 + $0x8] sm:$0xff] %v858_v12  ;;  %v554_v18 = vadd.f32 %v1219_v16, %v1673_v3  ;;  %v548_v20 = vpop.f32.mrb[3].mxu0 }
 0x123   : > { %954 = vst [vmem:[%s1682_s25 + $0x108] sm:$0xff] %v890_v13  ;;  %v714_v19 = vadd.f32 %v1267_v17, %v1673_v3  ;;  %v708_v21 = vpop.f32.mrb[3].mxu1  ;;  %921 = vst [vmem:[%s1682_s25] sm:$0xff] %v857_v14  ;;  %v549_v22 = vadd.f32 %v1673_v3, %v548_v20 }
 0x124   : > { %953 = vst [vmem:[%s1682_s25 + $0x100] sm:$0xff] %v889_v15  ;;  %v709_v23 = vadd.f32 %v1673_v3, %v708_v21  ;;  %v860_v24 = vmax.f32 %v554_v18, 0.0 }
 0x125   : > { %v892_v25 = vmax.f32 %v714_v19, 0.0  ;;  %v859_v26 = vmax.f32 %v549_v22, 0.0  ;;  %v1222_v28 = vpop.f32.mrb[4].mxu0 }
 0x126   : > { %v891_v27 = vmax.f32 %v709_v23, 0.0  ;;  %v1270_v29 = vpop.f32.mrb[4].mxu1  ;;  %924 = vst [vmem:[%s1682_s25 + $0x18] sm:$0xff] %v860_v24  ;;  %v564_v30 = vadd.f32 %v1222_v28, %v1673_v3  ;;  %v558_v32 = vpop.f32.mrb[5].mxu0 }
 0x127   : > { %956 = vst [vmem:[%s1682_s25 + $0x118] sm:$0xff] %v892_v25  ;;  %v724_v31 = vadd.f32 %v1270_v29, %v1673_v3  ;;  %v718_v33 = vpop.f32.mrb[5].mxu1  ;;  %923 = vst [vmem:[%s1682_s25 + $0x10] sm:$0xff] %v859_v26  ;;  %v559_v34 = vadd.f32 %v1673_v3, %v558_v32 }
 0x128   : > { %955 = vst [vmem:[%s1682_s25 + $0x110] sm:$0xff] %v891_v27  ;;  %v719_v35 = vadd.f32 %v1673_v3, %v718_v33  ;;  %v862_v36 = vmax.f32 %v564_v30, 0.0 }
 0x129   : > { %v894_v37 = vmax.f32 %v724_v31, 0.0  ;;  %v861_v38 = vmax.f32 %v559_v34, 0.0  ;;  %v1225_v40 = vpop.f32.mrb[6].mxu0 }
 0x12a   : > { %v893_v39 = vmax.f32 %v719_v35, 0.0  ;;  %v1273_v41 = vpop.f32.mrb[6].mxu1  ;;  %926 = vst [vmem:[%s1682_s25 + $0x28] sm:$0xff] %v862_v36  ;;  %v574_v42 = vadd.f32 %v1225_v40, %v1673_v3  ;;  %v568_v44 = vpop.f32.mrb[7].mxu0 }
 0x12b   : > { %958 = vst [vmem:[%s1682_s25 + $0x128] sm:$0xff] %v894_v37  ;;  %v734_v43 = vadd.f32 %v1273_v41, %v1673_v3  ;;  %v728_v45 = vpop.f32.mrb[7].mxu1  ;;  %925 = vst [vmem:[%s1682_s25 + $0x20] sm:$0xff] %v861_v38  ;;  %v569_v46 = vadd.f32 %v1673_v3, %v568_v44 }
 0x12c   : > { %957 = vst [vmem:[%s1682_s25 + $0x120] sm:$0xff] %v893_v39  ;;  %v729_v47 = vadd.f32 %v1673_v3, %v728_v45  ;;  %v864_v48 = vmax.f32 %v574_v42, 0.0 }
 0x12d   : > { %v896_v49 = vmax.f32 %v734_v43, 0.0  ;;  %v863_v50 = vmax.f32 %v569_v46, 0.0  ;;  %v1228_v52 = vpop.f32.mrb[8].mxu0 }
 0x12e   : > { %v895_v51 = vmax.f32 %v729_v47, 0.0  ;;  %v1276_v53 = vpop.f32.mrb[8].mxu1  ;;  %928 = vst [vmem:[%s1682_s25 + $0x38] sm:$0xff] %v864_v48  ;;  %v584_v54 = vadd.f32 %v1228_v52, %v1673_v3  ;;  %v578_v56 = vpop.f32.mrb[9].mxu0 }
 0x12f   : > { %960 = vst [vmem:[%s1682_s25 + $0x138] sm:$0xff] %v896_v49  ;;  %v744_v55 = vadd.f32 %v1276_v53, %v1673_v3  ;;  %v738_v57 = vpop.f32.mrb[9].mxu1  ;;  %927 = vst [vmem:[%s1682_s25 + $0x30] sm:$0xff] %v863_v50  ;;  %v579_v58 = vadd.f32 %v1673_v3, %v578_v56 }
 0x130   : > { %959 = vst [vmem:[%s1682_s25 + $0x130] sm:$0xff] %v895_v51  ;;  %v739_v59 = vadd.f32 %v1673_v3, %v738_v57  ;;  %v866_v60 = vmax.f32 %v584_v54, 0.0 }
 0x131   : > { %v898_v61 = vmax.f32 %v744_v55, 0.0  ;;  %v865_v62 = vmax.f32 %v579_v58, 0.0  ;;  %v1231_v0 = vpop.f32.mrb[10].mxu0 }
 0x132   : > { %v897_v63 = vmax.f32 %v739_v59, 0.0  ;;  %v1279_v1 = vpop.f32.mrb[10].mxu1  ;;  %930 = vst [vmem:[%s1682_s25 + $0x48] sm:$0xff] %v866_v60  ;;  %v594_v2 = vadd.f32 %v1231_v0, %v1673_v3  ;;  %v588_v5 = vpop.f32.mrb[11].mxu0 }
 0x133   : > { %962 = vst [vmem:[%s1682_s25 + $0x148] sm:$0xff] %v898_v61  ;;  %v754_v4 = vadd.f32 %v1279_v1, %v1673_v3  ;;  %v748_v6 = vpop.f32.mrb[11].mxu1  ;;  %929 = vst [vmem:[%s1682_s25 + $0x40] sm:$0xff] %v865_v62  ;;  %v589_v7 = vadd.f32 %v1673_v3, %v588_v5 }
 0x134   : > { %961 = vst [vmem:[%s1682_s25 + $0x140] sm:$0xff] %v897_v63  ;;  %v749_v8 = vadd.f32 %v1673_v3, %v748_v6  ;;  %v868_v9 = vmax.f32 %v594_v2, 0.0 }
 0x135   : > { %v900_v10 = vmax.f32 %v754_v4, 0.0  ;;  %v867_v11 = vmax.f32 %v589_v7, 0.0  ;;  %v1234_v13 = vpop.f32.mrb[12].mxu0 }
 0x136   : > { %v899_v12 = vmax.f32 %v749_v8, 0.0  ;;  %v1282_v14 = vpop.f32.mrb[12].mxu1  ;;  %932 = vst [vmem:[%s1682_s25 + $0x58] sm:$0xff] %v868_v9  ;;  %v604_v15 = vadd.f32 %v1234_v13, %v1673_v3  ;;  %v598_v17 = vpop.f32.mrb[13].mxu0 }
 0x137   : > { %964 = vst [vmem:[%s1682_s25 + $0x158] sm:$0xff] %v900_v10  ;;  %v764_v16 = vadd.f32 %v1282_v14, %v1673_v3  ;;  %v758_v18 = vpop.f32.mrb[13].mxu1  ;;  %931 = vst [vmem:[%s1682_s25 + $0x50] sm:$0xff] %v867_v11  ;;  %v599_v19 = vadd.f32 %v1673_v3, %v598_v17 }
 0x138   : > { %963 = vst [vmem:[%s1682_s25 + $0x150] sm:$0xff] %v899_v12  ;;  %v759_v20 = vadd.f32 %v1673_v3, %v758_v18  ;;  %v870_v21 = vmax.f32 %v604_v15, 0.0 }
 0x139   : > { %v902_v22 = vmax.f32 %v764_v16, 0.0  ;;  %v869_v23 = vmax.f32 %v599_v19, 0.0  ;;  %v1237_v25 = vpop.f32.mrb[14].mxu0 }
 0x13a   : > { %v901_v24 = vmax.f32 %v759_v20, 0.0  ;;  %v1285_v26 = vpop.f32.mrb[14].mxu1  ;;  %934 = vst [vmem:[%s1682_s25 + $0x68] sm:$0xff] %v870_v21  ;;  %v614_v27 = vadd.f32 %v1237_v25, %v1673_v3  ;;  %v608_v29 = vpop.f32.mrb[15].mxu0 }
 0x13b   : > { %966 = vst [vmem:[%s1682_s25 + $0x168] sm:$0xff] %v902_v22  ;;  %v774_v28 = vadd.f32 %v1285_v26, %v1673_v3  ;;  %v768_v30 = vpop.f32.mrb[15].mxu1  ;;  %933 = vst [vmem:[%s1682_s25 + $0x60] sm:$0xff] %v869_v23  ;;  %v609_v31 = vadd.f32 %v1673_v3, %v608_v29 }
 0x13c   : > { %965 = vst [vmem:[%s1682_s25 + $0x160] sm:$0xff] %v901_v24  ;;  %v769_v32 = vadd.f32 %v1673_v3, %v768_v30  ;;  %v872_v33 = vmax.f32 %v614_v27, 0.0 }
 0x13d   : > { %v904_v34 = vmax.f32 %v774_v28, 0.0  ;;  %v871_v35 = vmax.f32 %v609_v31, 0.0  ;;  %v1240_v37 = vpop.f32.mrb[16].mxu0 }
 0x13e   : > { %v903_v36 = vmax.f32 %v769_v32, 0.0  ;;  %v1288_v38 = vpop.f32.mrb[16].mxu1  ;;  %936 = vst [vmem:[%s1682_s25 + $0x78] sm:$0xff] %v872_v33  ;;  %v624_v39 = vadd.f32 %v1240_v37, %v1673_v3  ;;  %v618_v41 = vpop.f32.mrb[17].mxu0 }
 0x13f   : > { %968 = vst [vmem:[%s1682_s25 + $0x178] sm:$0xff] %v904_v34  ;;  %v784_v40 = vadd.f32 %v1288_v38, %v1673_v3  ;;  %v778_v42 = vpop.f32.mrb[17].mxu1  ;;  %935 = vst [vmem:[%s1682_s25 + $0x70] sm:$0xff] %v871_v35  ;;  %v619_v43 = vadd.f32 %v1673_v3, %v618_v41 }
 0x140   : > { %967 = vst [vmem:[%s1682_s25 + $0x170] sm:$0xff] %v903_v36  ;;  %v779_v44 = vadd.f32 %v1673_v3, %v778_v42  ;;  %v874_v45 = vmax.f32 %v624_v39, 0.0 }
 0x141   : > { %v906_v46 = vmax.f32 %v784_v40, 0.0  ;;  %v873_v47 = vmax.f32 %v619_v43, 0.0  ;;  %v1243_v49 = vpop.f32.mrb[18].mxu0 }
 0x142   : > { %v905_v48 = vmax.f32 %v779_v44, 0.0  ;;  %v1291_v50 = vpop.f32.mrb[18].mxu1  ;;  %938 = vst [vmem:[%s1682_s25 + $0x88] sm:$0xff] %v874_v45  ;;  %v634_v51 = vadd.f32 %v1243_v49, %v1673_v3  ;;  %v628_v53 = vpop.f32.mrb[19].mxu0 }
 0x143   : > { %970 = vst [vmem:[%s1682_s25 + $0x188] sm:$0xff] %v906_v46  ;;  %v794_v52 = vadd.f32 %v1291_v50, %v1673_v3  ;;  %v788_v54 = vpop.f32.mrb[19].mxu1  ;;  %937 = vst [vmem:[%s1682_s25 + $0x80] sm:$0xff] %v873_v47  ;;  %v629_v55 = vadd.f32 %v1673_v3, %v628_v53 }
 0x144   : > { %969 = vst [vmem:[%s1682_s25 + $0x180] sm:$0xff] %v905_v48  ;;  %v789_v56 = vadd.f32 %v1673_v3, %v788_v54  ;;  %v876_v57 = vmax.f32 %v634_v51, 0.0 }
 0x145   : > { %v908_v58 = vmax.f32 %v794_v52, 0.0  ;;  %v875_v59 = vmax.f32 %v629_v55, 0.0  ;;  %v1246_v61 = vpop.f32.mrb[20].mxu0 }
 0x146   : > { %v907_v60 = vmax.f32 %v789_v56, 0.0  ;;  %v1294_v62 = vpop.f32.mrb[20].mxu1  ;;  %940 = vst [vmem:[%s1682_s25 + $0x98] sm:$0xff] %v876_v57  ;;  %v644_v63 = vadd.f32 %v1246_v61, %v1673_v3  ;;  %v638_v1 = vpop.f32.mrb[21].mxu0 }
 0x147   : > { %972 = vst [vmem:[%s1682_s25 + $0x198] sm:$0xff] %v908_v58  ;;  %v804_v0 = vadd.f32 %v1294_v62, %v1673_v3  ;;  %v798_v2 = vpop.f32.mrb[21].mxu1  ;;  %939 = vst [vmem:[%s1682_s25 + $0x90] sm:$0xff] %v875_v59  ;;  %v639_v4 = vadd.f32 %v1673_v3, %v638_v1 }
 0x148   : > { %971 = vst [vmem:[%s1682_s25 + $0x190] sm:$0xff] %v907_v60  ;;  %v799_v5 = vadd.f32 %v1673_v3, %v798_v2  ;;  %v878_v6 = vmax.f32 %v644_v63, 0.0 }
 0x149   : > { %v910_v7 = vmax.f32 %v804_v0, 0.0  ;;  %v877_v8 = vmax.f32 %v639_v4, 0.0  ;;  %v1249_v10 = vpop.f32.mrb[22].mxu0 }
 0x14a   : > { %v909_v9 = vmax.f32 %v799_v5, 0.0  ;;  %v1297_v11 = vpop.f32.mrb[22].mxu1  ;;  %942 = vst [vmem:[%s1682_s25 + $0xa8] sm:$0xff] %v878_v6  ;;  %v654_v12 = vadd.f32 %v1249_v10, %v1673_v3  ;;  %v648_v14 = vpop.f32.mrb[23].mxu0 }
 0x14b   : > { %974 = vst [vmem:[%s1682_s25 + $0x1a8] sm:$0xff] %v910_v7  ;;  %v814_v13 = vadd.f32 %v1297_v11, %v1673_v3  ;;  %v808_v15 = vpop.f32.mrb[23].mxu1  ;;  %941 = vst [vmem:[%s1682_s25 + $0xa0] sm:$0xff] %v877_v8  ;;  %v649_v16 = vadd.f32 %v1673_v3, %v648_v14 }
 0x14c   : > { %973 = vst [vmem:[%s1682_s25 + $0x1a0] sm:$0xff] %v909_v9  ;;  %v809_v17 = vadd.f32 %v1673_v3, %v808_v15  ;;  %v880_v18 = vmax.f32 %v654_v12, 0.0 }
 0x14d   : > { %v912_v19 = vmax.f32 %v814_v13, 0.0  ;;  %v879_v20 = vmax.f32 %v649_v16, 0.0  ;;  %v1252_v22 = vpop.f32.mrb[24].mxu0 }
 0x14e   : > { %v911_v21 = vmax.f32 %v809_v17, 0.0  ;;  %v1300_v23 = vpop.f32.mrb[24].mxu1  ;;  %944 = vst [vmem:[%s1682_s25 + $0xb8] sm:$0xff] %v880_v18  ;;  %v664_v24 = vadd.f32 %v1252_v22, %v1673_v3  ;;  %v658_v26 = vpop.f32.mrb[25].mxu0 }
 0x14f   : > { %976 = vst [vmem:[%s1682_s25 + $0x1b8] sm:$0xff] %v912_v19  ;;  %v824_v25 = vadd.f32 %v1300_v23, %v1673_v3  ;;  %v818_v27 = vpop.f32.mrb[25].mxu1  ;;  %943 = vst [vmem:[%s1682_s25 + $0xb0] sm:$0xff] %v879_v20  ;;  %v659_v28 = vadd.f32 %v1673_v3, %v658_v26 }
 0x150   : > { %975 = vst [vmem:[%s1682_s25 + $0x1b0] sm:$0xff] %v911_v21  ;;  %v819_v29 = vadd.f32 %v1673_v3, %v818_v27  ;;  %v882_v30 = vmax.f32 %v664_v24, 0.0 }
 0x151   : > { %v914_v31 = vmax.f32 %v824_v25, 0.0  ;;  %v881_v32 = vmax.f32 %v659_v28, 0.0  ;;  %v1255_v34 = vpop.f32.mrb[26].mxu0 }
 0x152   : > { %v913_v33 = vmax.f32 %v819_v29, 0.0  ;;  %v1303_v35 = vpop.f32.mrb[26].mxu1  ;;  %946 = vst [vmem:[%s1682_s25 + $0xc8] sm:$0xff] %v882_v30  ;;  %v674_v36 = vadd.f32 %v1255_v34, %v1673_v3  ;;  %v668_v38 = vpop.f32.mrb[27].mxu0 }
 0x153   : > { %978 = vst [vmem:[%s1682_s25 + $0x1c8] sm:$0xff] %v914_v31  ;;  %v834_v37 = vadd.f32 %v1303_v35, %v1673_v3  ;;  %v828_v39 = vpop.f32.mrb[27].mxu1  ;;  %945 = vst [vmem:[%s1682_s25 + $0xc0] sm:$0xff] %v881_v32  ;;  %v669_v40 = vadd.f32 %v1673_v3, %v668_v38 }
 0x154   : > { %977 = vst [vmem:[%s1682_s25 + $0x1c0] sm:$0xff] %v913_v33  ;;  %v829_v41 = vadd.f32 %v1673_v3, %v828_v39  ;;  %v884_v42 = vmax.f32 %v674_v36, 0.0 }
 0x155   : > { %v916_v43 = vmax.f32 %v834_v37, 0.0  ;;  %v883_v44 = vmax.f32 %v669_v40, 0.0  ;;  %v1258_v46 = vpop.f32.mrb[28].mxu0 }
 0x156   : > { %v915_v45 = vmax.f32 %v829_v41, 0.0  ;;  %v1306_v47 = vpop.f32.mrb[28].mxu1  ;;  %948 = vst [vmem:[%s1682_s25 + $0xd8] sm:$0xff] %v884_v42  ;;  %v684_v48 = vadd.f32 %v1258_v46, %v1673_v3  ;;  %v678_v50 = vpop.f32.mrb[29].mxu0 }
 0x157   : > { %980 = vst [vmem:[%s1682_s25 + $0x1d8] sm:$0xff] %v916_v43  ;;  %v844_v49 = vadd.f32 %v1306_v47, %v1673_v3  ;;  %v838_v51 = vpop.f32.mrb[29].mxu1  ;;  %947 = vst [vmem:[%s1682_s25 + $0xd0] sm:$0xff] %v883_v44  ;;  %v679_v52 = vadd.f32 %v1673_v3, %v678_v50 }
 0x158   : > { %979 = vst [vmem:[%s1682_s25 + $0x1d0] sm:$0xff] %v915_v45  ;;  %v839_v53 = vadd.f32 %v1673_v3, %v838_v51  ;;  %v886_v54 = vmax.f32 %v684_v48, 0.0 }
 0x159   : > { %v918_v55 = vmax.f32 %v844_v49, 0.0  ;;  %v885_v56 = vmax.f32 %v679_v52, 0.0  ;;  %v1261_v58 = vpop.f32.mrb[30].mxu0 }
 0x15a   : > { %v917_v57 = vmax.f32 %v839_v53, 0.0  ;;  %v1309_v59 = vpop.f32.mrb[30].mxu1  ;;  %950 = vst [vmem:[%s1682_s25 + $0xe8] sm:$0xff] %v886_v54  ;;  %v694_v60 = vadd.f32 %v1261_v58, %v1673_v3  ;;  %v688_v62 = vpop.f32.mrb[31].mxu0 }
 0x15b   : > { %982 = vst [vmem:[%s1682_s25 + $0x1e8] sm:$0xff] %v918_v55  ;;  %v854_v61 = vadd.f32 %v1309_v59, %v1673_v3  ;;  %v848_v63 = vpop.f32.mrb[31].mxu1  ;;  %949 = vst [vmem:[%s1682_s25 + $0xe0] sm:$0xff] %v885_v56  ;;  %v689_v0 = vadd.f32 %v1673_v3, %v688_v62 }
 0x15c   : > { %981 = vst [vmem:[%s1682_s25 + $0x1e0] sm:$0xff] %v917_v57  ;;  %v849_v1 = vadd.f32 %v1673_v3, %v848_v63  ;;  %v888_v2 = vmax.f32 %v694_v60, 0.0 }
 0x15d   : > { %v920_v4 = vmax.f32 %v854_v61, 0.0  ;;  %v887_v5 = vmax.f32 %v689_v0, 0.0 }
 0x15e   : > { %v919_v6 = vmax.f32 %v849_v1, 0.0  ;;  %952 = vst [vmem:[%s1682_s25 + $0xf8] sm:$0xff] %v888_v2 }
 0x15f   : > { %984 = vst [vmem:[%s1682_s25 + $0x1f8] sm:$0xff] %v920_v4  ;;  %951 = vst [vmem:[%s1682_s25 + $0xf0] sm:$0xff] %v887_v5 }
 0x160   : > { %983 = vst [vmem:[%s1682_s25 + $0x1f0] sm:$0xff] %v919_v6 }
 0x161 PF: > { %s15_s12 = sadd.s32 1, %s1420_s12  }
 0x162   : > { %p12_p5 = scmp.ge.s32.totalorder %s15_s12, 5  }
 0x164   :  { %14 = sbr.rel (!%p12_p5) target bundleno = 2 (0x2), region = 71 }
 0x16b   :  { %1007 = vsyncpa [#allocation3], 1 }
 0x16c   :  { %1009 = vsyncpa [#allocation3 + $0x1], 1 }
 0x16d   :  { %1010 = vsyncpa [#allocation5], 1 }

// kernel: net_forward.6
= control target key start
LH: loop header
LB: loop body
LE: loop exit
PB: predicated region body
PF: predicated region fallthrough
CT: control target
= control target key end

     0   :  { %s556_s15 = smov 0   ;;  %s682_s0 = inlined_call_operand.vmem [shape: f32[288,128], index: 0, kind: input, shape index: {}]   ;;  %s683_s1 = inlined_call_operand.vmem [shape: f32[288,128], index: 1, kind: input, shape index: {}]   ;;  %s684_s2 = inlined_call_operand.vmem [shape: f32[288,128], index: 2, kind: input, shape index: {}]   ;;  %s685_s3 = inlined_call_operand.vmem [shape: f32[288,128], index: 3, kind: input, shape index: {}]   ;;  %s686_s4 = inlined_call_operand.vmem [shape: f32[288,128], index: 4, kind: output, shape index: {}]  }
   0x1 LB: > { %s503_s16 = sadd.s32 4294967295, %s529_s15   ;;  %p507_p0 = scmp.ge.s32.totalorder %s529_s15, 1  ;;  %s529_s15 = sphi %s556_s15, %s14_s15  }
   0x2   : > { %p196_p1 = scmp.lt.s32.totalorder %s529_s15, 3 }
   0x4   : > { %p197_p2 = pnand %p507_p0, %p196_p1 }
   0x5   : > { %s237_s17 = smul.u32 (!%p197_p2), 18, %s503_s16 }
   0x6   : > { %200 = sbr.rel (%p197_p2) target bundleno = 47 (0x2f), region = 36 }
   0x7   : > { %p238_p3 = scmp.lt.s32.totalorder (!%p197_p2), %s237_s17, 35 }
   0xd   : > { %s688_s17 = smov (!%p238_p3, %s237_s17), 35 }
   0xe   : > { %s508_s18 = sshll.u32 %s688_s17, 3 }
   0xf   : > { %s567_s21 = scalar_lea.vmem %s682_s0, %s508_s18  ;;  %s572_s24 = scalar_lea.vmem %s683_s1, %s508_s18 }
  0x10   : > { %s577_s27 = scalar_lea.vmem %s684_s2, %s508_s18  ;;  %s582_s30 = scalar_lea.vmem %s685_s3, %s508_s18  ;;  %v267_v0 = vld [vmem:[%s567_s21] sm:$0xff]  ;;  %v268_v2 = vld [vmem:[%s567_s21 + $0x8] sm:$0xff]  ;;  %v269_v11 = vld [vmem:[%s567_s21 + $0x10] sm:$0xff] }
  0x11   : > { %v285_v1 = vld [vmem:[%s572_s24] sm:$0xff]  ;;  %v286_v6 = vld [vmem:[%s572_s24 + $0x8] sm:$0xff]  ;;  %s596_s7 = scalar_lea.vmem %s686_s4, %s508_s18  ;;  %v287_v13 = vld [vmem:[%s572_s24 + $0x10] sm:$0xff] }
  0x12   : > { %v303_v3 = vmax.f32 %v267_v0, %v285_v1  ;;  %v321_v4 = vld [vmem:[%s577_s27] sm:$0xff]  ;;  %v304_v8 = vmax.f32 %v268_v2, %v286_v6  ;;  %v322_v9 = vld [vmem:[%s577_s27 + $0x8] sm:$0xff]  ;;  %v323_v14 = vld [vmem:[%s577_s27 + $0x10] sm:$0xff]  ;;  %v305_v17 = vmax.f32 %v269_v11, %v287_v13 }
  0x13   : > { %v339_v5 = vld [vmem:[%s582_s30] sm:$0xff]  ;;  %v340_v10 = vld [vmem:[%s582_s30 + $0x8] sm:$0xff]  ;;  %v341_v15 = vld [vmem:[%s582_s30 + $0x10] sm:$0xff] }
  0x14   : > { %v357_v7 = vmax.f32 %v321_v4, %v339_v5  ;;  %v358_v12 = vmax.f32 %v322_v9, %v340_v10  ;;  %v359_v18 = vmax.f32 %v323_v14, %v341_v15  ;;  %v270_v19 = vld [vmem:[%s567_s21 + $0x18] sm:$0xff]  ;;  %v271_v25 = vld [vmem:[%s567_s21 + $0x20] sm:$0xff]  ;;  %v272_v32 = vld [vmem:[%s567_s21 + $0x28] sm:$0xff] }
  0x15   : > { %v288_v20 = vld [vmem:[%s572_s24 + $0x18] sm:$0xff]  ;;  %v289_v26 = vld [vmem:[%s572_s24 + $0x20] sm:$0xff]  ;;  %v290_v34 = vld [vmem:[%s572_s24 + $0x28] sm:$0xff] }
  0x16   : > { %v375_v16 = vmax.f32 %v303_v3, %v357_v7  ;;  %v324_v21 = vld [vmem:[%s577_s27 + $0x18] sm:$0xff]  ;;  %v376_v22 = vmax.f32 %v304_v8, %v358_v12  ;;  %v306_v23 = vmax.f32 %v270_v19, %v288_v20  ;;  %v377_v27 = vmax.f32 %v305_v17, %v359_v18  ;;  %v325_v30 = vld [vmem:[%s577_s27 + $0x20] sm:$0xff]  ;;  %v326_v35 = vld [vmem:[%s577_s27 + $0x28] sm:$0xff] }
  0x17   : > { %v342_v24 = vld [vmem:[%s582_s30 + $0x18] sm:$0xff]  ;;  %v307_v29 = vmax.f32 %v271_v25, %v289_v26  ;;  %v343_v31 = vld [vmem:[%s582_s30 + $0x20] sm:$0xff]  ;;  %v344_v36 = vld [vmem:[%s582_s30 + $0x28] sm:$0xff]  ;;  %v308_v38 = vmax.f32 %v272_v32, %v290_v34 }
  0x18   : > { %393 = vst [vmem:[%s596_s7] sm:$0xff] %v375_v16  ;;  %v360_v28 = vmax.f32 %v324_v21, %v342_v24  ;;  %394 = vst [vmem:[%s596_s7 + $0x8] sm:$0xff] %v376_v22  ;;  %v361_v33 = vmax.f32 %v325_v30, %v343_v31  ;;  %v362_v39 = vmax.f32 %v326_v35, %v344_v36  ;;  %v273_v40 = vld [vmem:[%s567_s21 + $0x30] sm:$0xff]  ;;  %v274_v46 = vld [vmem:[%s567_s21 + $0x38] sm:$0xff] }
  0x19   : > { %395 = vst [vmem:[%s596_s7 + $0x10] sm:$0xff] %v377_v27  ;;  %v291_v41 = vld [vmem:[%s572_s24 + $0x30] sm:$0xff]  ;;  %v292_v47 = vld [vmem:[%s572_s24 + $0x38] sm:$0xff]  ;;  %v275_v53 = vld [vmem:[%s567_s21 + $0x40] sm:$0xff] }
  0x1a   : > { %v378_v37 = vmax.f32 %v306_v23, %v360_v28  ;;  %v327_v42 = vld [vmem:[%s577_s27 + $0x30] sm:$0xff]  ;;  %v379_v43 = vmax.f32 %v307_v29, %v361_v33  ;;  %v309_v44 = vmax.f32 %v273_v40, %v291_v41  ;;  %v380_v48 = vmax.f32 %v308_v38, %v362_v39  ;;  %v328_v51 = vld [vmem:[%s577_s27 + $0x38] sm:$0xff]  ;;  %v293_v55 = vld [vmem:[%s572_s24 + $0x40] sm:$0xff] }
  0x1b   : > { %v345_v45 = vld [vmem:[%s582_s30 + $0x30] sm:$0xff]  ;;  %v310_v50 = vmax.f32 %v274_v46, %v292_v47  ;;  %v346_v52 = vld [vmem:[%s582_s30 + $0x38] sm:$0xff]  ;;  %v329_v56 = vld [vmem:[%s577_s27 + $0x40] sm:$0xff]  ;;  %v311_v59 = vmax.f32 %v275_v53, %v293_v55 }
  0x1c   : > { %396 = vst [vmem:[%s596_s7 + $0x18] sm:$0xff] %v378_v37  ;;  %v363_v49 = vmax.f32 %v327_v42, %v345_v45  ;;  %397 = vst [vmem:[%s596_s7 + $0x20] sm:$0xff] %v379_v43  ;;  %v364_v54 = vmax.f32 %v328_v51, %v346_v52  ;;  %v347_v57 = vld [vmem:[%s582_s30 + $0x40] sm:$0xff]  ;;  %v276_v61 = vld [vmem:[%s567_s21 + $0x48] sm:$0xff] }
  0x1d   : > { %398 = vst [vmem:[%s596_s7 + $0x28] sm:$0xff] %v380_v48  ;;  %v365_v60 = vmax.f32 %v329_v56, %v347_v57  ;;  %v294_v62 = vld [vmem:[%s572_s24 + $0x48] sm:$0xff]  ;;  %v277_v3 = vld [vmem:[%s567_s21 + $0x50] sm:$0xff]  ;;  %v278_v10 = vld [vmem:[%s567_s21 + $0x58] sm:$0xff] }
  0x1e   : > { %v381_v58 = vmax.f32 %v309_v44, %v363_v49  ;;  %v330_v63 = vld [vmem:[%s577_s27 + $0x48] sm:$0xff]  ;;  %v382_v0 = vmax.f32 %v310_v50, %v364_v54  ;;  %v312_v1 = vmax.f32 %v276_v61, %v294_v62  ;;  %v295_v4 = vld [vmem:[%s572_s24 + $0x50] sm:$0xff]  ;;  %v296_v12 = vld [vmem:[%s572_s24 + $0x58] sm:$0xff] }
  0x1f   : > { %v348_v2 = vld [vmem:[%s582_s30 + $0x48] sm:$0xff]  ;;  %v383_v5 = vmax.f32 %v311_v59, %v365_v60  ;;  %v313_v7 = vmax.f32 %v277_v3, %v295_v4  ;;  %v331_v8 = vld [vmem:[%s577_s27 + $0x50] sm:$0xff]  ;;  %v332_v13 = vld [vmem:[%s577_s27 + $0x58] sm:$0xff]  ;;  %v314_v16 = vmax.f32 %v278_v10, %v296_v12 }
  0x20   : > { %399 = vst [vmem:[%s596_s7 + $0x30] sm:$0xff] %v381_v58  ;;  %v366_v6 = vmax.f32 %v330_v63, %v348_v2  ;;  %v349_v9 = vld [vmem:[%s582_s30 + $0x50] sm:$0xff]  ;;  %400 = vst [vmem:[%s596_s7 + $0x38] sm:$0xff] %v382_v0  ;;  %v350_v14 = vld [vmem:[%s582_s30 + $0x58] sm:$0xff] }
  0x21   : > { %v367_v11 = vmax.f32 %v331_v8, %v349_v9  ;;  %401 = vst [vmem:[%s596_s7 + $0x40] sm:$0xff] %v383_v5  ;;  %v368_v17 = vmax.f32 %v332_v13, %v350_v14  ;;  %v279_v18 = vld [vmem:[%s567_s21 + $0x60] sm:$0xff]  ;;  %v280_v24 = vld [vmem:[%s567_s21 + $0x68] sm:$0xff]  ;;  %v281_v31 = vld [vmem:[%s567_s21 + $0x70] sm:$0xff] }
  0x22   : > { %v384_v15 = vmax.f32 %v312_v1, %v366_v6  ;;  %v297_v19 = vld [vmem:[%s572_s24 + $0x60] sm:$0xff]  ;;  %v298_v25 = vld [vmem:[%s572_s24 + $0x68] sm:$0xff]  ;;  %v299_v33 = vld [vmem:[%s572_s24 + $0x70] sm:$0xff] }
  0x23   : > { %v333_v20 = vld [vmem:[%s577_s27 + $0x60] sm:$0xff]  ;;  %v385_v21 = vmax.f32 %v313_v7, %v367_v11  ;;  %v315_v22 = vmax.f32 %v279_v18, %v297_v19  ;;  %v386_v26 = vmax.f32 %v314_v16, %v368_v17  ;;  %v316_v28 = vmax.f32 %v280_v24, %v298_v25  ;;  %v334_v29 = vld [vmem:[%s577_s27 + $0x68] sm:$0xff]  ;;  %v335_v34 = vld [vmem:[%s577_s27 + $0x70] sm:$0xff] }
  0x24   : > { %v351_v23 = vld [vmem:[%s582_s30 + $0x60] sm:$0xff]  ;;  %402 = vst [vmem:[%s596_s7 + $0x48] sm:$0xff] %v384_v15  ;;  %v352_v30 = vld [vmem:[%s582_s30 + $0x68] sm:$0xff]  ;;  %v353_v35 = vld [vmem:[%s582_s30 + $0x70] sm:$0xff]  ;;  %v317_v37 = vmax.f32 %v281_v31, %v299_v33 }
  0x25   : > { %v369_v27 = vmax.f32 %v333_v20, %v351_v23  ;;  %403 = vst [vmem:[%s596_s7 + $0x50] sm:$0xff] %v385_v21  ;;  %v370_v32 = vmax.f32 %v334_v29, %v352_v30  ;;  %404 = vst [vmem:[%s596_s7 + $0x58] sm:$0xff] %v386_v26  ;;  %v371_v38 = vmax.f32 %v335_v34, %v353_v35  ;;  %v282_v39 = vld [vmem:[%s567_s21 + $0x78] sm:$0xff]  ;;  %v283_v45 = vld [vmem:[%s567_s21 + $0x80] sm:$0xff] }
  0x26   : > { %v300_v40 = vld [vmem:[%s572_s24 + $0x78] sm:$0xff]  ;;  %v301_v46 = vld [vmem:[%s572_s24 + $0x80] sm:$0xff]  ;;  %v284_v52 = vld [vmem:[%s567_s21 + $0x88] sm:$0xff] }
  0x27   : > { %v387_v36 = vmax.f32 %v315_v22, %v369_v27  ;;  %v336_v41 = vld [vmem:[%s577_s27 + $0x78] sm:$0xff]  ;;  %v388_v42 = vmax.f32 %v316_v28, %v370_v32  ;;  %v318_v43 = vmax.f32 %v282_v39, %v300_v40  ;;  %v389_v47 = vmax.f32 %v317_v37, %v371_v38  ;;  %v337_v50 = vld [vmem:[%s577_s27 + $0x80] sm:$0xff]  ;;  %v302_v54 = vld [vmem:[%s572_s24 + $0x88] sm:$0xff] }
  0x28   : > { %v354_v44 = vld [vmem:[%s582_s30 + $0x78] sm:$0xff]  ;;  %v319_v49 = vmax.f32 %v283_v45, %v301_v46  ;;  %v355_v51 = vld [vmem:[%s582_s30 + $0x80] sm:$0xff]  ;;  %v338_v55 = vld [vmem:[%s577_s27 + $0x88] sm:$0xff]  ;;  %v320_v58 = vmax.f32 %v284_v52, %v302_v54 }
  0x29   : > { %405 = vst [vmem:[%s596_s7 + $0x60] sm:$0xff] %v387_v36  ;;  %v372_v48 = vmax.f32 %v336_v41, %v354_v44  ;;  %406 = vst [vmem:[%s596_s7 + $0x68] sm:$0xff] %v388_v42  ;;  %v373_v53 = vmax.f32 %v337_v50, %v355_v51  ;;  %v356_v56 = vld [vmem:[%s582_s30 + $0x88] sm:$0xff] }
  0x2a   : > { %407 = vst [vmem:[%s596_s7 + $0x70] sm:$0xff] %v389_v47  ;;  %v374_v59 = vmax.f32 %v338_v55, %v356_v56 }
  0x2b   : > { %v390_v57 = vmax.f32 %v318_v43, %v372_v48  ;;  %v391_v60 = vmax.f32 %v319_v49, %v373_v53 }
  0x2c   : > { %v392_v61 = vmax.f32 %v320_v58, %v374_v59 }
  0x2d   : > { %408 = vst [vmem:[%s596_s7 + $0x78] sm:$0xff] %v390_v57  ;;  %409 = vst [vmem:[%s596_s7 + $0x80] sm:$0xff] %v391_v60 }
  0x2e   : > { %410 = vst [vmem:[%s596_s7 + $0x88] sm:$0xff] %v392_v61 }
  0x2f PF: > { %s14_s15 = sadd.s32 1, %s529_s15  }
  0x30   : > { %p11_p4 = scmp.ge.s32.totalorder %s14_s15, 4  }
  0x32   :  { %13 = sbr.rel (!%p11_p4) target bundleno = 1 (0x1), region = 75 }

// kernel: net_forward.5
= control target key start
LH: loop header
LB: loop body
LE: loop exit
PB: predicated region body
PF: predicated region fallthrough
CT: control target
= control target key end

     0   :  { %s10499_s12 = smov 0   ;;  %s13254_s0 = inlined_call_operand.vmem [shape: f32[2,26,26,128], index: 0, kind: input, shape index: {}]   ;;  %s13255_s1 = inlined_call_operand.vmem [shape: f32[9,128,128], index: 1, kind: input, shape index: {}]   ;;  %s13256_s2 = inlined_call_operand.vmem [shape: f32[1,128], index: 2, kind: input, shape index: {}]   ;;  %s13257_s3 = inlined_call_operand.vmem [shape: f32[2,24,24,128], index: 3, kind: output, shape index: {}]  }
   0x1 LB: > { %s6950_s13 = sadd.s32 4294967295, %s10477_s12   ;;  %p6954_p0 = scmp.ge.s32.totalorder %s10477_s12, 1  ;;  %s10477_s12 = sphi %s10499_s12, %s13_s12  }
   0x2   : > { %p137_p1 = scmp.lt.s32.totalorder %s10477_s12, 3 }
   0x4   : > { %p138_p2 = pnand %p6954_p0, %p137_p1 }
   0x6   : > { %141 = sbr.rel (%p138_p2) target bundleno = 913 (0x391), region = 32 }
   0xd   : > { %v6957_v0 = vld [vmem:[%s13255_s1 + $0x80] sm:$0xff]  ;;  %v6958_v1 = vld [vmem:[%s13255_s1 + $0x88] sm:$0xff]  ;;  %p161_p3 = scmp.lt.s32.totalorder %s6950_s13, 1  ;;  %v6959_v5 = vld [vmem:[%s13255_s1 + $0x90] sm:$0xff]  ;;  %vm379_vm0 = vcmask 1046528   ;;  %vm1487_vm1 = vcmask 1045504  }
   0xe   : > { %v7101_v2 = vld [vmem:[%s13255_s1 + $0x200] sm:$0xff]  ;;  %v9332_v3 = vpack.c.bf16 %v6958_v1, %v6957_v0  ;;  %v7102_v4 = vld [vmem:[%s13255_s1 + $0x208] sm:$0xff]  ;;  %v6960_v6 = vld [vmem:[%s13255_s1 + $0x98] sm:$0xff] }
   0xf   : > { %v10525_v7 = vpack.c.bf16 %v7102_v4, %v7101_v2  ;;  %v9336_v8 = vpack.c.bf16 %v6960_v6, %v6959_v5  ;;  %v7103_v9 = vld [vmem:[%s13255_s1 + $0x210] sm:$0xff]  ;;  %v7104_v10 = vld [vmem:[%s13255_s1 + $0x218] sm:$0xff]  ;;  %v6961_v11 = vld [vmem:[%s13255_s1 + $0xa0] sm:$0xff]  ;;  %s13522_s13 = smov (!%p161_p3, %s6950_s13), 1 }
  0x10   : > { %9333 = vmatprep.subr.bf16.mxu1 %v9332_v3  ;;  %v10538_v12 = vpack.c.bf16 %v7104_v10, %v7103_v9  ;;  %v6962_v13 = vld [vmem:[%s13255_s1 + $0xa8] sm:$0xff]  ;;  %v7105_v14 = vld [vmem:[%s13255_s1 + $0x220] sm:$0xff]  ;;  %s10212_s11 = smul.u32 832, %s13522_s13  ;;  %v6963_v18 = vld [vmem:[%s13255_s1 + $0xb0] sm:$0xff] }
  0x11   : > { %13351 = vst [vmem:[#allocation2_spill] sm:$0xff] %v10525_v7  ;;  %v7106_v15 = vld [vmem:[%s13255_s1 + $0x228] sm:$0xff]  ;;  %9461 = vmatprep.subr.bf16.mxu0 %v10525_v7  ;;  %9335 = vmatpush3.bf16.msra.mxu1 %v9332_v3  ;;  %v9340_v16 = vpack.c.bf16 %v6962_v13, %v6961_v11  ;;  %v6964_v19 = vld [vmem:[%s13255_s1 + $0xb8] sm:$0xff]  ;;  %v7107_v20 = vld [vmem:[%s13255_s1 + $0x230] sm:$0xff] }
  0x12   : > { %13352 = vst [vmem:[#allocation3_spill] sm:$0xff] %v10538_v12  ;;  %9463 = vmatpush3.bf16.msra.mxu0 %v10525_v7  ;;  %9337 = vmatprep.subr.bf16.mxu1 %v9336_v8  ;;  %v10553_v17 = vpack.c.bf16 %v7106_v15, %v7105_v14  ;;  %v7108_v21 = vld [vmem:[%s13255_s1 + $0x238] sm:$0xff]  ;;  %s10570_s24 = scalar_lea.vmem %s13254_s0, %s10212_s11  ;;  %v9344_v22 = vpack.c.bf16 %v6964_v19, %v6963_v18  ;;  %v6965_v23 = vld [vmem:[%s13255_s1 + $0xc0] sm:$0xff]  ;;  %v6966_v24 = vld [vmem:[%s13255_s1 + $0xc8] sm:$0xff] }
  0x13   : > { %9465 = vmatprep.subr.bf16.mxu0 %v10538_v12  ;;  %v10580_v25 = vpack.c.bf16 %v7108_v21, %v7107_v20  ;;  %v7109_v26 = vld [vmem:[%s13255_s1 + $0x240] sm:$0xff]  ;;  %v7110_v27 = vld [vmem:[%s13255_s1 + $0x248] sm:$0xff]  ;;  %v9348_v36 = vpack.c.bf16 %v6966_v24, %v6965_v23  ;;  %v6967_v38 = vld [vmem:[%s13255_s1 + $0xd0] sm:$0xff] }
  0x14   : > { %13353 = vst [vmem:[#allocation4_spill] sm:$0xff] %v10553_v17  ;;  %v171_v28 = vld [vmem:[%s10570_s24] sm:$0xff]  ;;  %v10590_v29 = vld [vmem:[%s10570_s24 + $0x8] sm:$0xff]  ;;  %v10603_v37 = vpack.c.bf16 %v7110_v27, %v7109_v26  ;;  %v6968_v39 = vld [vmem:[%s13255_s1 + $0xd8] sm:$0xff] }
  0x15   : > { %9339 = vmatpush3.bf16.msra.mxu1 %v9336_v8  ;;  %13354 = vst [vmem:[#allocation5_spill] sm:$0xff] %v10580_v25  ;;  %v380_v30 = vrot.slane %v171_v28, 1  ;;  %v10593_v31 = vld [vmem:[%s10570_s24 + $0x20] sm:$0xff]  ;;  %v10596_v32 = vld [vmem:[%s10570_s24 + $0x28] sm:$0xff]  ;;  %v381_v33 = vrot.slane %v10590_v29, 1  ;;  %v7111_v42 = vld [vmem:[%s13255_s1 + $0x250] sm:$0xff]  ;;  %v9352_v44 = vpack.c.bf16 %v6968_v39, %v6967_v38 }
  0x16   : > { %9467 = vmatpush3.bf16.msra.mxu0 %v10538_v12  ;;  %9341 = vmatprep.subr.bf16.mxu1 %v9340_v16  ;;  %v2949_v34 = vrot.slane %v10593_v31, 1  ;;  %v2950_v35 = vrot.slane %v10596_v32, 1  ;;  %13355 = vst [vmem:[#allocation6_spill] sm:$0xff] %v10603_v37  ;;  %v7112_v43 = vld [vmem:[%s13255_s1 + $0x258] sm:$0xff]  ;;  %v6969_v46 = vld [vmem:[%s13255_s1 + $0xe0] sm:$0xff]  ;;  %v6970_v47 = vld [vmem:[%s13255_s1 + $0xe8] sm:$0xff] }
  0x17   : > { %9469 = vmatprep.subr.bf16.mxu0 %v10553_v17  ;;  %v382_v40 = vsel %vm379_vm0, %v380_v30, %v381_v33  ;;  %v10628_v45 = vpack.c.bf16 %v7112_v43, %v7111_v42  ;;  %v7113_v48 = vld [vmem:[%s13255_s1 + $0x260] sm:$0xff]  ;;  %v7114_v49 = vld [vmem:[%s13255_s1 + $0x268] sm:$0xff]  ;;  %v9356_v50 = vpack.c.bf16 %v6970_v47, %v6969_v46  ;;  %v6971_v52 = vld [vmem:[%s13255_s1 + $0xf0] sm:$0xff] }
  0x18   : > { %v10617_v41 = vsel %vm379_vm0, %v2949_v34, %v2950_v35  ;;  %8104 = vmatprep.mubr.f32.mxu1 %v382_v40  ;;  %v10644_v51 = vpack.c.bf16 %v7114_v49, %v7113_v48  ;;  %v6972_v53 = vld [vmem:[%s13255_s1 + $0xf8] sm:$0xff]  ;;  %v7115_v54 = vld [vmem:[%s13255_s1 + $0x270] sm:$0xff]  ;;  %v267_v59 = vld [vmem:[%s13255_s1] sm:$0xff] }
  0x19   : > { %9343 = vmatpush3.bf16.msra.mxu1 %v9340_v16  ;;  %8664 = vmatprep.mubr.f32.mxu0 %v10617_v41  ;;  %13356 = vst [vmem:[#allocation7_spill] sm:$0xff] %v10628_v45  ;;  %v7116_v55 = vld [vmem:[%s13255_s1 + $0x278] sm:$0xff]  ;;  %v9360_v56 = vpack.c.bf16 %v6972_v53, %v6971_v52  ;;  %v173_v57 = vld [vmem:[%s10570_s24 + $0x10] sm:$0xff]  ;;  %v268_v60 = vld [vmem:[%s13255_s1 + $0x8] sm:$0xff] }
  0x1a   : > { %9471 = vmatpush3.bf16.msra.mxu0 %v10553_v17  ;;  %9345 = vmatprep.subr.bf16.mxu1 %v9344_v22  ;;  %13357 = vst [vmem:[#allocation8_spill] sm:$0xff] %v10644_v51  ;;  %v10661_v58 = vpack.c.bf16 %v7116_v55, %v7115_v54  ;;  %v10670_v61 = vld [vmem:[%s10570_s24 + $0x30] sm:$0xff]  ;;  %v7117_v62 = vld [vmem:[%s13255_s1 + $0x280] sm:$0xff]  ;;  %v7118_v63 = vld [vmem:[%s13255_s1 + $0x288] sm:$0xff]  ;;  %v383_v1 = vrot.slane %v173_v57, 1  ;;  %v9364_v3 = vpack.c.bf16 %v268_v60, %v267_v59 }
  0x1b   : > { %9473 = vmatprep.subr.bf16.mxu0 %v10580_v25  ;;  %v174_v0 = vld [vmem:[%s10570_s24 + $0x18] sm:$0x3]  ;;  %v2952_v4 = vrot.slane %v10670_v61, 1  ;;  %v9492_v5 = vpack.c.bf16 %v7118_v63, %v7117_v62  ;;  %v10686_v8 = vld [vmem:[%s10570_s24 + $0x40] sm:$0xff]  ;;  %v10689_v9 = vld [vmem:[%s10570_s24 + $0x48] sm:$0xff] }
  0x1c   : > { %13358 = vst [vmem:[#allocation9_spill] sm:$0xff] %v10661_v58  ;;  %v10680_v2 = vld [vmem:[%s10570_s24 + $0x38] sm:$0x3]  ;;  %v385_v6 = vrot.slane %v174_v0, 1  ;;  %v10693_v11 = vld [vmem:[%s10570_s24 + $0x50] sm:$0xff]  ;;  %v384_v15 = vsel %vm379_vm0, %v381_v33, %v383_v1  ;;  %v2956_v20 = vrot.slane %v10686_v8, 1 }
  0x1d   : > { %9347 = vmatpush3.bf16.msra.mxu1 %v9344_v22  ;;  %v2954_v10 = vrot.slane %v10680_v2, 1  ;;  %v7119_v13 = vld [vmem:[%s13255_s1 + $0x290] sm:$0xff]  ;;  %v7120_v14 = vld [vmem:[%s13255_s1 + $0x298] sm:$0xff]  ;;  %v2953_v19 = vsel %vm379_vm0, %v2950_v35, %v2952_v4  ;;  %v2957_v21 = vrot.slane %v10689_v9, 1  ;;  %v10719_v24 = vrot.slane %v10693_v11, 1  ;;  %v10725_v28 = vld [vmem:[%s10570_s24 + $0x60] sm:$0xff] }
  0x1e   : > { %9475 = vmatpush3.bf16.msra.mxu0 %v10580_v25  ;;  %9349 = vmatprep.subr.bf16.mxu1 %v9348_v36  ;;  %v269_v16 = vld [vmem:[%s13255_s1 + $0x10] sm:$0xff]  ;;  %v270_v18 = vld [vmem:[%s13255_s1 + $0x18] sm:$0xff]  ;;  %v386_v23 = vsel %vm379_vm0, %v383_v1, %v385_v6  ;;  %v9496_v27 = vpack.c.bf16 %v7120_v14, %v7119_v13  ;;  %v10729_v30 = vld [vmem:[%s10570_s24 + $0x68] sm:$0xff] }
  0x1f   : > { %9477 = vmatprep.subr.bf16.mxu0 %v10603_v37  ;;  %v178_v22 = vld [vmem:[%s10570_s24 + $0x38] sm:$0x3]  ;;  %v2955_v29 = vsel %vm379_vm0, %v2952_v4, %v2954_v10  ;;  %v9368_v33 = vpack.c.bf16 %v270_v18, %v269_v16  ;;  %v7121_v34 = vld [vmem:[%s13255_s1 + $0x2a0] sm:$0xff]  ;;  %v7122_v35 = vld [vmem:[%s13255_s1 + $0x2a8] sm:$0xff]  ;;  %v2958_v40 = vsel %vm379_vm0, %v2956_v20, %v2957_v21  ;;  %v2960_v43 = vsel %vm379_vm0, %v2957_v21, %v10719_v24 }
  0x20   : > { %v10722_v26 = vld [vmem:[%s10570_s24 + $0x58] sm:$0x3]  ;;  %v271_v38 = vld [vmem:[%s13255_s1 + $0x20] sm:$0xff]  ;;  %v272_v39 = vld [vmem:[%s13255_s1 + $0x28] sm:$0xff]  ;;  %v2964_v46 = vrot.slane %v10729_v30, 1  ;;  %v9500_v49 = vpack.c.bf16 %v7122_v35, %v7121_v34 }
  0x21   : > { %9351 = vmatpush3.bf16.msra.mxu1 %v9348_v36  ;;  %v392_v36 = vrot.slane %v178_v22, 1  ;;  %v2961_v42 = vrot.slane %v10722_v26, 1  ;;  %v10750_v47 = vld [vmem:[%s10570_s24 + $0x70] sm:$0xff]  ;;  %v182_v48 = vld [vmem:[%s10570_s24 + $0x58] sm:$0x3]  ;;  %v9372_v54 = vpack.c.bf16 %v272_v39, %v271_v38  ;;  %v10778_v0 = vld [vmem:[%s10570_s24 + $0x80] sm:$0xff] }
  0x22   : > { %9479 = vmatpush3.bf16.msra.mxu0 %v10603_v37  ;;  %9353 = vmatprep.subr.bf16.mxu1 %v9352_v44  ;;  %v7123_v52 = vld [vmem:[%s13255_s1 + $0x2b0] sm:$0xff]  ;;  %v7124_v53 = vld [vmem:[%s13255_s1 + $0x2b8] sm:$0xff]  ;;  %v10773_v59 = vrot.slane %v10750_v47, 1  ;;  %v399_v60 = vrot.slane %v182_v48, 1  ;;  %v10781_v1 = vld [vmem:[%s10570_s24 + $0x88] sm:$0xff]  ;;  %v2970_v18 = vrot.slane %v10778_v0, 1 }
  0x23   : > { %9481 = vmatprep.subr.bf16.mxu0 %v10628_v45  ;;  %v393_v55 = vsel %vm379_vm0, %v2952_v4, %v392_v36  ;;  %v2962_v57 = vsel %vm379_vm0, %v10719_v24, %v2961_v42  ;;  %v10784_v4 = vld [vmem:[%s10570_s24 + $0x90] sm:$0xff]  ;;  %v7126_v6 = vld [vmem:[%s13255_s1 + $0x2c8] sm:$0xff]  ;;  %v275_v13 = vld [vmem:[%s13255_s1 + $0x40] sm:$0xff] }
  0x24   : > { %v276_v14 = vld [vmem:[%s13255_s1 + $0x48] sm:$0xff]  ;;  %v400_v16 = vsel %vm379_vm0, %v10719_v24, %v399_v60  ;;  %v186_v20 = vld [vmem:[%s10570_s24 + $0x78] sm:$0x3]  ;;  %v2973_v22 = vrot.slane %v10784_v4, 1  ;;  %v10827_v42 = vld [vmem:[%s10570_s24 + $0xb0] sm:$0xff] }
  0x25   : > { %9355 = vmatpush3.bf16.msra.mxu1 %v9352_v44  ;;  %v2963_v44 = vrot.slane %v10725_v28, 1  ;;  %v10815_v24 = vld [vmem:[%s10570_s24 + $0xa8] sm:$0xff]  ;;  %v7128_v34 = vld [vmem:[%s13255_s1 + $0x2d8] sm:$0xff]  ;;  %v9380_v35 = vpack.c.bf16 %v276_v14, %v275_v13  ;;  %v406_v36 = vrot.slane %v186_v20, 1  ;;  %v7131_v13 = vld [vmem:[%s13255_s1 + $0x2f0] sm:$0xff] }
  0x26   : > { %9483 = vmatpush3.bf16.msra.mxu0 %v10628_v45  ;;  %9357 = vmatprep.subr.bf16.mxu1 %v9356_v50  ;;  %v10833_v48 = vld [vmem:[%s10570_s24 + $0xb8] sm:$0x3]  ;;  %v11003_v17 = vld [vmem:[%s10570_s24 + $0x170] sm:$0xff]  ;;  %v11019_v7 = vld [vmem:[%s10570_s24 + $0x188] sm:$0xff] }
  0x27   : > { %9485 = vmatprep.subr.bf16.mxu0 %v10644_v51  ;;  %v2965_v62 = vsel %vm379_vm0, %v2963_v44, %v2964_v46  ;;  %v2978_v44 = vrot.slane %v10815_v24, 1  ;;  %v7132_v14 = vld [vmem:[%s13255_s1 + $0x2f8] sm:$0xff]  ;;  %13361 = vst [vmem:[#allocation12_spill] sm:$0xff] %v11019_v7 }
  0x28   : > { %v194_v20 = vld [vmem:[%s10570_s24 + $0xb8] sm:$0x3] }
  0x29   : > { %9359 = vmatpush3.bf16.msra.mxu1 %v9356_v50  ;;  %v10755_v50 = vld [vmem:[%s10570_s24 + $0x78] sm:$0x3] }
  0x2a   : > { %9487 = vmatpush3.bf16.msra.mxu0 %v10644_v51  ;;  %9361 = vmatprep.subr.bf16.mxu1 %v9360_v56  ;;  %v2968_v63 = vrot.slane %v10755_v50, 1  ;;  %v10968_v51 = vld [vmem:[%s10570_s24 + $0x148] sm:$0xff]  ;;  %v214_v12 = vld [vmem:[%s10570_s24 + $0x158] sm:$0x3] }
  0x2b   : > { %9489 = vmatprep.subr.bf16.mxu0 %v10661_v58 }
  0x2c   : > { %v2969_v21 = vsel %vm379_vm0, %v10773_v59, %v2968_v63  ;;  %v2982_v63 = vrot.slane %v10833_v48, 1 }
  0x2d   : > { %9363 = vmatpush3.bf16.msra.mxu1 %v9360_v56  ;;  %v274_v56 = vld [vmem:[%s13255_s1 + $0x38] sm:$0xff] }
  0x2e   : > { %9491 = vmatpush3.bf16.msra.mxu0 %v10661_v58  ;;  %9365 = vmatprep.subr.bf16.mxu1 %v9364_v3 }
  0x2f   : > { %9493 = vmatprep.subr.bf16.mxu0 %v9492_v5 }
  0x30   : > { %8105 = vmatmul.mubr.f32.vlgmr.msra.gmra.mrb[0].mxu1 %v384_v15  ;;  %v2967_v15 = vsel %vm379_vm0, %v2964_v46, %v10773_v59  ;;  %v190_v46 = vld [vmem:[%s10570_s24 + $0x98] sm:$0x3] }
  0x31   : > { %8665 = vmatmul.mubr.f32.vlgmr.msra.gmra.mrb[0].mxu0 %v2953_v19  ;;  %9367 = vmatpush3.bf16.msra.mxu1 %v9364_v3  ;;  %v9504_v3 = vpack.c.bf16 %v7124_v53, %v7123_v52  ;;  %v7129_v52 = vld [vmem:[%s13255_s1 + $0x2e0] sm:$0xff]  ;;  %v7130_v53 = vld [vmem:[%s13255_s1 + $0x2e8] sm:$0xff]  ;;  %v413_v60 = vrot.slane %v190_v46, 1 }
  0x32   : > { %9495 = vmatpush3.bf16.msra.mxu0 %v9492_v5  ;;  %8107 = vmatprep.mubr.f32.mxu1 %v386_v23  ;;  %v7125_v5 = vld [vmem:[%s13255_s1 + $0x2c0] sm:$0xff]  ;;  %v10809_v23 = vld [vmem:[%s10570_s24 + $0x98] sm:$0x3] }
  0x33   : > { %8667 = vmatprep.mubr.f32.mxu0 %v2955_v29  ;;  %9497 = vmatprep.subr.bf16.mxu0 %v9496_v27  ;;  %v9508_v29 = vpack.c.bf16 %v7126_v6, %v7125_v5  ;;  %v2975_v39 = vrot.slane %v10809_v23, 1  ;;  %v10857_v5 = vld [vmem:[%s10570_s24 + $0xc8] sm:$0xff]  ;;  %v9516_v6 = vpack.c.bf16 %v7130_v53, %v7129_v52  ;;  %v198_v53 = vld [vmem:[%s10570_s24 + $0xd8] sm:$0x3] }
  0x34   : > { %8108 = vmatmul.mubr.f32.gmra.mrb[2].mxu1 %v10617_v41  ;;  %9369 = vmatprep.subr.bf16.mxu1 %v9368_v33  ;;  %v273_v41 = vld [vmem:[%s13255_s1 + $0x30] sm:$0xff] }
  0x35   : > { %8668 = vmatmul.mubr.f32.gmra.mrb[2].mxu0 %v2958_v40  ;;  %8110 = vmatprep.mubr.f32.mxu1 %v2953_v19  ;;  %v9376_v10 = vpack.c.bf16 %v274_v56, %v273_v41  ;;  %v2971_v19 = vrot.slane %v10781_v1, 1  ;;  %v407_v41 = vsel %vm379_vm0, %v10773_v59, %v406_v36  ;;  %v2976_v56 = vsel %vm379_vm0, %v2973_v22, %v2975_v39  ;;  %v7229_v36 = vld [vmem:[%s13255_s1 + $0x300] sm:$0xff] }
  0x36   : > { %8670 = vmatprep.mubr.f32.mxu0 %v2960_v43  ;;  %9499 = vmatpush3.bf16.msra.mxu0 %v9496_v27  ;;  %v10812_v27 = vld [vmem:[%s10570_s24 + $0xa0] sm:$0xff]  ;;  %v420_v39 = vrot.slane %v194_v20, 1 }
  0x37   : > { %9501 = vmatprep.subr.bf16.mxu0 %v9500_v49  ;;  %9371 = vmatpush3.bf16.msra.mxu1 %v9368_v33  ;;  %v7127_v33 = vld [vmem:[%s13255_s1 + $0x2d0] sm:$0xff]  ;;  %v2972_v38 = vsel %vm379_vm0, %v2970_v18, %v2971_v19 }
  0x38   : > { %8111 = vmatmul.mubr.f32.gmra.mrb[4].mxu1 %v393_v55  ;;  %9373 = vmatprep.subr.bf16.mxu1 %v9372_v54  ;;  %v278_v55 = vld [vmem:[%s13255_s1 + $0x58] sm:$0xff] }
  0x39   : > { %8671 = vmatmul.mubr.f32.gmra.mrb[4].mxu0 %v2962_v57  ;;  %8113 = vmatprep.mubr.f32.mxu1 %v2958_v40  ;;  %v2977_v40 = vrot.slane %v10812_v27, 1  ;;  %v2980_v57 = vrot.slane %v10827_v42, 1 }
  0x3a   : > { %8673 = vmatprep.mubr.f32.mxu0 %v2965_v62  ;;  %9503 = vmatpush3.bf16.msra.mxu0 %v9500_v49  ;;  %v9512_v49 = vpack.c.bf16 %v7128_v34, %v7127_v33  ;;  %v10876_v33 = vld [vmem:[%s10570_s24 + $0xd8] sm:$0x3]  ;;  %v10879_v34 = vld [vmem:[%s10570_s24 + $0xe0] sm:$0xff] }
  0x3b   : > { %9505 = vmatprep.subr.bf16.mxu0 %v9504_v3  ;;  %9375 = vmatpush3.bf16.msra.mxu1 %v9372_v54  ;;  %v277_v54 = vld [vmem:[%s13255_s1 + $0x50] sm:$0xff] }
  0x3c   : > { %8114 = vmatmul.mubr.f32.gmra.mrb[6].mxu1 %v2960_v43  ;;  %9377 = vmatprep.subr.bf16.mxu1 %v9376_v10  ;;  %v2974_v43 = vsel %vm379_vm0, %v2971_v19, %v2973_v22  ;;  %v9384_v59 = vpack.c.bf16 %v278_v55, %v277_v54  ;;  %v2985_v19 = vrot.slane %v10857_v5, 1  ;;  %v279_v55 = vld [vmem:[%s13255_s1 + $0x60] sm:$0xff] }
  0x3d   : > { %8674 = vmatmul.mubr.f32.gmra.mrb[6].mxu0 %v2967_v15  ;;  %8116 = vmatprep.mubr.f32.mxu1 %v400_v16  ;;  %v414_v16 = vsel %vm379_vm0, %v2973_v22, %v413_v60  ;;  %v10882_v22 = vld [vmem:[%s10570_s24 + $0xe8] sm:$0xff]  ;;  %v421_v60 = vsel %vm379_vm0, %v2980_v57, %v420_v39  ;;  %v10933_v39 = vld [vmem:[%s10570_s24 + $0x118] sm:$0x3] }
  0x3e   : > { %8676 = vmatprep.mubr.f32.mxu0 %v2969_v21  ;;  %9507 = vmatpush3.bf16.msra.mxu0 %v9504_v3  ;;  %v10854_v3 = vld [vmem:[%s10570_s24 + $0xc0] sm:$0xff]  ;;  %v2983_v21 = vsel %vm379_vm0, %v2980_v57, %v2982_v63  ;;  %v2992_v52 = vrot.slane %v10882_v22, 1 }
  0x3f   : > { %9509 = vmatprep.subr.bf16.mxu0 %v9508_v29  ;;  %9379 = vmatpush3.bf16.msra.mxu1 %v9376_v10  ;;  %v10860_v10 = vld [vmem:[%s10570_s24 + $0xd0] sm:$0xff]  ;;  %v2984_v18 = vrot.slane %v10854_v3, 1 }
  0x40   : > { %8117 = vmatmul.mubr.f32.gmra.mrb[8].mxu1 %v2965_v62  ;;  %9381 = vmatprep.subr.bf16.mxu1 %v9380_v35  ;;  %v2979_v62 = vsel %vm379_vm0, %v2977_v40, %v2978_v44 }
  0x41   : > { %8677 = vmatmul.mubr.f32.gmra.mrb[8].mxu0 %v2972_v38  ;;  %8119 = vmatprep.mubr.f32.mxu1 %v2967_v15  ;;  %v2981_v15 = vsel %vm379_vm0, %v2978_v44, %v2980_v57  ;;  %v2986_v40 = vsel %vm379_vm0, %v2984_v18, %v2985_v19  ;;  %v2989_v44 = vrot.slane %v10876_v33, 1  ;;  %v10919_v18 = vld [vmem:[%s10570_s24 + $0x108] sm:$0xff]  ;;  %v10923_v57 = vld [vmem:[%s10570_s24 + $0x110] sm:$0xff] }
  0x42   : > { %8679 = vmatprep.mubr.f32.mxu0 %v2974_v43  ;;  %9511 = vmatpush3.bf16.msra.mxu0 %v9508_v29  ;;  %v2987_v29 = vrot.slane %v10860_v10, 1 }
  0x43   : > { %9513 = vmatprep.subr.bf16.mxu0 %v9512_v49  ;;  %9383 = vmatpush3.bf16.msra.mxu1 %v9380_v35  ;;  %v9520_v35 = vpack.c.bf16 %v7132_v14, %v7131_v13 }
  0x44   : > { %8120 = vmatmul.mubr.f32.gmra.mrb[10].mxu1 %v407_v41  ;;  %9385 = vmatprep.subr.bf16.mxu1 %v9384_v59  ;;  %v2988_v46 = vsel %vm379_vm0, %v2985_v19, %v2987_v29  ;;  %v280_v41 = vld [vmem:[%s13255_s1 + $0x68] sm:$0xff]  ;;  %v2990_v63 = vsel %vm379_vm0, %v2987_v29, %v2989_v44 }
  0x45   : > { %8680 = vmatmul.mubr.f32.gmra.mrb[10].mxu0 %v2976_v56  ;;  %8122 = vmatprep.mubr.f32.mxu1 %v2972_v38  ;;  %v7230_v38 = vld [vmem:[%s13255_s1 + $0x308] sm:$0xff]  ;;  %v10908_v56 = vld [vmem:[%s10570_s24 + $0xf8] sm:$0x3]  ;;  %v9388_v13 = vpack.c.bf16 %v280_v41, %v279_v55 }
  0x46   : > { %8682 = vmatprep.mubr.f32.mxu0 %v2979_v62  ;;  %9515 = vmatpush3.bf16.msra.mxu0 %v9512_v49  ;;  %v2991_v49 = vrot.slane %v10879_v34, 1  ;;  %v10899_v54 = vpack.c.bf16 %v7230_v38, %v7229_v36  ;;  %v3001_v38 = vrot.slane %v10923_v57, 1  ;;  %v10939_v44 = vld [vmem:[%s10570_s24 + $0x128] sm:$0xff] }
  0x47   : > { %9517 = vmatprep.subr.bf16.mxu0 %v9516_v6  ;;  %9387 = vmatpush3.bf16.msra.mxu1 %v9384_v59  ;;  %v427_v59 = vrot.slane %v198_v53, 1  ;;  %v281_v53 = vld [vmem:[%s13255_s1 + $0x70] sm:$0xff] }
  0x48   : > { %8123 = vmatmul.mubr.f32.gmra.mrb[12].mxu1 %v2974_v43  ;;  %v10893_v43 = vld [vmem:[%s10570_s24 + $0xf0] sm:$0xff]  ;;  %v2993_v14 = vsel %vm379_vm0, %v2991_v49, %v2992_v52  ;;  %9389 = vmatprep.subr.bf16.mxu1 %v9388_v13 }
  0x49   : > { %8683 = vmatmul.mubr.f32.gmra.mrb[12].mxu0 %v2981_v15  ;;  %8125 = vmatprep.mubr.f32.mxu1 %v414_v16  ;;  %v10916_v16 = vld [vmem:[%s10570_s24 + $0x100] sm:$0xff]  ;;  %v428_v19 = vsel %vm379_vm0, %v2987_v29, %v427_v59  ;;  %v206_v59 = vld [vmem:[%s10570_s24 + $0x118] sm:$0x3] }
  0x4a   : > { %8685 = vmatprep.mubr.f32.mxu0 %v2983_v21  ;;  %9519 = vmatpush3.bf16.msra.mxu0 %v9516_v6  ;;  %v2994_v6 = vrot.slane %v10893_v43, 1  ;;  %v2998_v20 = vrot.slane %v10916_v16, 1  ;;  %v2999_v21 = vrot.slane %v10919_v18, 1 }
  0x4b   : > { %9521 = vmatprep.subr.bf16.mxu0 %v9520_v35  ;;  %9391 = vmatpush3.bf16.msra.mxu1 %v9388_v13  ;;  %v10957_v13 = vld [vmem:[%s10570_s24 + $0x138] sm:$0x3] }
  0x4c   : > { %8126 = vmatmul.mubr.f32.gmra.mrb[14].mxu1 %v2979_v62  ;;  %v2996_v62 = vrot.slane %v10908_v56, 1  ;;  %v3000_v49 = vsel %vm379_vm0, %v2998_v20, %v2999_v21  ;;  %v3002_v55 = vsel %vm379_vm0, %v2999_v21, %v3001_v38  ;;  %v3010_v58 = vrot.slane %v10957_v13, 1 }
  0x4d   : > { %8686 = vmatmul.mubr.f32.gmra.mrb[14].mxu0 %v2986_v40  ;;  %8128 = vmatprep.mubr.f32.mxu1 %v2981_v15  ;;  %v2995_v15 = vsel %vm379_vm0, %v2992_v52, %v2994_v6  ;;  %v3003_v52 = vrot.slane %v10933_v39, 1 }
  0x4e   : > { %8688 = vmatprep.mubr.f32.mxu0 %v2988_v46  ;;  %9523 = vmatpush3.bf16.msra.mxu0 %v9520_v35  ;;  %v202_v35 = vld [vmem:[%s10570_s24 + $0xf8] sm:$0x3]  ;;  %v2997_v36 = vsel %vm379_vm0, %v2994_v6, %v2996_v62 }
  0x4f   : > { %9525 = vmatprep.subr.bf16.mxu0 %v10899_v54  ;;  %v434_v29 = vrot.slane %v202_v35, 1  ;;  %v3004_v20 = vsel %vm379_vm0, %v3001_v38, %v3003_v52  ;;  %v441_v35 = vrot.slane %v206_v59, 1 }
  0x50   : > { %8129 = vmatmul.mubr.f32.gmra.mrb[16].mxu1 %v421_v60  ;;  %v3006_v60 = vrot.slane %v10939_v44, 1 }
  0x51   : > { %8689 = vmatmul.mubr.f32.gmra.mrb[16].mxu0 %v2990_v63  ;;  %8131 = vmatprep.mubr.f32.mxu1 %v2986_v40  ;;  %v10936_v40 = vld [vmem:[%s10570_s24 + $0x120] sm:$0xff]  ;;  %v10953_v63 = vld [vmem:[%s10570_s24 + $0x130] sm:$0xff]  ;;  %v435_v62 = vsel %vm379_vm0, %v2994_v6, %v434_v29  ;;  %v442_v29 = vsel %vm379_vm0, %v3001_v38, %v441_v35  ;;  %v6974_v38 = vld [vmem:[%s13255_s1 + $0x108] sm:$0xff] }
  0x52   : > { %8691 = vmatprep.mubr.f32.mxu0 %v2993_v14  ;;  %v3005_v41 = vrot.slane %v10936_v40, 1  ;;  %v3008_v21 = vrot.slane %v10953_v63, 1  ;;  %v10971_v6 = vld [vmem:[%s10570_s24 + $0x150] sm:$0xff] }
  0x53   : > { %v3015_v59 = vrot.slane %v10971_v6, 1 }
  0x54   : > { %8132 = vmatmul.mubr.f32.gmra.mrb[18].mxu1 %v2988_v46  ;;  %v282_v46 = vld [vmem:[%s13255_s1 + $0x78] sm:$0xff] }
  0x55   : > { %8692 = vmatmul.mubr.f32.gmra.mrb[18].mxu0 %v2995_v15  ;;  %8134 = vmatprep.mubr.f32.mxu1 %v428_v19  ;;  %v9392_v19 = vpack.c.bf16 %v282_v46, %v281_v53  ;;  %v3013_v53 = vrot.slane %v10968_v51, 1  ;;  %v210_v46 = vld [vmem:[%s10570_s24 + $0x138] sm:$0x3] }
  0x56   : > { %8694 = vmatprep.mubr.f32.mxu0 %v2997_v36  ;;  %v3007_v36 = vsel %vm379_vm0, %v3005_v41, %v3006_v60  ;;  %v3011_v41 = vsel %vm379_vm0, %v3008_v21, %v3010_v58  ;;  %v448_v58 = vrot.slane %v210_v46, 1  ;;  %v3022_v46 = vrot.slane %v11003_v17, 1 }
  0x57   : > { %9393 = vmatprep.subr.bf16.mxu1 %v9392_v19  ;;  %v3016_v37 = vsel %vm379_vm0, %v3013_v53, %v3015_v59 }
  0x58   : > { %8135 = vmatmul.mubr.f32.gmra.mrb[20].mxu1 %v2993_v14  ;;  %v10965_v14 = vld [vmem:[%s10570_s24 + $0x140] sm:$0xff] }
  0x59   : > { %8695 = vmatmul.mubr.f32.gmra.mrb[20].mxu0 %v3000_v49  ;;  %8137 = vmatprep.mubr.f32.mxu1 %v2995_v15  ;;  %v3009_v15 = vsel %vm379_vm0, %v3006_v60, %v3008_v21  ;;  %v3012_v52 = vrot.slane %v10965_v14, 1  ;;  %v10990_v60 = vld [vmem:[%s10570_s24 + $0x160] sm:$0xff] }
  0x5a   : > { %8697 = vmatprep.mubr.f32.mxu0 %v3002_v55  ;;  %9395 = vmatpush3.bf16.msra.mxu1 %v9392_v19  ;;  %v10993_v19 = vld [vmem:[%s10570_s24 + $0x168] sm:$0xff]  ;;  %v3019_v25 = vrot.slane %v10990_v60, 1 }
  0x5c   : > { %8138 = vmatmul.mubr.f32.gmra.mrb[22].mxu1 %v435_v62  ;;  %v10981_v62 = vld [vmem:[%s10570_s24 + $0x158] sm:$0x3] }
  0x5d   : > { %8698 = vmatmul.mubr.f32.gmra.mrb[22].mxu0 %v3004_v20  ;;  %8140 = vmatprep.mubr.f32.mxu1 %v3000_v49  ;;  %v6973_v49 = vld [vmem:[%s13255_s1 + $0x100] sm:$0xff]  ;;  %v3014_v20 = vsel %vm379_vm0, %v3012_v52, %v3013_v53  ;;  %v3017_v35 = vrot.slane %v10981_v62, 1  ;;  %v449_v52 = vsel %vm379_vm0, %v3008_v21, %v448_v58 }
  0x5e   : > { %8700 = vmatprep.mubr.f32.mxu0 %v3007_v36  ;;  %v10997_v45 = vpack.c.bf16 %v6974_v38, %v6973_v49  ;;  %v11016_v38 = vld [vmem:[%s10570_s24 + $0x180] sm:$0xff] }
  0x5f   : > { %v3018_v53 = vsel %vm379_vm0, %v3015_v59, %v3017_v35  ;;  %v218_v35 = vld [vmem:[%s10570_s24 + $0x178] sm:$0x3] }
  0x60   : > { %8141 = vmatmul.mubr.f32.gmra.mrb[24].mxu1 %v3002_v55  ;;  %13359 = vst [vmem:[#allocation10_spill] sm:$0xff] %v10997_v45  ;;  %v3020_v55 = vrot.slane %v10993_v19, 1  ;;  %9397 = vmatprep.subr.bf16.mxu1 %v10997_v45 }
  0x61   : > { %8701 = vmatmul.mubr.f32.gmra.mrb[24].mxu0 %v3009_v15  ;;  %8143 = vmatprep.mubr.f32.mxu1 %v442_v29  ;;  %v11007_v29 = vld [vmem:[%s10570_s24 + $0x178] sm:$0x3] }
  0x62   : > { %8703 = vmatprep.mubr.f32.mxu0 %v3011_v41  ;;  %13360 = vst [vmem:[#allocation11_spill] sm:$0xff] %v11007_v29  ;;  %v455_v41 = vrot.slane %v214_v12, 1  ;;  %v3021_v49 = vsel %vm379_vm0, %v3019_v25, %v3020_v55  ;;  %v3023_v21 = vsel %vm379_vm0, %v3020_v55, %v3022_v46  ;;  %v3026_v12 = vrot.slane %v11016_v38, 1 }
  0x63   : > { %v3027_v25 = vrot.slane %v11019_v7, 1 }
  0x64   : > { %8144 = vmatmul.mubr.f32.gmra.mrb[26].mxu1 %v3007_v36  ;;  %v3024_v36 = vrot.slane %v11007_v29, 1  ;;  %v456_v58 = vsel %vm379_vm0, %v3015_v59, %v455_v41  ;;  %v3703_v41 = vrot.slane %v10593_v31, 2 }
  0x65   : > { %8704 = vmatmul.mubr.f32.gmra.mrb[26].mxu0 %v3014_v20  ;;  %8146 = vmatprep.mubr.f32.mxu1 %v3009_v15  ;;  %v11022_v15 = vld [vmem:[%s10570_s24 + $0x190] sm:$0xff]  ;;  %v3028_v59 = vsel %vm379_vm0, %v3026_v12, %v3027_v25 }
  0x66   : > { %8706 = vmatprep.mubr.f32.mxu0 %v3016_v37  ;;  %13362 = vst [vmem:[#allocation13_spill] sm:$0xff] %v11022_v15  ;;  %v3025_v45 = vsel %vm379_vm0, %v3022_v46, %v3024_v36  ;;  %v3029_v29 = vrot.slane %v11022_v15, 1  ;;  %v3704_v36 = vrot.slane %v10596_v32, 2  ;;  %v222_v15 = vld [vmem:[%s10570_s24 + $0x198] sm:$0x3]  ;;  %v3708_v32 = vrot.slane %v10680_v2, 2 }
  0x67   : > { %v469_v12 = vrot.slane %v222_v15, 1 }
  0x68   : > { %8147 = vmatmul.mubr.f32.gmra.mrb[28].mxu1 %v449_v52  ;;  %v11032_v52 = vld [vmem:[%s10570_s24 + $0x198] sm:$0x3]  ;;  %v3705_v31 = vsel %vm1487_vm1, %v3703_v41, %v3704_v36  ;;  %v3711_v41 = vrot.slane %v10689_v9, 2  ;;  %v7234_v9 = vld [vmem:[%s13255_s1 + $0x328] sm:$0xff] }
  0x69   : > { %8707 = vmatmul.mubr.f32.gmra.mrb[28].mxu0 %v3018_v53  ;;  %8149 = vmatprep.mubr.f32.mxu1 %v3014_v20  ;;  %13363 = vst [vmem:[#allocation14_spill] sm:$0xff] %v11032_v52  ;;  %v462_v20 = vrot.slane %v218_v35, 1  ;;  %v3031_v55 = vrot.slane %v11032_v52, 1  ;;  %v3030_v53 = vsel %vm379_vm0, %v3027_v25, %v3029_v29  ;;  %v11044_v35 = vld [vmem:[%s10570_s24 + $0x1a0] sm:$0xff]  ;;  %v11047_v25 = vld [vmem:[%s10570_s24 + $0x1a8] sm:$0xff] }
  0x6a   : > { %8709 = vmatprep.mubr.f32.mxu0 %v3021_v49  ;;  %13364 = vst [vmem:[#allocation15_spill] sm:$0xff] %v11047_v25  ;;  %v472_v2 = vrot.slane %v11047_v25, 1  ;;  %v226_v52 = vld [vmem:[%s10570_s24 + $0x1b8] sm:$0x3] }
  0x6c   : > { %8150 = vmatmul.mubr.f32.gmra.mrb[30].mxu1 %v3016_v37  ;;  %v463_v37 = vsel %vm379_vm0, %v3022_v46, %v462_v20  ;;  %v7232_v46 = vld [vmem:[%s13255_s1 + $0x318] sm:$0xff]  ;;  %v470_v20 = vsel %vm379_vm0, %v3029_v29, %v469_v12 }
  0x6d   : > { %8710 = vmatmul.mubr.f32.gmra.mrb[30].mxu0 %v3023_v21  ;;  %8152 = vmatprep.mubr.f32.mxu1 %v456_v58  ;;  %v3032_v58 = vsel %vm379_vm0, %v3029_v29, %v3031_v55  ;;  %v3710_v55 = vrot.slane %v10686_v8, 2  ;;  %v7233_v8 = vld [vmem:[%s13255_s1 + $0x320] sm:$0xff]  ;;  %v476_v29 = vrot.slane %v226_v52, 1  ;;  %v3717_v52 = vrot.slane %v10725_v28, 2 }
  0x6e   : > { %8712 = vmatprep.mubr.f32.mxu0 %v3025_v45  ;;  %v3706_v45 = vrot.slane %v10670_v61, 2  ;;  %v7231_v61 = vld [vmem:[%s13255_s1 + $0x310] sm:$0xff] }
  0x6f   : > { %v9528_v25 = vpack.c.bf16 %v7232_v46, %v7231_v61  ;;  %v11090_v61 = vld [vmem:[%s10570_s24 + $0x1d0] sm:$0xff] }
  0x70   : > { %8153 = vmatmul.mubr.f32.gmra.mrb[32].mxu1 %v3021_v49  ;;  %v11052_v49 = vld [vmem:[%s10570_s24 + $0x1b0] sm:$0xff]  ;;  %v3707_v15 = vsel %vm1487_vm1, %v3704_v36, %v3706_v45  ;;  %v3709_v7 = vsel %vm1487_vm1, %v3706_v45, %v3708_v32  ;;  %v11074_v36 = vld [vmem:[%s10570_s24 + $0x1c8] sm:$0xff]  ;;  %v3715_v45 = vrot.slane %v10722_v26, 2  ;;  %v3718_v26 = vrot.slane %v10729_v30, 2 }
  0x71   : > { %8713 = vmatmul.mubr.f32.gmra.mrb[32].mxu0 %v3028_v59  ;;  %8155 = vmatprep.mubr.f32.mxu1 %v3023_v21  ;;  %v471_v21 = vrot.slane %v11044_v35, 1  ;;  %v479_v32 = vrot.slane %v11074_v36, 1  ;;  %v481_v30 = vrot.slane %v11090_v61, 1 }
  0x72   : > { %8715 = vmatprep.mubr.f32.mxu0 %v3030_v53 }
  0x74   : > { %8156 = vmatmul.mubr.f32.gmra.mrb[34].mxu1 %v463_v37  ;;  %v474_v37 = vrot.slane %v11052_v49, 1 }
  0x75   : > { %8716 = vmatmul.mubr.f32.gmra.mrb[34].mxu0 %v3032_v58  ;;  %8158 = vmatprep.mubr.f32.mxu1 %v3028_v59  ;;  %v3713_v59 = vrot.slane %v10693_v11, 2  ;;  %v11071_v58 = vld [vmem:[%s10570_s24 + $0x1c0] sm:$0xff]  ;;  %v473_v11 = vsel %vm379_vm0, %v471_v21, %v472_v2  ;;  %v7236_v21 = vld [vmem:[%s13255_s1 + $0x338] sm:$0xff] }
  0x76   : > { %8804 = vmatprep.mubr.f32.mxu0 %v3705_v31  ;;  %v475_v12 = vsel %vm379_vm0, %v472_v2, %v474_v37  ;;  %v478_v31 = vrot.slane %v11071_v58, 1  ;;  %v477_v28 = vsel %vm379_vm0, %v474_v37, %v476_v29  ;;  %v11105_v2 = vld [vmem:[%s10570_s24 + $0x1e0] sm:$0xff]  ;;  %v11116_v37 = vld [vmem:[%s10570_s24 + $0x1f0] sm:$0xff] }
  0x77   : > { %v3714_v46 = vsel %vm1487_vm1, %v3711_v41, %v3713_v59 }
  0x78   : > { %8159 = vmatmul.mubr.f32.gmra.mrb[36].mxu1 %v3030_v53  ;;  %v3712_v53 = vsel %vm1487_vm1, %v3710_v55, %v3711_v41  ;;  %v480_v55 = vsel %vm379_vm0, %v478_v31, %v479_v32  ;;  %v3720_v41 = vrot.slane %v10750_v47, 2  ;;  %v7237_v47 = vld [vmem:[%s13255_s1 + $0x340] sm:$0xff]  ;;  %v3725_v31 = vrot.slane %v10781_v1, 2  ;;  %v7239_v1 = vld [vmem:[%s13255_s1 + $0x350] sm:$0xff] }
  0x79   : > { %8805 = vmatmul.mubr.f32.vlgmr.msra.gmra.mrb[0].mxu0 %v3707_v15  ;;  %8161 = vmatprep.mubr.f32.mxu1 %v470_v20  ;;  %v230_v15 = vld [vmem:[%s10570_s24 + $0x1d8] sm:$0x3]  ;;  %v3716_v20 = vsel %vm1487_vm1, %v3713_v59, %v3715_v45  ;;  %v485_v59 = vrot.slane %v11105_v2, 1 }
  0x7a   : > { %9527 = vmatpush3.bf16.msra.mxu0 %v10899_v54  ;;  %8807 = vmatprep.mubr.f32.mxu0 %v3709_v7  ;;  %v9532_v7 = vpack.c.bf16 %v7234_v9, %v7233_v8  ;;  %v7235_v54 = vld [vmem:[%s13255_s1 + $0x330] sm:$0xff]  ;;  %v483_v8 = vrot.slane %v230_v15, 1  ;;  %v11111_v9 = vld [vmem:[%s10570_s24 + $0x1e8] sm:$0xff]  ;;  %v488_v15 = vrot.slane %v11116_v37, 1 }
  0x7b   : > { %9529 = vmatprep.subr.bf16.mxu0 %v9528_v25  ;;  %v9536_v29 = vpack.c.bf16 %v7236_v21, %v7235_v54  ;;  %v486_v45 = vrot.slane %v11111_v9, 1  ;;  %v234_v54 = vld [vmem:[%s10570_s24 + $0x1f8] sm:$0x3] }
  0x7c   : > { %8162 = vmatmul.mubr.f32.gmra.mrb[38].mxu1 %v473_v11  ;;  %v3719_v11 = vsel %vm1487_vm1, %v3717_v52, %v3718_v26  ;;  %v484_v52 = vsel %vm379_vm0, %v481_v30, %v483_v8 }
  0x7d   : > { %8808 = vmatmul.mubr.f32.gmra.mrb[2].mxu0 %v3712_v53  ;;  %8164 = vmatprep.mubr.f32.mxu1 %v475_v12  ;;  %v3722_v53 = vrot.slane %v10755_v50, 2  ;;  %v482_v50 = vsel %vm379_vm0, %v479_v32, %v481_v30  ;;  %v3724_v12 = vrot.slane %v10778_v0, 2  ;;  %v11136_v32 = vld [vmem:[%s10570_s24 + $0x200] sm:$0xff]  ;;  %v490_v30 = vrot.slane %v234_v54, 1 }
  0x7e   : > { %8810 = vmatprep.mubr.f32.mxu0 %v3714_v46  ;;  %9531 = vmatpush3.bf16.msra.mxu0 %v9528_v25  ;;  %v7238_v25 = vld [vmem:[%s13255_s1 + $0x348] sm:$0xff]  ;;  %v3721_v46 = vsel %vm1487_vm1, %v3718_v26, %v3720_v41  ;;  %v7240_v26 = vld [vmem:[%s13255_s1 + $0x358] sm:$0xff]  ;;  %v492_v8 = vrot.slane %v11136_v32, 1  ;;  %v11172_v54 = vld [vmem:[%s10570_s24 + $0x220] sm:$0xff] }
  0x7f   : > { %9533 = vmatprep.subr.bf16.mxu0 %v9532_v7  ;;  %v3723_v21 = vsel %vm1487_vm1, %v3720_v41, %v3722_v53  ;;  %v9540_v0 = vpack.c.bf16 %v7238_v25, %v7237_v47  ;;  %v3729_v41 = vrot.slane %v10809_v23, 2  ;;  %v11154_v53 = vld [vmem:[%s10570_s24 + $0x210] sm:$0xff]  ;;  %v3731_v25 = vrot.slane %v10812_v27, 2  ;;  %v7241_v23 = vld [vmem:[%s13255_s1 + $0x360] sm:$0xff] }
  0x80   : > { %8165 = vmatmul.mubr.f32.gmra.mrb[40].mxu1 %v477_v28  ;;  %v3727_v28 = vrot.slane %v10784_v4, 2  ;;  %v487_v4 = vsel %vm379_vm0, %v485_v59, %v486_v45  ;;  %v3732_v59 = vrot.slane %v10815_v24, 2  ;;  %v491_v27 = vsel %vm379_vm0, %v488_v15, %v490_v30 }
  0x81   : > { %8811 = vmatmul.mubr.f32.gmra.mrb[4].mxu0 %v3716_v20  ;;  %8167 = vmatprep.mubr.f32.mxu1 %v480_v55  ;;  %v11139_v20 = vld [vmem:[%s10570_s24 + $0x208] sm:$0xff]  ;;  %v489_v55 = vsel %vm379_vm0, %v486_v45, %v488_v15  ;;  %v9544_v45 = vpack.c.bf16 %v7240_v26, %v7239_v1  ;;  %v495_v24 = vrot.slane %v11154_v53, 1  ;;  %v3736_v26 = vrot.slane %v10833_v48, 2  ;;  %v11180_v15 = vld [vmem:[%s10570_s24 + $0x230] sm:$0xff] }
  0x82   : > { %8813 = vmatprep.mubr.f32.mxu0 %v3719_v11  ;;  %9535 = vmatpush3.bf16.msra.mxu0 %v9532_v7  ;;  %v3726_v7 = vsel %vm1487_vm1, %v3724_v12, %v3725_v31  ;;  %v493_v11 = vrot.slane %v11139_v20, 1  ;;  %v3728_v47 = vsel %vm1487_vm1, %v3725_v31, %v3727_v28  ;;  %v3734_v12 = vrot.slane %v10827_v42, 2 }
  0x83   : > { %9537 = vmatprep.subr.bf16.mxu0 %v9536_v29  ;;  %v3730_v31 = vsel %vm1487_vm1, %v3727_v28, %v3729_v41  ;;  %v3733_v1 = vsel %vm1487_vm1, %v3731_v25, %v3732_v59  ;;  %v7243_v28 = vld [vmem:[%s13255_s1 + $0x370] sm:$0xff]  ;;  %v3738_v41 = vrot.slane %v10854_v3, 2  ;;  %v242_v25 = vld [vmem:[%s10570_s24 + $0x238] sm:$0x3]  ;;  %v7245_v3 = vld [vmem:[%s13255_s1 + $0x380] sm:$0xff] }
  0x84   : > { %8168 = vmatmul.mubr.f32.gmra.mrb[42].mxu1 %v482_v50  ;;  %v238_v50 = vld [vmem:[%s10570_s24 + $0x218] sm:$0x3]  ;;  %v496_v48 = vsel %vm379_vm0, %v493_v11, %v495_v24 }
  0x85   : > { %8814 = vmatmul.mubr.f32.gmra.mrb[6].mxu0 %v3721_v46  ;;  %8170 = vmatprep.mubr.f32.mxu1 %v484_v52  ;;  %v494_v46 = vsel %vm379_vm0, %v492_v8, %v493_v11  ;;  %v497_v52 = vrot.slane %v238_v50, 1  ;;  %v3739_v8 = vrot.slane %v10857_v5, 2  ;;  %v3737_v50 = vsel %vm1487_vm1, %v3734_v12, %v3736_v26  ;;  %v7246_v5 = vld [vmem:[%s13255_s1 + $0x388] sm:$0xff] }
  0x86   : > { %8816 = vmatprep.mubr.f32.mxu0 %v3723_v21  ;;  %9539 = vmatpush3.bf16.msra.mxu0 %v9536_v29  ;;  %v7242_v29 = vld [vmem:[%s13255_s1 + $0x368] sm:$0xff]  ;;  %v3741_v11 = vrot.slane %v10860_v10, 2  ;;  %v3745_v26 = vrot.slane %v10879_v34, 2 }
  0x87   : > { %9541 = vmatprep.subr.bf16.mxu0 %v9540_v0  ;;  %v11175_v21 = vld [vmem:[%s10570_s24 + $0x228] sm:$0xff]  ;;  %v9548_v42 = vpack.c.bf16 %v7242_v29, %v7241_v23 }
  0x88   : > { %8171 = vmatmul.mubr.f32.gmra.mrb[44].mxu1 %v487_v4  ;;  %v7244_v4 = vld [vmem:[%s13255_s1 + $0x378] sm:$0xff]  ;;  %v500_v30 = vrot.slane %v11175_v21, 1  ;;  %v11203_v23 = vld [vmem:[%s10570_s24 + $0x248] sm:$0xff] }
  0x89   : > { %8817 = vmatmul.mubr.f32.gmra.mrb[8].mxu0 %v3726_v7  ;;  %8173 = vmatprep.mubr.f32.mxu1 %v489_v55  ;;  %v499_v7 = vrot.slane %v11172_v54, 1  ;;  %v498_v55 = vsel %vm379_vm0, %v495_v24, %v497_v52  ;;  %v9552_v29 = vpack.c.bf16 %v7244_v4, %v7243_v28  ;;  %v3740_v24 = vsel %vm1487_vm1, %v3738_v41, %v3739_v8  ;;  %v11218_v52 = vld [vmem:[%s10570_s24 + $0x250] sm:$0xff]  ;;  %v246_v28 = vld [vmem:[%s10570_s24 + $0x258] sm:$0x3] }
  0x8a   : > { %8819 = vmatprep.mubr.f32.mxu0 %v3728_v47  ;;  %9543 = vmatpush3.bf16.msra.mxu0 %v9540_v0  ;;  %v3735_v0 = vsel %vm1487_vm1, %v3732_v59, %v3734_v12  ;;  %v502_v47 = vrot.slane %v11180_v15, 1  ;;  %v11200_v59 = vld [vmem:[%s10570_s24 + $0x240] sm:$0xff]  ;;  %v11224_v4 = vpack.c.bf16 %v7246_v5, %v7245_v3  ;;  %v3753_v3 = vrot.slane %v10919_v18, 2 }
  0x8b   : > { %9545 = vmatprep.subr.bf16.mxu0 %v9544_v45  ;;  %v501_v10 = vsel %vm379_vm0, %v499_v7, %v500_v30  ;;  %v3757_v18 = vrot.slane %v10933_v39, 2  ;;  %v254_v39 = vld [vmem:[%s10570_s24 + $0x298] sm:$0x3] }
  0x8c   : > { %8174 = vmatmul.mubr.f32.gmra.mrb[46].mxu1 %v491_v27  ;;  %v3743_v27 = vrot.slane %v10876_v33, 2  ;;  %v503_v12 = vsel %vm379_vm0, %v500_v30, %v502_v47  ;;  %v3746_v33 = vrot.slane %v10882_v22, 2  ;;  %v511_v22 = vrot.slane %v246_v28, 1  ;;  %v11232_v30 = vld [vmem:[%s10570_s24 + $0x260] sm:$0xff] }
  0x8d   : > { %8820 = vmatmul.mubr.f32.gmra.mrb[10].mxu0 %v3730_v31  ;;  %8176 = vmatprep.mubr.f32.mxu1 %v494_v46  ;;  %v506_v31 = vrot.slane %v11200_v59, 1  ;;  %v507_v46 = vrot.slane %v11203_v23, 1 }
  0x8e   : > { %8822 = vmatprep.mubr.f32.mxu0 %v3733_v1  ;;  %9547 = vmatpush3.bf16.msra.mxu0 %v9544_v45  ;;  %v504_v45 = vrot.slane %v242_v25, 1  ;;  %v3742_v1 = vsel %vm1487_vm1, %v3739_v8, %v3741_v11  ;;  %v3744_v34 = vsel %vm1487_vm1, %v3741_v11, %v3743_v27  ;;  %v3747_v41 = vsel %vm1487_vm1, %v3745_v26, %v3746_v33 }
  0x8f   : > { %9549 = vmatprep.subr.bf16.mxu0 %v9548_v42  ;;  %v508_v7 = vsel %vm379_vm0, %v506_v31, %v507_v46  ;;  %v3750_v8 = vrot.slane %v10908_v56, 2  ;;  %v3755_v27 = vrot.slane %v10923_v57, 2 }
  0x90   : > { %8177 = vmatmul.mubr.f32.gmra.mrb[48].mxu1 %v496_v48  ;;  %v505_v48 = vsel %vm379_vm0, %v502_v47, %v504_v45  ;;  %v11240_v47 = vld [vmem:[%s10570_s24 + $0x270] sm:$0xff] }
  0x91   : > { %8823 = vmatmul.mubr.f32.gmra.mrb[12].mxu0 %v3735_v0  ;;  %8179 = vmatprep.mubr.f32.mxu1 %v498_v55  ;;  %v3748_v0 = vrot.slane %v10893_v43, 2  ;;  %v11235_v55 = vld [vmem:[%s10570_s24 + $0x268] sm:$0xff]  ;;  %v516_v5 = vrot.slane %v11240_v47, 1  ;;  %v3756_v28 = vsel %vm1487_vm1, %v3753_v3, %v3755_v27 }
  0x92   : > { %8825 = vmatprep.mubr.f32.mxu0 %v3737_v50  ;;  %9551 = vmatpush3.bf16.msra.mxu0 %v9548_v42  ;;  %v509_v42 = vrot.slane %v11218_v52, 1  ;;  %v513_v50 = vrot.slane %v11232_v30, 1  ;;  %v514_v11 = vrot.slane %v11235_v55, 1 }
  0x93   : > { %9553 = vmatprep.subr.bf16.mxu0 %v9552_v29  ;;  %v3749_v25 = vsel %vm1487_vm1, %v3746_v33, %v3748_v0  ;;  %v3751_v45 = vsel %vm1487_vm1, %v3748_v0, %v3750_v8  ;;  %v11267_v33 = vld [vmem:[%s10570_s24 + $0x290] sm:$0xff]  ;;  %v525_v8 = vrot.slane %v254_v39, 1  ;;  %v3774_v39 = vrot.slane %v10993_v19, 2  ;;  %v11328_v19 = vld [vmem:[%s10570_s24 + $0x2e8] sm:$0xff] }
  0x94   : > { %8180 = vmatmul.mubr.f32.gmra.mrb[50].mxu1 %v501_v10  ;;  %v510_v43 = vsel %vm379_vm0, %v507_v46, %v509_v42  ;;  %v512_v56 = vsel %vm379_vm0, %v509_v42, %v511_v22  ;;  %v250_v10 = vld [vmem:[%s10570_s24 + $0x278] sm:$0x3]  ;;  %v3760_v42 = vrot.slane %v10939_v44, 2  ;;  %v11282_v44 = vld [vmem:[%s10570_s24 + $0x2a8] sm:$0xff] }
  0x95   : > { %8826 = vmatmul.mubr.f32.gmra.mrb[14].mxu0 %v3740_v24  ;;  %8182 = vmatprep.mubr.f32.mxu1 %v503_v12  ;;  %v11255_v24 = vld [vmem:[%s10570_s24 + $0x280] sm:$0xff]  ;;  %v11258_v12 = vld [vmem:[%s10570_s24 + $0x288] sm:$0xff]  ;;  %v518_v31 = vrot.slane %v250_v10, 1 }
  0x96   : > { %8828 = vmatprep.mubr.f32.mxu0 %v3742_v1  ;;  %9555 = vmatpush3.bf16.msra.mxu0 %v9552_v29  ;;  %v3752_v29 = vrot.slane %v10916_v16, 2  ;;  %v515_v16 = vsel %vm379_vm0, %v513_v50, %v514_v11  ;;  %v517_v1 = vsel %vm379_vm0, %v514_v11, %v516_v5  ;;  %v520_v57 = vrot.slane %v11255_v24, 1  ;;  %v11287_v50 = vld [vmem:[%s10570_s24 + $0x2b0] sm:$0xff] }
  0x97   : > { %9557 = vmatprep.subr.bf16.mxu0 %v11224_v4  ;;  %v521_v26 = vrot.slane %v11258_v12, 1  ;;  %v519_v0 = vsel %vm379_vm0, %v516_v5, %v518_v31  ;;  %v3767_v5 = vrot.slane %v10968_v51, 2  ;;  %v530_v10 = vrot.slane %v11287_v50, 1  ;;  %v11301_v31 = vld [vmem:[%s10570_s24 + $0x2c0] sm:$0xff] }
  0x98   : > { %8183 = vmatmul.mubr.f32.gmra.mrb[52].mxu1 %v505_v48  ;;  %v3754_v46 = vsel %vm1487_vm1, %v3752_v29, %v3753_v3  ;;  %v3759_v48 = vrot.slane %v10936_v40, 2  ;;  %v11279_v40 = vld [vmem:[%s10570_s24 + $0x2a0] sm:$0xff]  ;;  %v3766_v29 = vrot.slane %v10965_v14, 2  ;;  %v3771_v51 = vrot.slane %v10981_v62, 2  ;;  %v262_v62 = vld [vmem:[%s10570_s24 + $0x2d8] sm:$0x3] }
  0x99   : > { %8829 = vmatmul.mubr.f32.gmra.mrb[16].mxu0 %v3744_v34  ;;  %8185 = vmatprep.mubr.f32.mxu1 %v508_v7  ;;  %v523_v34 = vrot.slane %v11267_v33, 1  ;;  %v3758_v7 = vsel %vm1487_vm1, %v3755_v27, %v3757_v18  ;;  %v522_v22 = vsel %vm379_vm0, %v520_v57, %v521_v26  ;;  %v11304_v18 = vld [vmem:[%s10570_s24 + $0x2c8] sm:$0xff] }
  0x9a   : > { %8831 = vmatprep.mubr.f32.mxu0 %v3747_v41  ;;  %v3762_v41 = vrot.slane %v10953_v63, 2  ;;  %v527_v63 = vrot.slane %v11279_v40, 1 }
  0x9b   : > { %v524_v11 = vsel %vm379_vm0, %v521_v26, %v523_v34  ;;  %v535_v26 = vrot.slane %v11304_v18, 1 }
  0x9c   : > { %8186 = vmatmul.mubr.f32.gmra.mrb[54].mxu1 %v510_v43  ;;  %v3761_v43 = vsel %vm1487_vm1, %v3759_v48, %v3760_v42  ;;  %v3763_v3 = vsel %vm1487_vm1, %v3760_v42, %v3762_v41  ;;  %v3773_v42 = vrot.slane %v10990_v60, 2  ;;  %v11325_v60 = vld [vmem:[%s10570_s24 + $0x2e0] sm:$0xff] }
  0x9d   : > { %8832 = vmatmul.mubr.f32.gmra.mrb[18].mxu0 %v3749_v25  ;;  %8188 = vmatprep.mubr.f32.mxu1 %v512_v56  ;;  %v3764_v25 = vrot.slane %v10957_v13, 2  ;;  %v528_v56 = vrot.slane %v11282_v44, 1  ;;  %v526_v13 = vsel %vm379_vm0, %v523_v34, %v525_v8  ;;  %v539_v8 = vrot.slane %v262_v62, 1  ;;  %v13369_v62 = vld [vmem:[#allocation15_spill] sm:$0xff] }
  0x9e   : > { %8834 = vmatprep.mubr.f32.mxu0 %v3751_v45  ;;  %v258_v45 = vld [vmem:[%s10570_s24 + $0x2b8] sm:$0x3] }
  0x9f   : > { %v3765_v27 = vsel %vm1487_vm1, %v3762_v41, %v3764_v25  ;;  %v529_v14 = vsel %vm379_vm0, %v527_v63, %v528_v56  ;;  %v531_v57 = vsel %vm379_vm0, %v528_v56, %v530_v10  ;;  %v13365_v25 = vld [vmem:[#allocation11_spill] sm:$0xff]  ;;  %v11333_v63 = vld [vmem:[%s10570_s24 + $0x2f0] sm:$0xff] }
  0xa0   : > { %8189 = vmatmul.mubr.f32.gmra.mrb[56].mxu1 %v515_v16  ;;  %v3769_v16 = vrot.slane %v10971_v6, 2  ;;  %v534_v6 = vrot.slane %v11301_v31, 1 }
  0xa1   : > { %8835 = vmatmul.mubr.f32.gmra.mrb[20].mxu0 %v3754_v46  ;;  %8191 = vmatprep.mubr.f32.mxu1 %v517_v1  ;;  %v532_v46 = vrot.slane %v258_v45, 1  ;;  %v3768_v1 = vsel %vm1487_vm1, %v3766_v29, %v3767_v5  ;;  %v541_v29 = vrot.slane %v11325_v60, 1 }
  0xa2   : > { %8837 = vmatprep.mubr.f32.mxu0 %v3756_v28  ;;  %v11313_v28 = vld [vmem:[%s10570_s24 + $0x2d0] sm:$0xff]  ;;  %v3770_v48 = vsel %vm1487_vm1, %v3767_v5, %v3769_v16  ;;  %v536_v41 = vsel %vm379_vm0, %v534_v6, %v535_v26  ;;  %v3780_v5 = vrot.slane %v11016_v38, 2 }
  0xa3   : > { %v537_v34 = vrot.slane %v11313_v28, 1 }
  0xa4   : > { %8192 = vmatmul.mubr.f32.gmra.mrb[58].mxu1 %v519_v0  ;;  %v533_v0 = vsel %vm379_vm0, %v530_v10, %v532_v46  ;;  %v13366_v10 = vld [vmem:[#allocation12_spill] sm:$0xff]  ;;  %v13367_v46 = vld [vmem:[#allocation13_spill] sm:$0xff] }
  0xa5   : > { %8838 = vmatmul.mubr.f32.gmra.mrb[22].mxu0 %v3758_v7  ;;  %8194 = vmatprep.mubr.f32.mxu1 %v522_v22  ;;  %v3776_v7 = vrot.slane %v11003_v17, 2  ;;  %v3772_v22 = vsel %vm1487_vm1, %v3769_v16, %v3771_v51  ;;  %v538_v17 = vsel %vm379_vm0, %v535_v26, %v537_v34  ;;  %v3781_v45 = vrot.slane %v13366_v10, 2  ;;  %v266_v16 = vld [vmem:[%s10570_s24 + $0x2f8] sm:$0x3]  ;;  %v13368_v26 = vld [vmem:[#allocation14_spill] sm:$0xff]  ;;  %v11375_v10 = vld [vmem:[%s10570_s24 + $0x8] sm:$0xff] }
  0xa6   : > { %8840 = vmatprep.mubr.f32.mxu0 %v3761_v43  ;;  %v3775_v43 = vsel %vm1487_vm1, %v3773_v42, %v3774_v39  ;;  %v3783_v51 = vrot.slane %v13367_v46, 2  ;;  %v3801_v46 = vrot.slane %v11105_v2, 2  ;;  %v11405_v2 = vld [vmem:[%s10570_s24 + $0x28] sm:$0xff] }
  0xa7   : > { %v3777_v56 = vsel %vm1487_vm1, %v3774_v39, %v3776_v7  ;;  %v3782_v6 = vsel %vm1487_vm1, %v3780_v5, %v3781_v45  ;;  %v3787_v39 = vrot.slane %v11044_v35, 2  ;;  %v6975_v35 = vld [vmem:[%s13255_s1 + $0x110] sm:$0xff] }
  0xa8   : > { %8195 = vmatmul.mubr.f32.gmra.mrb[60].mxu1 %v524_v11  ;;  %v3778_v11 = vrot.slane %v13365_v25, 2  ;;  %v3784_v42 = vsel %vm1487_vm1, %v3781_v45, %v3783_v51  ;;  %v6976_v25 = vld [vmem:[%s13255_s1 + $0x118] sm:$0xff]  ;;  %v6977_v45 = vld [vmem:[%s13255_s1 + $0x120] sm:$0xff] }
  0xa9   : > { %8841 = vmatmul.mubr.f32.gmra.mrb[24].mxu0 %v3763_v3  ;;  %8197 = vmatprep.mubr.f32.mxu1 %v526_v13  ;;  %v542_v3 = vrot.slane %v11328_v19, 1  ;;  %v540_v13 = vsel %vm379_vm0, %v537_v34, %v539_v8  ;;  %v7040_v34 = vld [vmem:[%s10570_s24 + $0x1b8] sm:$0x3]  ;;  %v9400_v5 = vpack.c.bf16 %v6976_v25, %v6975_v35  ;;  %v3811_v35 = vrot.slane %v11154_v53, 2 }
  0xaa   : > { %8843 = vmatprep.mubr.f32.mxu0 %v3765_v27  ;;  %v544_v27 = vrot.slane %v11333_v63, 1  ;;  %v7052_v25 = vld [vmem:[%s10570_s24 + $0x218] sm:$0x3] }
  0xac   : > { %8198 = vmatmul.mubr.f32.gmra.mrb[62].mxu1 %v529_v14  ;;  %v3779_v14 = vsel %vm1487_vm1, %v3776_v7, %v3778_v11  ;;  %v545_v38 = vsel %vm379_vm0, %v542_v3, %v544_v27  ;;  %v11365_v11 = vld [vmem:[%s10570_s24] sm:$0xff] }
  0xad   : > { %8844 = vmatmul.mubr.f32.gmra.mrb[26].mxu0 %v3768_v1  ;;  %8200 = vmatprep.mubr.f32.mxu1 %v531_v57  ;;  %v543_v1 = vsel %vm379_vm0, %v541_v29, %v542_v3  ;;  %v546_v57 = vrot.slane %v266_v16, 1  ;;  %v3797_v3 = vrot.slane %v11090_v61, 2  ;;  %v11386_v61 = vld [vmem:[%s10570_s24 + $0x10] sm:$0xff] }
  0xae   : > { %8846 = vmatprep.mubr.f32.mxu0 %v3770_v48  ;;  %v3785_v48 = vrot.slane %v13368_v26, 2  ;;  %v6980_v26 = vld [vmem:[%s13255_s1 + $0x138] sm:$0xff] }
  0xaf   : > { %v547_v7 = vsel %vm379_vm0, %v544_v27, %v546_v57  ;;  %v11394_v57 = vld [vmem:[%s10570_s24 + $0x20] sm:$0xff] }
  0xb0   : > { %8201 = vmatmul.mubr.f32.gmra.mrb[64].mxu1 %v533_v0  ;;  %v3788_v0 = vrot.slane %v13369_v62, 2 }
  0xb1   : > { %8847 = vmatmul.mubr.f32.gmra.mrb[28].mxu0 %v3772_v22  ;;  %8203 = vmatprep.mubr.f32.mxu1 %v536_v41  ;;  %v3786_v22 = vsel %vm1487_vm1, %v3783_v51, %v3785_v48  ;;  %v3790_v41 = vrot.slane %v11052_v49, 2  ;;  %v3802_v51 = vrot.slane %v11111_v9, 2  ;;  %v3804_v48 = vrot.slane %v11116_v37, 2  ;;  %v6982_v37 = vld [vmem:[%s13255_s1 + $0x148] sm:$0xff] }
  0xb2   : > { %8849 = vmatprep.mubr.f32.mxu0 %v3775_v43  ;;  %v3789_v8 = vsel %vm1487_vm1, %v3787_v39, %v3788_v0  ;;  %v3792_v43 = vrot.slane %v7040_v34, 2  ;;  %v6981_v34 = vld [vmem:[%s13255_s1 + $0x140] sm:$0xff] }
  0xb3   : > { %v3791_v49 = vsel %vm1487_vm1, %v3788_v0, %v3790_v41  ;;  %v11412_v0 = vld [vmem:[%s10570_s24 + $0x30] sm:$0xff] }
  0xb4   : > { %8204 = vmatmul.mubr.f32.gmra.mrb[66].mxu1 %v538_v17  ;;  %v3794_v17 = vrot.slane %v11071_v58, 2  ;;  %v3793_v29 = vsel %vm1487_vm1, %v3790_v41, %v3792_v43  ;;  %v6978_v58 = vld [vmem:[%s13255_s1 + $0x128] sm:$0xff]  ;;  %v3808_v41 = vrot.slane %v11136_v32, 2  ;;  %v6984_v32 = vld [vmem:[%s13255_s1 + $0x158] sm:$0xff] }
  0xb5   : > { %8850 = vmatmul.mubr.f32.gmra.mrb[30].mxu0 %v3777_v56  ;;  %8206 = vmatprep.mubr.f32.mxu1 %v540_v13  ;;  %v3795_v56 = vrot.slane %v11074_v36, 2  ;;  %v7044_v13 = vld [vmem:[%s10570_s24 + $0x1d8] sm:$0x3]  ;;  %v13370_v36 = vld [vmem:[#allocation10_spill] sm:$0xff] }
  0xb6   : > { %8852 = vmatprep.mubr.f32.mxu0 %v3779_v14  ;;  %v3799_v16 = vrot.slane %v7044_v13, 2 }
  0xb7   : > { %v3796_v27 = vsel %vm1487_vm1, %v3794_v17, %v3795_v56  ;;  %v3798_v14 = vsel %vm1487_vm1, %v3795_v56, %v3797_v3  ;;  %v11432_v17 = vld [vmem:[%s10570_s24 + $0x48] sm:$0xff]  ;;  %v6983_v56 = vld [vmem:[%s13255_s1 + $0x150] sm:$0xff] }
  0xb8   : > { %8207 = vmatmul.mubr.f32.gmra.mrb[68].mxu1 %v543_v1  ;;  %v9404_v1 = vpack.c.bf16 %v6978_v58, %v6977_v45  ;;  %v3800_v9 = vsel %vm1487_vm1, %v3797_v3, %v3799_v16  ;;  %v3813_v3 = vrot.slane %v7052_v25, 2  ;;  %v3816_v45 = vrot.slane %v11175_v21, 2  ;;  %v6985_v16 = vld [vmem:[%s13255_s1 + $0x160] sm:$0xff] }
  0xb9   : > { %8853 = vmatmul.mubr.f32.gmra.mrb[32].mxu0 %v3782_v6  ;;  %8209 = vmatprep.mubr.f32.mxu1 %v545_v38  ;;  %v7048_v6 = vld [vmem:[%s10570_s24 + $0x1f8] sm:$0x3]  ;;  %v6979_v38 = vld [vmem:[%s13255_s1 + $0x130] sm:$0xff]  ;;  %v9416_v58 = vpack.c.bf16 %v6984_v32, %v6983_v56  ;;  %v7085_v25 = vld [vmem:[%s13255_s1 + $0x180] sm:$0xff] }
  0xba   : > { %8855 = vmatprep.mubr.f32.mxu0 %v3784_v42  ;;  %v3803_v42 = vsel %vm1487_vm1, %v3801_v46, %v3802_v51  ;;  %v3806_v39 = vrot.slane %v7048_v6, 2  ;;  %v9408_v62 = vpack.c.bf16 %v6980_v26, %v6979_v38  ;;  %v11461_v46 = vld [vmem:[%s10570_s24 + $0x68] sm:$0xff]  ;;  %v11498_v56 = vld [vmem:[%s10570_s24 + $0x90] sm:$0xff] }
  0xbc   : > { %8210 = vmatmul.mubr.f32.gmra.mrb[70].mxu1 %v547_v7  ;;  %v11422_v7 = vld [vmem:[%s10570_s24 + $0x40] sm:$0xff]  ;;  %v3807_v43 = vsel %vm1487_vm1, %v3804_v48, %v3806_v39 }
  0xbd   : > { %8856 = vmatmul.mubr.f32.gmra.mrb[34].mxu0 %v3786_v22  ;;  %8244 = vmatprep.mubr.f32.mxu1 %v11365_v11  ;;  %v3805_v22 = vsel %vm1487_vm1, %v3802_v51, %v3804_v48  ;;  %v3814_v51 = vsel %vm1487_vm1, %v3811_v35, %v3813_v3  ;;  %v6987_v48 = vld [vmem:[%s13255_s1 + $0x170] sm:$0xff]  ;;  %v11478_v39 = vld [vmem:[%s10570_s24 + $0x80] sm:$0xff] }
  0xbe   : > { %8858 = vmatprep.mubr.f32.mxu0 %v3789_v8  ;;  %v3809_v8 = vrot.slane %v11139_v20, 2  ;;  %v11442_v20 = vld [vmem:[%s10570_s24 + $0x50] sm:$0xff] }
  0xc0   : > { %8245 = vmatmul.mubr.f32.vlgmr.msra.gmra.mrb[0].mxu1 %v11375_v10  ;;  %v3812_v13 = vsel %vm1487_vm1, %v3809_v8, %v3811_v35  ;;  %v11488_v35 = vld [vmem:[%s10570_s24 + $0x88] sm:$0xff] }
  0xc1   : > { %8859 = vmatmul.mubr.f32.gmra.mrb[36].mxu0 %v3791_v49  ;;  %9399 = vmatpush3.bf16.msra.mxu1 %v13370_v36  ;;  %v9412_v49 = vpack.c.bf16 %v6982_v37, %v6981_v34  ;;  %v11450_v36 = vld [vmem:[%s10570_s24 + $0x60] sm:$0xff]  ;;  %v3822_v34 = vrot.slane %v11200_v59, 2  ;;  %v3823_v37 = vrot.slane %v11203_v23, 2 }
  0xc2   : > { %8247 = vmatprep.mubr.f32.mxu1 %v11386_v61  ;;  %8861 = vmatprep.mubr.f32.mxu0 %v3793_v29  ;;  %v3810_v29 = vsel %vm1487_vm1, %v3808_v41, %v3809_v8  ;;  %v3825_v41 = vrot.slane %v11218_v52, 2  ;;  %v7060_v8 = vld [vmem:[%s10570_s24 + $0x258] sm:$0x3] }
  0xc3   : > { %9401 = vmatprep.subr.bf16.mxu1 %v9400_v5  ;;  %v3824_v32 = vsel %vm1487_vm1, %v3822_v34, %v3823_v37 }
  0xc4   : > { %8248 = vmatmul.mubr.f32.gmra.mrb[2].mxu1 %v11394_v57  ;;  %v3826_v3 = vsel %vm1487_vm1, %v3823_v37, %v3825_v41  ;;  %v3839_v37 = vrot.slane %v11267_v33, 2 }
  0xc5   : > { %8862 = vmatmul.mubr.f32.gmra.mrb[38].mxu0 %v3796_v27  ;;  %8250 = vmatprep.mubr.f32.mxu1 %v11405_v2  ;;  %v7056_v27 = vld [vmem:[%s10570_s24 + $0x238] sm:$0x3] }
  0xc6   : > { %8864 = vmatprep.mubr.f32.mxu0 %v3798_v14  ;;  %9403 = vmatpush3.bf16.msra.mxu1 %v9400_v5  ;;  %v3815_v5 = vrot.slane %v11172_v54, 2  ;;  %v6986_v14 = vld [vmem:[%s13255_s1 + $0x168] sm:$0xff]  ;;  %v3820_v38 = vrot.slane %v7056_v27, 2  ;;  %v7064_v27 = vld [vmem:[%s10570_s24 + $0x278] sm:$0x3] }
  0xc7   : > { %9405 = vmatprep.subr.bf16.mxu1 %v9404_v1  ;;  %v9420_v26 = vpack.c.bf16 %v6986_v14, %v6985_v16  ;;  %v11513_v16 = vld [vmem:[%s10570_s24 + $0xa8] sm:$0xff] }
  0xc8   : > { %8251 = vmatmul.mubr.f32.gmra.mrb[4].mxu1 %v11412_v0  ;;  %v3817_v6 = vsel %vm1487_vm1, %v3815_v5, %v3816_v45  ;;  %v3830_v5 = vrot.slane %v11235_v55, 2 }
  0xc9   : > { %8865 = vmatmul.mubr.f32.gmra.mrb[40].mxu0 %v3800_v9  ;;  %8253 = vmatprep.mubr.f32.mxu1 %v11422_v7  ;;  %v11468_v9 = vld [vmem:[%s10570_s24 + $0x70] sm:$0xff] }
  0xca   : > { %8867 = vmatprep.mubr.f32.mxu0 %v3803_v42  ;;  %9407 = vmatpush3.bf16.msra.mxu1 %v9404_v1  ;;  %v3818_v1 = vrot.slane %v11180_v15, 2  ;;  %v6988_v42 = vld [vmem:[%s13255_s1 + $0x178] sm:$0xff] }
  0xcb   : > { %9409 = vmatprep.subr.bf16.mxu1 %v9408_v62 }
  0xcc   : > { %8254 = vmatmul.mubr.f32.gmra.mrb[6].mxu1 %v11432_v17 }
  0xcd   : > { %8868 = vmatmul.mubr.f32.gmra.mrb[42].mxu0 %v3805_v22  ;;  %8256 = vmatprep.mubr.f32.mxu1 %v11442_v20  ;;  %v3821_v22 = vsel %vm1487_vm1, %v3818_v1, %v3820_v38  ;;  %v11521_v38 = vld [vmem:[%s10570_s24 + $0xb0] sm:$0xff] }
  0xce   : > { %8870 = vmatprep.mubr.f32.mxu0 %v3807_v43  ;;  %9411 = vmatpush3.bf16.msra.mxu1 %v9408_v62  ;;  %v3819_v62 = vsel %vm1487_vm1, %v3816_v45, %v3818_v1  ;;  %v9424_v43 = vpack.c.bf16 %v6988_v42, %v6987_v48  ;;  %v3836_v42 = vrot.slane %v11255_v24, 2 }
  0xcf   : > { %9413 = vmatprep.subr.bf16.mxu1 %v9412_v49 }
  0xd0   : > { %8257 = vmatmul.mubr.f32.gmra.mrb[8].mxu1 %v11450_v36 }
  0xd1   : > { %8871 = vmatmul.mubr.f32.gmra.mrb[44].mxu0 %v3810_v29  ;;  %8259 = vmatprep.mubr.f32.mxu1 %v11461_v46  ;;  %v3827_v29 = vrot.slane %v7060_v8, 2  ;;  %v11539_v8 = vld [vmem:[%s10570_s24 + $0xd0] sm:$0xff] }
  0xd2   : > { %8873 = vmatprep.mubr.f32.mxu0 %v3812_v13  ;;  %9415 = vmatpush3.bf16.msra.mxu1 %v9412_v49  ;;  %v7086_v49 = vld [vmem:[%s13255_s1 + $0x188] sm:$0xff]  ;;  %v3829_v13 = vrot.slane %v11232_v30, 2 }
  0xd3   : > { %9417 = vmatprep.subr.bf16.mxu1 %v9416_v58  ;;  %v11505_v45 = vpack.c.bf16 %v7086_v49, %v7085_v25  ;;  %v3828_v14 = vsel %vm1487_vm1, %v3825_v41, %v3827_v29  ;;  %v11535_v41 = vld [vmem:[%s10570_s24 + $0xc8] sm:$0xff]  ;;  %v3844_v29 = vrot.slane %v11282_v44, 2 }
  0xd4   : > { %8260 = vmatmul.mubr.f32.gmra.mrb[10].mxu1 %v11468_v9  ;;  %v3831_v1 = vsel %vm1487_vm1, %v3829_v13, %v3830_v5  ;;  %v7072_v13 = vld [vmem:[%s10570_s24 + $0x2b8] sm:$0x3] }
  0xd5   : > { %8874 = vmatmul.mubr.f32.gmra.mrb[46].mxu0 %v3814_v51  ;;  %8262 = vmatprep.mubr.f32.mxu1 %v11478_v39  ;;  %v3832_v51 = vrot.slane %v11240_v47, 2 }
  0xd6   : > { %8876 = vmatprep.mubr.f32.mxu0 %v3817_v6  ;;  %9419 = vmatpush3.bf16.msra.mxu1 %v9416_v58  ;;  %v11508_v58 = vld [vmem:[%s10570_s24 + $0xa0] sm:$0xff]  ;;  %v3834_v6 = vrot.slane %v7064_v27, 2 }
  0xd7   : > { %9421 = vmatprep.subr.bf16.mxu1 %v9420_v26  ;;  %v3833_v48 = vsel %vm1487_vm1, %v3830_v5, %v3832_v51  ;;  %v11552_v5 = vld [vmem:[%s10570_s24 + $0xe8] sm:$0xff] }
  0xd8   : > { %8263 = vmatmul.mubr.f32.gmra.mrb[12].mxu1 %v11488_v35  ;;  %v3835_v34 = vsel %vm1487_vm1, %v3832_v51, %v3834_v6  ;;  %v11559_v6 = vld [vmem:[%s10570_s24 + $0xf0] sm:$0xff] }
  0xd9   : > { %8877 = vmatmul.mubr.f32.gmra.mrb[48].mxu0 %v3819_v62  ;;  %8265 = vmatprep.mubr.f32.mxu1 %v11498_v56  ;;  %v3837_v62 = vrot.slane %v11258_v12, 2 }
  0xda   : > { %8879 = vmatprep.mubr.f32.mxu0 %v3821_v22  ;;  %9423 = vmatpush3.bf16.msra.mxu1 %v9420_v26  ;;  %v11525_v26 = vld [vmem:[%s10570_s24 + $0xc0] sm:$0xff]  ;;  %v7068_v22 = vld [vmem:[%s10570_s24 + $0x298] sm:$0x3] }
  0xdb   : > { %9425 = vmatprep.subr.bf16.mxu1 %v9424_v43  ;;  %v3841_v25 = vrot.slane %v7068_v22, 2  ;;  %v3840_v49 = vsel %vm1487_vm1, %v3837_v62, %v3839_v37  ;;  %v3853_v22 = vrot.slane %v11313_v28, 2 }
  0xdc   : > { %8266 = vmatmul.mubr.f32.gmra.mrb[14].mxu1 %v11508_v58 }
  0xdd   : > { %8880 = vmatmul.mubr.f32.gmra.mrb[50].mxu0 %v3824_v32  ;;  %8268 = vmatprep.mubr.f32.mxu1 %v11513_v16  ;;  %v3843_v32 = vrot.slane %v11279_v40, 2  ;;  %v3842_v27 = vsel %vm1487_vm1, %v3839_v37, %v3841_v25  ;;  %v11573_v25 = vld [vmem:[%s10570_s24 + $0x108] sm:$0xff] }
  0xde   : > { %8882 = vmatprep.mubr.f32.mxu0 %v3826_v3  ;;  %9427 = vmatpush3.bf16.msra.mxu1 %v9424_v43  ;;  %v3838_v43 = vsel %vm1487_vm1, %v3836_v42, %v3837_v62  ;;  %v11547_v3 = vld [vmem:[%s10570_s24 + $0xe0] sm:$0xff]  ;;  %v3850_v62 = vrot.slane %v11301_v31, 2  ;;  %13371 = vst [vmem:[#allocation11_spill] sm:$0xff] %v11573_v25 }
  0xdf   : > { %9429 = vmatprep.subr.bf16.mxu1 %v11505_v45  ;;  %v3845_v51 = vsel %vm1487_vm1, %v3843_v32, %v3844_v29 }
  0xe0   : > { %8269 = vmatmul.mubr.f32.gmra.mrb[16].mxu1 %v11521_v38 }
  0xe1   : > { %8883 = vmatmul.mubr.f32.gmra.mrb[52].mxu0 %v3828_v14  ;;  %8271 = vmatprep.mubr.f32.mxu1 %v11525_v26  ;;  %v3846_v14 = vrot.slane %v11287_v50, 2 }
  0xe2   : > { %8885 = vmatprep.mubr.f32.mxu0 %v3831_v1  ;;  %v3848_v1 = vrot.slane %v7072_v13, 2 }
  0xe3   : > { %v3847_v42 = vsel %vm1487_vm1, %v3844_v29, %v3846_v14 }
  0xe4   : > { %8272 = vmatmul.mubr.f32.gmra.mrb[18].mxu1 %v11535_v41  ;;  %v3849_v37 = vsel %vm1487_vm1, %v3846_v14, %v3848_v1  ;;  %v3858_v14 = vrot.slane %v11328_v19, 2  ;;  %v7080_v1 = vld [vmem:[%s10570_s24 + $0x2f8] sm:$0x3] }
  0xe5   : > { %8886 = vmatmul.mubr.f32.gmra.mrb[54].mxu0 %v3833_v48  ;;  %8274 = vmatprep.mubr.f32.mxu1 %v11539_v8  ;;  %v11563_v48 = vld [vmem:[%s10570_s24 + $0x100] sm:$0xff] }
  0xe6   : > { %8888 = vmatprep.mubr.f32.mxu0 %v3835_v34  ;;  %v3851_v34 = vrot.slane %v11304_v18, 2 }
  0xe8   : > { %8275 = vmatmul.mubr.f32.gmra.mrb[20].mxu1 %v11547_v3  ;;  %v3852_v32 = vsel %vm1487_vm1, %v3850_v62, %v3851_v34  ;;  %v3854_v13 = vsel %vm1487_vm1, %v3851_v34, %v3853_v22  ;;  %v3860_v34 = vrot.slane %v11333_v63, 2 }
  0xe9   : > { %8889 = vmatmul.mubr.f32.gmra.mrb[56].mxu0 %v3838_v43  ;;  %8277 = vmatprep.mubr.f32.mxu1 %v11552_v5  ;;  %v7076_v43 = vld [vmem:[%s10570_s24 + $0x2d8] sm:$0x3] }
  0xea   : > { %8891 = vmatprep.mubr.f32.mxu0 %v3840_v49  ;;  %v11577_v49 = vld [vmem:[%s10570_s24 + $0x110] sm:$0xff]  ;;  %v3855_v29 = vrot.slane %v7076_v43, 2  ;;  %v3862_v43 = vrot.slane %v7080_v1, 2 }
  0xeb   : > { %13372 = vst [vmem:[#allocation12_spill] sm:$0xff] %v11577_v49 }
  0xec   : > { %8278 = vmatmul.mubr.f32.gmra.mrb[22].mxu1 %v11559_v6  ;;  %v3856_v62 = vsel %vm1487_vm1, %v3853_v22, %v3855_v29  ;;  %v11610_v22 = vld [vmem:[%s10570_s24 + $0x140] sm:$0xff]  ;;  %v3861_v29 = vsel %vm1487_vm1, %v3858_v14, %v3860_v34  ;;  %v3863_v1 = vsel %vm1487_vm1, %v3860_v34, %v3862_v43 }
  0xed   : > { %8892 = vmatmul.mubr.f32.gmra.mrb[58].mxu0 %v3842_v27  ;;  %8280 = vmatprep.mubr.f32.mxu1 %v11563_v48  ;;  %v3857_v27 = vrot.slane %v11325_v60, 2 }
  0xee   : > { %8894 = vmatprep.mubr.f32.mxu0 %v3845_v51  ;;  %v11585_v51 = vld [vmem:[%s10570_s24 + $0x120] sm:$0xff] }
  0xef   : > { %13373 = vst [vmem:[#allocation13_spill] sm:$0xff] %v11585_v51 }
  0xf0   : > { %8281 = vmatmul.mubr.f32.gmra.mrb[24].mxu1 %v11573_v25  ;;  %v11603_v25 = vld [vmem:[%s10570_s24 + $0x130] sm:$0xff] }
  0xf1   : > { %8895 = vmatmul.mubr.f32.gmra.mrb[60].mxu0 %v3847_v42  ;;  %8283 = vmatprep.mubr.f32.mxu1 %v11577_v49  ;;  %v11590_v42 = vld [vmem:[%s10570_s24 + $0x128] sm:$0xff]  ;;  %v11597_v49 = vld [vmem:[%s10570_s24 + $0x300] sm:$0xff]  ;;  %13377 = vst [vmem:[#allocation16_spill] sm:$0xff] %v11603_v25 }
  0xf2   : > { %8897 = vmatprep.mubr.f32.mxu0 %v3849_v37  ;;  %13374 = vst [vmem:[#allocation14_spill] sm:$0xff] %v11590_v42  ;;  %v3859_v37 = vsel %vm1487_vm1, %v3857_v27, %v3858_v14  ;;  %13375 = vst [vmem:[#allocation15_spill] sm:$0xff] %v11597_v49 }
  0xf4   : > { %8284 = vmatmul.mubr.f32.gmra.mrb[26].mxu1 %v11585_v51  ;;  %v11600_v51 = vld [vmem:[%s10570_s24 + $0x308] sm:$0xff] }
  0xf5   : > { %8898 = vmatmul.mubr.f32.gmra.mrb[62].mxu0 %v3852_v32  ;;  %8286 = vmatprep.mubr.f32.mxu1 %v11590_v42  ;;  %13376 = vst [vmem:[#allocation10_spill] sm:$0xff] %v11600_v51  ;;  %v11607_v32 = vld [vmem:[%s10570_s24 + $0x310] sm:$0xff]  ;;  %v3865_v27 = vrot.slane %v11600_v51, 2  ;;  %v7084_v42 = vld [vmem:[%s10570_s24 + $0x318] sm:$0x3] }
  0xf6   : > { %8900 = vmatprep.mubr.f32.mxu0 %v3854_v13  ;;  %13378 = vst [vmem:[#allocation17_spill] sm:$0xff] %v11607_v32  ;;  %v3864_v13 = vrot.slane %v11597_v49, 2  ;;  %v3869_v34 = vrot.slane %v7084_v42, 2  ;;  %v11696_v49 = vld [vmem:[%s10570_s24 + $0x1a0] sm:$0xff] }
  0xf7   : > { %13391 = vst [vmem:[#allocation30_spill] sm:$0xff] %v11696_v49 }
  0xf8   : > { %8287 = vmatmul.mubr.f32.gmra.mrb[28].mxu1 %v11603_v25  ;;  %v11618_v25 = vrot.slane %v11607_v32, 2  ;;  %v11630_v14 = vsel %vm1487_vm1, %v3864_v13, %v3865_v27  ;;  %v11637_v32 = vld [vmem:[%s10570_s24 + $0x160] sm:$0xff] }
  0xf9   : > { %8901 = vmatmul.mubr.f32.gmra.mrb[64].mxu0 %v3856_v62  ;;  %8289 = vmatprep.mubr.f32.mxu1 %v11610_v22  ;;  %v11622_v62 = vld [vmem:[%s10570_s24 + $0x148] sm:$0xff]  ;;  %13380 = vst [vmem:[#allocation19_spill] sm:$0xff] %v11630_v14  ;;  %v11649_v13 = vld [vmem:[%s10570_s24 + $0x40] sm:$0xff] }
  0xfa   : > { %8903 = vmatprep.mubr.f32.mxu0 %v3859_v37  ;;  %13379 = vst [vmem:[#allocation18_spill] sm:$0xff] %v11618_v25  ;;  %v11626_v37 = vld [vmem:[%s10570_s24 + $0x150] sm:$0xff]  ;;  %v11634_v43 = vsel %vm1487_vm1, %v3865_v27, %v11618_v25  ;;  %v3870_v42 = vsel %vm1487_vm1, %v11618_v25, %v3869_v34  ;;  %13382 = vst [vmem:[#allocation21_spill] sm:$0xff] %v11649_v13  ;;  %v11667_v34 = vld [vmem:[%s10570_s24 + $0x48] sm:$0xff] }
  0xfb   : > { %13381 = vst [vmem:[#allocation20_spill] sm:$0xff] %v11634_v43  ;;  %v11652_v27 = vld [vmem:[%s10570_s24 + $0x170] sm:$0xff]  ;;  %13385 = vst [vmem:[#allocation24_spill] sm:$0xff] %v11667_v34 }
  0xfc   : > { %8290 = vmatmul.mubr.f32.gmra.mrb[30].mxu1 %v11622_v62  ;;  %13383 = vst [vmem:[#allocation22_spill] sm:$0xff] %v11652_v27  ;;  %v11670_v25 = vld [vmem:[%s10570_s24 + $0x50] sm:$0xff] }
  0xfd   : > { %8904 = vmatmul.mubr.f32.gmra.mrb[66].mxu0 %v3861_v29  ;;  %8292 = vmatprep.mubr.f32.mxu1 %v11626_v37  ;;  %v11642_v29 = vld [vmem:[%s10570_s24 + $0x168] sm:$0xff]  ;;  %13386 = vst [vmem:[#allocation25_spill] sm:$0xff] %v11670_v25 }
  0xfe   : > { %8906 = vmatprep.mubr.f32.mxu0 %v3863_v1  ;;  %v7247_v1 = vld [vmem:[%s13255_s1 + $0x390] sm:$0xff] }
 0x100   : > { %8293 = vmatmul.mubr.f32.gmra.mrb[32].mxu1 %v11637_v32 }
 0x101   : > { %8907 = vmatmul.mubr.f32.gmra.mrb[68].mxu0 %v11630_v14  ;;  %8295 = vmatprep.mubr.f32.mxu1 %v11642_v29  ;;  %v7248_v14 = vld [vmem:[%s13255_s1 + $0x398] sm:$0xff] }
 0x102   : > { %8909 = vmatprep.mubr.f32.mxu0 %v11634_v43  ;;  %v11662_v43 = vld [vmem:[%s10570_s24 + $0x180] sm:$0xff]  ;;  %v9560_v51 = vpack.c.bf16 %v7248_v14, %v7247_v1  ;;  %v11693_v1 = vld [vmem:[%s10570_s24 + $0x68] sm:$0xff] }
 0x103   : > { %13384 = vst [vmem:[#allocation23_spill] sm:$0xff] %v11662_v43  ;;  %v11690_v14 = vld [vmem:[%s10570_s24 + $0x60] sm:$0xff]  ;;  %13390 = vst [vmem:[#allocation29_spill] sm:$0xff] %v11693_v1 }
 0x104   : > { %8296 = vmatmul.mubr.f32.gmra.mrb[34].mxu1 %v11652_v27  ;;  %v11673_v27 = vld [vmem:[%s10570_s24 + $0x188] sm:$0xff]  ;;  %13389 = vst [vmem:[#allocation28_spill] sm:$0xff] %v11690_v14 }
 0x105   : > { %8910 = vmatmul.mubr.f32.gmra.mrb[70].mxu0 %v3870_v42  ;;  %8298 = vmatprep.mubr.f32.mxu1 %v11662_v43  ;;  %13387 = vst [vmem:[#allocation26_spill] sm:$0xff] %v11673_v27  ;;  %v7249_v42 = vld [vmem:[%s13255_s1 + $0x3a0] sm:$0xff]  ;;  %v7250_v43 = vld [vmem:[%s13255_s1 + $0x3a8] sm:$0xff] }
 0x106   : > { %8944 = vmatprep.mubr.f32.mxu0 %v11649_v13  ;;  %v11684_v13 = vld [vmem:[%s10570_s24 + $0x190] sm:$0xff] }
 0x107   : > { %13388 = vst [vmem:[#allocation27_spill] sm:$0xff] %v11684_v13 }
 0x108   : > { %8299 = vmatmul.mubr.f32.gmra.mrb[36].mxu1 %v11673_v27  ;;  %v9564_v27 = vpack.c.bf16 %v7250_v43, %v7249_v42  ;;  %v11712_v43 = vld [vmem:[%s10570_s24 + $0x70] sm:$0xff]  ;;  %v11715_v42 = vld [vmem:[%s10570_s24 + $0x80] sm:$0xff] }
 0x109   : > { %8945 = vmatmul.mubr.f32.vlgmr.msra.gmra.mrb[0].mxu0 %v11667_v34  ;;  %8301 = vmatprep.mubr.f32.mxu1 %v11684_v13  ;;  %v7251_v13 = vld [vmem:[%s13255_s1 + $0x3b0] sm:$0xff]  ;;  %13393 = vst [vmem:[#allocation32_spill] sm:$0xff] %v11712_v43  ;;  %13394 = vst [vmem:[#allocation33_spill] sm:$0xff] %v11715_v42 }
 0x10a   : > { %9559 = vmatpush3.bf16.msra.mxu0 %v11224_v4  ;;  %8947 = vmatprep.mubr.f32.mxu0 %v11670_v25  ;;  %v7252_v4 = vld [vmem:[%s13255_s1 + $0x3b8] sm:$0xff]  ;;  %v11707_v25 = vld [vmem:[%s10570_s24 + $0x1a8] sm:$0xff]  ;;  %v11718_v34 = vld [vmem:[%s10570_s24 + $0x1b0] sm:$0xff] }
 0x10b   : > { %9561 = vmatprep.subr.bf16.mxu0 %v9560_v51  ;;  %13392 = vst [vmem:[#allocation31_spill] sm:$0xff] %v11707_v25  ;;  %13395 = vst [vmem:[#allocation34_spill] sm:$0xff] %v11718_v34 }
 0x10c   : > { %8302 = vmatmul.mubr.f32.gmra.mrb[38].mxu1 %v11696_v49  ;;  %v9568_v49 = vpack.c.bf16 %v7252_v4, %v7251_v13  ;;  %v11734_v13 = vld [vmem:[%s10570_s24 + $0x88] sm:$0xff]  ;;  %v11737_v4 = vld [vmem:[%s10570_s24 + $0x90] sm:$0xff] }
 0x10d   : > { %8948 = vmatmul.mubr.f32.gmra.mrb[2].mxu0 %v11690_v14  ;;  %8304 = vmatprep.mubr.f32.mxu1 %v11707_v25  ;;  %v7253_v14 = vld [vmem:[%s13255_s1 + $0x3c0] sm:$0xff]  ;;  %v7254_v25 = vld [vmem:[%s13255_s1 + $0x3c8] sm:$0xff]  ;;  %13397 = vst [vmem:[#allocation36_spill] sm:$0xff] %v11734_v13  ;;  %13398 = vst [vmem:[#allocation37_spill] sm:$0xff] %v11737_v4 }
 0x10e   : > { %8950 = vmatprep.mubr.f32.mxu0 %v11693_v1  ;;  %9563 = vmatpush3.bf16.msra.mxu0 %v9560_v51  ;;  %v11729_v51 = vld [vmem:[%s10570_s24 + $0x1c0] sm:$0xff]  ;;  %v11740_v1 = vld [vmem:[%s10570_s24 + $0x1c8] sm:$0xff] }
 0x10f   : > { %9565 = vmatprep.subr.bf16.mxu0 %v9564_v27  ;;  %13396 = vst [vmem:[#allocation35_spill] sm:$0xff] %v11729_v51  ;;  %13399 = vst [vmem:[#allocation38_spill] sm:$0xff] %v11740_v1 }
 0x110   : > { %8305 = vmatmul.mubr.f32.gmra.mrb[40].mxu1 %v11718_v34  ;;  %v9572_v34 = vpack.c.bf16 %v7254_v25, %v7253_v14  ;;  %v11756_v25 = vld [vmem:[%s10570_s24 + $0xa0] sm:$0xff]  ;;  %v11759_v14 = vld [vmem:[%s10570_s24 + $0xa8] sm:$0xff] }
 0x111   : > { %8951 = vmatmul.mubr.f32.gmra.mrb[4].mxu0 %v11712_v43  ;;  %8307 = vmatprep.mubr.f32.mxu1 %v11729_v51  ;;  %v7255_v43 = vld [vmem:[%s13255_s1 + $0x3d0] sm:$0xff]  ;;  %13401 = vst [vmem:[#allocation40_spill] sm:$0xff] %v11756_v25  ;;  %13402 = vst [vmem:[#allocation41_spill] sm:$0xff] %v11759_v14  ;;  %v11762_v51 = vld [vmem:[%s10570_s24 + $0x1e0] sm:$0xff] }
 0x112   : > { %8953 = vmatprep.mubr.f32.mxu0 %v11715_v42  ;;  %9567 = vmatpush3.bf16.msra.mxu0 %v9564_v27  ;;  %v7256_v42 = vld [vmem:[%s13255_s1 + $0x3d8] sm:$0xff]  ;;  %v11751_v27 = vld [vmem:[%s10570_s24 + $0x1d0] sm:$0xff]  ;;  %13403 = vst [vmem:[#allocation42_spill] sm:$0xff] %v11762_v51 }
 0x113   : > { %9569 = vmatprep.subr.bf16.mxu0 %v9568_v49  ;;  %13400 = vst [vmem:[#allocation39_spill] sm:$0xff] %v11751_v27 }
 0x114   : > { %8308 = vmatmul.mubr.f32.gmra.mrb[42].mxu1 %v11740_v1  ;;  %v9576_v1 = vpack.c.bf16 %v7256_v42, %v7255_v43  ;;  %v11778_v43 = vld [vmem:[%s10570_s24 + $0xb0] sm:$0xff]  ;;  %v11781_v42 = vld [vmem:[%s10570_s24 + $0xc0] sm:$0xff] }
 0x115   : > { %8954 = vmatmul.mubr.f32.gmra.mrb[6].mxu0 %v11734_v13  ;;  %8310 = vmatprep.mubr.f32.mxu1 %v11751_v27  ;;  %v7257_v13 = vld [vmem:[%s13255_s1 + $0x3e0] sm:$0xff]  ;;  %13405 = vst [vmem:[#allocation44_spill] sm:$0xff] %v11778_v43  ;;  %13406 = vst [vmem:[#allocation45_spill] sm:$0xff] %v11781_v42  ;;  %v11784_v27 = vld [vmem:[%s10570_s24 + $0x1f0] sm:$0xff] }
 0x116   : > { %8956 = vmatprep.mubr.f32.mxu0 %v11737_v4  ;;  %9571 = vmatpush3.bf16.msra.mxu0 %v9568_v49  ;;  %v7258_v4 = vld [vmem:[%s13255_s1 + $0x3e8] sm:$0xff]  ;;  %13407 = vst [vmem:[#allocation46_spill] sm:$0xff] %v11784_v27 }
 0x117   : > { %9573 = vmatprep.subr.bf16.mxu0 %v9572_v34  ;;  %v11773_v49 = vld [vmem:[%s10570_s24 + $0x1e8] sm:$0xff] }
 0x118   : > { %8311 = vmatmul.mubr.f32.gmra.mrb[44].mxu1 %v11762_v51  ;;  %13404 = vst [vmem:[#allocation43_spill] sm:$0xff] %v11773_v49  ;;  %v9580_v51 = vpack.c.bf16 %v7258_v4, %v7257_v13  ;;  %v11800_v13 = vld [vmem:[%s10570_s24 + $0xc8] sm:$0xff]  ;;  %v11803_v4 = vld [vmem:[%s10570_s24 + $0xd0] sm:$0xff] }
 0x119   : > { %8957 = vmatmul.mubr.f32.gmra.mrb[8].mxu0 %v11756_v25  ;;  %8313 = vmatprep.mubr.f32.mxu1 %v11773_v49  ;;  %v7259_v25 = vld [vmem:[%s13255_s1 + $0x3f0] sm:$0xff]  ;;  %v7260_v49 = vld [vmem:[%s13255_s1 + $0x3f8] sm:$0xff] }
 0x11a   : > { %8959 = vmatprep.mubr.f32.mxu0 %v11759_v14  ;;  %9575 = vmatpush3.bf16.msra.mxu0 %v9572_v34  ;;  %v11795_v34 = vld [vmem:[%s10570_s24 + $0x200] sm:$0xff]  ;;  %v11806_v14 = vld [vmem:[%s10570_s24 + $0x208] sm:$0xff] }
 0x11b   : > { %9577 = vmatprep.subr.bf16.mxu0 %v9576_v1 }
 0x11c   : > { %8314 = vmatmul.mubr.f32.gmra.mrb[46].mxu1 %v11784_v27  ;;  %v9584_v27 = vpack.c.bf16 %v7260_v49, %v7259_v25  ;;  %v11822_v25 = vld [vmem:[%s10570_s24 + $0xe8] sm:$0xff] }
 0x11d   : > { %8960 = vmatmul.mubr.f32.gmra.mrb[10].mxu0 %v11778_v43  ;;  %8316 = vmatprep.mubr.f32.mxu1 %v11795_v34  ;;  %v7261_v43 = vld [vmem:[%s13255_s1 + $0x400] sm:$0xff] }
 0x11e   : > { %8962 = vmatprep.mubr.f32.mxu0 %v11781_v42  ;;  %9579 = vmatpush3.bf16.msra.mxu0 %v9576_v1  ;;  %v7262_v42 = vld [vmem:[%s13255_s1 + $0x408] sm:$0xff]  ;;  %v11819_v1 = vld [vmem:[%s10570_s24 + $0xe0] sm:$0xff] }
 0x11f   : > { %9581 = vmatprep.subr.bf16.mxu0 %v9580_v51  ;;  %v11824_v49 = vpack.c.bf16 %v7262_v42, %v7261_v43  ;;  %v11917_v43 = vld [vmem:[%s10570_s24 + $0x1a8] sm:$0xff] }
 0x120   : > { %8317 = vmatmul.mubr.f32.gmra.mrb[48].mxu1 %v11806_v14  ;;  %13411 = vst [vmem:[#allocation50_spill] sm:$0xff] %v11917_v43 }
 0x121   : > { %8963 = vmatmul.mubr.f32.gmra.mrb[12].mxu0 %v11800_v13  ;;  %8319 = vmatprep.mubr.f32.mxu1 %v11154_v53  ;;  %v11831_v53 = vld [vmem:[%s10570_s24 + $0xf0] sm:$0xff] }
 0x122   : > { %8965 = vmatprep.mubr.f32.mxu0 %v11803_v4  ;;  %9583 = vmatpush3.bf16.msra.mxu0 %v9580_v51  ;;  %v11834_v51 = vld [vmem:[%s10570_s24 + $0x100] sm:$0xff] }
 0x123   : > { %9585 = vmatprep.subr.bf16.mxu0 %v9584_v27 }
 0x124   : > { %8320 = vmatmul.mubr.f32.gmra.mrb[50].mxu1 %v11172_v54  ;;  %v11842_v54 = vld [vmem:[%s10570_s24 + $0x108] sm:$0xff] }
 0x125   : > { %8966 = vmatmul.mubr.f32.gmra.mrb[14].mxu0 %v11819_v1  ;;  %8322 = vmatprep.mubr.f32.mxu1 %v11175_v21  ;;  %v11845_v21 = vld [vmem:[%s10570_s24 + $0x110] sm:$0xff] }
 0x126   : > { %8968 = vmatprep.mubr.f32.mxu0 %v11822_v25  ;;  %9587 = vmatpush3.bf16.msra.mxu0 %v9584_v27  ;;  %v11855_v27 = vld [vmem:[%s10570_s24 + $0x128] sm:$0xff] }
 0x127   : > { %9589 = vmatprep.subr.bf16.mxu0 %v11824_v49 }
 0x128   : > { %8323 = vmatmul.mubr.f32.gmra.mrb[52].mxu1 %v11180_v15  ;;  %v11852_v15 = vld [vmem:[%s10570_s24 + $0x120] sm:$0xff] }
 0x129   : > { %8969 = vmatmul.mubr.f32.gmra.mrb[16].mxu0 %v11831_v53  ;;  %8325 = vmatprep.mubr.f32.mxu1 %v11200_v59  ;;  %v11862_v59 = vld [vmem:[%s10570_s24 + $0x130] sm:$0xff] }
 0x12a   : > { %8971 = vmatprep.mubr.f32.mxu0 %v11834_v51 }
 0x12c   : > { %8326 = vmatmul.mubr.f32.gmra.mrb[54].mxu1 %v11203_v23  ;;  %v11865_v23 = vld [vmem:[%s10570_s24 + $0x140] sm:$0xff] }
 0x12d   : > { %8972 = vmatmul.mubr.f32.gmra.mrb[18].mxu0 %v11842_v54  ;;  %8328 = vmatprep.mubr.f32.mxu1 %v11218_v52  ;;  %v11872_v52 = vld [vmem:[%s10570_s24 + $0x148] sm:$0xff] }
 0x12e   : > { %8974 = vmatprep.mubr.f32.mxu0 %v11845_v21 }
 0x130   : > { %8329 = vmatmul.mubr.f32.gmra.mrb[56].mxu1 %v11232_v30  ;;  %v11875_v30 = vld [vmem:[%s10570_s24 + $0x150] sm:$0xff] }
 0x131   : > { %8975 = vmatmul.mubr.f32.gmra.mrb[20].mxu0 %v11852_v15  ;;  %8331 = vmatprep.mubr.f32.mxu1 %v11235_v55  ;;  %v11882_v55 = vld [vmem:[%s10570_s24 + $0x160] sm:$0xff] }
 0x132   : > { %8977 = vmatprep.mubr.f32.mxu0 %v11855_v27 }
 0x134   : > { %8332 = vmatmul.mubr.f32.gmra.mrb[58].mxu1 %v11240_v47  ;;  %v11885_v47 = vld [vmem:[%s10570_s24 + $0x168] sm:$0xff] }
 0x135   : > { %8978 = vmatmul.mubr.f32.gmra.mrb[22].mxu0 %v11862_v59  ;;  %8334 = vmatprep.mubr.f32.mxu1 %v11255_v24  ;;  %v11892_v24 = vld [vmem:[%s10570_s24 + $0x170] sm:$0xff] }
 0x136   : > { %8980 = vmatprep.mubr.f32.mxu0 %v11865_v23 }
 0x138   : > { %8335 = vmatmul.mubr.f32.gmra.mrb[60].mxu1 %v11258_v12  ;;  %v11895_v12 = vld [vmem:[%s10570_s24 + $0x180] sm:$0xff] }
 0x139   : > { %8981 = vmatmul.mubr.f32.gmra.mrb[24].mxu0 %v11872_v52  ;;  %8337 = vmatprep.mubr.f32.mxu1 %v11267_v33  ;;  %v11902_v33 = vld [vmem:[%s10570_s24 + $0x188] sm:$0xff] }
 0x13a   : > { %8983 = vmatprep.mubr.f32.mxu0 %v11875_v30  ;;  %13408 = vst [vmem:[#allocation47_spill] sm:$0xff] %v11902_v33 }
 0x13c   : > { %8338 = vmatmul.mubr.f32.gmra.mrb[62].mxu1 %v11279_v40  ;;  %v11905_v40 = vld [vmem:[%s10570_s24 + $0x190] sm:$0xff] }
 0x13d   : > { %8984 = vmatmul.mubr.f32.gmra.mrb[26].mxu0 %v11882_v55  ;;  %8340 = vmatprep.mubr.f32.mxu1 %v11282_v44  ;;  %13409 = vst [vmem:[#allocation48_spill] sm:$0xff] %v11905_v40  ;;  %v11912_v44 = vld [vmem:[%s10570_s24 + $0x1a0] sm:$0xff] }
 0x13e   : > { %8986 = vmatprep.mubr.f32.mxu0 %v11885_v47  ;;  %13410 = vst [vmem:[#allocation49_spill] sm:$0xff] %v11912_v44 }
 0x140   : > { %8341 = vmatmul.mubr.f32.gmra.mrb[64].mxu1 %v11287_v50  ;;  %v1488_v50 = vrot.slane %v11365_v11, 2  ;;  %v11929_v11 = vld [vmem:[%s10570_s24 + $0x1c0] sm:$0xff] }
 0x141   : > { %8987 = vmatmul.mubr.f32.gmra.mrb[28].mxu0 %v11892_v24  ;;  %8343 = vmatprep.mubr.f32.mxu1 %v11301_v31  ;;  %v1489_v31 = vrot.slane %v11375_v10, 2  ;;  %v10272_v10 = vld [vmem:[%s10570_s24 + $0x18] sm:$0x3] }
 0x142   : > { %8989 = vmatprep.mubr.f32.mxu0 %v11895_v12 }
 0x143   : > { %v1490_v42 = vsel %vm1487_vm1, %v1488_v50, %v1489_v31  ;;  %v1495_v50 = vrot.slane %v11394_v57, 2  ;;  %v7089_v57 = vld [vmem:[%s13255_s1 + $0x1a0] sm:$0xff] }
 0x144   : > { %8344 = vmatmul.mubr.f32.gmra.mrb[66].mxu1 %v11304_v18  ;;  %v1491_v18 = vrot.slane %v11386_v61, 2 }
 0x145   : > { %8990 = vmatmul.mubr.f32.gmra.mrb[30].mxu0 %v11902_v33  ;;  %8346 = vmatprep.mubr.f32.mxu1 %v11313_v28  ;;  %v11925_v28 = vld [vmem:[%s10570_s24 + $0x1b0] sm:$0xff] }
 0x146   : > { %8992 = vmatprep.mubr.f32.mxu0 %v11905_v40  ;;  %v1493_v40 = vrot.slane %v10272_v10, 2  ;;  %v1492_v61 = vsel %vm1487_vm1, %v1489_v31, %v1491_v18  ;;  %v1496_v10 = vrot.slane %v11405_v2, 2  ;;  %v11950_v33 = vld [vmem:[%s10570_s24 + $0x1d0] sm:$0xff]  ;;  %v7090_v2 = vld [vmem:[%s13255_s1 + $0x1a8] sm:$0xff] }
 0x148   : > { %8347 = vmatmul.mubr.f32.gmra.mrb[68].mxu1 %v11325_v60  ;;  %v7087_v60 = vld [vmem:[%s13255_s1 + $0x190] sm:$0xff] }
 0x149   : > { %8993 = vmatmul.mubr.f32.gmra.mrb[32].mxu0 %v11912_v44  ;;  %8349 = vmatprep.mubr.f32.mxu1 %v11328_v19  ;;  %v7088_v19 = vld [vmem:[%s13255_s1 + $0x198] sm:$0xff]  ;;  %v1494_v44 = vsel %vm1487_vm1, %v1491_v18, %v1493_v40  ;;  %v11964_v18 = vld [vmem:[%s10570_s24 + $0x1e0] sm:$0xff] }
 0x14a   : > { %8995 = vmatprep.mubr.f32.mxu0 %v11917_v43  ;;  %v1498_v43 = vrot.slane %v11412_v0, 2  ;;  %v1497_v0 = vsel %vm1487_vm1, %v1495_v50, %v1496_v10  ;;  %v10273_v40 = vld [vmem:[%s10570_s24 + $0x38] sm:$0x3]  ;;  %13413 = vst [vmem:[#allocation52_spill] sm:$0xff] %v11964_v18 }
 0x14b   : > { %v1500_v31 = vrot.slane %v10273_v40, 2  ;;  %v7092_v50 = vld [vmem:[%s13255_s1 + $0x1b8] sm:$0xff]  ;;  %v11988_v40 = vld [vmem:[%s10570_s24 + $0x200] sm:$0xff] }
 0x14c   : > { %8350 = vmatmul.mubr.f32.gmra.mrb[70].mxu1 %v11333_v63  ;;  %v11945_v63 = vld [vmem:[%s10570_s24 + $0x1c8] sm:$0xff] }
 0x14d   : > { %8996 = vmatmul.mubr.f32.gmra.mrb[34].mxu0 %v11925_v28  ;;  %8384 = vmatprep.mubr.f32.mxu1 %v1490_v42  ;;  %13412 = vst [vmem:[#allocation51_spill] sm:$0xff] %v11945_v63  ;;  %v9432_v42 = vpack.c.bf16 %v7088_v19, %v7087_v60  ;;  %v1499_v60 = vsel %vm1487_vm1, %v1496_v10, %v1498_v43  ;;  %v1502_v19 = vrot.slane %v11422_v7, 2  ;;  %v11983_v10 = vld [vmem:[%s10570_s24 + $0x1f0] sm:$0xff] }
 0x14e   : > { %8998 = vmatprep.mubr.f32.mxu0 %v11929_v11  ;;  %v1501_v7 = vsel %vm1487_vm1, %v1498_v43, %v1500_v31  ;;  %v7094_v43 = vld [vmem:[%s13255_s1 + $0x1c8] sm:$0xff] }
 0x150   : > { %8385 = vmatmul.mubr.f32.vlgmr.msra.gmra.mrb[0].mxu1 %v1492_v61  ;;  %v1503_v61 = vrot.slane %v11432_v17, 2  ;;  %v1505_v17 = vrot.slane %v11442_v20, 2  ;;  %v7093_v20 = vld [vmem:[%s13255_s1 + $0x1c0] sm:$0xff] }
 0x151   : > { %8999 = vmatmul.mubr.f32.gmra.mrb[36].mxu0 %v11945_v63  ;;  %9431 = vmatpush3.bf16.msra.mxu1 %v11505_v45  ;;  %v11970_v63 = vld [vmem:[%s10570_s24 + $0x1e8] sm:$0xff]  ;;  %v9436_v45 = vpack.c.bf16 %v7090_v2, %v7089_v57  ;;  %v10274_v2 = vld [vmem:[%s10570_s24 + $0x58] sm:$0x3] }
 0x152   : > { %8387 = vmatprep.mubr.f32.mxu1 %v1494_v44  ;;  %9001 = vmatprep.mubr.f32.mxu0 %v11950_v33  ;;  %v7091_v44 = vld [vmem:[%s13255_s1 + $0x1b0] sm:$0xff]  ;;  %v1504_v57 = vsel %vm1487_vm1, %v1502_v19, %v1503_v61  ;;  %v1506_v31 = vsel %vm1487_vm1, %v1503_v61, %v1505_v17  ;;  %v12002_v19 = vld [vmem:[%s10570_s24 + $0x208] sm:$0xff]  ;;  %v9444_v61 = vpack.c.bf16 %v7094_v43, %v7093_v20  ;;  %v1517_v20 = vrot.slane %v11488_v35, 2 }
 0x153   : > { %9433 = vmatprep.subr.bf16.mxu1 %v9432_v42  ;;  %v12026_v43 = vld [vmem:[%s10570_s24 + $0x228] sm:$0xff]  ;;  %v1519_v35 = vrot.slane %v11498_v56, 2  ;;  %v7099_v56 = vld [vmem:[%s13255_s1 + $0x1f0] sm:$0xff] }
 0x154   : > { %8388 = vmatmul.mubr.f32.gmra.mrb[2].mxu1 %v1497_v0  ;;  %v1507_v0 = vrot.slane %v10274_v2, 2 }
 0x155   : > { %9002 = vmatmul.mubr.f32.gmra.mrb[38].mxu0 %v11964_v18  ;;  %8390 = vmatprep.mubr.f32.mxu1 %v1499_v60  ;;  %v9440_v18 = vpack.c.bf16 %v7092_v50, %v7091_v44  ;;  %v1510_v60 = vrot.slane %v11461_v46, 2  ;;  %v1512_v50 = vrot.slane %v11468_v9, 2  ;;  %v7096_v46 = vld [vmem:[%s13255_s1 + $0x1d8] sm:$0xff] }
 0x156   : > { %9004 = vmatprep.mubr.f32.mxu0 %v11970_v63  ;;  %9435 = vmatpush3.bf16.msra.mxu1 %v9432_v42  ;;  %v1509_v42 = vrot.slane %v11450_v36, 2  ;;  %v1508_v44 = vsel %vm1487_vm1, %v1505_v17, %v1507_v0  ;;  %v7095_v36 = vld [vmem:[%s13255_s1 + $0x1d0] sm:$0xff]  ;;  %v1516_v0 = vrot.slane %v11478_v39, 2 }
 0x157   : > { %9437 = vmatprep.subr.bf16.mxu1 %v9436_v45  ;;  %v1513_v2 = vsel %vm1487_vm1, %v1510_v60, %v1512_v50 }
 0x158   : > { %8391 = vmatmul.mubr.f32.gmra.mrb[4].mxu1 %v1501_v7  ;;  %v12007_v7 = vld [vmem:[%s10570_s24 + $0x210] sm:$0xff]  ;;  %v1511_v9 = vsel %vm1487_vm1, %v1509_v42, %v1510_v60  ;;  %v7097_v42 = vld [vmem:[%s13255_s1 + $0x1e0] sm:$0xff]  ;;  %v7098_v60 = vld [vmem:[%s13255_s1 + $0x1e8] sm:$0xff] }
 0x159   : > { %9005 = vmatmul.mubr.f32.gmra.mrb[40].mxu0 %v11983_v10  ;;  %8393 = vmatprep.mubr.f32.mxu1 %v1504_v57  ;;  %v12020_v57 = vld [vmem:[%s10570_s24 + $0x220] sm:$0xff] }
 0x15a   : > { %9007 = vmatprep.mubr.f32.mxu0 %v11988_v40  ;;  %9439 = vmatpush3.bf16.msra.mxu1 %v9436_v45  ;;  %v10275_v45 = vld [vmem:[%s10570_s24 + $0x78] sm:$0x3] }
 0x15b   : > { %9441 = vmatprep.subr.bf16.mxu1 %v9440_v18  ;;  %v1514_v17 = vrot.slane %v10275_v45, 2  ;;  %v9452_v45 = vpack.c.bf16 %v7098_v60, %v7097_v42  ;;  %v1526_v60 = vrot.slane %v11521_v38, 2 }
 0x15c   : > { %8394 = vmatmul.mubr.f32.gmra.mrb[6].mxu1 %v1506_v31  ;;  %v9448_v31 = vpack.c.bf16 %v7096_v46, %v7095_v36  ;;  %v10276_v36 = vld [vmem:[%s10570_s24 + $0x98] sm:$0x3] }
 0x15d   : > { %9008 = vmatmul.mubr.f32.gmra.mrb[42].mxu0 %v12002_v19  ;;  %8396 = vmatprep.mubr.f32.mxu1 %v1508_v44  ;;  %v1515_v39 = vsel %vm1487_vm1, %v1512_v50, %v1514_v17  ;;  %v1518_v44 = vsel %vm1487_vm1, %v1516_v0, %v1517_v20  ;;  %v1521_v46 = vrot.slane %v10276_v36, 2  ;;  %v7100_v50 = vld [vmem:[%s13255_s1 + $0x1f8] sm:$0xff]  ;;  %v1523_v17 = vrot.slane %v11508_v58, 2  ;;  %v12058_v0 = vld [vmem:[%s10570_s24 + $0x248] sm:$0xff] }
 0x15e   : > { %9010 = vmatprep.mubr.f32.mxu0 %v12007_v7  ;;  %9443 = vmatpush3.bf16.msra.mxu1 %v9440_v18  ;;  %v12039_v18 = vld [vmem:[%s10570_s24 + $0x230] sm:$0xff]  ;;  %v1531_v36 = vrot.slane %v11535_v41, 2  ;;  %v10278_v41 = vld [vmem:[%s10570_s24 + $0xd8] sm:$0x3] }
 0x15f   : > { %9445 = vmatprep.subr.bf16.mxu1 %v9444_v61  ;;  %v1522_v42 = vsel %vm1487_vm1, %v1519_v35, %v1521_v46  ;;  %v12076_v46 = vld [vmem:[%s10570_s24 + $0x268] sm:$0xff] }
 0x160   : > { %8397 = vmatmul.mubr.f32.gmra.mrb[8].mxu1 %v1511_v9  ;;  %v12044_v9 = vld [vmem:[%s10570_s24 + $0x240] sm:$0xff] }
 0x161   : > { %9011 = vmatmul.mubr.f32.gmra.mrb[44].mxu0 %v12020_v57  ;;  %8399 = vmatprep.mubr.f32.mxu1 %v1513_v2  ;;  %v1524_v2 = vrot.slane %v11513_v16, 2  ;;  %v10277_v16 = vld [vmem:[%s10570_s24 + $0xb8] sm:$0x3] }
 0x162   : > { %9013 = vmatprep.mubr.f32.mxu0 %v12026_v43  ;;  %9447 = vmatpush3.bf16.msra.mxu1 %v9444_v61  ;;  %v1520_v61 = vsel %vm1487_vm1, %v1517_v20, %v1519_v35  ;;  %v1528_v20 = vrot.slane %v10277_v16, 2  ;;  %v12070_v35 = vld [vmem:[%s10570_s24 + $0x260] sm:$0xff]  ;;  %v1540_v16 = vrot.slane %v11559_v6, 2  ;;  %v1544_v6 = vrot.slane %v11563_v48, 2 }
 0x163   : > { %9449 = vmatprep.subr.bf16.mxu1 %v9448_v31  ;;  %v1525_v58 = vsel %vm1487_vm1, %v1523_v17, %v1524_v2  ;;  %v1527_v38 = vsel %vm1487_vm1, %v1524_v2, %v1526_v60  ;;  %v12088_v17 = vld [vmem:[%s10570_s24 + $0x280] sm:$0xff] }
 0x164   : > { %8400 = vmatmul.mubr.f32.gmra.mrb[10].mxu1 %v1515_v39  ;;  %v12063_v39 = vld [vmem:[%s10570_s24 + $0x250] sm:$0xff]  ;;  %13415 = vst [vmem:[#allocation54_spill] sm:$0xff] %v12088_v17  ;;  %v13416_v2 = vld [vmem:[#allocation2_spill] sm:$0xff] }
 0x165   : > { %9014 = vmatmul.mubr.f32.gmra.mrb[46].mxu0 %v12039_v18  ;;  %8402 = vmatprep.mubr.f32.mxu1 %v1518_v44  ;;  %v9456_v44 = vpack.c.bf16 %v7100_v50, %v7099_v56  ;;  %v1529_v56 = vsel %vm1487_vm1, %v1526_v60, %v1528_v20  ;;  %v1533_v50 = vrot.slane %v11539_v8, 2  ;;  %v1538_v60 = vrot.slane %v11552_v5, 2  ;;  %v12102_v20 = vld [vmem:[%s10570_s24 + $0x290] sm:$0xff] }
 0x166   : > { %9016 = vmatprep.mubr.f32.mxu0 %v12044_v9  ;;  %9451 = vmatpush3.bf16.msra.mxu1 %v9448_v31  ;;  %v1530_v31 = vrot.slane %v11525_v26, 2  ;;  %13418 = vst [vmem:[#allocation55_spill] sm:$0xff] %v12102_v20 }
 0x167   : > { %9453 = vmatprep.subr.bf16.mxu1 %v9452_v45  ;;  %v1534_v8 = vsel %vm1487_vm1, %v1531_v36, %v1533_v50 }
 0x168   : > { %8403 = vmatmul.mubr.f32.gmra.mrb[12].mxu1 %v1520_v61  ;;  %v12083_v61 = vld [vmem:[%s10570_s24 + $0x270] sm:$0xff]  ;;  %v1532_v26 = vsel %vm1487_vm1, %v1530_v31, %v1531_v36  ;;  %v12109_v31 = vld [vmem:[%s10570_s24 + $0x2a0] sm:$0xff]  ;;  %v1541_v36 = vsel %vm1487_vm1, %v1538_v60, %v1540_v16 }
 0x169   : > { %9017 = vmatmul.mubr.f32.gmra.mrb[48].mxu0 %v12058_v0  ;;  %8405 = vmatprep.mubr.f32.mxu1 %v1522_v42  ;;  %13414 = vst [vmem:[#allocation53_spill] sm:$0xff] %v12083_v61  ;;  %v1537_v42 = vrot.slane %v11547_v3, 2  ;;  %13419 = vst [vmem:[#allocation56_spill] sm:$0xff] %v12109_v31 }
 0x16a   : > { %9019 = vmatprep.mubr.f32.mxu0 %v12063_v39  ;;  %9455 = vmatpush3.bf16.msra.mxu1 %v9452_v45  ;;  %v1535_v45 = vrot.slane %v10278_v41, 2 }
 0x16b   : > { %9457 = vmatprep.subr.bf16.mxu1 %v9456_v44  ;;  %v1539_v3 = vsel %vm1487_vm1, %v1537_v42, %v1538_v60  ;;  %v12122_v42 = vld [vmem:[%s10570_s24 + $0x2b0] sm:$0xff]  ;;  %v10280_v60 = vld [vmem:[%s10570_s24 + $0x118] sm:$0x3] }
 0x16c   : > { %8406 = vmatmul.mubr.f32.gmra.mrb[14].mxu1 %v1525_v58  ;;  %v1536_v58 = vsel %vm1487_vm1, %v1533_v50, %v1535_v45  ;;  %v13422_v45 = vld [vmem:[#allocation12_spill] sm:$0xff] }
 0x16d   : > { %9020 = vmatmul.mubr.f32.gmra.mrb[50].mxu0 %v12070_v35  ;;  %8408 = vmatprep.mubr.f32.mxu1 %v1527_v38  ;;  %v10279_v38 = vld [vmem:[%s10570_s24 + $0xf8] sm:$0x3]  ;;  %13423 = vst [vmem:[#allocation12_spill] sm:$0xff] %v12122_v42 }
 0x16e   : > { %9022 = vmatprep.mubr.f32.mxu0 %v12076_v46  ;;  %9459 = vmatpush3.bf16.msra.mxu1 %v9456_v44  ;;  %v12097_v44 = vld [vmem:[%s10570_s24 + $0x288] sm:$0xff]  ;;  %v1542_v5 = vrot.slane %v10279_v38, 2  ;;  %v12127_v38 = vld [vmem:[%s10570_s24 + $0x2c0] sm:$0xff] }
 0x16f   : > { %9620 = vmatprep.subr.bf16.mxu1 %v13416_v2  ;;  %13417 = vst [vmem:[#allocation2_spill] sm:$0xff] %v12097_v44  ;;  %13424 = vst [vmem:[#allocation57_spill] sm:$0xff] %v12127_v38 }
 0x170   : > { %8409 = vmatmul.mubr.f32.gmra.mrb[16].mxu1 %v1529_v56  ;;  %v13420_v56 = vld [vmem:[#allocation11_spill] sm:$0xff]  ;;  %v1543_v41 = vsel %vm1487_vm1, %v1540_v16, %v1542_v5 }
 0x171   : > { %9023 = vmatmul.mubr.f32.gmra.mrb[52].mxu0 %v12083_v61  ;;  %8411 = vmatprep.mubr.f32.mxu1 %v1532_v26  ;;  %v1545_v50 = vrot.slane %v13420_v56, 2  ;;  %v12115_v26 = vld [vmem:[%s10570_s24 + $0x2a8] sm:$0xff] }
 0x172   : > { %9025 = vmatprep.mubr.f32.mxu0 %v12088_v17  ;;  %13421 = vst [vmem:[#allocation11_spill] sm:$0xff] %v12115_v26 }
 0x173   : > { %v1546_v48 = vsel %vm1487_vm1, %v1544_v6, %v1545_v50  ;;  %v12135_v6 = vld [vmem:[%s10570_s24 + $0x2c8] sm:$0xff] }
 0x174   : > { %8412 = vmatmul.mubr.f32.gmra.mrb[18].mxu1 %v1534_v8  ;;  %v1547_v8 = vrot.slane %v13422_v45, 2 }
 0x175   : > { %9026 = vmatmul.mubr.f32.gmra.mrb[54].mxu0 %v12097_v44  ;;  %8414 = vmatprep.mubr.f32.mxu1 %v1536_v58  ;;  %v1549_v58 = vrot.slane %v10280_v60, 2  ;;  %v13428_v60 = vld [vmem:[#allocation16_spill] sm:$0xff] }
 0x176   : > { %9028 = vmatprep.mubr.f32.mxu0 %v12102_v20  ;;  %v1548_v16 = vsel %vm1487_vm1, %v1545_v50, %v1547_v8  ;;  %v13452_v44 = vld [vmem:[#allocation32_spill] sm:$0xff] }
 0x177   : > { %v1550_v45 = vsel %vm1487_vm1, %v1547_v8, %v1549_v58  ;;  %v1558_v58 = vrot.slane %v11610_v22, 2  ;;  %v10282_v22 = vld [vmem:[%s10570_s24 + $0x158] sm:$0x3]  ;;  %v5174_v17 = vrot.slane %v13452_v44, 1 }
 0x178   : > { %8415 = vmatmul.mubr.f32.gmra.mrb[20].mxu1 %v1539_v3  ;;  %v13425_v3 = vld [vmem:[#allocation13_spill] sm:$0xff] }
 0x179   : > { %9029 = vmatmul.mubr.f32.gmra.mrb[56].mxu0 %v12109_v31  ;;  %8417 = vmatprep.mubr.f32.mxu1 %v1541_v36  ;;  %v1551_v5 = vrot.slane %v13425_v3, 2  ;;  %v13426_v36 = vld [vmem:[#allocation14_spill] sm:$0xff]  ;;  %13427 = vst [vmem:[#allocation13_spill] sm:$0xff] %v12135_v6 }
 0x17a   : > { %9031 = vmatprep.mubr.f32.mxu0 %v12115_v26  ;;  %v1552_v56 = vrot.slane %v13426_v36, 2  ;;  %v1554_v26 = vrot.slane %v13428_v60, 2  ;;  %v12147_v36 = vld [vmem:[%s10570_s24 + $0x2e0] sm:$0xff]  ;;  %v1559_v60 = vrot.slane %v11622_v62, 2 }
 0x17b   : > { %13430 = vst [vmem:[#allocation16_spill] sm:$0xff] %v12147_v36  ;;  %v13451_v31 = vld [vmem:[#allocation34_spill] sm:$0xff] }
 0x17c   : > { %8418 = vmatmul.mubr.f32.gmra.mrb[22].mxu1 %v1543_v41  ;;  %v12140_v41 = vld [vmem:[%s10570_s24 + $0x2d0] sm:$0xff]  ;;  %v1553_v50 = vsel %vm1487_vm1, %v1551_v5, %v1552_v56  ;;  %v1555_v8 = vsel %vm1487_vm1, %v1552_v56, %v1554_v26  ;;  %v1560_v56 = vsel %vm1487_vm1, %v1558_v58, %v1559_v60  ;;  %v1582_v20 = vrot.slane %v13451_v31, 2 }
 0x17d   : > { %9032 = vmatmul.mubr.f32.gmra.mrb[58].mxu0 %v12122_v42  ;;  %8420 = vmatprep.mubr.f32.mxu1 %v1546_v48  ;;  %13429 = vst [vmem:[#allocation14_spill] sm:$0xff] %v12140_v41  ;;  %v10281_v48 = vld [vmem:[%s10570_s24 + $0x138] sm:$0x3] }
 0x17e   : > { %9034 = vmatprep.mubr.f32.mxu0 %v12127_v38  ;;  %v1556_v3 = vrot.slane %v10281_v48, 2  ;;  %v12160_v48 = vld [vmem:[%s10570_s24 + $0x2f0] sm:$0xff]  ;;  %v10284_v38 = vld [vmem:[%s10570_s24 + $0x198] sm:$0x3] }
 0x17f   : > { %13432 = vst [vmem:[#allocation59_spill] sm:$0xff] %v12160_v48 }
 0x180   : > { %8421 = vmatmul.mubr.f32.gmra.mrb[24].mxu1 %v1548_v16  ;;  %v12153_v16 = vld [vmem:[%s10570_s24 + $0x2e8] sm:$0xff]  ;;  %v1557_v5 = vsel %vm1487_vm1, %v1554_v26, %v1556_v3  ;;  %v1565_v26 = vrot.slane %v11637_v32, 2  ;;  %v12176_v32 = vld [vmem:[%s10570_s24 + $0x320] sm:$0xff] }
 0x181   : > { %9035 = vmatmul.mubr.f32.gmra.mrb[60].mxu0 %v12135_v6  ;;  %8423 = vmatprep.mubr.f32.mxu1 %v1550_v45  ;;  %13431 = vst [vmem:[#allocation58_spill] sm:$0xff] %v12153_v16  ;;  %v1561_v45 = vrot.slane %v11626_v37, 2  ;;  %v1566_v37 = vrot.slane %v11642_v29, 2  ;;  %v13445_v6 = vld [vmem:[#allocation25_spill] sm:$0xff] }
 0x182   : > { %9037 = vmatprep.mubr.f32.mxu0 %v12140_v41  ;;  %v1563_v41 = vrot.slane %v10282_v22, 2  ;;  %v10283_v22 = vld [vmem:[%s10570_s24 + $0x178] sm:$0x3] }
 0x183   : > { %v1562_v62 = vsel %vm1487_vm1, %v1559_v60, %v1561_v45  ;;  %v1570_v60 = vrot.slane %v10283_v22, 2  ;;  %v12187_v22 = vld [vmem:[%s10570_s24 + $0x58] sm:$0x3] }
 0x184   : > { %8424 = vmatmul.mubr.f32.gmra.mrb[26].mxu1 %v1553_v50  ;;  %v13433_v50 = vld [vmem:[#allocation15_spill] sm:$0xff]  ;;  %v1564_v3 = vsel %vm1487_vm1, %v1561_v45, %v1563_v41  ;;  %v13439_v45 = vld [vmem:[#allocation26_spill] sm:$0xff]  ;;  %v5169_v42 = vrot.slane %v12187_v22, 1 }
 0x185   : > { %9038 = vmatmul.mubr.f32.gmra.mrb[62].mxu0 %v12147_v36  ;;  %8426 = vmatprep.mubr.f32.mxu1 %v1555_v8  ;;  %v13434_v8 = vld [vmem:[#allocation22_spill] sm:$0xff]  ;;  %13437 = vst [vmem:[#allocation15_spill] sm:$0xff] %v12176_v32 }
 0x186   : > { %9040 = vmatprep.mubr.f32.mxu0 %v12153_v16  ;;  %v1568_v58 = vrot.slane %v13434_v8, 2  ;;  %v1573_v8 = vrot.slane %v13439_v45, 2  ;;  %v12195_v45 = vld [vmem:[%s10570_s24 + $0x330] sm:$0xff] }
 0x188   : > { %8427 = vmatmul.mubr.f32.gmra.mrb[28].mxu1 %v1557_v5  ;;  %v13435_v5 = vld [vmem:[#allocation10_spill] sm:$0xff]  ;;  %v1569_v29 = vsel %vm1487_vm1, %v1566_v37, %v1568_v58 }
 0x189   : > { %9041 = vmatmul.mubr.f32.gmra.mrb[64].mxu0 %v12160_v48  ;;  %8429 = vmatprep.mubr.f32.mxu1 %v1560_v56  ;;  %v1567_v56 = vsel %vm1487_vm1, %v1565_v26, %v1566_v37  ;;  %v13436_v48 = vld [vmem:[#allocation17_spill] sm:$0xff]  ;;  %13443 = vst [vmem:[#allocation10_spill] sm:$0xff] %v12187_v22  ;;  %v13444_v37 = vld [vmem:[#allocation27_spill] sm:$0xff] }
 0x18a   : > { %9043 = vmatprep.mubr.f32.mxu0 %v13433_v50  ;;  %v13438_v50 = vld [vmem:[#allocation23_spill] sm:$0xff]  ;;  %v1575_v36 = vrot.slane %v13444_v37, 2  ;;  %13446 = vst [vmem:[#allocation17_spill] sm:$0xff] %v12195_v45 }
 0x18b   : > { %v1572_v41 = vrot.slane %v13438_v50, 2  ;;  %v5167_v50 = vrot.slane %v13445_v6, 1  ;;  %v7263_v6 = vld [vmem:[%s13255_s1 + $0x410] sm:$0xff] }
 0x18c   : > { %8430 = vmatmul.mubr.f32.gmra.mrb[30].mxu1 %v1562_v62  ;;  %v13440_v62 = vld [vmem:[#allocation21_spill] sm:$0xff] }
 0x18d   : > { %9044 = vmatmul.mubr.f32.gmra.mrb[66].mxu0 %v13435_v5  ;;  %8432 = vmatprep.mubr.f32.mxu1 %v1564_v3  ;;  %v5164_v16 = vrot.slane %v13440_v62, 1  ;;  %v12183_v5 = vld [vmem:[%s10570_s24 + $0x328] sm:$0xff]  ;;  %v13442_v3 = vld [vmem:[#allocation24_spill] sm:$0xff]  ;;  %v1574_v62 = vsel %vm1487_vm1, %v1572_v41, %v1573_v8 }
 0x18e   : > { %9046 = vmatprep.mubr.f32.mxu0 %v13436_v48  ;;  %13441 = vst [vmem:[#allocation22_spill] sm:$0xff] %v12183_v5  ;;  %v5165_v26 = vrot.slane %v13442_v3, 1  ;;  %v1571_v48 = vsel %vm1487_vm1, %v1568_v58, %v1570_v60  ;;  %v1577_v3 = vrot.slane %v10284_v38, 2  ;;  %v7264_v58 = vld [vmem:[%s13255_s1 + $0x418] sm:$0xff]  ;;  %v1576_v38 = vsel %vm1487_vm1, %v1573_v8, %v1575_v36  ;;  %v7265_v8 = vld [vmem:[%s13255_s1 + $0x420] sm:$0xff] }
 0x18f   : > { %v13448_v60 = vld [vmem:[#allocation29_spill] sm:$0xff] }
 0x190   : > { %8433 = vmatmul.mubr.f32.gmra.mrb[32].mxu1 %v1567_v56  ;;  %v5166_v56 = vsel %vm379_vm0, %v5164_v16, %v5165_v26  ;;  %v5172_v41 = vrot.slane %v13448_v60, 1  ;;  %v13449_v16 = vld [vmem:[#allocation30_spill] sm:$0xff]  ;;  %v5170_v60 = vsel %vm379_vm0, %v5167_v50, %v5169_v42  ;;  %v10285_v42 = vld [vmem:[%s10570_s24 + $0x1b8] sm:$0x3] }
 0x191   : > { %9047 = vmatmul.mubr.f32.gmra.mrb[68].mxu0 %v12176_v32  ;;  %8435 = vmatprep.mubr.f32.mxu1 %v1569_v29  ;;  %v13447_v32 = vld [vmem:[#allocation28_spill] sm:$0xff]  ;;  %v1579_v37 = vrot.slane %v13449_v16, 2  ;;  %v13456_v16 = vld [vmem:[#allocation33_spill] sm:$0xff] }
 0x192   : > { %9049 = vmatprep.mubr.f32.mxu0 %v12183_v5  ;;  %v5171_v29 = vrot.slane %v13447_v32, 1  ;;  %v13450_v32 = vld [vmem:[#allocation31_spill] sm:$0xff]  ;;  %v1578_v5 = vsel %vm1487_vm1, %v1575_v36, %v1577_v3  ;;  %v1584_v36 = vrot.slane %v10285_v42, 2 }
 0x193   : > { %v1580_v22 = vrot.slane %v13450_v32, 2  ;;  %v13457_v32 = vld [vmem:[#allocation36_spill] sm:$0xff] }
 0x194   : > { %8436 = vmatmul.mubr.f32.gmra.mrb[34].mxu1 %v1571_v48  ;;  %v5168_v48 = vsel %vm379_vm0, %v5165_v26, %v5167_v50  ;;  %v7266_v26 = vld [vmem:[%s13255_s1 + $0x428] sm:$0xff]  ;;  %v5173_v44 = vsel %vm379_vm0, %v5171_v29, %v5172_v41  ;;  %v5175_v29 = vsel %vm379_vm0, %v5172_v41, %v5174_v17  ;;  %v1585_v42 = vsel %vm1487_vm1, %v1582_v20, %v1584_v36  ;;  %v13460_v41 = vld [vmem:[#allocation37_spill] sm:$0xff]  ;;  %v7269_v36 = vld [vmem:[%s13255_s1 + $0x440] sm:$0xff] }
 0x195   : > { %9050 = vmatmul.mubr.f32.gmra.mrb[70].mxu0 %v12195_v45  ;;  %8438 = vmatprep.mubr.f32.mxu1 %v1574_v62  ;;  %v12219_v45 = vld [vmem:[%s10570_s24 + $0x78] sm:$0x3]  ;;  %v9592_v62 = vpack.c.bf16 %v7264_v58, %v7263_v6  ;;  %v1581_v31 = vsel %vm1487_vm1, %v1579_v37, %v1580_v22  ;;  %v1583_v50 = vsel %vm1487_vm1, %v1580_v22, %v1582_v20  ;;  %v13455_v58 = vld [vmem:[#allocation38_spill] sm:$0xff]  ;;  %v5179_v37 = vrot.slane %v13457_v32, 1  ;;  %v7267_v22 = vld [vmem:[%s13255_s1 + $0x430] sm:$0xff] }
 0x196   : > { %9084 = vmatprep.mubr.f32.mxu0 %v5166_v56  ;;  %13453 = vst [vmem:[#allocation23_spill] sm:$0xff] %v12219_v45  ;;  %v5176_v3 = vrot.slane %v12219_v45, 1  ;;  %v13454_v56 = vld [vmem:[#allocation35_spill] sm:$0xff] }
 0x197   : > { %v1586_v6 = vrot.slane %v13454_v56, 2  ;;  %v13459_v56 = vld [vmem:[#allocation39_spill] sm:$0xff] }
 0x198   : > { %8439 = vmatmul.mubr.f32.gmra.mrb[36].mxu1 %v1576_v38  ;;  %v1587_v38 = vrot.slane %v13455_v58, 2  ;;  %v1589_v58 = vrot.slane %v13459_v56, 2 }
 0x199   : > { %9085 = vmatmul.mubr.f32.vlgmr.msra.gmra.mrb[0].mxu0 %v5168_v48  ;;  %8441 = vmatprep.mubr.f32.mxu1 %v1578_v5  ;;  %v5178_v5 = vrot.slane %v13456_v16, 1  ;;  %v9596_v48 = vpack.c.bf16 %v7266_v26, %v7265_v8  ;;  %v5181_v16 = vrot.slane %v13460_v41, 1  ;;  %v5177_v8 = vsel %vm379_vm0, %v5174_v17, %v5176_v3  ;;  %v7270_v17 = vld [vmem:[%s13255_s1 + $0x448] sm:$0xff]  ;;  %v13462_v3 = vld [vmem:[#allocation41_spill] sm:$0xff]  ;;  %v13465_v41 = vld [vmem:[#allocation46_spill] sm:$0xff] }
 0x19a   : > { %9591 = vmatpush3.bf16.msra.mxu0 %v11824_v49  ;;  %9087 = vmatprep.mubr.f32.mxu0 %v5170_v60  ;;  %v12239_v49 = vld [vmem:[%s10570_s24 + $0x98] sm:$0x3]  ;;  %v1588_v26 = vsel %vm1487_vm1, %v1586_v6, %v1587_v38  ;;  %v1590_v6 = vsel %vm1487_vm1, %v1587_v38, %v1589_v58  ;;  %v9604_v38 = vpack.c.bf16 %v7270_v17, %v7269_v36  ;;  %v1600_v17 = vrot.slane %v11795_v34, 2 }
 0x19b   : > { %9593 = vmatprep.subr.bf16.mxu0 %v9592_v62  ;;  %13458 = vst [vmem:[#allocation26_spill] sm:$0xff] %v12239_v49  ;;  %v7268_v60 = vld [vmem:[%s13255_s1 + $0x438] sm:$0xff]  ;;  %v5180_v45 = vsel %vm379_vm0, %v5178_v5, %v5179_v37  ;;  %v5183_v61 = vrot.slane %v12239_v49, 1  ;;  %v13463_v5 = vld [vmem:[#allocation42_spill] sm:$0xff] }
 0x19c   : > { %8442 = vmatmul.mubr.f32.gmra.mrb[38].mxu1 %v1581_v31  ;;  %v10286_v31 = vld [vmem:[%s10570_s24 + $0x1d8] sm:$0x3] }
 0x19d   : > { %9088 = vmatmul.mubr.f32.gmra.mrb[2].mxu0 %v5173_v44  ;;  %8444 = vmatprep.mubr.f32.mxu1 %v1583_v50  ;;  %v1591_v32 = vrot.slane %v10286_v31, 2  ;;  %v9600_v44 = vpack.c.bf16 %v7268_v60, %v7267_v22  ;;  %v13461_v50 = vld [vmem:[#allocation40_spill] sm:$0xff]  ;;  %v13464_v22 = vld [vmem:[#allocation43_spill] sm:$0xff]  ;;  %v1596_v31 = vrot.slane %v13465_v41, 2 }
 0x19e   : > { %9090 = vmatprep.mubr.f32.mxu0 %v5175_v29  ;;  %9595 = vmatpush3.bf16.msra.mxu0 %v9592_v62  ;;  %v5185_v20 = vrot.slane %v13461_v50, 1  ;;  %v5186_v62 = vrot.slane %v13462_v3, 1  ;;  %v1593_v29 = vrot.slane %v13463_v5, 2  ;;  %v1594_v60 = vrot.slane %v13464_v22, 2  ;;  %v13466_v50 = vld [vmem:[#allocation44_spill] sm:$0xff] }
 0x19f   : > { %9597 = vmatprep.subr.bf16.mxu0 %v9596_v48  ;;  %v1592_v56 = vsel %vm1487_vm1, %v1589_v58, %v1591_v32  ;;  %v5188_v49 = vrot.slane %v13466_v50, 1  ;;  %v10287_v58 = vld [vmem:[%s10570_s24 + $0x1f8] sm:$0x3]  ;;  %v1601_v3 = vrot.slane %v11806_v14, 2  ;;  %v7274_v14 = vld [vmem:[%s13255_s1 + $0x468] sm:$0xff] }
 0x1a0   : > { %8445 = vmatmul.mubr.f32.gmra.mrb[40].mxu1 %v1585_v42  ;;  %v5182_v42 = vsel %vm379_vm0, %v5179_v37, %v5181_v16  ;;  %v7272_v37 = vld [vmem:[%s13255_s1 + $0x458] sm:$0xff]  ;;  %v1597_v32 = vsel %vm1487_vm1, %v1594_v60, %v1596_v31 }
 0x1a1   : > { %9091 = vmatmul.mubr.f32.gmra.mrb[4].mxu0 %v5177_v8  ;;  %8447 = vmatprep.mubr.f32.mxu1 %v1588_v26  ;;  %v5184_v8 = vsel %vm379_vm0, %v5181_v16, %v5183_v61  ;;  %v12272_v26 = vld [vmem:[%s10570_s24 + $0xb8] sm:$0x3]  ;;  %v5187_v61 = vsel %vm379_vm0, %v5185_v20, %v5186_v62  ;;  %v1598_v16 = vrot.slane %v10287_v58, 2  ;;  %v5189_v22 = vsel %vm379_vm0, %v5186_v62, %v5188_v49  ;;  %v12320_v58 = vld [vmem:[%s10570_s24 + $0x220] sm:$0xff] }
 0x1a2   : > { %9093 = vmatprep.mubr.f32.mxu0 %v5180_v45  ;;  %9599 = vmatpush3.bf16.msra.mxu0 %v9596_v48  ;;  %v7271_v45 = vld [vmem:[%s13255_s1 + $0x450] sm:$0xff]  ;;  %v1595_v48 = vsel %vm1487_vm1, %v1593_v29, %v1594_v60  ;;  %v5190_v36 = vrot.slane %v12272_v26, 1  ;;  %v5193_v29 = vrot.slane %v11800_v13, 1  ;;  %v7273_v60 = vld [vmem:[%s13255_s1 + $0x460] sm:$0xff]  ;;  %v5195_v62 = vrot.slane %v11803_v4, 1 }
 0x1a3   : > { %9601 = vmatprep.subr.bf16.mxu0 %v9600_v44  ;;  %v9608_v20 = vpack.c.bf16 %v7272_v37, %v7271_v45  ;;  %v1599_v34 = vsel %vm1487_vm1, %v1596_v31, %v1598_v16  ;;  %v12301_v13 = vld [vmem:[%s10570_s24 + $0x210] sm:$0xff]  ;;  %v1602_v41 = vsel %vm1487_vm1, %v1600_v17, %v1601_v3  ;;  %v10289_v50 = vld [vmem:[%s10570_s24 + $0x218] sm:$0x3]  ;;  %v9612_v37 = vpack.c.bf16 %v7274_v14, %v7273_v60  ;;  %v12324_v16 = vld [vmem:[%s10570_s24 + $0x228] sm:$0xff] }
 0x1a4   : > { %8448 = vmatmul.mubr.f32.gmra.mrb[42].mxu1 %v1590_v6  ;;  %v13467_v6 = vld [vmem:[#allocation45_spill] sm:$0xff]  ;;  %v7275_v4 = vld [vmem:[%s13255_s1 + $0x470] sm:$0xff] }
 0x1a5   : > { %9094 = vmatmul.mubr.f32.gmra.mrb[6].mxu0 %v5182_v42  ;;  %8450 = vmatprep.mubr.f32.mxu1 %v1592_v56  ;;  %v5192_v5 = vrot.slane %v13467_v6, 1  ;;  %v12291_v42 = vld [vmem:[%s10570_s24 + $0xd8] sm:$0x3]  ;;  %v5191_v56 = vsel %vm379_vm0, %v5188_v49, %v5190_v36  ;;  %v5196_v36 = vsel %vm379_vm0, %v5193_v29, %v5195_v62 }
 0x1a6   : > { %9096 = vmatprep.mubr.f32.mxu0 %v5184_v8  ;;  %9603 = vmatpush3.bf16.msra.mxu0 %v9600_v44  ;;  %v1603_v44 = vrot.slane %v12301_v13, 2  ;;  %v1605_v8 = vrot.slane %v10289_v50, 2  ;;  %v5197_v31 = vrot.slane %v12291_v42, 1  ;;  %v7276_v49 = vld [vmem:[%s13255_s1 + $0x478] sm:$0xff] }
 0x1a7   : > { %9605 = vmatprep.subr.bf16.mxu0 %v9604_v38  ;;  %v5194_v45 = vsel %vm379_vm0, %v5192_v5, %v5193_v29  ;;  %v9616_v60 = vpack.c.bf16 %v7276_v49, %v7275_v4  ;;  %v12359_v49 = vld [vmem:[%s10570_s24 + $0x250] sm:$0xff] }
 0x1a8   : > { %8451 = vmatmul.mubr.f32.gmra.mrb[44].mxu1 %v1595_v48  ;;  %v5199_v48 = vrot.slane %v11819_v1, 1  ;;  %v1607_v1 = vrot.slane %v12320_v58, 2  ;;  %v1606_v17 = vsel %vm1487_vm1, %v1603_v44, %v1605_v8  ;;  %v5198_v5 = vsel %vm379_vm0, %v5195_v62, %v5197_v31  ;;  %v12344_v62 = vld [vmem:[%s10570_s24 + $0x240] sm:$0xff] }
 0x1a9   : > { %9097 = vmatmul.mubr.f32.gmra.mrb[8].mxu0 %v5187_v61  ;;  %8453 = vmatprep.mubr.f32.mxu1 %v1597_v32  ;;  %v1604_v61 = vsel %vm1487_vm1, %v1601_v3, %v1603_v44  ;;  %v1608_v32 = vrot.slane %v12324_v16, 2  ;;  %v5202_v3 = vrot.slane %v11831_v53, 1  ;;  %v5206_v8 = vrot.slane %v11834_v51, 1 }
 0x1aa   : > { %9099 = vmatprep.mubr.f32.mxu0 %v5189_v22  ;;  %9607 = vmatpush3.bf16.msra.mxu0 %v9604_v38  ;;  %v5200_v38 = vrot.slane %v11822_v25, 1  ;;  %v12330_v25 = vld [vmem:[%s10570_s24 + $0x230] sm:$0xff]  ;;  %v12336_v22 = vld [vmem:[%s10570_s24 + $0xf8] sm:$0x3] }
 0x1ab   : > { %9609 = vmatprep.subr.bf16.mxu0 %v9608_v20  ;;  %v1610_v6 = vrot.slane %v12330_v25, 2  ;;  %v1609_v29 = vsel %vm1487_vm1, %v1607_v1, %v1608_v32  ;;  %v5204_v44 = vrot.slane %v12336_v22, 1 }
 0x1ac   : > { %8454 = vmatmul.mubr.f32.gmra.mrb[46].mxu1 %v1599_v34  ;;  %v5201_v14 = vsel %vm379_vm0, %v5199_v48, %v5200_v38  ;;  %v10293_v34 = vld [vmem:[%s10570_s24 + $0x238] sm:$0x3]  ;;  %v5203_v31 = vsel %vm379_vm0, %v5200_v38, %v5202_v3 }
 0x1ad   : > { %9100 = vmatmul.mubr.f32.gmra.mrb[10].mxu0 %v5191_v56  ;;  %8456 = vmatprep.mubr.f32.mxu1 %v1602_v41  ;;  %v1611_v53 = vsel %vm1487_vm1, %v1608_v32, %v1610_v6  ;;  %v1614_v56 = vrot.slane %v12344_v62, 2  ;;  %v12348_v41 = vld [vmem:[%s10570_s24 + $0x248] sm:$0xff]  ;;  %v12355_v48 = vld [vmem:[%s10570_s24 + $0x118] sm:$0x3]  ;;  %v5205_v51 = vsel %vm379_vm0, %v5202_v3, %v5204_v44  ;;  %v12372_v3 = vld [vmem:[%s10570_s24 + $0x260] sm:$0xff] }
 0x1ae   : > { %9102 = vmatprep.mubr.f32.mxu0 %v5194_v45  ;;  %9611 = vmatpush3.bf16.msra.mxu0 %v9608_v20  ;;  %v1612_v20 = vrot.slane %v10293_v34, 2  ;;  %v1615_v50 = vrot.slane %v12348_v41, 2  ;;  %v5207_v45 = vrot.slane %v11842_v54, 1  ;;  %v10297_v38 = vld [vmem:[%s10570_s24 + $0x258] sm:$0x3] }
 0x1af   : > { %9613 = vmatprep.subr.bf16.mxu0 %v9612_v37  ;;  %v1619_v1 = vrot.slane %v10297_v38, 2  ;;  %v12388_v44 = vld [vmem:[%s10570_s24 + $0x138] sm:$0x3]  ;;  %v5221_v38 = vrot.slane %v11872_v52, 1 }
 0x1b0   : > { %8457 = vmatmul.mubr.f32.gmra.mrb[48].mxu1 %v1604_v61  ;;  %v1613_v4 = vsel %vm1487_vm1, %v1610_v6, %v1612_v20  ;;  %v1617_v61 = vrot.slane %v12359_v49, 2  ;;  %v1616_v54 = vsel %vm1487_vm1, %v1614_v56, %v1615_v50  ;;  %v5208_v32 = vsel %vm379_vm0, %v5206_v8, %v5207_v45  ;;  %v10301_v8 = vld [vmem:[%s10570_s24 + $0x278] sm:$0x3] }
 0x1b1   : > { %9103 = vmatmul.mubr.f32.gmra.mrb[12].mxu0 %v5196_v36  ;;  %8459 = vmatprep.mubr.f32.mxu1 %v1606_v17  ;;  %v5211_v36 = vrot.slane %v12355_v48, 1  ;;  %v5213_v17 = vrot.slane %v11852_v15, 1  ;;  %v5216_v20 = vrot.slane %v11862_v59, 1  ;;  %v5218_v59 = vrot.slane %v12388_v44, 1 }
 0x1b2   : > { %9105 = vmatprep.mubr.f32.mxu0 %v5198_v5  ;;  %9615 = vmatpush3.bf16.msra.mxu0 %v9612_v37  ;;  %v5209_v37 = vrot.slane %v11845_v21, 1  ;;  %v5214_v21 = vrot.slane %v11855_v27, 1  ;;  %v1618_v6 = vsel %vm1487_vm1, %v1615_v50, %v1617_v61  ;;  %v1621_v5 = vrot.slane %v12372_v3, 2  ;;  %v12382_v27 = vld [vmem:[%s10570_s24 + $0x270] sm:$0xff] }
 0x1b3   : > { %9617 = vmatprep.subr.bf16.mxu0 %v9616_v60  ;;  %v1624_v34 = vrot.slane %v12382_v27, 2 }
 0x1b4   : > { %8460 = vmatmul.mubr.f32.gmra.mrb[50].mxu1 %v1609_v29  ;;  %v5210_v15 = vsel %vm379_vm0, %v5207_v45, %v5209_v37  ;;  %v5215_v50 = vsel %vm379_vm0, %v5213_v17, %v5214_v21  ;;  %v1626_v45 = vrot.slane %v10301_v8, 2  ;;  %v12411_v17 = vld [vmem:[%s10570_s24 + $0x290] sm:$0xff] }
 0x1b5   : > { %9106 = vmatmul.mubr.f32.gmra.mrb[14].mxu0 %v5201_v14  ;;  %8462 = vmatprep.mubr.f32.mxu1 %v1611_v53  ;;  %v1620_v14 = vsel %vm1487_vm1, %v1617_v61, %v1619_v1  ;;  %v5212_v53 = vsel %vm379_vm0, %v5209_v37, %v5211_v36  ;;  %v12400_v37 = vld [vmem:[%s10570_s24 + $0x288] sm:$0xff]  ;;  %v5217_v1 = vsel %vm379_vm0, %v5214_v21, %v5216_v20  ;;  %v10305_v21 = vld [vmem:[%s10570_s24 + $0x298] sm:$0x3] }
 0x1b6   : > { %9108 = vmatprep.mubr.f32.mxu0 %v5203_v31  ;;  %9619 = vmatpush3.bf16.msra.mxu0 %v9616_v60  ;;  %v12376_v60 = vld [vmem:[%s10570_s24 + $0x268] sm:$0xff]  ;;  %v1627_v36 = vsel %vm1487_vm1, %v1624_v34, %v1626_v45 }
 0x1b7   : > { %v1622_v29 = vrot.slane %v12376_v60, 2 }
 0x1b8   : > { %8463 = vmatmul.mubr.f32.gmra.mrb[52].mxu1 %v1613_v4  ;;  %v12396_v4 = vld [vmem:[%s10570_s24 + $0x280] sm:$0xff] }
 0x1b9   : > { %9109 = vmatmul.mubr.f32.gmra.mrb[16].mxu0 %v5205_v51  ;;  %8465 = vmatprep.mubr.f32.mxu1 %v1616_v54  ;;  %v1623_v56 = vsel %vm1487_vm1, %v1621_v5, %v1622_v29  ;;  %v1625_v31 = vsel %vm1487_vm1, %v1622_v29, %v1624_v34  ;;  %v1628_v61 = vrot.slane %v12396_v4, 2  ;;  %v1629_v51 = vrot.slane %v12400_v37, 2 }
 0x1ba   : > { %9111 = vmatprep.mubr.f32.mxu0 %v5208_v32  ;;  %v5220_v54 = vrot.slane %v11865_v23, 1  ;;  %v12407_v32 = vld [vmem:[%s10570_s24 + $0x158] sm:$0x3]  ;;  %v5223_v5 = vrot.slane %v11875_v30, 1  ;;  %v5219_v23 = vsel %vm379_vm0, %v5216_v20, %v5218_v59  ;;  %v1633_v29 = vrot.slane %v10305_v21, 2  ;;  %v12424_v20 = vld [vmem:[%s10570_s24 + $0x2a0] sm:$0xff] }
 0x1bb   : > { %v1630_v52 = vsel %vm1487_vm1, %v1628_v61, %v1629_v51  ;;  %v5227_v34 = vrot.slane %v11882_v55, 1  ;;  %v5230_v59 = vrot.slane %v11892_v24, 1 }
 0x1bc   : > { %8466 = vmatmul.mubr.f32.gmra.mrb[54].mxu1 %v1618_v6  ;;  %v1631_v6 = vrot.slane %v12411_v17, 2  ;;  %v5224_v55 = vsel %vm379_vm0, %v5221_v38, %v5223_v5 }
 0x1bd   : > { %9112 = vmatmul.mubr.f32.gmra.mrb[18].mxu0 %v5210_v15  ;;  %8468 = vmatprep.mubr.f32.mxu1 %v1620_v14  ;;  %v5222_v15 = vsel %vm379_vm0, %v5220_v54, %v5221_v38  ;;  %v5225_v14 = vrot.slane %v12407_v32, 1 }
 0x1be   : > { %9114 = vmatprep.mubr.f32.mxu0 %v5212_v53  ;;  %v5228_v53 = vrot.slane %v11885_v47, 1  ;;  %v1632_v30 = vsel %vm1487_vm1, %v1629_v51, %v1631_v6  ;;  %v1634_v45 = vsel %vm1487_vm1, %v1631_v6, %v1633_v29  ;;  %v12434_v47 = vld [vmem:[%s10570_s24 + $0x2b0] sm:$0xff]  ;;  %v12440_v51 = vld [vmem:[%s10570_s24 + $0x178] sm:$0x3]  ;;  %v5234_v29 = vrot.slane %v11895_v12, 1 }
 0x1bf   : > { %v5226_v61 = vsel %vm379_vm0, %v5223_v5, %v5225_v14  ;;  %v5232_v24 = vrot.slane %v12440_v51, 1 }
 0x1c0   : > { %8469 = vmatmul.mubr.f32.gmra.mrb[56].mxu1 %v1623_v56  ;;  %v1635_v56 = vrot.slane %v12424_v20, 2  ;;  %v5229_v38 = vsel %vm379_vm0, %v5227_v34, %v5228_v53  ;;  %v5231_v34 = vsel %vm379_vm0, %v5228_v53, %v5230_v59 }
 0x1c1   : > { %9115 = vmatmul.mubr.f32.gmra.mrb[20].mxu0 %v5215_v50  ;;  %8471 = vmatprep.mubr.f32.mxu1 %v1625_v31  ;;  %v12428_v50 = vld [vmem:[%s10570_s24 + $0x2a8] sm:$0xff]  ;;  %v1638_v31 = vrot.slane %v12434_v47, 2  ;;  %v5233_v12 = vsel %vm379_vm0, %v5230_v59, %v5232_v24 }
 0x1c2   : > { %9117 = vmatprep.mubr.f32.mxu0 %v5217_v1  ;;  %v1636_v8 = vrot.slane %v12428_v50, 2  ;;  %v10309_v1 = vld [vmem:[%s10570_s24 + $0x2b8] sm:$0x3]  ;;  %v12479_v24 = vld [vmem:[%s10570_s24 + $0x2e8] sm:$0xff] }
 0x1c4   : > { %8472 = vmatmul.mubr.f32.gmra.mrb[58].mxu1 %v1627_v36  ;;  %v1637_v54 = vsel %vm1487_vm1, %v1635_v56, %v1636_v8  ;;  %v1640_v36 = vrot.slane %v10309_v1, 2  ;;  %v1639_v6 = vsel %vm1487_vm1, %v1636_v8, %v1638_v31  ;;  %v12463_v8 = vld [vmem:[%s10570_s24 + $0x2d0] sm:$0xff] }
 0x1c5   : > { %9118 = vmatmul.mubr.f32.gmra.mrb[22].mxu0 %v5219_v23  ;;  %8474 = vmatprep.mubr.f32.mxu1 %v1630_v52  ;;  %v12448_v23 = vld [vmem:[%s10570_s24 + $0x2c0] sm:$0xff]  ;;  %v12452_v52 = vld [vmem:[%s10570_s24 + $0x2c8] sm:$0xff] }
 0x1c6   : > { %9120 = vmatprep.mubr.f32.mxu0 %v5222_v15  ;;  %v1642_v5 = vrot.slane %v12448_v23, 2  ;;  %v1643_v21 = vrot.slane %v12452_v52, 2  ;;  %v13468_v15 = vld [vmem:[#allocation47_spill] sm:$0xff]  ;;  %v1641_v56 = vsel %vm1487_vm1, %v1638_v31, %v1640_v36  ;;  %v13470_v36 = vld [vmem:[#allocation49_spill] sm:$0xff] }
 0x1c7   : > { %v5235_v14 = vrot.slane %v13468_v15, 1 }
 0x1c8   : > { %8475 = vmatmul.mubr.f32.gmra.mrb[60].mxu1 %v1632_v30  ;;  %v12459_v30 = vld [vmem:[%s10570_s24 + $0x198] sm:$0x3]  ;;  %v1644_v53 = vsel %vm1487_vm1, %v1642_v5, %v1643_v21  ;;  %v1650_v5 = vrot.slane %v12479_v24, 2 }
 0x1c9   : > { %9121 = vmatmul.mubr.f32.gmra.mrb[24].mxu0 %v5224_v55  ;;  %8477 = vmatprep.mubr.f32.mxu1 %v1634_v45  ;;  %v1645_v55 = vrot.slane %v12463_v8, 2  ;;  %v13469_v45 = vld [vmem:[#allocation48_spill] sm:$0xff]  ;;  %v5239_v31 = vrot.slane %v12459_v30, 1 }
 0x1ca   : > { %9123 = vmatprep.mubr.f32.mxu0 %v5226_v61  ;;  %v5237_v61 = vrot.slane %v13469_v45, 1 }
 0x1cb   : > { %v1646_v15 = vsel %vm1487_vm1, %v1643_v21, %v1645_v55 }
 0x1cc   : > { %8478 = vmatmul.mubr.f32.gmra.mrb[62].mxu1 %v1637_v54  ;;  %v10313_v54 = vld [vmem:[%s10570_s24 + $0x2d8] sm:$0x3] }
 0x1cd   : > { %9124 = vmatmul.mubr.f32.gmra.mrb[26].mxu0 %v5229_v38  ;;  %8480 = vmatprep.mubr.f32.mxu1 %v1639_v6  ;;  %v1647_v1 = vrot.slane %v10313_v54, 2  ;;  %v5236_v38 = vsel %vm379_vm0, %v5234_v29, %v5235_v14  ;;  %v5241_v6 = vrot.slane %v13470_v36, 1  ;;  %v13472_v29 = vld [vmem:[#allocation50_spill] sm:$0xff]  ;;  %v5240_v36 = vsel %vm379_vm0, %v5237_v61, %v5239_v31 }
 0x1ce   : > { %9126 = vmatprep.mubr.f32.mxu0 %v5231_v34  ;;  %v12475_v34 = vld [vmem:[%s10570_s24 + $0x2e0] sm:$0xff]  ;;  %v5242_v45 = vrot.slane %v13472_v29, 1  ;;  %v10317_v29 = vld [vmem:[%s10570_s24 + $0x2f8] sm:$0x3] }
 0x1cf   : > { %13471 = vst [vmem:[#allocation21_spill] sm:$0xff] %v12475_v34  ;;  %v1649_v59 = vrot.slane %v12475_v34, 2  ;;  %v1648_v54 = vsel %vm1487_vm1, %v1645_v55, %v1647_v1  ;;  %v12492_v34 = vld [vmem:[%s10570_s24 + $0x1b8] sm:$0x3] }
 0x1d0   : > { %8481 = vmatmul.mubr.f32.gmra.mrb[64].mxu1 %v1641_v56  ;;  %v5238_v56 = vsel %vm379_vm0, %v5235_v14, %v5237_v61  ;;  %v1654_v14 = vrot.slane %v10317_v29, 2  ;;  %v5243_v55 = vsel %vm379_vm0, %v5241_v6, %v5242_v45  ;;  %v13474_v61 = vld [vmem:[#allocation51_spill] sm:$0xff]  ;;  %v5251_v6 = vrot.slane %v11950_v33, 1 }
 0x1d1   : > { %9127 = vmatmul.mubr.f32.gmra.mrb[28].mxu0 %v5233_v12  ;;  %8483 = vmatprep.mubr.f32.mxu1 %v1644_v53  ;;  %v12486_v12 = vld [vmem:[%s10570_s24 + $0x2f0] sm:$0xff]  ;;  %v5244_v53 = vrot.slane %v11925_v28, 1  ;;  %v5248_v28 = vrot.slane %v11929_v11, 1  ;;  %v5249_v31 = vrot.slane %v13474_v61, 1  ;;  %v5258_v29 = vrot.slane %v11983_v10, 1 }
 0x1d2   : > { %9129 = vmatprep.mubr.f32.mxu0 %v5236_v38  ;;  %13473 = vst [vmem:[#allocation24_spill] sm:$0xff] %v12486_v12  ;;  %v1652_v21 = vrot.slane %v12486_v12, 2  ;;  %v1651_v38 = vsel %vm1487_vm1, %v1649_v59, %v1650_v5  ;;  %v5246_v12 = vrot.slane %v12492_v34, 1  ;;  %v5262_v10 = vrot.slane %v11988_v40, 1 }
 0x1d3   : > { %v5250_v11 = vsel %vm379_vm0, %v5248_v28, %v5249_v31  ;;  %v5252_v33 = vsel %vm379_vm0, %v5249_v31, %v5251_v6  ;;  %v5263_v28 = vrot.slane %v12002_v19, 1  ;;  %v13476_v31 = vld [vmem:[#allocation3_spill] sm:$0xff] }
 0x1d4   : > { %8484 = vmatmul.mubr.f32.gmra.mrb[66].mxu1 %v1646_v15  ;;  %v1653_v1 = vsel %vm1487_vm1, %v1650_v5, %v1652_v21  ;;  %v5245_v15 = vsel %vm379_vm0, %v5242_v45, %v5244_v53  ;;  %v1655_v59 = vsel %vm1487_vm1, %v1652_v21, %v1654_v14  ;;  %v5247_v5 = vsel %vm379_vm0, %v5244_v53, %v5246_v12  ;;  %v10318_v45 = vld [vmem:[%s10570_s24 + $0x20] sm:$0xff]  ;;  %v12517_v53 = vld [vmem:[%s10570_s24 + $0x1f8] sm:$0x3]  ;;  %v10319_v14 = vld [vmem:[%s10570_s24 + $0x28] sm:$0xff] }
 0x1d5   : > { %9130 = vmatmul.mubr.f32.gmra.mrb[30].mxu0 %v5238_v56  ;;  %8486 = vmatprep.mubr.f32.mxu1 %v1648_v54  ;;  %v12503_v56 = vld [vmem:[%s10570_s24 + $0x1d8] sm:$0x3]  ;;  %v5256_v21 = vrot.slane %v11970_v63, 1  ;;  %v5264_v19 = vsel %vm379_vm0, %v5262_v10, %v5263_v28  ;;  %v13479_v10 = vld [vmem:[#allocation6_spill] sm:$0xff] }
 0x1d6   : > { %9132 = vmatprep.mubr.f32.mxu0 %v5240_v36  ;;  %v5253_v54 = vrot.slane %v12503_v56, 1  ;;  %v13475_v36 = vld [vmem:[#allocation52_spill] sm:$0xff] }
 0x1d7   : > { %v5259_v61 = vsel %vm379_vm0, %v5256_v21, %v5258_v29 }
 0x1d8   : > { %8487 = vmatmul.mubr.f32.gmra.mrb[68].mxu1 %v1651_v38  ;;  %v5255_v38 = vrot.slane %v13475_v36, 1  ;;  %v5254_v12 = vsel %vm379_vm0, %v5251_v6, %v5253_v54  ;;  %v5265_v6 = vrot.slane %v12007_v7, 1  ;;  %v10323_v54 = vld [vmem:[%s10570_s24 + $0x50] sm:$0xff]  ;;  %v5269_v7 = vrot.slane %v12020_v57, 1 }
 0x1d9   : > { %9133 = vmatmul.mubr.f32.gmra.mrb[32].mxu0 %v5243_v55  ;;  %8489 = vmatprep.mubr.f32.mxu1 %v1653_v1  ;;  %v10320_v55 = vld [vmem:[%s10570_s24 + $0x30] sm:$0xff]  ;;  %v5260_v1 = vrot.slane %v12517_v53, 1  ;;  %v5270_v36 = vrot.slane %v12026_v43, 1 }
 0x1da   : > { %9135 = vmatprep.mubr.f32.mxu0 %v5245_v15  ;;  %v5257_v63 = vsel %vm379_vm0, %v5255_v38, %v5256_v21  ;;  %v10321_v15 = vld [vmem:[%s10570_s24 + $0x40] sm:$0xff]  ;;  %v5266_v38 = vsel %vm379_vm0, %v5263_v28, %v5265_v6  ;;  %v5272_v21 = vrot.slane %v12039_v18, 1  ;;  %v10326_v57 = vld [vmem:[%s10570_s24 + $0x70] sm:$0xff]  ;;  %v5276_v18 = vrot.slane %v12044_v9, 1 }
 0x1db   : > { %v5261_v40 = vsel %vm379_vm0, %v5258_v29, %v5260_v1  ;;  %v12548_v29 = vld [vmem:[%s10570_s24 + $0x238] sm:$0x3]  ;;  %v5271_v43 = vsel %vm379_vm0, %v5269_v7, %v5270_v36  ;;  %v10327_v28 = vld [vmem:[%s10570_s24 + $0x80] sm:$0xff] }
 0x1dc   : > { %8490 = vmatmul.mubr.f32.gmra.mrb[70].mxu1 %v1655_v59  ;;  %v10322_v59 = vld [vmem:[%s10570_s24 + $0x48] sm:$0xff]  ;;  %v5273_v1 = vsel %vm379_vm0, %v5270_v36, %v5272_v21  ;;  %v12580_v36 = vld [vmem:[%s10570_s24 + $0x278] sm:$0x3] }
 0x1dd   : > { %9136 = vmatmul.mubr.f32.gmra.mrb[34].mxu0 %v5247_v5  ;;  %8524 = vmatprep.mubr.f32.mxu1 %v10318_v45  ;;  %v10324_v45 = vld [vmem:[%s10570_s24 + $0x60] sm:$0xff] }
 0x1de   : > { %9138 = vmatprep.mubr.f32.mxu0 %v5250_v11  ;;  %v13477_v11 = vld [vmem:[#allocation4_spill] sm:$0xff] }
 0x1e0   : > { %8525 = vmatmul.mubr.f32.vlgmr.msra.gmra.mrb[0].mxu1 %v10319_v14  ;;  %v10325_v14 = vld [vmem:[%s10570_s24 + $0x68] sm:$0xff] }
 0x1e1   : > { %9139 = vmatmul.mubr.f32.gmra.mrb[36].mxu0 %v5252_v33  ;;  %9628 = vmatpush3.bf16.msra.mxu1 %v13416_v2  ;;  %v12530_v2 = vld [vmem:[%s10570_s24 + $0x218] sm:$0x3] }
 0x1e2   : > { %8527 = vmatprep.mubr.f32.mxu1 %v10320_v55  ;;  %9141 = vmatprep.mubr.f32.mxu0 %v5254_v12  ;;  %v5267_v5 = vrot.slane %v12530_v2, 1  ;;  %v13478_v12 = vld [vmem:[#allocation5_spill] sm:$0xff]  ;;  %v5274_v55 = vrot.slane %v12548_v29, 1 }
 0x1e3   : > { %9621 = vmatprep.subr.bf16.mxu1 %v13476_v31 }
 0x1e4   : > { %8528 = vmatmul.mubr.f32.gmra.mrb[2].mxu1 %v10321_v15  ;;  %v5268_v33 = vsel %vm379_vm0, %v5265_v6, %v5267_v5  ;;  %v5279_v15 = vrot.slane %v12063_v39, 1  ;;  %v5275_v9 = vsel %vm379_vm0, %v5272_v21, %v5274_v55  ;;  %v13480_v6 = vld [vmem:[#allocation7_spill] sm:$0xff]  ;;  %v5283_v39 = vrot.slane %v12070_v35, 1  ;;  %v10332_v35 = vld [vmem:[%s10570_s24 + $0xb0] sm:$0xff] }
 0x1e5   : > { %9142 = vmatmul.mubr.f32.gmra.mrb[38].mxu0 %v5257_v63  ;;  %8530 = vmatprep.mubr.f32.mxu1 %v10322_v59  ;;  %v5277_v63 = vrot.slane %v12058_v0, 1  ;;  %v5284_v5 = vrot.slane %v12076_v46, 1  ;;  %v10331_v21 = vld [vmem:[%s10570_s24 + $0xa8] sm:$0xff] }
 0x1e6   : > { %9144 = vmatprep.mubr.f32.mxu0 %v5259_v61  ;;  %9629 = vmatpush3.bf16.msra.mxu1 %v13476_v31  ;;  %v12562_v61 = vld [vmem:[%s10570_s24 + $0x258] sm:$0x3]  ;;  %v10328_v31 = vld [vmem:[%s10570_s24 + $0x88] sm:$0xff] }
 0x1e7   : > { %9622 = vmatprep.subr.bf16.mxu1 %v13477_v11  ;;  %v5278_v0 = vsel %vm379_vm0, %v5276_v18, %v5277_v63  ;;  %v5281_v59 = vrot.slane %v12562_v61, 1  ;;  %v5285_v46 = vsel %vm379_vm0, %v5283_v39, %v5284_v5  ;;  %v13485_v18 = vld [vmem:[#allocation9_spill] sm:$0xff]  ;;  %v13488_v39 = vld [vmem:[#allocation11_spill] sm:$0xff] }
 0x1e8   : > { %8531 = vmatmul.mubr.f32.gmra.mrb[4].mxu1 %v10323_v54  ;;  %v13481_v54 = vld [vmem:[#allocation53_spill] sm:$0xff] }
 0x1e9   : > { %9145 = vmatmul.mubr.f32.gmra.mrb[40].mxu0 %v5261_v40  ;;  %8533 = vmatprep.mubr.f32.mxu1 %v10324_v45  ;;  %v10329_v40 = vld [vmem:[%s10570_s24 + $0x90] sm:$0xff]  ;;  %v5286_v45 = vrot.slane %v13481_v54, 1  ;;  %v5282_v7 = vsel %vm379_vm0, %v5279_v15, %v5281_v59 }
 0x1ea   : > { %9147 = vmatprep.mubr.f32.mxu0 %v5264_v19  ;;  %9630 = vmatpush3.bf16.msra.mxu1 %v13477_v11  ;;  %v10330_v19 = vld [vmem:[%s10570_s24 + $0xa0] sm:$0xff]  ;;  %v5280_v11 = vsel %vm379_vm0, %v5277_v63, %v5279_v15  ;;  %v10335_v59 = vld [vmem:[%s10570_s24 + $0xd0] sm:$0xff] }
 0x1eb   : > { %9623 = vmatprep.subr.bf16.mxu1 %v13478_v12  ;;  %v5287_v55 = vsel %vm379_vm0, %v5284_v5, %v5286_v45  ;;  %v10333_v63 = vld [vmem:[%s10570_s24 + $0xc0] sm:$0xff]  ;;  %v5298_v5 = vrot.slane %v13488_v39, 1  ;;  %v13489_v54 = vld [vmem:[#allocation12_spill] sm:$0xff] }
 0x1ec   : > { %8534 = vmatmul.mubr.f32.gmra.mrb[6].mxu1 %v10325_v14  ;;  %v13495_v39 = vld [vmem:[#allocation58_spill] sm:$0xff] }
 0x1ed   : > { %9148 = vmatmul.mubr.f32.gmra.mrb[42].mxu0 %v5266_v38  ;;  %8536 = vmatprep.mubr.f32.mxu1 %v10326_v57  ;;  %v13482_v38 = vld [vmem:[#allocation8_spill] sm:$0xff]  ;;  %v13484_v57 = vld [vmem:[#allocation2_spill] sm:$0xff] }
 0x1ee   : > { %9150 = vmatprep.mubr.f32.mxu0 %v5268_v33  ;;  %9631 = vmatpush3.bf16.msra.mxu1 %v13478_v12  ;;  %v5288_v33 = vrot.slane %v12580_v36, 1  ;;  %v13483_v12 = vld [vmem:[#allocation54_spill] sm:$0xff] }
 0x1ef   : > { %9624 = vmatprep.subr.bf16.mxu1 %v13479_v10  ;;  %v5290_v14 = vrot.slane %v13483_v12, 1  ;;  %v13490_v12 = vld [vmem:[#allocation57_spill] sm:$0xff] }
 0x1f0   : > { %8537 = vmatmul.mubr.f32.gmra.mrb[8].mxu1 %v10327_v28  ;;  %v13486_v28 = vld [vmem:[#allocation55_spill] sm:$0xff]  ;;  %v5289_v15 = vsel %vm379_vm0, %v5286_v45, %v5288_v33  ;;  %v5300_v45 = vrot.slane %v13489_v54, 1 }
 0x1f1   : > { %9151 = vmatmul.mubr.f32.gmra.mrb[44].mxu0 %v5271_v43  ;;  %8539 = vmatprep.mubr.f32.mxu1 %v10328_v31  ;;  %v5291_v43 = vrot.slane %v13484_v57, 1  ;;  %v5293_v31 = vrot.slane %v13486_v28, 1  ;;  %v13491_v57 = vld [vmem:[#allocation13_spill] sm:$0xff]  ;;  %v13493_v28 = vld [vmem:[#allocation14_spill] sm:$0xff]  ;;  %v13496_v54 = vld [vmem:[#allocation59_spill] sm:$0xff] }
 0x1f2   : > { %9153 = vmatprep.mubr.f32.mxu0 %v5273_v1  ;;  %9632 = vmatpush3.bf16.msra.mxu1 %v13479_v10  ;;  %v12594_v1 = vld [vmem:[%s10570_s24 + $0x298] sm:$0x3]  ;;  %v10334_v10 = vld [vmem:[%s10570_s24 + $0xc8] sm:$0xff] }
 0x1f3   : > { %9625 = vmatprep.subr.bf16.mxu1 %v13480_v6 }
 0x1f4   : > { %8540 = vmatmul.mubr.f32.gmra.mrb[10].mxu1 %v10329_v40  ;;  %v13487_v40 = vld [vmem:[#allocation56_spill] sm:$0xff] }
 0x1f5   : > { %9154 = vmatmul.mubr.f32.gmra.mrb[46].mxu0 %v5275_v9  ;;  %8542 = vmatprep.mubr.f32.mxu1 %v10330_v19  ;;  %v5292_v9 = vsel %vm379_vm0, %v5290_v14, %v5291_v43  ;;  %v5297_v19 = vrot.slane %v13487_v40, 1  ;;  %v5304_v14 = vrot.slane %v13490_v12, 1  ;;  %v13494_v40 = vld [vmem:[#allocation16_spill] sm:$0xff] }
 0x1f6   : > { %9156 = vmatprep.mubr.f32.mxu0 %v5278_v0  ;;  %9633 = vmatpush3.bf16.msra.mxu1 %v13480_v6  ;;  %v5295_v0 = vrot.slane %v12594_v1, 1  ;;  %v10336_v6 = vld [vmem:[%s10570_s24 + $0xe0] sm:$0xff] }
 0x1f7   : > { %9626 = vmatprep.subr.bf16.mxu1 %v13482_v38 }
 0x1f8   : > { %8543 = vmatmul.mubr.f32.gmra.mrb[12].mxu1 %v10331_v21  ;;  %v10337_v21 = vld [vmem:[%s10570_s24 + $0xe8] sm:$0xff] }
 0x1f9   : > { %9157 = vmatmul.mubr.f32.gmra.mrb[48].mxu0 %v5280_v11  ;;  %8545 = vmatprep.mubr.f32.mxu1 %v10332_v35  ;;  %v5294_v11 = vsel %vm379_vm0, %v5291_v43, %v5293_v31  ;;  %v10338_v35 = vld [vmem:[%s10570_s24 + $0xf0] sm:$0xff]  ;;  %v5305_v43 = vrot.slane %v13491_v57, 1 }
 0x1fa   : > { %9159 = vmatprep.mubr.f32.mxu0 %v5282_v7  ;;  %9634 = vmatpush3.bf16.msra.mxu1 %v13482_v38  ;;  %v5296_v7 = vsel %vm379_vm0, %v5293_v31, %v5295_v0  ;;  %v12610_v38 = vld [vmem:[%s10570_s24 + $0x2b8] sm:$0x3]  ;;  %v5307_v31 = vrot.slane %v13493_v28, 1 }
 0x1fb   : > { %9627 = vmatprep.subr.bf16.mxu1 %v13485_v18  ;;  %v5302_v33 = vrot.slane %v12610_v38, 1  ;;  %v12653_v28 = vld [vmem:[%s10570_s24 + $0x318] sm:$0x3] }
 0x1fc   : > { %8546 = vmatmul.mubr.f32.gmra.mrb[14].mxu1 %v10333_v63  ;;  %v12621_v63 = vld [vmem:[%s10570_s24 + $0x2d8] sm:$0x3]  ;;  %13498 = vst [vmem:[#allocation28_spill] sm:$0xff] %v12653_v28 }
 0x1fd   : > { %9160 = vmatmul.mubr.f32.gmra.mrb[50].mxu0 %v5285_v46  ;;  %8548 = vmatprep.mubr.f32.mxu1 %v10334_v10  ;;  %v5299_v46 = vsel %vm379_vm0, %v5297_v19, %v5298_v5  ;;  %13492 = vst [vmem:[#allocation27_spill] sm:$0xff] %v12621_v63  ;;  %v10340_v10 = vld [vmem:[%s10570_s24 + $0x108] sm:$0xff]  ;;  %v5309_v0 = vrot.slane %v12621_v63, 1  ;;  %v5311_v19 = vrot.slane %v13494_v40, 1  ;;  %v10350_v40 = vld [vmem:[%s10570_s24 + $0x150] sm:$0xff] }
 0x1fe   : > { %9162 = vmatprep.mubr.f32.mxu0 %v5287_v55  ;;  %9635 = vmatpush3.bf16.msra.mxu1 %v13485_v18  ;;  %v5301_v55 = vsel %vm379_vm0, %v5298_v5, %v5300_v45  ;;  %v10339_v18 = vld [vmem:[%s10570_s24 + $0x100] sm:$0xff]  ;;  %v5312_v5 = vrot.slane %v13495_v39, 1  ;;  %v13501_v39 = vld [vmem:[#allocation15_spill] sm:$0xff] }
 0x200   : > { %8549 = vmatmul.mubr.f32.gmra.mrb[16].mxu1 %v10335_v59  ;;  %v10341_v59 = vld [vmem:[%s10570_s24 + $0x110] sm:$0xff] }
 0x201   : > { %9163 = vmatmul.mubr.f32.gmra.mrb[52].mxu0 %v5289_v15  ;;  %8551 = vmatprep.mubr.f32.mxu1 %v10336_v6  ;;  %v5303_v15 = vsel %vm379_vm0, %v5300_v45, %v5302_v33  ;;  %v10342_v6 = vld [vmem:[%s10570_s24 + $0x120] sm:$0xff]  ;;  %v5314_v45 = vrot.slane %v13496_v54, 1  ;;  %v5313_v33 = vsel %vm379_vm0, %v5311_v19, %v5312_v5 }
 0x202   : > { %9165 = vmatprep.mubr.f32.mxu0 %v5292_v9  ;;  %v5306_v9 = vsel %vm379_vm0, %v5304_v14, %v5305_v43  ;;  %v12643_v14 = vld [vmem:[%s10570_s24 + $0x300] sm:$0xff] }
 0x203   : > { %v5318_v57 = vrot.slane %v12643_v14, 1  ;;  %v10351_v19 = vld [vmem:[%s10570_s24 + $0x160] sm:$0xff] }
 0x204   : > { %8552 = vmatmul.mubr.f32.gmra.mrb[18].mxu1 %v10337_v21  ;;  %v12636_v21 = vld [vmem:[%s10570_s24 + $0x2f8] sm:$0x3] }
 0x205   : > { %9166 = vmatmul.mubr.f32.gmra.mrb[54].mxu0 %v5294_v11  ;;  %8554 = vmatprep.mubr.f32.mxu1 %v10338_v35  ;;  %v5308_v11 = vsel %vm379_vm0, %v5305_v43, %v5307_v31  ;;  %13497 = vst [vmem:[#allocation25_spill] sm:$0xff] %v12636_v21  ;;  %v10343_v35 = vld [vmem:[%s10570_s24 + $0x128] sm:$0xff]  ;;  %v5316_v12 = vrot.slane %v12636_v21, 1 }
 0x206   : > { %9168 = vmatprep.mubr.f32.mxu0 %v5296_v7  ;;  %v5310_v7 = vsel %vm379_vm0, %v5307_v31, %v5309_v0  ;;  %v12647_v43 = vld [vmem:[%s10570_s24 + $0x308] sm:$0xff] }
 0x207   : > { %v10348_v31 = vld [vmem:[%s10570_s24 + $0x148] sm:$0xff]  ;;  %v5317_v0 = vsel %vm379_vm0, %v5314_v45, %v5316_v12 }
 0x208   : > { %8555 = vmatmul.mubr.f32.gmra.mrb[20].mxu1 %v10339_v18  ;;  %v5315_v18 = vsel %vm379_vm0, %v5312_v5, %v5314_v45  ;;  %v5325_v5 = vrot.slane %v13501_v39, 1  ;;  %v10352_v12 = vld [vmem:[%s10570_s24 + $0x168] sm:$0xff] }
 0x209   : > { %9169 = vmatmul.mubr.f32.gmra.mrb[56].mxu0 %v5299_v46  ;;  %8557 = vmatprep.mubr.f32.mxu1 %v10340_v10  ;;  %v10344_v46 = vld [vmem:[%s10570_s24 + $0x130] sm:$0xff]  ;;  %v10347_v10 = vld [vmem:[%s10570_s24 + $0x140] sm:$0xff]  ;;  %v10357_v39 = vld [vmem:[%s10570_s24 + $0x188] sm:$0xff] }
 0x20a   : > { %9171 = vmatprep.mubr.f32.mxu0 %v5301_v55  ;;  %v5319_v55 = vrot.slane %v12647_v43, 1  ;;  %v10384_v21 = vld [vmem:[%s10570_s24 + $0xe8] sm:$0xff] }
 0x20b   : > { %v5954_v63 = vrot.slane %v10384_v21, 2 }
 0x20c   : > { %8558 = vmatmul.mubr.f32.gmra.mrb[22].mxu1 %v10341_v59  ;;  %v12664_v59 = vsel %vm379_vm0, %v5318_v57, %v5319_v55  ;;  %v10353_v57 = vld [vmem:[%s10570_s24 + $0x170] sm:$0xff] }
 0x20d   : > { %9172 = vmatmul.mubr.f32.gmra.mrb[58].mxu0 %v5303_v15  ;;  %8560 = vmatprep.mubr.f32.mxu1 %v10342_v6  ;;  %v12657_v15 = vld [vmem:[%s10570_s24 + $0x310] sm:$0xff]  ;;  %13500 = vst [vmem:[#allocation30_spill] sm:$0xff] %v12664_v59  ;;  %v5323_v6 = vrot.slane %v12653_v28, 1  ;;  %v12758_v28 = vld [vmem:[%s10570_s24 + $0x200] sm:$0xff] }
 0x20e   : > { %9174 = vmatprep.mubr.f32.mxu0 %v5306_v9  ;;  %v12660_v9 = vrot.slane %v12657_v15, 1 }
 0x210   : > { %8561 = vmatmul.mubr.f32.gmra.mrb[24].mxu1 %v10343_v35  ;;  %13499 = vst [vmem:[#allocation29_spill] sm:$0xff] %v12660_v9  ;;  %v12674_v45 = vsel %vm379_vm0, %v5319_v55, %v12660_v9 }
 0x211   : > { %9175 = vmatmul.mubr.f32.gmra.mrb[60].mxu0 %v5308_v11  ;;  %8563 = vmatprep.mubr.f32.mxu1 %v10344_v46  ;;  %v13502_v11 = vld [vmem:[#allocation22_spill] sm:$0xff]  ;;  %13503 = vst [vmem:[#allocation31_spill] sm:$0xff] %v12674_v45  ;;  %v5324_v46 = vsel %vm379_vm0, %v12660_v9, %v5323_v6  ;;  %v10355_v6 = vld [vmem:[%s10570_s24 + $0x48] sm:$0xff]  ;;  %v12732_v9 = vld [vmem:[%s10570_s24 + $0x1d0] sm:$0xff] }
 0x212   : > { %9177 = vmatprep.mubr.f32.mxu0 %v5310_v7  ;;  %v5326_v54 = vrot.slane %v13502_v11, 1  ;;  %v13504_v7 = vld [vmem:[#allocation17_spill] sm:$0xff]  ;;  %v10358_v11 = vld [vmem:[%s10570_s24 + $0x50] sm:$0xff] }
 0x213   : > { %v5328_v35 = vrot.slane %v13504_v7, 1  ;;  %v5921_v7 = vrot.slane %v10358_v11, 2  ;;  %v12707_v11 = vld [vmem:[%s10570_s24 + $0x1a8] sm:$0xff] }
 0x214   : > { %8564 = vmatmul.mubr.f32.gmra.mrb[26].mxu1 %v10347_v10  ;;  %v5327_v55 = vsel %vm379_vm0, %v5325_v5, %v5326_v54  ;;  %v10354_v10 = vld [vmem:[%s10570_s24 + $0x40] sm:$0xff] }
 0x215   : > { %9178 = vmatmul.mubr.f32.gmra.mrb[62].mxu0 %v5313_v33  ;;  %8566 = vmatprep.mubr.f32.mxu1 %v10348_v31  ;;  %v12680_v33 = vld [vmem:[%s10570_s24 + $0x338] sm:$0x3]  ;;  %v5918_v31 = vrot.slane %v10354_v10, 2  ;;  %v12698_v10 = vld [vmem:[%s10570_s24 + $0x1a0] sm:$0xff] }
 0x216   : > { %9180 = vmatprep.mubr.f32.mxu0 %v5315_v18  ;;  %13505 = vst [vmem:[#allocation34_spill] sm:$0xff] %v12680_v33  ;;  %v5330_v18 = vrot.slane %v12680_v33, 1  ;;  %v12745_v33 = vld [vmem:[%s10570_s24 + $0x1e8] sm:$0xff] }
 0x218   : > { %8567 = vmatmul.mubr.f32.gmra.mrb[28].mxu1 %v10350_v40  ;;  %v5919_v40 = vrot.slane %v10355_v6, 2  ;;  %v5331_v5 = vsel %vm379_vm0, %v5328_v35, %v5330_v18  ;;  %v10363_v18 = vld [vmem:[%s10570_s24 + $0x70] sm:$0xff] }
 0x219   : > { %9181 = vmatmul.mubr.f32.gmra.mrb[64].mxu0 %v5317_v0  ;;  %8569 = vmatprep.mubr.f32.mxu1 %v10351_v19  ;;  %v5329_v0 = vsel %vm379_vm0, %v5326_v54, %v5328_v35  ;;  %v10356_v19 = vld [vmem:[%s10570_s24 + $0x180] sm:$0xff] }
 0x21a   : > { %9183 = vmatprep.mubr.f32.mxu0 %v12664_v59  ;;  %v5922_v35 = vsel %vm1487_vm1, %v5919_v40, %v5921_v7 }
 0x21c   : > { %8570 = vmatmul.mubr.f32.gmra.mrb[30].mxu1 %v10352_v12  ;;  %v13506_v12 = vld [vmem:[#allocation10_spill] sm:$0xff] }
 0x21d   : > { %9184 = vmatmul.mubr.f32.gmra.mrb[66].mxu0 %v12674_v45  ;;  %8572 = vmatprep.mubr.f32.mxu1 %v10353_v57  ;;  %v5923_v54 = vrot.slane %v13506_v12, 2  ;;  %v10359_v57 = vld [vmem:[%s10570_s24 + $0x190] sm:$0xff] }
 0x21e   : > { %9186 = vmatprep.mubr.f32.mxu0 %v5324_v46  ;;  %v5920_v46 = vsel %vm1487_vm1, %v5918_v31, %v5919_v40  ;;  %v5928_v31 = vrot.slane %v10363_v18, 2  ;;  %v13507_v40 = vld [vmem:[#allocation23_spill] sm:$0xff]  ;;  %v12720_v18 = vld [vmem:[%s10570_s24 + $0x1c0] sm:$0xff] }
 0x21f   : > { %v5930_v12 = vrot.slane %v13507_v40, 2 }
 0x220   : > { %8573 = vmatmul.mubr.f32.gmra.mrb[32].mxu1 %v10356_v19  ;;  %v10362_v19 = vld [vmem:[%s10570_s24 + $0x68] sm:$0xff] }
 0x221   : > { %9187 = vmatmul.mubr.f32.gmra.mrb[68].mxu0 %v5327_v55  ;;  %8575 = vmatprep.mubr.f32.mxu1 %v10357_v39  ;;  %v10361_v55 = vld [vmem:[%s10570_s24 + $0x60] sm:$0xff]  ;;  %v5924_v39 = vsel %vm1487_vm1, %v5921_v7, %v5923_v54  ;;  %v10367_v7 = vld [vmem:[%s10570_s24 + $0x88] sm:$0xff]  ;;  %v5931_v40 = vsel %vm1487_vm1, %v5928_v31, %v5930_v12 }
 0x222   : > { %9189 = vmatprep.mubr.f32.mxu0 %v5329_v0  ;;  %v5925_v6 = vrot.slane %v10361_v55, 2  ;;  %v5926_v0 = vrot.slane %v10362_v19, 2  ;;  %v5933_v54 = vrot.slane %v10367_v7, 2 }
 0x224   : > { %8576 = vmatmul.mubr.f32.gmra.mrb[34].mxu1 %v10359_v57  ;;  %v10366_v57 = vld [vmem:[%s10570_s24 + $0x80] sm:$0xff]  ;;  %v5929_v19 = vsel %vm1487_vm1, %v5926_v0, %v5928_v31 }
 0x225   : > { %9190 = vmatmul.mubr.f32.gmra.mrb[70].mxu0 %v5331_v5  ;;  %8578 = vmatprep.mubr.f32.mxu1 %v12698_v10  ;;  %v12711_v5 = vld [vmem:[%s10570_s24 + $0x1b0] sm:$0xff]  ;;  %v5932_v55 = vrot.slane %v10366_v57, 2 }
 0x226   : > { %9224 = vmatprep.mubr.f32.mxu0 %v5920_v46  ;;  %v5927_v46 = vsel %vm1487_vm1, %v5925_v6, %v5926_v0  ;;  %v10370_v6 = vld [vmem:[%s10570_s24 + $0x90] sm:$0xff]  ;;  %v13508_v0 = vld [vmem:[#allocation26_spill] sm:$0xff] }
 0x227   : > { %v5934_v57 = vsel %vm1487_vm1, %v5932_v55, %v5933_v54  ;;  %v5937_v7 = vrot.slane %v13508_v0, 2  ;;  %v10375_v55 = vld [vmem:[%s10570_s24 + $0xb0] sm:$0xff] }
 0x228   : > { %8579 = vmatmul.mubr.f32.gmra.mrb[36].mxu1 %v12707_v11  ;;  %v5942_v0 = vrot.slane %v10375_v55, 2  ;;  %v10379_v55 = vld [vmem:[%s10570_s24 + $0xc8] sm:$0xff] }
 0x229   : > { %9225 = vmatmul.mubr.f32.vlgmr.msra.gmra.mrb[0].mxu0 %v5922_v35  ;;  %8581 = vmatprep.mubr.f32.mxu1 %v12711_v5  ;;  %v12724_v35 = vld [vmem:[%s10570_s24 + $0x1c8] sm:$0xff] }
 0x22a   : > { %9227 = vmatprep.mubr.f32.mxu0 %v5924_v39  ;;  %v5935_v39 = vrot.slane %v10370_v6, 2  ;;  %v10373_v6 = vld [vmem:[%s10570_s24 + $0xa0] sm:$0xff] }
 0x22b   : > { %v5939_v45 = vrot.slane %v10373_v6, 2  ;;  %v10378_v6 = vld [vmem:[%s10570_s24 + $0xc0] sm:$0xff] }
 0x22c   : > { %8582 = vmatmul.mubr.f32.gmra.mrb[38].mxu1 %v12720_v18  ;;  %v5936_v12 = vsel %vm1487_vm1, %v5933_v54, %v5935_v39  ;;  %v5938_v59 = vsel %vm1487_vm1, %v5935_v39, %v5937_v7  ;;  %v5944_v54 = vrot.slane %v12272_v26, 2  ;;  %v5947_v39 = vrot.slane %v10379_v55, 2 }
 0x22d   : > { %9228 = vmatmul.mubr.f32.gmra.mrb[2].mxu0 %v5927_v46  ;;  %8584 = vmatprep.mubr.f32.mxu1 %v12724_v35  ;;  %v12736_v46 = vld [vmem:[%s10570_s24 + $0x1e0] sm:$0xff] }
 0x22e   : > { %9230 = vmatprep.mubr.f32.mxu0 %v5929_v19  ;;  %v10374_v19 = vld [vmem:[%s10570_s24 + $0xa8] sm:$0xff] }
 0x22f   : > { %v5940_v31 = vrot.slane %v10374_v19, 2  ;;  %v5946_v19 = vrot.slane %v10378_v6, 2 }
 0x230   : > { %8585 = vmatmul.mubr.f32.gmra.mrb[40].mxu1 %v12732_v9 }
 0x231   : > { %9231 = vmatmul.mubr.f32.gmra.mrb[4].mxu0 %v5931_v40  ;;  %8587 = vmatprep.mubr.f32.mxu1 %v12736_v46  ;;  %v12749_v40 = vld [vmem:[%s10570_s24 + $0x1f0] sm:$0xff]  ;;  %v5943_v7 = vsel %vm1487_vm1, %v5940_v31, %v5942_v0  ;;  %v5948_v6 = vsel %vm1487_vm1, %v5946_v19, %v5947_v39  ;;  %v10387_v19 = vld [vmem:[%s10570_s24 + $0x108] sm:$0xff] }
 0x232   : > { %9233 = vmatprep.mubr.f32.mxu0 %v5934_v57  ;;  %v5941_v57 = vsel %vm1487_vm1, %v5939_v45, %v5940_v31  ;;  %v5945_v45 = vsel %vm1487_vm1, %v5942_v0, %v5944_v54  ;;  %v5951_v31 = vrot.slane %v12291_v42, 2 }
 0x234   : > { %8588 = vmatmul.mubr.f32.gmra.mrb[42].mxu1 %v12745_v33 }
 0x235   : > { %9234 = vmatmul.mubr.f32.gmra.mrb[6].mxu0 %v5936_v12  ;;  %8590 = vmatprep.mubr.f32.mxu1 %v12749_v40  ;;  %v12762_v12 = vld [vmem:[%s10570_s24 + $0x208] sm:$0xff] }
 0x236   : > { %9236 = vmatprep.mubr.f32.mxu0 %v5938_v59  ;;  %v10382_v59 = vld [vmem:[%s10570_s24 + $0xd0] sm:$0xff] }
 0x237   : > { %v5949_v26 = vrot.slane %v10382_v59, 2  ;;  %v10385_v59 = vld [vmem:[%s10570_s24 + $0xf0] sm:$0xff] }
 0x238   : > { %8591 = vmatmul.mubr.f32.gmra.mrb[44].mxu1 %v12758_v28  ;;  %v5956_v0 = vrot.slane %v10385_v59, 2 }
 0x239   : > { %9237 = vmatmul.mubr.f32.gmra.mrb[8].mxu0 %v5941_v57  ;;  %8593 = vmatprep.mubr.f32.mxu1 %v12762_v12  ;;  %v10383_v57 = vld [vmem:[%s10570_s24 + $0xe0] sm:$0xff]  ;;  %v5952_v54 = vsel %vm1487_vm1, %v5949_v26, %v5951_v31 }
 0x23a   : > { %9239 = vmatprep.mubr.f32.mxu0 %v5943_v7  ;;  %v5953_v55 = vrot.slane %v10383_v57, 2  ;;  %v5950_v7 = vsel %vm1487_vm1, %v5947_v39, %v5949_v26  ;;  %v5961_v39 = vrot.slane %v10387_v19, 2 }
 0x23c   : > { %8594 = vmatmul.mubr.f32.gmra.mrb[46].mxu1 %v12301_v13  ;;  %v5955_v42 = vsel %vm1487_vm1, %v5953_v55, %v5954_v63  ;;  %v5958_v13 = vrot.slane %v12336_v22, 2  ;;  %v10391_v55 = vld [vmem:[%s10570_s24 + $0x130] sm:$0xff] }
 0x23d   : > { %9240 = vmatmul.mubr.f32.gmra.mrb[10].mxu0 %v5945_v45  ;;  %8596 = vmatprep.mubr.f32.mxu1 %v12320_v58  ;;  %v10386_v58 = vld [vmem:[%s10570_s24 + $0x100] sm:$0xff]  ;;  %v5957_v45 = vsel %vm1487_vm1, %v5954_v63, %v5956_v0 }
 0x23e   : > { %9242 = vmatprep.mubr.f32.mxu0 %v5948_v6  ;;  %v5960_v21 = vrot.slane %v10386_v58, 2  ;;  %v5959_v26 = vsel %vm1487_vm1, %v5956_v0, %v5958_v13  ;;  %v5965_v6 = vrot.slane %v12355_v48, 2 }
 0x240   : > { %8597 = vmatmul.mubr.f32.gmra.mrb[48].mxu1 %v12324_v16  ;;  %v10388_v16 = vld [vmem:[%s10570_s24 + $0x110] sm:$0xff]  ;;  %v5962_v22 = vsel %vm1487_vm1, %v5960_v21, %v5961_v39  ;;  %v5979_v21 = vrot.slane %v12407_v32, 2 }
 0x241   : > { %9243 = vmatmul.mubr.f32.gmra.mrb[12].mxu0 %v5950_v7  ;;  %8599 = vmatprep.mubr.f32.mxu1 %v12330_v25  ;;  %v5963_v25 = vrot.slane %v10388_v16, 2  ;;  %v5970_v7 = vrot.slane %v10391_v55, 2  ;;  %v10397_v16 = vld [vmem:[%s10570_s24 + $0x170] sm:$0xff]  ;;  %v10401_v55 = vld [vmem:[%s10570_s24 + $0x1a0] sm:$0xff] }
 0x242   : > { %9245 = vmatprep.mubr.f32.mxu0 %v5952_v54  ;;  %v10393_v54 = vld [vmem:[%s10570_s24 + $0x148] sm:$0xff] }
 0x243   : > { %v5964_v57 = vsel %vm1487_vm1, %v5961_v39, %v5963_v25  ;;  %v5966_v59 = vsel %vm1487_vm1, %v5963_v25, %v5965_v6  ;;  %v5984_v25 = vrot.slane %v10397_v16, 2  ;;  %v10399_v6 = vld [vmem:[%s10570_s24 + $0x188] sm:$0xff] }
 0x244   : > { %8600 = vmatmul.mubr.f32.gmra.mrb[50].mxu1 %v12344_v62  ;;  %v10389_v62 = vld [vmem:[%s10570_s24 + $0x120] sm:$0xff] }
 0x245   : > { %9246 = vmatmul.mubr.f32.gmra.mrb[14].mxu0 %v5955_v42  ;;  %8602 = vmatprep.mubr.f32.mxu1 %v12348_v41  ;;  %v5967_v63 = vrot.slane %v10389_v62, 2  ;;  %v10390_v41 = vld [vmem:[%s10570_s24 + $0x128] sm:$0xff]  ;;  %v5975_v42 = vrot.slane %v10393_v54, 2  ;;  %v5989_v62 = vrot.slane %v10399_v6, 2  ;;  %v3033_v54 = vrot.slane %v12698_v10, 1 }
 0x246   : > { %9248 = vmatprep.mubr.f32.mxu0 %v5957_v45  ;;  %v5968_v31 = vrot.slane %v10390_v41, 2  ;;  %v10411_v6 = vld [vmem:[%s10570_s24 + $0x1d8] sm:$0x3] }
 0x248   : > { %8603 = vmatmul.mubr.f32.gmra.mrb[52].mxu1 %v12359_v49  ;;  %v5969_v48 = vsel %vm1487_vm1, %v5967_v63, %v5968_v31  ;;  %v5972_v49 = vrot.slane %v12388_v44, 2  ;;  %v5971_v13 = vsel %vm1487_vm1, %v5968_v31, %v5970_v7  ;;  %v5993_v31 = vrot.slane %v12459_v30, 2  ;;  %v13510_v30 = vld [vmem:[#allocation24_spill] sm:$0xff] }
 0x249   : > { %9249 = vmatmul.mubr.f32.gmra.mrb[16].mxu0 %v5959_v26  ;;  %8605 = vmatprep.mubr.f32.mxu1 %v12372_v3  ;;  %v10392_v3 = vld [vmem:[%s10570_s24 + $0x140] sm:$0xff] }
 0x24a   : > { %9251 = vmatprep.mubr.f32.mxu0 %v5962_v22  ;;  %v5974_v0 = vrot.slane %v10392_v3, 2  ;;  %v5973_v58 = vsel %vm1487_vm1, %v5970_v7, %v5972_v49  ;;  %v10402_v7 = vld [vmem:[%s10570_s24 + $0x1a8] sm:$0xff] }
 0x24c   : > { %8606 = vmatmul.mubr.f32.gmra.mrb[54].mxu1 %v12376_v60  ;;  %v10394_v60 = vld [vmem:[%s10570_s24 + $0x150] sm:$0xff]  ;;  %v5976_v44 = vsel %vm1487_vm1, %v5974_v0, %v5975_v42  ;;  %v6000_v0 = vrot.slane %v12492_v34, 2  ;;  %v3036_v34 = vrot.slane %v12711_v5, 1 }
 0x24d   : > { %9252 = vmatmul.mubr.f32.gmra.mrb[18].mxu0 %v5964_v57  ;;  %8608 = vmatprep.mubr.f32.mxu1 %v12382_v27  ;;  %v5977_v27 = vrot.slane %v10394_v60, 2  ;;  %v13509_v57 = vld [vmem:[#allocation21_spill] sm:$0xff] }
 0x24e   : > { %9254 = vmatprep.mubr.f32.mxu0 %v5966_v59 }
 0x24f   : > { %v5978_v45 = vsel %vm1487_vm1, %v5975_v42, %v5977_v27  ;;  %v5980_v26 = vsel %vm1487_vm1, %v5977_v27, %v5979_v21  ;;  %v3034_v42 = vrot.slane %v12707_v11, 1  ;;  %v10405_v27 = vld [vmem:[%s10570_s24 + $0x1c8] sm:$0xff] }
 0x250   : > { %8609 = vmatmul.mubr.f32.gmra.mrb[56].mxu1 %v12396_v4  ;;  %v10395_v4 = vld [vmem:[%s10570_s24 + $0x160] sm:$0xff] }
 0x251   : > { %9255 = vmatmul.mubr.f32.gmra.mrb[20].mxu0 %v5969_v48  ;;  %8611 = vmatprep.mubr.f32.mxu1 %v12400_v37  ;;  %v5981_v19 = vrot.slane %v10395_v4, 2  ;;  %v10396_v37 = vld [vmem:[%s10570_s24 + $0x168] sm:$0xff]  ;;  %v10403_v48 = vld [vmem:[%s10570_s24 + $0x1b0] sm:$0xff]  ;;  %v3035_v21 = vsel %vm379_vm0, %v3033_v54, %v3034_v42  ;;  %v10407_v4 = vld [vmem:[%s10570_s24 + $0x1b8] sm:$0x3]  ;;  %v3037_v16 = vsel %vm379_vm0, %v3034_v42, %v3036_v34  ;;  %v3054_v42 = vrot.slane %v12758_v28, 1 }
 0x252   : > { %9257 = vmatprep.mubr.f32.mxu0 %v5971_v13  ;;  %v5982_v39 = vrot.slane %v10396_v37, 2  ;;  %v5998_v49 = vrot.slane %v10403_v48, 2  ;;  %v10404_v13 = vld [vmem:[%s10570_s24 + $0x1c0] sm:$0xff] }
 0x253   : > { %v6002_v60 = vrot.slane %v10404_v13, 2  ;;  %v3055_v13 = vrot.slane %v12762_v12, 1 }
 0x254   : > { %8612 = vmatmul.mubr.f32.gmra.mrb[58].mxu1 %v12411_v17  ;;  %v5983_v32 = vsel %vm1487_vm1, %v5981_v19, %v5982_v39  ;;  %v5986_v17 = vrot.slane %v12440_v51, 2  ;;  %v5985_v63 = vsel %vm1487_vm1, %v5982_v39, %v5984_v25  ;;  %v6001_v11 = vsel %vm1487_vm1, %v5998_v49, %v6000_v0  ;;  %v10408_v39 = vld [vmem:[%s10570_s24 + $0x1e0] sm:$0xff]  ;;  %v10417_v0 = vld [vmem:[%s10570_s24 + $0x228] sm:$0xff] }
 0x255   : > { %9258 = vmatmul.mubr.f32.gmra.mrb[22].mxu0 %v5973_v58  ;;  %8614 = vmatprep.mubr.f32.mxu1 %v12424_v20  ;;  %v10398_v20 = vld [vmem:[%s10570_s24 + $0x180] sm:$0xff]  ;;  %v6003_v58 = vrot.slane %v10405_v27, 2  ;;  %v3038_v19 = vrot.slane %v10407_v4, 1  ;;  %v10418_v27 = vld [vmem:[%s10570_s24 + $0x210] sm:$0xff]  ;;  %v3056_v28 = vsel %vm379_vm0, %v3054_v42, %v3055_v13  ;;  %v6028_v4 = vrot.slane %v12548_v29, 2 }
 0x256   : > { %9260 = vmatprep.mubr.f32.mxu0 %v5976_v44  ;;  %v5988_v22 = vrot.slane %v10398_v20, 2  ;;  %v5987_v41 = vsel %vm1487_vm1, %v5984_v25, %v5986_v17  ;;  %v10406_v44 = vld [vmem:[%s10570_s24 + $0x1d0] sm:$0xff]  ;;  %v3040_v25 = vrot.slane %v12720_v18, 1  ;;  %v3043_v17 = vrot.slane %v12732_v9, 1  ;;  %v10437_v42 = vld [vmem:[%s10570_s24 + $0x280] sm:$0xff] }
 0x257   : > { %v6005_v10 = vrot.slane %v10406_v44, 2  ;;  %v6004_v37 = vsel %vm1487_vm1, %v6002_v60, %v6003_v58  ;;  %v6014_v9 = vrot.slane %v12517_v53, 2  ;;  %v3050_v53 = vrot.slane %v12749_v40, 1  ;;  %v10425_v29 = vld [vmem:[%s10570_s24 + $0x230] sm:$0xff] }
 0x258   : > { %8615 = vmatmul.mubr.f32.gmra.mrb[60].mxu1 %v12428_v50  ;;  %v10400_v50 = vld [vmem:[%s10570_s24 + $0x190] sm:$0xff]  ;;  %v5990_v51 = vsel %vm1487_vm1, %v5988_v22, %v5989_v62  ;;  %v6024_v40 = vrot.slane %v10417_v0, 2 }
 0x259   : > { %9261 = vmatmul.mubr.f32.gmra.mrb[24].mxu0 %v5978_v45  ;;  %8617 = vmatprep.mubr.f32.mxu1 %v12434_v47  ;;  %v5991_v47 = vrot.slane %v10400_v50, 2  ;;  %v6009_v45 = vrot.slane %v10408_v39, 2  ;;  %v3047_v50 = vrot.slane %v12736_v46, 1 }
 0x25a   : > { %9263 = vmatprep.mubr.f32.mxu0 %v5980_v26  ;;  %v3041_v26 = vrot.slane %v12724_v35, 1 }
 0x25b   : > { %v5992_v59 = vsel %vm1487_vm1, %v5989_v62, %v5991_v47  ;;  %v5994_v3 = vsel %vm1487_vm1, %v5991_v47, %v5993_v31  ;;  %v3045_v62 = vrot.slane %v10411_v6, 1  ;;  %v3048_v47 = vrot.slane %v12745_v33, 1  ;;  %v10413_v31 = vld [vmem:[%s10570_s24 + $0x208] sm:$0xff] }
 0x25c   : > { %8618 = vmatmul.mubr.f32.gmra.mrb[62].mxu1 %v12448_v23  ;;  %v5995_v23 = vrot.slane %v10401_v55, 2  ;;  %v3042_v18 = vsel %vm379_vm0, %v3040_v25, %v3041_v26  ;;  %v6035_v6 = vrot.slane %v12562_v61, 2 }
 0x25d   : > { %9264 = vmatmul.mubr.f32.gmra.mrb[26].mxu0 %v5983_v32  ;;  %8620 = vmatprep.mubr.f32.mxu1 %v12452_v52  ;;  %v5996_v52 = vrot.slane %v10402_v7, 2  ;;  %v6006_v32 = vsel %vm1487_vm1, %v6003_v58, %v6005_v10  ;;  %v10414_v7 = vld [vmem:[%s10570_s24 + $0x210] sm:$0xff]  ;;  %v3051_v54 = vsel %vm379_vm0, %v3048_v47, %v3050_v53  ;;  %v3057_v58 = vrot.slane %v10418_v27, 1 }
 0x25e   : > { %9266 = vmatprep.mubr.f32.mxu0 %v5985_v63  ;;  %v3044_v63 = vsel %vm379_vm0, %v3041_v26, %v3043_v17  ;;  %v6019_v46 = vrot.slane %v10414_v7, 2  ;;  %v10433_v7 = vld [vmem:[%s10570_s24 + $0x270] sm:$0xff] }
 0x260   : > { %8621 = vmatmul.mubr.f32.gmra.mrb[64].mxu1 %v12463_v8  ;;  %v5997_v8 = vsel %vm1487_vm1, %v5995_v23, %v5996_v52  ;;  %v3046_v23 = vsel %vm379_vm0, %v3043_v17, %v3045_v62  ;;  %v10428_v62 = vld [vmem:[%s10570_s24 + $0x260] sm:$0xff] }
 0x261   : > { %9267 = vmatmul.mubr.f32.gmra.mrb[28].mxu0 %v5987_v41  ;;  %8623 = vmatprep.mubr.f32.mxu1 %v13509_v57  ;;  %v10412_v41 = vld [vmem:[%s10570_s24 + $0x200] sm:$0xff]  ;;  %v6017_v57 = vrot.slane %v10413_v31, 2  ;;  %v10431_v31 = vld [vmem:[%s10570_s24 + $0x248] sm:$0xff] }
 0x262   : > { %9269 = vmatprep.mubr.f32.mxu0 %v5990_v51  ;;  %v6016_v51 = vrot.slane %v10412_v41, 2  ;;  %v10430_v41 = vld [vmem:[%s10570_s24 + $0x240] sm:$0xff] }
 0x263   : > { %v6020_v60 = vsel %vm1487_vm1, %v6017_v57, %v6019_v46 }
 0x264   : > { %8624 = vmatmul.mubr.f32.gmra.mrb[66].mxu1 %v12479_v24  ;;  %v5999_v24 = vsel %vm1487_vm1, %v5996_v52, %v5998_v49  ;;  %v3049_v52 = vsel %vm379_vm0, %v3047_v50, %v3048_v47  ;;  %v6018_v49 = vsel %vm1487_vm1, %v6016_v51, %v6017_v57  ;;  %v3068_v51 = vrot.slane %v10430_v41, 1  ;;  %v10451_v41 = vld [vmem:[%s10570_s24 + $0x2c0] sm:$0xff] }
 0x265   : > { %9270 = vmatmul.mubr.f32.gmra.mrb[30].mxu0 %v5992_v59  ;;  %8626 = vmatprep.mubr.f32.mxu1 %v13510_v30  ;;  %v10415_v59 = vld [vmem:[%s10570_s24 + $0x1f8] sm:$0x3]  ;;  %v10416_v30 = vld [vmem:[%s10570_s24 + $0x220] sm:$0xff]  ;;  %v3069_v57 = vrot.slane %v10431_v31, 1  ;;  %v10452_v31 = vld [vmem:[%s10570_s24 + $0x2c8] sm:$0xff] }
 0x266   : > { %9272 = vmatprep.mubr.f32.mxu0 %v5994_v3  ;;  %v3052_v48 = vrot.slane %v10415_v59, 1  ;;  %v6021_v3 = vrot.slane %v12530_v2, 2 }
 0x268   : > { %8627 = vmatmul.mubr.f32.gmra.mrb[68].mxu1 %v12643_v14  ;;  %v6007_v14 = vrot.slane %v12503_v56, 2  ;;  %v3039_v56 = vsel %vm379_vm0, %v3036_v34, %v3038_v19  ;;  %v3053_v2 = vsel %vm379_vm0, %v3050_v53, %v3052_v48  ;;  %v6022_v44 = vsel %vm1487_vm1, %v6019_v46, %v6021_v3  ;;  %v10421_v19 = vld [vmem:[%s10570_s24 + $0x220] sm:$0xff]  ;;  %v10434_v48 = vld [vmem:[%s10570_s24 + $0x258] sm:$0x3] }
 0x269   : > { %9273 = vmatmul.mubr.f32.gmra.mrb[32].mxu0 %v5997_v8  ;;  %8629 = vmatprep.mubr.f32.mxu1 %v12647_v43  ;;  %v10409_v43 = vld [vmem:[%s10570_s24 + $0x1e8] sm:$0xff]  ;;  %v6023_v8 = vrot.slane %v10416_v30, 2  ;;  %v6040_v46 = vrot.slane %v10433_v7, 2  ;;  %v6042_v30 = vrot.slane %v12580_v36, 2  ;;  %v10439_v36 = vld [vmem:[%s10570_s24 + $0x270] sm:$0xff] }
 0x26a   : > { %9275 = vmatprep.mubr.f32.mxu0 %v5999_v24  ;;  %v6010_v5 = vrot.slane %v10409_v43, 2  ;;  %v6008_v22 = vsel %vm1487_vm1, %v6005_v10, %v6007_v14  ;;  %v10419_v24 = vld [vmem:[%s10570_s24 + $0x230] sm:$0xff]  ;;  %v10420_v10 = vld [vmem:[%s10570_s24 + $0x218] sm:$0x3]  ;;  %v10422_v14 = vld [vmem:[%s10570_s24 + $0x228] sm:$0xff] }
 0x26b   : > { %v6026_v34 = vrot.slane %v10419_v24, 2  ;;  %v6025_v12 = vsel %vm1487_vm1, %v6023_v8, %v6024_v40  ;;  %v3062_v39 = vrot.slane %v10422_v14, 1  ;;  %v10435_v8 = vld [vmem:[%s10570_s24 + $0x260] sm:$0xff]  ;;  %v3078_v24 = vrot.slane %v10439_v36, 1  ;;  %v10443_v14 = vld [vmem:[%s10570_s24 + $0x2a8] sm:$0xff]  ;;  %v10460_v36 = vld [vmem:[%s10570_s24 + $0x2d0] sm:$0xff] }
 0x26c   : > { %8630 = vmatmul.mubr.f32.gmra.mrb[70].mxu1 %v12657_v15  ;;  %v10410_v15 = vld [vmem:[%s10570_s24 + $0x1f0] sm:$0xff]  ;;  %v6011_v35 = vsel %vm1487_vm1, %v6009_v45, %v6010_v5  ;;  %v10423_v45 = vld [vmem:[%s10570_s24 + $0x240] sm:$0xff]  ;;  %v3075_v0 = vrot.slane %v10435_v8, 1 }
 0x26d   : > { %9276 = vmatmul.mubr.f32.gmra.mrb[34].mxu0 %v6001_v11  ;;  %8718 = vmatprep.mubr.f32.mxu1 %v3035_v21  ;;  %v6012_v20 = vrot.slane %v10410_v15, 2  ;;  %v3059_v11 = vrot.slane %v10420_v10, 1  ;;  %v3058_v21 = vsel %vm379_vm0, %v3055_v13, %v3057_v58  ;;  %v6030_v43 = vrot.slane %v10423_v45, 2  ;;  %v10441_v10 = vld [vmem:[%s10570_s24 + $0x278] sm:$0x3] }
 0x26e   : > { %9278 = vmatprep.mubr.f32.mxu0 %v6004_v37  ;;  %v3061_v37 = vrot.slane %v10421_v19, 1  ;;  %v6027_v25 = vsel %vm1487_vm1, %v6024_v40, %v6026_v34  ;;  %v6029_v15 = vsel %vm1487_vm1, %v6026_v34, %v6028_v4  ;;  %v10436_v40 = vld [vmem:[%s10570_s24 + $0x268] sm:$0xff]  ;;  %v6044_v13 = vrot.slane %v10437_v42, 2  ;;  %v10440_v34 = vld [vmem:[%s10570_s24 + $0x290] sm:$0xff]  ;;  %v10442_v19 = vld [vmem:[%s10570_s24 + $0x2a0] sm:$0xff] }
 0x26f   : > { %v6013_v55 = vsel %vm1487_vm1, %v6010_v5, %v6012_v20  ;;  %v6015_v33 = vsel %vm1487_vm1, %v6012_v20, %v6014_v9  ;;  %v10424_v5 = vld [vmem:[%s10570_s24 + $0x248] sm:$0xff]  ;;  %v3060_v26 = vsel %vm379_vm0, %v3057_v58, %v3059_v11  ;;  %v3080_v11 = vrot.slane %v10441_v10, 1  ;;  %v10458_v42 = vld [vmem:[%s10570_s24 + $0x2c0] sm:$0xff] }
 0x270   : > { %8719 = vmatmul.mubr.f32.vlgmr.msra.gmra.mrb[36].mxu1 %v3037_v16  ;;  %v6031_v16 = vrot.slane %v10424_v5, 2  ;;  %v3063_v20 = vsel %vm379_vm0, %v3061_v37, %v3062_v39  ;;  %v10429_v9 = vld [vmem:[%s10570_s24 + $0x268] sm:$0xff]  ;;  %v6049_v4 = vrot.slane %v12594_v1, 2  ;;  %v6051_v37 = vrot.slane %v10442_v19, 2  ;;  %v13512_v19 = vld [vmem:[#allocation25_spill] sm:$0xff] }
 0x271   : > { %9279 = vmatmul.mubr.f32.gmra.mrb[36].mxu0 %v6006_v32  ;;  %8721 = vmatprep.mubr.f32.mxu1 %v3039_v56  ;;  %v3064_v32 = vrot.slane %v10425_v29, 1  ;;  %v10426_v56 = vld [vmem:[%s10570_s24 + $0x250] sm:$0xff]  ;;  %v6038_v50 = vrot.slane %v10429_v9, 2  ;;  %v3081_v1 = vsel %vm379_vm0, %v3078_v24, %v3080_v11  ;;  %v10462_v11 = vld [vmem:[%s10570_s24 + $0x2d8] sm:$0x3] }
 0x272   : > { %9281 = vmatprep.mubr.f32.mxu0 %v6008_v22  ;;  %v6033_v17 = vrot.slane %v10426_v56, 2  ;;  %v10427_v22 = vld [vmem:[%s10570_s24 + $0x238] sm:$0x3]  ;;  %v10446_v29 = vld [vmem:[%s10570_s24 + $0x290] sm:$0xff] }
 0x273   : > { %v3065_v47 = vsel %vm379_vm0, %v3062_v39, %v3064_v32  ;;  %v6041_v27 = vsel %vm1487_vm1, %v6038_v50, %v6040_v46  ;;  %v6052_v39 = vrot.slane %v10443_v14, 2  ;;  %v10447_v56 = vld [vmem:[%s10570_s24 + $0x2b0] sm:$0xff]  ;;  %v10463_v14 = vld [vmem:[%s10570_s24 + $0x2e0] sm:$0xff] }
 0x274   : > { %8722 = vmatmul.mubr.f32.gmra.mrb[38].mxu1 %v3042_v18  ;;  %v3066_v18 = vrot.slane %v10427_v22, 1 }
 0x275   : > { %9282 = vmatmul.mubr.f32.gmra.mrb[38].mxu0 %v6011_v35  ;;  %8724 = vmatprep.mubr.f32.mxu1 %v3044_v63  ;;  %v6032_v35 = vsel %vm1487_vm1, %v6030_v43, %v6031_v16  ;;  %v6037_v63 = vrot.slane %v10428_v62, 2  ;;  %v10444_v43 = vld [vmem:[%s10570_s24 + $0x280] sm:$0xff]  ;;  %v6053_v22 = vsel %vm1487_vm1, %v6051_v37, %v6052_v39  ;;  %v6056_v62 = vrot.slane %v12610_v38, 2  ;;  %v10453_v38 = vld [vmem:[%s10570_s24 + $0x2b0] sm:$0xff] }
 0x276   : > { %9284 = vmatprep.mubr.f32.mxu0 %v6013_v55  ;;  %v6034_v55 = vsel %vm1487_vm1, %v6031_v16, %v6033_v17  ;;  %v3067_v61 = vsel %vm379_vm0, %v3064_v32, %v3066_v18  ;;  %v3082_v5 = vrot.slane %v10444_v43, 1  ;;  %v10445_v16 = vld [vmem:[%s10570_s24 + $0x288] sm:$0xff]  ;;  %v3085_v32 = vrot.slane %v10446_v29, 1  ;;  %v10448_v18 = vld [vmem:[%s10570_s24 + $0x298] sm:$0x3] }
 0x277   : > { %v6039_v59 = vsel %vm1487_vm1, %v6037_v63, %v6038_v50  ;;  %v10449_v63 = vld [vmem:[%s10570_s24 + $0x2a0] sm:$0xff]  ;;  %v10450_v50 = vld [vmem:[%s10570_s24 + $0x2a8] sm:$0xff]  ;;  %v6070_v37 = vrot.slane %v13512_v19, 2 }
 0x278   : > { %8725 = vmatmul.mubr.f32.gmra.mrb[40].mxu1 %v3046_v23  ;;  %v10432_v23 = vld [vmem:[%s10570_s24 + $0x250] sm:$0xff]  ;;  %v3089_v9 = vrot.slane %v10449_v63, 1 }
 0x279   : > { %9285 = vmatmul.mubr.f32.gmra.mrb[40].mxu0 %v6015_v33  ;;  %8727 = vmatprep.mubr.f32.mxu1 %v3049_v52  ;;  %v3071_v53 = vrot.slane %v10432_v23, 1  ;;  %v6036_v33 = vsel %vm1487_vm1, %v6033_v17, %v6035_v6  ;;  %v3070_v52 = vsel %vm379_vm0, %v3068_v51, %v3069_v57  ;;  %v6054_v17 = vrot.slane %v10447_v56, 2 }
 0x27a   : > { %9287 = vmatprep.mubr.f32.mxu0 %v6018_v49  ;;  %v3073_v49 = vrot.slane %v10434_v48, 1  ;;  %v6058_v51 = vrot.slane %v10451_v41, 2  ;;  %v3092_v23 = vrot.slane %v10453_v38, 1 }
 0x27b   : > { %v3072_v3 = vsel %vm379_vm0, %v3069_v57, %v3071_v53  ;;  %v6059_v57 = vrot.slane %v10452_v31, 2  ;;  %v10470_v31 = vld [vmem:[%s10570_s24 + $0x318] sm:$0x3] }
 0x27c   : > { %8728 = vmatmul.mubr.f32.gmra.mrb[42].mxu1 %v3051_v54  ;;  %v3076_v54 = vrot.slane %v10436_v40, 1  ;;  %v3074_v58 = vsel %vm379_vm0, %v3071_v53, %v3073_v49  ;;  %v10454_v53 = vld [vmem:[%s10570_s24 + $0x2d0] sm:$0xff]  ;;  %v13511_v49 = vld [vmem:[#allocation27_spill] sm:$0xff] }
 0x27d   : > { %9288 = vmatmul.mubr.f32.gmra.mrb[42].mxu0 %v6020_v60  ;;  %8730 = vmatprep.mubr.f32.mxu1 %v3053_v2  ;;  %v10438_v60 = vld [vmem:[%s10570_s24 + $0x288] sm:$0xff]  ;;  %v6061_v7 = vrot.slane %v10454_v53, 2  ;;  %v6060_v48 = vsel %vm1487_vm1, %v6058_v51, %v6059_v57  ;;  %v13516_v51 = vld [vmem:[#allocation20_spill] sm:$0xff]  ;;  %v13518_v53 = vld [vmem:[#allocation30_spill] sm:$0xff] }
 0x27e   : > { %9290 = vmatprep.mubr.f32.mxu0 %v6022_v44  ;;  %v6045_v2 = vrot.slane %v10438_v60, 2  ;;  %v6047_v44 = vrot.slane %v10440_v34, 2  ;;  %v3079_v45 = vsel %vm379_vm0, %v3076_v54, %v3078_v24  ;;  %v10459_v60 = vld [vmem:[%s10570_s24 + $0x2c8] sm:$0xff]  ;;  %v3099_v24 = vrot.slane %v10460_v36, 1  ;;  %v10461_v34 = vld [vmem:[%s10570_s24 + $0x2f0] sm:$0xff] }
 0x280   : > { %8731 = vmatmul.mubr.f32.gmra.mrb[44].mxu1 %v3056_v28  ;;  %v6043_v28 = vsel %vm1487_vm1, %v6040_v46, %v6042_v30  ;;  %v6057_v46 = vsel %vm1487_vm1, %v6054_v17, %v6056_v62  ;;  %v10456_v30 = vld [vmem:[%s10570_s24 + $0x2e0] sm:$0xff]  ;;  %v13514_v62 = vld [vmem:[#allocation19_spill] sm:$0xff] }
 0x281   : > { %9291 = vmatmul.mubr.f32.gmra.mrb[44].mxu0 %v6025_v12  ;;  %8733 = vmatprep.mubr.f32.mxu1 %v3058_v21  ;;  %v3077_v12 = vsel %vm379_vm0, %v3075_v0, %v3076_v54  ;;  %v6046_v21 = vsel %vm1487_vm1, %v6044_v13, %v6045_v2  ;;  %v6065_v8 = vrot.slane %v10456_v30, 2  ;;  %v10457_v0 = vld [vmem:[%s10570_s24 + $0x2e8] sm:$0xff]  ;;  %v3096_v13 = vrot.slane %v10458_v42, 1 }
 0x282   : > { %9293 = vmatprep.mubr.f32.mxu0 %v6027_v25  ;;  %v3083_v25 = vrot.slane %v10445_v16, 1  ;;  %v6066_v40 = vrot.slane %v10457_v0, 2 }
 0x284   : > { %8734 = vmatmul.mubr.f32.gmra.mrb[46].mxu1 %v3060_v26  ;;  %v6048_v26 = vsel %vm1487_vm1, %v6045_v2, %v6047_v44  ;;  %v3086_v6 = vsel %vm379_vm0, %v3083_v25, %v3085_v32  ;;  %v3097_v2 = vrot.slane %v10459_v60, 1  ;;  %v6067_v10 = vsel %vm1487_vm1, %v6065_v8, %v6066_v40 }
 0x285   : > { %9294 = vmatmul.mubr.f32.gmra.mrb[46].mxu0 %v6029_v15  ;;  %8736 = vmatprep.mubr.f32.mxu1 %v3063_v20  ;;  %v6050_v15 = vsel %vm1487_vm1, %v6047_v44, %v6049_v4  ;;  %v3084_v20 = vsel %vm379_vm0, %v3082_v5, %v3083_v25  ;;  %v6068_v44 = vrot.slane %v10461_v34, 2  ;;  %v10465_v25 = vld [vmem:[%s10570_s24 + $0x2f0] sm:$0xff] }
 0x286   : > { %9296 = vmatprep.mubr.f32.mxu0 %v6032_v35  ;;  %v3087_v35 = vrot.slane %v10448_v18, 1  ;;  %v3100_v4 = vsel %vm379_vm0, %v3097_v2, %v3099_v24 }
 0x287   : > { %v6069_v5 = vsel %vm1487_vm1, %v6066_v40, %v6068_v44 }
 0x288   : > { %8737 = vmatmul.mubr.f32.gmra.mrb[48].mxu1 %v3065_v47  ;;  %v3090_v47 = vrot.slane %v10450_v50, 1 }
 0x289   : > { %9297 = vmatmul.mubr.f32.gmra.mrb[48].mxu0 %v6034_v55  ;;  %8739 = vmatprep.mubr.f32.mxu1 %v3067_v61  ;;  %v6055_v55 = vsel %vm1487_vm1, %v6052_v39, %v6054_v17  ;;  %v3088_v61 = vsel %vm379_vm0, %v3085_v32, %v3087_v35  ;;  %v3103_v39 = vrot.slane %v10463_v14, 1  ;;  %v10466_v32 = vld [vmem:[%s10570_s24 + $0x2f8] sm:$0x3]  ;;  %v13513_v17 = vld [vmem:[#allocation28_spill] sm:$0xff]  ;;  %v10468_v35 = vld [vmem:[%s10570_s24 + $0x328] sm:$0xff] }
 0x28a   : > { %9299 = vmatprep.mubr.f32.mxu0 %v6036_v33  ;;  %v3091_v33 = vsel %vm379_vm0, %v3089_v9, %v3090_v47  ;;  %v3093_v54 = vsel %vm379_vm0, %v3090_v47, %v3092_v23  ;;  %v3108_v56 = vrot.slane %v10466_v32, 1  ;;  %v10469_v9 = vld [vmem:[%s10570_s24 + $0x330] sm:$0xff]  ;;  %v13515_v47 = vld [vmem:[#allocation18_spill] sm:$0xff] }
 0x28b   : > { %v6082_v50 = vrot.slane %v10469_v9, 2  ;;  %v13071_v32 = vld [vmem:[%s13256_s2] ss:$0 sm:$0xff] }
 0x28c   : > { %8740 = vmatmul.mubr.f32.gmra.mrb[50].mxu1 %v3070_v52  ;;  %v10455_v52 = vld [vmem:[%s10570_s24 + $0x2b8] sm:$0x3] }
 0x28d   : > { %9300 = vmatmul.mubr.f32.gmra.mrb[50].mxu0 %v6039_v59  ;;  %8742 = vmatprep.mubr.f32.mxu1 %v3072_v3  ;;  %v3094_v59 = vrot.slane %v10455_v52, 1  ;;  %v6063_v3 = vrot.slane %v13511_v49, 2 }
 0x28e   : > { %9302 = vmatprep.mubr.f32.mxu0 %v6041_v27  ;;  %v6062_v27 = vsel %vm1487_vm1, %v6059_v57, %v6061_v7  ;;  %v3115_v57 = vrot.slane %v10470_v31, 1 }
 0x290   : > { %8743 = vmatmul.mubr.f32.gmra.mrb[52].mxu1 %v3074_v58  ;;  %v3095_v58 = vsel %vm379_vm0, %v3092_v23, %v3094_v59 }
 0x291   : > { %9303 = vmatmul.mubr.f32.gmra.mrb[52].mxu0 %v6043_v28  ;;  %8745 = vmatprep.mubr.f32.mxu1 %v3077_v12  ;;  %v6064_v28 = vsel %vm1487_vm1, %v6061_v7, %v6063_v3  ;;  %v3098_v12 = vsel %vm379_vm0, %v3096_v13, %v3097_v2  ;;  %v13519_v7 = vld [vmem:[#allocation31_spill] sm:$0xff] }
 0x292   : > { %9305 = vmatprep.mubr.f32.mxu0 %v6046_v21  ;;  %v3101_v21 = vrot.slane %v10462_v11, 1 }
 0x294   : > { %8746 = vmatmul.mubr.f32.gmra.mrb[54].mxu1 %v3079_v45  ;;  %v10464_v45 = vld [vmem:[%s10570_s24 + $0x2e8] sm:$0xff]  ;;  %v3102_v16 = vsel %vm379_vm0, %v3099_v24, %v3101_v21 }
 0x295   : > { %9306 = vmatmul.mubr.f32.gmra.mrb[54].mxu0 %v6048_v26  ;;  %8748 = vmatprep.mubr.f32.mxu1 %v3081_v1  ;;  %v3104_v43 = vrot.slane %v10464_v45, 1  ;;  %v3106_v26 = vrot.slane %v10465_v25, 1  ;;  %v6071_v1 = vsel %vm1487_vm1, %v6068_v44, %v6070_v37 }
 0x296   : > { %9308 = vmatprep.mubr.f32.mxu0 %v6050_v15  ;;  %v6077_v15 = vrot.slane %v13513_v17, 2 }
 0x297   : > { %v3105_v29 = vsel %vm379_vm0, %v3103_v39, %v3104_v43  ;;  %v3107_v18 = vsel %vm379_vm0, %v3104_v43, %v3106_v26  ;;  %v3109_v63 = vsel %vm379_vm0, %v3106_v26, %v3108_v56 }
 0x298   : > { %8749 = vmatmul.mubr.f32.gmra.mrb[56].mxu1 %v3084_v20  ;;  %v10467_v20 = vld [vmem:[%s10570_s24 + $0x320] sm:$0xff]  ;;  %v6078_v41 = vsel %vm1487_vm1, %v13515_v47, %v6077_v15  ;;  %s10213_s24 = smul.u32 576, %s13522_s13 }
 0x299   : > { %9309 = vmatmul.mubr.f32.gmra.mrb[56].mxu0 %v6053_v22  ;;  %8751 = vmatprep.mubr.f32.mxu1 %v3086_v6  ;;  %v6079_v22 = vrot.slane %v10467_v20, 2  ;;  %v6080_v6 = vrot.slane %v10468_v35, 2 }
 0x29a   : > { %9311 = vmatprep.mubr.f32.mxu0 %v6055_v55  ;;  %s13077_s20 = scalar_lea.vmem %s13257_s3, %s10213_s24 }
 0x29b   : > { %v6081_v55 = vsel %vm1487_vm1, %v6079_v22, %v6080_v6  ;;  %v6083_v23 = vsel %vm1487_vm1, %v6080_v6, %v6082_v50 }
 0x29c   : > { %8752 = vmatmul.mubr.f32.gmra.mrb[58].mxu1 %v3088_v61  ;;  %v13517_v61 = vld [vmem:[#allocation34_spill] sm:$0xff] }
 0x29d   : > { %9312 = vmatmul.mubr.f32.gmra.mrb[58].mxu0 %v6057_v46  ;;  %8754 = vmatprep.mubr.f32.mxu1 %v3091_v33  ;;  %v6084_v38 = vrot.slane %v13517_v61, 2  ;;  %v13520_v46 = vld [vmem:[#allocation29_spill] sm:$0xff] }
 0x29e   : > { %9314 = vmatprep.mubr.f32.mxu0 %v6060_v48  ;;  %v3116_v33 = vsel %vm379_vm0, %v13520_v46, %v3115_v57 }
 0x29f   : > { %v6085_v52 = vsel %vm1487_vm1, %v6082_v50, %v6084_v38 }
 0x2a0   : > { %8755 = vmatmul.mubr.f32.gmra.mrb[60].mxu1 %v3093_v54 }
 0x2a1   : > { %9315 = vmatmul.mubr.f32.gmra.mrb[60].mxu0 %v6062_v27  ;;  %8757 = vmatprep.mubr.f32.mxu1 %v3095_v58 }
 0x2a2   : > { %9317 = vmatprep.mubr.f32.mxu0 %v6064_v28 }
 0x2a4   : > { %8758 = vmatmul.mubr.f32.gmra.mrb[62].mxu1 %v3098_v12 }
 0x2a5   : > { %9318 = vmatmul.mubr.f32.gmra.mrb[62].mxu0 %v6067_v10  ;;  %8760 = vmatprep.mubr.f32.mxu1 %v3100_v4 }
 0x2a6   : > { %9320 = vmatprep.mubr.f32.mxu0 %v6069_v5 }
 0x2a8   : > { %8761 = vmatmul.mubr.f32.gmra.mrb[64].mxu1 %v3102_v16 }
 0x2a9   : > { %9321 = vmatmul.mubr.f32.gmra.mrb[64].mxu0 %v6071_v1  ;;  %8763 = vmatprep.mubr.f32.mxu1 %v3105_v29 }
 0x2aa   : > { %9323 = vmatprep.mubr.f32.mxu0 %v13514_v62 }
 0x2ac   : > { %8764 = vmatmul.mubr.f32.gmra.mrb[66].mxu1 %v3107_v18 }
 0x2ad   : > { %9324 = vmatmul.mubr.f32.gmra.mrb[66].mxu0 %v13516_v51  ;;  %8766 = vmatprep.mubr.f32.mxu1 %v3109_v63 }
 0x2ae   : > { %9326 = vmatprep.mubr.f32.mxu0 %v6078_v41 }
 0x2b0   : > { %8767 = vmatmul.mubr.f32.gmra.mrb[68].mxu1 %v13518_v53 }
 0x2b1   : > { %9327 = vmatmul.mubr.f32.gmra.mrb[68].mxu0 %v6081_v55  ;;  %8769 = vmatprep.mubr.f32.mxu1 %v13519_v7 }
 0x2b2   : > { %9329 = vmatprep.mubr.f32.mxu0 %v6083_v23 }
 0x2b3   : > { %v8526_v59 = vpop.f32.mrb[0].mxu1 }
 0x2b4   : > { %v2422_v48 = vpop.f32.mrb[1].mxu1  ;;  %8770 = vmatmul.mubr.f32.gmra.mrb[70].mxu1 %v3116_v33 }
 0x2b5   : > { %9330 = vmatmul.mubr.f32.gmra.mrb[70].mxu0 %v6085_v52 }
 0x2b7   : > { %v8529_v49 = vpop.f32.mrb[2].mxu1 }
 0x2b8   : > { %v2432_v3 = vpop.f32.mrb[3].mxu1 }
 0x2bb   : > { %v8532_v30 = vpop.f32.mrb[4].mxu1 }
 0x2bc   : > { %v2442_v8 = vpop.f32.mrb[5].mxu1 }
 0x2bf   : > { %v8535_v0 = vpop.f32.mrb[6].mxu1 }
 0x2c0   : > { %v13009_v40 = vpop.f32.mrb[7].mxu1 }
 0x2c3   : > { %v13011_v54 = vpop.f32.mrb[8].mxu1 }
 0x2c4   : > { %v13013_v42 = vpop.f32.mrb[9].mxu1 }
 0x2c7   : > { %v13015_v13 = vpop.f32.mrb[10].mxu1 }
 0x2c8   : > { %v13017_v60 = vpop.f32.mrb[11].mxu1 }
 0x2cb   : > { %v13019_v2 = vpop.f32.mrb[12].mxu1 }
 0x2cc   : > { %v13021_v27 = vpop.f32.mrb[13].mxu1 }
 0x2cf   : > { %v13023_v58 = vpop.f32.mrb[14].mxu1 }
 0x2d0   : > { %v13025_v36 = vpop.f32.mrb[15].mxu1 }
 0x2d3   : > { %v13027_v24 = vpop.f32.mrb[16].mxu1 }
 0x2d4   : > { %v13029_v34 = vpop.f32.mrb[17].mxu1 }
 0x2d7   : > { %v13031_v44 = vpop.f32.mrb[18].mxu1 }
 0x2d8   : > { %v13033_v28 = vpop.f32.mrb[19].mxu1 }
 0x2db   : > { %v13035_v12 = vpop.f32.mrb[20].mxu1 }
 0x2dc   : > { %v13037_v10 = vpop.f32.mrb[21].mxu1 }
 0x2df   : > { %v13039_v11 = vpop.f32.mrb[22].mxu1 }
 0x2e0   : > { %v13041_v21 = vpop.f32.mrb[23].mxu1 }
 0x2e3   : > { %v13043_v4 = vpop.f32.mrb[24].mxu1 }
 0x2e4   : > { %v13045_v19 = vpop.f32.mrb[25].mxu1 }
 0x2e7   : > { %v13047_v37 = vpop.f32.mrb[26].mxu1 }
 0x2e8   : > { %v13049_v14 = vpop.f32.mrb[27].mxu1 }
 0x2eb   : > { %v13051_v39 = vpop.f32.mrb[28].mxu1 }
 0x2ec   : > { %v13053_v45 = vpop.f32.mrb[29].mxu1 }
 0x2ef   : > { %v13055_v43 = vpop.f32.mrb[30].mxu1 }
 0x2f0   : > { %v13057_v5 = vpop.f32.mrb[31].mxu1 }
 0x2f3   : > { %v13059_v16 = vpop.f32.mrb[32].mxu1 }
 0x2f4   : > { %v13061_v25 = vpop.f32.mrb[33].mxu1 }
 0x2f7   : > { %v13063_v26 = vpop.f32.mrb[34].mxu1 }
 0x2f8   : > { %v13065_v1 = vpop.f32.mrb[35].mxu1 }
 0x2fc   : > { %v9226_v29 = vpop.f32.mrb[0].mxu0 }
 0x2fd   : > { %v9636_v56 = vadd.f32 %v9226_v29, %v8526_v59  ;;  %v6241_v17 = vpop.f32.mrb[1].mxu0 }
 0x2fe   : > { %v9637_v15 = vadd.f32 %v6241_v17, %v2422_v48 }
 0x2ff   : > { %v6680_v20 = vadd.f32 %v9636_v56, %v13071_v32 }
 0x300   : > { %v6679_v22 = vadd.f32 %v9637_v15, %v13071_v32  ;;  %v9229_v18 = vpop.f32.mrb[2].mxu0 }
 0x301   : > { %v6752_v35 = vmax.f32 %v6680_v20, 0.0  ;;  %v9638_v6 = vadd.f32 %v9229_v18, %v8529_v49  ;;  %v6251_v62 = vpop.f32.mrb[3].mxu0 }
 0x302   : > { %v6751_v63 = vmax.f32 %v6679_v22, 0.0  ;;  %v9639_v9 = vadd.f32 %v6251_v62, %v2432_v3 }
 0x303   : > { %6824 = vst [vmem:[%s13077_s20 + $0x8] sm:$0xff] %v6752_v35  ;;  %v6682_v50 = vadd.f32 %v9638_v6, %v13071_v32 }
 0x304   : > { %6823 = vst [vmem:[%s13077_s20] sm:$0xff] %v6751_v63  ;;  %v6681_v47 = vadd.f32 %v9639_v9, %v13071_v32  ;;  %v9232_v41 = vpop.f32.mrb[4].mxu0 }
 0x305   : > { %v6754_v51 = vmax.f32 %v6682_v50, 0.0  ;;  %v9640_v31 = vadd.f32 %v9232_v41, %v8532_v30  ;;  %v6261_v57 = vpop.f32.mrb[5].mxu0 }
 0x306   : > { %v6753_v55 = vmax.f32 %v6681_v47, 0.0  ;;  %v9641_v61 = vadd.f32 %v6261_v57, %v2442_v8 }
 0x307   : > { %6826 = vst [vmem:[%s13077_s20 + $0x18] sm:$0xff] %v6754_v51  ;;  %v6684_v38 = vadd.f32 %v9640_v31, %v13071_v32 }
 0x308   : > { %6825 = vst [vmem:[%s13077_s20 + $0x10] sm:$0xff] %v6753_v55  ;;  %v6683_v23 = vadd.f32 %v9641_v61, %v13071_v32  ;;  %v9235_v53 = vpop.f32.mrb[6].mxu0 }
 0x309   : > { %v6756_v7 = vmax.f32 %v6684_v38, 0.0  ;;  %v9642_v46 = vadd.f32 %v9235_v53, %v8535_v0  ;;  %v6271_v33 = vpop.f32.mrb[7].mxu0 }
 0x30a   : > { %v6755_v52 = vmax.f32 %v6683_v23, 0.0  ;;  %v9643_v59 = vadd.f32 %v6271_v33, %v13009_v40 }
 0x30b   : > { %6828 = vst [vmem:[%s13077_s20 + $0x28] sm:$0xff] %v6756_v7  ;;  %v6686_v48 = vadd.f32 %v9642_v46, %v13071_v32 }
 0x30c   : > { %6827 = vst [vmem:[%s13077_s20 + $0x20] sm:$0xff] %v6755_v52  ;;  %v6685_v49 = vadd.f32 %v9643_v59, %v13071_v32  ;;  %v9238_v3 = vpop.f32.mrb[8].mxu0 }
 0x30d   : > { %v6758_v30 = vmax.f32 %v6686_v48, 0.0  ;;  %v9644_v8 = vadd.f32 %v9238_v3, %v13011_v54  ;;  %v6281_v29 = vpop.f32.mrb[9].mxu0 }
 0x30e   : > { %v6757_v56 = vmax.f32 %v6685_v49, 0.0  ;;  %v9645_v0 = vadd.f32 %v6281_v29, %v13013_v42 }
 0x30f   : > { %6830 = vst [vmem:[%s13077_s20 + $0x38] sm:$0xff] %v6758_v30  ;;  %v6688_v17 = vadd.f32 %v9644_v8, %v13071_v32 }
 0x310   : > { %6829 = vst [vmem:[%s13077_s20 + $0x30] sm:$0xff] %v6757_v56  ;;  %v6687_v40 = vadd.f32 %v9645_v0, %v13071_v32  ;;  %v9241_v15 = vpop.f32.mrb[10].mxu0 }
 0x311   : > { %v6760_v20 = vmax.f32 %v6688_v17, 0.0  ;;  %v9646_v22 = vadd.f32 %v9241_v15, %v13015_v13  ;;  %v6291_v18 = vpop.f32.mrb[11].mxu0 }
 0x312   : > { %v6759_v35 = vmax.f32 %v6687_v40, 0.0  ;;  %v9647_v54 = vadd.f32 %v6291_v18, %v13017_v60 }
 0x313   : > { %6832 = vst [vmem:[%s13077_s20 + $0x48] sm:$0xff] %v6760_v20  ;;  %v6690_v6 = vadd.f32 %v9646_v22, %v13071_v32 }
 0x314   : > { %6831 = vst [vmem:[%s13077_s20 + $0x40] sm:$0xff] %v6759_v35  ;;  %v6689_v42 = vadd.f32 %v9647_v54, %v13071_v32  ;;  %v9244_v62 = vpop.f32.mrb[12].mxu0 }
 0x315   : > { %v6762_v63 = vmax.f32 %v6690_v6, 0.0  ;;  %v9648_v9 = vadd.f32 %v9244_v62, %v13019_v2  ;;  %v6301_v50 = vpop.f32.mrb[13].mxu0 }
 0x316   : > { %v6761_v47 = vmax.f32 %v6689_v42, 0.0  ;;  %v9649_v13 = vadd.f32 %v6301_v50, %v13021_v27 }
 0x317   : > { %6834 = vst [vmem:[%s13077_s20 + $0x58] sm:$0xff] %v6762_v63  ;;  %v6692_v41 = vadd.f32 %v9648_v9, %v13071_v32 }
 0x318   : > { %6833 = vst [vmem:[%s13077_s20 + $0x50] sm:$0xff] %v6761_v47  ;;  %v6691_v60 = vadd.f32 %v9649_v13, %v13071_v32  ;;  %v9247_v51 = vpop.f32.mrb[14].mxu0 }
 0x319   : > { %v6764_v31 = vmax.f32 %v6692_v41, 0.0  ;;  %v9650_v57 = vadd.f32 %v9247_v51, %v13023_v58  ;;  %v6311_v55 = vpop.f32.mrb[15].mxu0 }
 0x31a   : > { %v6763_v61 = vmax.f32 %v6691_v60, 0.0  ;;  %v9651_v2 = vadd.f32 %v6311_v55, %v13025_v36 }
 0x31b   : > { %6836 = vst [vmem:[%s13077_s20 + $0x68] sm:$0xff] %v6764_v31  ;;  %v6694_v38 = vadd.f32 %v9650_v57, %v13071_v32 }
 0x31c   : > { %6835 = vst [vmem:[%s13077_s20 + $0x60] sm:$0xff] %v6763_v61  ;;  %v6693_v27 = vadd.f32 %v9651_v2, %v13071_v32  ;;  %v9250_v23 = vpop.f32.mrb[16].mxu0 }
 0x31d   : > { %v6766_v53 = vmax.f32 %v6694_v38, 0.0  ;;  %v9652_v7 = vadd.f32 %v9250_v23, %v13027_v24  ;;  %v6321_v46 = vpop.f32.mrb[17].mxu0 }
 0x31e   : > { %v6765_v33 = vmax.f32 %v6693_v27, 0.0  ;;  %v9653_v58 = vadd.f32 %v6321_v46, %v13029_v34 }
 0x31f   : > { %6838 = vst [vmem:[%s13077_s20 + $0x78] sm:$0xff] %v6766_v53  ;;  %v6696_v52 = vadd.f32 %v9652_v7, %v13071_v32 }
 0x320   : > { %6837 = vst [vmem:[%s13077_s20 + $0x70] sm:$0xff] %v6765_v33  ;;  %v6695_v36 = vadd.f32 %v9653_v58, %v13071_v32  ;;  %v9253_v59 = vpop.f32.mrb[18].mxu0 }
 0x321   : > { %v6768_v48 = vmax.f32 %v6696_v52, 0.0  ;;  %v9654_v49 = vadd.f32 %v9253_v59, %v13031_v44  ;;  %v6331_v3 = vpop.f32.mrb[19].mxu0 }
 0x322   : > { %v6767_v30 = vmax.f32 %v6695_v36, 0.0  ;;  %v9655_v24 = vadd.f32 %v6331_v3, %v13033_v28 }
 0x323   : > { %6840 = vst [vmem:[%s13077_s20 + $0x88] sm:$0xff] %v6768_v48  ;;  %v6698_v8 = vadd.f32 %v9654_v49, %v13071_v32 }
 0x324   : > { %6839 = vst [vmem:[%s13077_s20 + $0x80] sm:$0xff] %v6767_v30  ;;  %v6697_v34 = vadd.f32 %v9655_v24, %v13071_v32  ;;  %v9256_v29 = vpop.f32.mrb[20].mxu0 }
 0x325   : > { %v6770_v56 = vmax.f32 %v6698_v8, 0.0  ;;  %v9656_v0 = vadd.f32 %v9256_v29, %v13035_v12  ;;  %v6341_v17 = vpop.f32.mrb[21].mxu0 }
 0x326   : > { %v6769_v40 = vmax.f32 %v6697_v34, 0.0  ;;  %v9657_v44 = vadd.f32 %v6341_v17, %v13037_v10 }
 0x327   : > { %6842 = vst [vmem:[%s13077_s20 + $0x98] sm:$0xff] %v6770_v56  ;;  %v6700_v15 = vadd.f32 %v9656_v0, %v13071_v32 }
 0x328   : > { %6841 = vst [vmem:[%s13077_s20 + $0x90] sm:$0xff] %v6769_v40  ;;  %v6699_v28 = vadd.f32 %v9657_v44, %v13071_v32  ;;  %v9259_v20 = vpop.f32.mrb[22].mxu0 }
 0x329   : > { %v6772_v22 = vmax.f32 %v6700_v15, 0.0  ;;  %v9658_v18 = vadd.f32 %v9259_v20, %v13039_v11  ;;  %v6351_v35 = vpop.f32.mrb[23].mxu0 }
 0x32a   : > { %v6771_v54 = vmax.f32 %v6699_v28, 0.0  ;;  %v9659_v12 = vadd.f32 %v6351_v35, %v13041_v21 }
 0x32b   : > { %6844 = vst [vmem:[%s13077_s20 + $0xa8] sm:$0xff] %v6772_v22  ;;  %v6702_v6 = vadd.f32 %v9658_v18, %v13071_v32 }
 0x32c   : > { %6843 = vst [vmem:[%s13077_s20 + $0xa0] sm:$0xff] %v6771_v54  ;;  %v6701_v10 = vadd.f32 %v9659_v12, %v13071_v32  ;;  %v9262_v42 = vpop.f32.mrb[24].mxu0 }
 0x32d   : > { %v6774_v62 = vmax.f32 %v6702_v6, 0.0  ;;  %v9660_v63 = vadd.f32 %v9262_v42, %v13043_v4  ;;  %v6361_v9 = vpop.f32.mrb[25].mxu0 }
 0x32e   : > { %v6773_v50 = vmax.f32 %v6701_v10, 0.0  ;;  %v9661_v11 = vadd.f32 %v6361_v9, %v13045_v19 }
 0x32f   : > { %6846 = vst [vmem:[%s13077_s20 + $0xb8] sm:$0xff] %v6774_v62  ;;  %v6704_v47 = vadd.f32 %v9660_v63, %v13071_v32 }
 0x330   : > { %6845 = vst [vmem:[%s13077_s20 + $0xb0] sm:$0xff] %v6773_v50  ;;  %v6703_v21 = vadd.f32 %v9661_v11, %v13071_v32  ;;  %v9265_v13 = vpop.f32.mrb[26].mxu0 }
 0x331   : > { %v6776_v41 = vmax.f32 %v6704_v47, 0.0  ;;  %v9662_v60 = vadd.f32 %v9265_v13, %v13047_v37  ;;  %v6371_v51 = vpop.f32.mrb[27].mxu0 }
 0x332   : > { %v6775_v31 = vmax.f32 %v6703_v21, 0.0  ;;  %v9663_v4 = vadd.f32 %v6371_v51, %v13049_v14 }
 0x333   : > { %6848 = vst [vmem:[%s13077_s20 + $0xc8] sm:$0xff] %v6776_v41  ;;  %v6706_v57 = vadd.f32 %v9662_v60, %v13071_v32 }
 0x334   : > { %6847 = vst [vmem:[%s13077_s20 + $0xc0] sm:$0xff] %v6775_v31  ;;  %v6705_v19 = vadd.f32 %v9663_v4, %v13071_v32  ;;  %v9268_v55 = vpop.f32.mrb[28].mxu0 }
 0x335   : > { %v6778_v61 = vmax.f32 %v6706_v57, 0.0  ;;  %v9664_v2 = vadd.f32 %v9268_v55, %v13051_v39  ;;  %v6381_v38 = vpop.f32.mrb[29].mxu0 }
 0x336   : > { %v6777_v27 = vmax.f32 %v6705_v19, 0.0  ;;  %v9665_v37 = vadd.f32 %v6381_v38, %v13053_v45 }
 0x337   : > { %6850 = vst [vmem:[%s13077_s20 + $0xd8] sm:$0xff] %v6778_v61  ;;  %v6708_v23 = vadd.f32 %v9664_v2, %v13071_v32 }
 0x338   : > { %6849 = vst [vmem:[%s13077_s20 + $0xd0] sm:$0xff] %v6777_v27  ;;  %v6707_v14 = vadd.f32 %v9665_v37, %v13071_v32  ;;  %v9271_v53 = vpop.f32.mrb[30].mxu0 }
 0x339   : > { %v6780_v7 = vmax.f32 %v6708_v23, 0.0  ;;  %v9666_v46 = vadd.f32 %v9271_v53, %v13055_v43  ;;  %v6391_v33 = vpop.f32.mrb[31].mxu0 }
 0x33a   : > { %v6779_v58 = vmax.f32 %v6707_v14, 0.0  ;;  %v9667_v39 = vadd.f32 %v6391_v33, %v13057_v5 }
 0x33b   : > { %6852 = vst [vmem:[%s13077_s20 + $0xe8] sm:$0xff] %v6780_v7  ;;  %v6710_v52 = vadd.f32 %v9666_v46, %v13071_v32 }
 0x33c   : > { %6851 = vst [vmem:[%s13077_s20 + $0xe0] sm:$0xff] %v6779_v58  ;;  %v6709_v45 = vadd.f32 %v9667_v39, %v13071_v32  ;;  %v9274_v36 = vpop.f32.mrb[32].mxu0 }
 0x33d   : > { %v6782_v59 = vmax.f32 %v6710_v52, 0.0  ;;  %v9668_v48 = vadd.f32 %v9274_v36, %v13059_v16  ;;  %v6401_v49 = vpop.f32.mrb[33].mxu0 }
 0x33e   : > { %v6781_v3 = vmax.f32 %v6709_v45, 0.0  ;;  %v9669_v43 = vadd.f32 %v6401_v49, %v13061_v25 }
 0x33f   : > { %6854 = vst [vmem:[%s13077_s20 + $0xf8] sm:$0xff] %v6782_v59  ;;  %v6712_v30 = vadd.f32 %v9668_v48, %v13071_v32 }
 0x340   : > { %6853 = vst [vmem:[%s13077_s20 + $0xf0] sm:$0xff] %v6781_v3  ;;  %v6711_v5 = vadd.f32 %v9669_v43, %v13071_v32  ;;  %v9277_v24 = vpop.f32.mrb[34].mxu0 }
 0x341   : > { %v6784_v8 = vmax.f32 %v6712_v30, 0.0  ;;  %v9670_v34 = vadd.f32 %v9277_v24, %v13063_v26  ;;  %v6411_v29 = vpop.f32.mrb[35].mxu0 }
 0x342   : > { %v6783_v56 = vmax.f32 %v6711_v5, 0.0  ;;  %v9671_v16 = vadd.f32 %v6411_v29, %v13065_v1 }
 0x343   : > { %6856 = vst [vmem:[%s13077_s20 + $0x108] sm:$0xff] %v6784_v8  ;;  %v6714_v0 = vadd.f32 %v9670_v34, %v13071_v32  ;;  %v8720_v25 = vpop.f32.mrb[36].mxu1 }
 0x344   : > { %6855 = vst [vmem:[%s13077_s20 + $0x100] sm:$0xff] %v6783_v56  ;;  %v6713_v17 = vadd.f32 %v9671_v16, %v13071_v32  ;;  %v9280_v40 = vpop.f32.mrb[36].mxu0  ;;  %v3452_v44 = vpop.f32.mrb[37].mxu1 }
 0x345   : > { %v6786_v15 = vmax.f32 %v6714_v0, 0.0  ;;  %v9672_v28 = vadd.f32 %v9280_v40, %v8720_v25  ;;  %v6421_v20 = vpop.f32.mrb[37].mxu0 }
 0x346   : > { %v6785_v26 = vmax.f32 %v6713_v17, 0.0  ;;  %v9673_v22 = vadd.f32 %v6421_v20, %v3452_v44 }
 0x347   : > { %6858 = vst [vmem:[%s13077_s20 + $0x118] sm:$0xff] %v6786_v15  ;;  %v6716_v1 = vadd.f32 %v9672_v28, %v13071_v32  ;;  %v8723_v18 = vpop.f32.mrb[38].mxu1 }
 0x348   : > { %6857 = vst [vmem:[%s13077_s20 + $0x110] sm:$0xff] %v6785_v26  ;;  %v6715_v35 = vadd.f32 %v9673_v22, %v13071_v32  ;;  %v9283_v54 = vpop.f32.mrb[38].mxu0  ;;  %v3462_v12 = vpop.f32.mrb[39].mxu1 }
 0x349   : > { %v6788_v6 = vmax.f32 %v6716_v1, 0.0  ;;  %v9674_v10 = vadd.f32 %v9283_v54, %v8723_v18  ;;  %v6431_v42 = vpop.f32.mrb[39].mxu0 }
 0x34a   : > { %v6787_v62 = vmax.f32 %v6715_v35, 0.0  ;;  %v9675_v63 = vadd.f32 %v6431_v42, %v3462_v12 }
 0x34b   : > { %6860 = vst [vmem:[%s13077_s20 + $0x128] sm:$0xff] %v6788_v6  ;;  %v6718_v9 = vadd.f32 %v9674_v10, %v13071_v32  ;;  %v8726_v50 = vpop.f32.mrb[40].mxu1 }
 0x34c   : > { %6859 = vst [vmem:[%s13077_s20 + $0x120] sm:$0xff] %v6787_v62  ;;  %v6717_v11 = vadd.f32 %v9675_v63, %v13071_v32  ;;  %v9286_v47 = vpop.f32.mrb[40].mxu0  ;;  %v3472_v21 = vpop.f32.mrb[41].mxu1 }
 0x34d   : > { %v6790_v13 = vmax.f32 %v6718_v9, 0.0  ;;  %v9676_v41 = vadd.f32 %v9286_v47, %v8726_v50  ;;  %v6441_v60 = vpop.f32.mrb[41].mxu0 }
 0x34e   : > { %v6789_v51 = vmax.f32 %v6717_v11, 0.0  ;;  %v9677_v31 = vadd.f32 %v6441_v60, %v3472_v21 }
 0x34f   : > { %6862 = vst [vmem:[%s13077_s20 + $0x138] sm:$0xff] %v6790_v13  ;;  %v6720_v4 = vadd.f32 %v9676_v41, %v13071_v32  ;;  %v8729_v57 = vpop.f32.mrb[42].mxu1 }
 0x350   : > { %6861 = vst [vmem:[%s13077_s20 + $0x130] sm:$0xff] %v6789_v51  ;;  %v6719_v19 = vadd.f32 %v9677_v31, %v13071_v32  ;;  %v9289_v55 = vpop.f32.mrb[42].mxu0  ;;  %v3482_v61 = vpop.f32.mrb[43].mxu1 }
 0x351   : > { %v6792_v2 = vmax.f32 %v6720_v4, 0.0  ;;  %v9678_v38 = vadd.f32 %v9289_v55, %v8729_v57  ;;  %v6451_v27 = vpop.f32.mrb[43].mxu0 }
 0x352   : > { %v6791_v37 = vmax.f32 %v6719_v19, 0.0  ;;  %v9679_v23 = vadd.f32 %v6451_v27, %v3482_v61 }
 0x353   : > { %6864 = vst [vmem:[%s13077_s20 + $0x148] sm:$0xff] %v6792_v2  ;;  %v6722_v14 = vadd.f32 %v9678_v38, %v13071_v32  ;;  %v8732_v53 = vpop.f32.mrb[44].mxu1 }
 0x354   : > { %6863 = vst [vmem:[%s13077_s20 + $0x140] sm:$0xff] %v6791_v37  ;;  %v6721_v7 = vadd.f32 %v9679_v23, %v13071_v32  ;;  %v9292_v46 = vpop.f32.mrb[44].mxu0  ;;  %v3492_v33 = vpop.f32.mrb[45].mxu1 }
 0x355   : > { %v6794_v58 = vmax.f32 %v6722_v14, 0.0  ;;  %v9680_v39 = vadd.f32 %v9292_v46, %v8732_v53  ;;  %v6461_v52 = vpop.f32.mrb[45].mxu0 }
 0x356   : > { %v6793_v45 = vmax.f32 %v6721_v7, 0.0  ;;  %v9681_v36 = vadd.f32 %v6461_v52, %v3492_v33 }
 0x357   : > { %6866 = vst [vmem:[%s13077_s20 + $0x158] sm:$0xff] %v6794_v58  ;;  %v6724_v59 = vadd.f32 %v9680_v39, %v13071_v32  ;;  %v8735_v48 = vpop.f32.mrb[46].mxu1 }
 0x358   : > { %6865 = vst [vmem:[%s13077_s20 + $0x150] sm:$0xff] %v6793_v45  ;;  %v6723_v49 = vadd.f32 %v9681_v36, %v13071_v32  ;;  %v9295_v3 = vpop.f32.mrb[46].mxu0  ;;  %v3502_v43 = vpop.f32.mrb[47].mxu1 }
 0x359   : > { %v6796_v30 = vmax.f32 %v6724_v59, 0.0  ;;  %v9682_v5 = vadd.f32 %v9295_v3, %v8735_v48  ;;  %v6471_v24 = vpop.f32.mrb[47].mxu0 }
 0x35a   : > { %v6795_v8 = vmax.f32 %v6723_v49, 0.0  ;;  %v9683_v34 = vadd.f32 %v6471_v24, %v3502_v43 }
 0x35b   : > { %6868 = vst [vmem:[%s13077_s20 + $0x168] sm:$0xff] %v6796_v30  ;;  %v6726_v29 = vadd.f32 %v9682_v5, %v13071_v32  ;;  %v8738_v56 = vpop.f32.mrb[48].mxu1 }
 0x35c   : > { %6867 = vst [vmem:[%s13077_s20 + $0x160] sm:$0xff] %v6795_v8  ;;  %v6725_v16 = vadd.f32 %v9683_v34, %v13071_v32  ;;  %v9298_v0 = vpop.f32.mrb[48].mxu0  ;;  %v3512_v25 = vpop.f32.mrb[49].mxu1 }
 0x35d   : > { %v6798_v17 = vmax.f32 %v6726_v29, 0.0  ;;  %v9684_v40 = vadd.f32 %v9298_v0, %v8738_v56  ;;  %v6481_v44 = vpop.f32.mrb[49].mxu0 }
 0x35e   : > { %v6797_v15 = vmax.f32 %v6725_v16, 0.0  ;;  %v9685_v28 = vadd.f32 %v6481_v44, %v3512_v25 }
 0x35f   : > { %6870 = vst [vmem:[%s13077_s20 + $0x178] sm:$0xff] %v6798_v17  ;;  %v6728_v20 = vadd.f32 %v9684_v40, %v13071_v32  ;;  %v8741_v26 = vpop.f32.mrb[50].mxu1 }
 0x360   : > { %6869 = vst [vmem:[%s13077_s20 + $0x170] sm:$0xff] %v6797_v15  ;;  %v6727_v22 = vadd.f32 %v9685_v28, %v13071_v32  ;;  %v9301_v1 = vpop.f32.mrb[50].mxu0  ;;  %v3522_v18 = vpop.f32.mrb[51].mxu1 }
 0x361   : > { %v6800_v35 = vmax.f32 %v6728_v20, 0.0  ;;  %v9686_v54 = vadd.f32 %v9301_v1, %v8741_v26  ;;  %v6491_v12 = vpop.f32.mrb[51].mxu0 }
 0x362   : > { %v6799_v6 = vmax.f32 %v6727_v22, 0.0  ;;  %v9687_v10 = vadd.f32 %v6491_v12, %v3522_v18 }
 0x363   : > { %6872 = vst [vmem:[%s13077_s20 + $0x188] sm:$0xff] %v6800_v35  ;;  %v6730_v42 = vadd.f32 %v9686_v54, %v13071_v32  ;;  %v8744_v62 = vpop.f32.mrb[52].mxu1 }
 0x364   : > { %6871 = vst [vmem:[%s13077_s20 + $0x180] sm:$0xff] %v6799_v6  ;;  %v6729_v63 = vadd.f32 %v9687_v10, %v13071_v32  ;;  %v9304_v9 = vpop.f32.mrb[52].mxu0  ;;  %v3532_v50 = vpop.f32.mrb[53].mxu1 }
 0x365   : > { %v6802_v11 = vmax.f32 %v6730_v42, 0.0  ;;  %v9688_v47 = vadd.f32 %v9304_v9, %v8744_v62  ;;  %v6501_v21 = vpop.f32.mrb[53].mxu0 }
 0x366   : > { %v6801_v13 = vmax.f32 %v6729_v63, 0.0  ;;  %v9689_v41 = vadd.f32 %v6501_v21, %v3532_v50 }
 0x367   : > { %6874 = vst [vmem:[%s13077_s20 + $0x198] sm:$0xff] %v6802_v11  ;;  %v6732_v60 = vadd.f32 %v9688_v47, %v13071_v32  ;;  %v8747_v51 = vpop.f32.mrb[54].mxu1 }
 0x368   : > { %6873 = vst [vmem:[%s13077_s20 + $0x190] sm:$0xff] %v6801_v13  ;;  %v6731_v31 = vadd.f32 %v9689_v41, %v13071_v32  ;;  %v9307_v4 = vpop.f32.mrb[54].mxu0  ;;  %v3542_v57 = vpop.f32.mrb[55].mxu1 }
 0x369   : > { %v6804_v19 = vmax.f32 %v6732_v60, 0.0  ;;  %v9690_v55 = vadd.f32 %v9307_v4, %v8747_v51  ;;  %v6511_v61 = vpop.f32.mrb[55].mxu0 }
 0x36a   : > { %v6803_v2 = vmax.f32 %v6731_v31, 0.0  ;;  %v9691_v38 = vadd.f32 %v6511_v61, %v3542_v57 }
 0x36b   : > { %6876 = vst [vmem:[%s13077_s20 + $0x1a8] sm:$0xff] %v6804_v19  ;;  %v6734_v27 = vadd.f32 %v9690_v55, %v13071_v32  ;;  %v8750_v37 = vpop.f32.mrb[56].mxu1 }
 0x36c   : > { %6875 = vst [vmem:[%s13077_s20 + $0x1a0] sm:$0xff] %v6803_v2  ;;  %v6733_v23 = vadd.f32 %v9691_v38, %v13071_v32  ;;  %v9310_v14 = vpop.f32.mrb[56].mxu0  ;;  %v3552_v53 = vpop.f32.mrb[57].mxu1 }
 0x36d   : > { %v6806_v7 = vmax.f32 %v6734_v27, 0.0  ;;  %v9692_v46 = vadd.f32 %v9310_v14, %v8750_v37  ;;  %v6521_v33 = vpop.f32.mrb[57].mxu0 }
 0x36e   : > { %v6805_v58 = vmax.f32 %v6733_v23, 0.0  ;;  %v9693_v39 = vadd.f32 %v6521_v33, %v3552_v53 }
 0x36f   : > { %6878 = vst [vmem:[%s13077_s20 + $0x1b8] sm:$0xff] %v6806_v7  ;;  %v6736_v52 = vadd.f32 %v9692_v46, %v13071_v32  ;;  %v8753_v45 = vpop.f32.mrb[58].mxu1 }
 0x370   : > { %6877 = vst [vmem:[%s13077_s20 + $0x1b0] sm:$0xff] %v6805_v58  ;;  %v6735_v36 = vadd.f32 %v9693_v39, %v13071_v32  ;;  %v9313_v59 = vpop.f32.mrb[58].mxu0  ;;  %v3562_v48 = vpop.f32.mrb[59].mxu1 }
 0x371   : > { %v6808_v49 = vmax.f32 %v6736_v52, 0.0  ;;  %v9694_v3 = vadd.f32 %v9313_v59, %v8753_v45  ;;  %v6531_v43 = vpop.f32.mrb[59].mxu0 }
 0x372   : > { %v6807_v30 = vmax.f32 %v6735_v36, 0.0  ;;  %v9695_v5 = vadd.f32 %v6531_v43, %v3562_v48 }
 0x373   : > { %6880 = vst [vmem:[%s13077_s20 + $0x1c8] sm:$0xff] %v6808_v49  ;;  %v6738_v24 = vadd.f32 %v9694_v3, %v13071_v32  ;;  %v8756_v8 = vpop.f32.mrb[60].mxu1 }
 0x374   : > { %6879 = vst [vmem:[%s13077_s20 + $0x1c0] sm:$0xff] %v6807_v30  ;;  %v6737_v34 = vadd.f32 %v9695_v5, %v13071_v32  ;;  %v9316_v29 = vpop.f32.mrb[60].mxu0  ;;  %v3572_v56 = vpop.f32.mrb[61].mxu1 }
 0x375   : > { %v6810_v16 = vmax.f32 %v6738_v24, 0.0  ;;  %v9696_v0 = vadd.f32 %v9316_v29, %v8756_v8  ;;  %v6541_v25 = vpop.f32.mrb[61].mxu0 }
 0x376   : > { %v6809_v17 = vmax.f32 %v6737_v34, 0.0  ;;  %v9697_v40 = vadd.f32 %v6541_v25, %v3572_v56 }
 0x377   : > { %6882 = vst [vmem:[%s13077_s20 + $0x1d8] sm:$0xff] %v6810_v16  ;;  %v6740_v44 = vadd.f32 %v9696_v0, %v13071_v32  ;;  %v8759_v15 = vpop.f32.mrb[62].mxu1 }
 0x378   : > { %6881 = vst [vmem:[%s13077_s20 + $0x1d0] sm:$0xff] %v6809_v17  ;;  %v6739_v28 = vadd.f32 %v9697_v40, %v13071_v32  ;;  %v9319_v20 = vpop.f32.mrb[62].mxu0  ;;  %v3582_v26 = vpop.f32.mrb[63].mxu1 }
 0x379   : > { %v6812_v22 = vmax.f32 %v6740_v44, 0.0  ;;  %v9698_v1 = vadd.f32 %v9319_v20, %v8759_v15  ;;  %v6551_v18 = vpop.f32.mrb[63].mxu0 }
 0x37a   : > { %v6811_v35 = vmax.f32 %v6739_v28, 0.0  ;;  %v9699_v54 = vadd.f32 %v6551_v18, %v3582_v26 }
 0x37b   : > { %6884 = vst [vmem:[%s13077_s20 + $0x1e8] sm:$0xff] %v6812_v22  ;;  %v6742_v12 = vadd.f32 %v9698_v1, %v13071_v32  ;;  %v8762_v6 = vpop.f32.mrb[64].mxu1 }
 0x37c   : > { %6883 = vst [vmem:[%s13077_s20 + $0x1e0] sm:$0xff] %v6811_v35  ;;  %v6741_v10 = vadd.f32 %v9699_v54, %v13071_v32  ;;  %v9322_v42 = vpop.f32.mrb[64].mxu0  ;;  %v3592_v62 = vpop.f32.mrb[65].mxu1 }
 0x37d   : > { %v6814_v63 = vmax.f32 %v6742_v12, 0.0  ;;  %v9700_v9 = vadd.f32 %v9322_v42, %v8762_v6  ;;  %v6561_v50 = vpop.f32.mrb[65].mxu0 }
 0x37e   : > { %v6813_v11 = vmax.f32 %v6741_v10, 0.0  ;;  %v9701_v47 = vadd.f32 %v6561_v50, %v3592_v62 }
 0x37f   : > { %6886 = vst [vmem:[%s13077_s20 + $0x1f8] sm:$0xff] %v6814_v63  ;;  %v6744_v21 = vadd.f32 %v9700_v9, %v13071_v32  ;;  %v8765_v13 = vpop.f32.mrb[66].mxu1 }
 0x380   : > { %6885 = vst [vmem:[%s13077_s20 + $0x1f0] sm:$0xff] %v6813_v11  ;;  %v6743_v41 = vadd.f32 %v9701_v47, %v13071_v32  ;;  %v9325_v60 = vpop.f32.mrb[66].mxu0  ;;  %v3602_v51 = vpop.f32.mrb[67].mxu1 }
 0x381   : > { %v6816_v31 = vmax.f32 %v6744_v21, 0.0  ;;  %v9702_v4 = vadd.f32 %v9325_v60, %v8765_v13  ;;  %v6571_v57 = vpop.f32.mrb[67].mxu0 }
 0x382   : > { %v6815_v19 = vmax.f32 %v6743_v41, 0.0  ;;  %v9703_v55 = vadd.f32 %v6571_v57, %v3602_v51 }
 0x383   : > { %6888 = vst [vmem:[%s13077_s20 + $0x208] sm:$0xff] %v6816_v31  ;;  %v6746_v61 = vadd.f32 %v9702_v4, %v13071_v32  ;;  %v8768_v2 = vpop.f32.mrb[68].mxu1 }
 0x384   : > { %6887 = vst [vmem:[%s13077_s20 + $0x200] sm:$0xff] %v6815_v19  ;;  %v6745_v38 = vadd.f32 %v9703_v55, %v13071_v32  ;;  %v9328_v27 = vpop.f32.mrb[68].mxu0  ;;  %v3612_v37 = vpop.f32.mrb[69].mxu1 }
 0x385   : > { %v6818_v23 = vmax.f32 %v6746_v61, 0.0  ;;  %v9704_v14 = vadd.f32 %v9328_v27, %v8768_v2  ;;  %v6581_v53 = vpop.f32.mrb[69].mxu0 }
 0x386   : > { %v6817_v7 = vmax.f32 %v6745_v38, 0.0  ;;  %v9705_v46 = vadd.f32 %v6581_v53, %v3612_v37 }
 0x387   : > { %6890 = vst [vmem:[%s13077_s20 + $0x218] sm:$0xff] %v6818_v23  ;;  %v6748_v33 = vadd.f32 %v9704_v14, %v13071_v32  ;;  %v8771_v58 = vpop.f32.mrb[70].mxu1 }
 0x388   : > { %6889 = vst [vmem:[%s13077_s20 + $0x210] sm:$0xff] %v6817_v7  ;;  %v6747_v39 = vadd.f32 %v9705_v46, %v13071_v32  ;;  %v9331_v52 = vpop.f32.mrb[70].mxu0  ;;  %v3622_v45 = vpop.f32.mrb[71].mxu1 }
 0x389   : > { %v6820_v36 = vmax.f32 %v6748_v33, 0.0  ;;  %v9706_v59 = vadd.f32 %v9331_v52, %v8771_v58  ;;  %v6591_v48 = vpop.f32.mrb[71].mxu0 }
 0x38a   : > { %v6819_v49 = vmax.f32 %v6747_v39, 0.0  ;;  %v9707_v3 = vadd.f32 %v6591_v48, %v3622_v45 }
 0x38b   : > { %6892 = vst [vmem:[%s13077_s20 + $0x228] sm:$0xff] %v6820_v36  ;;  %v6750_v43 = vadd.f32 %v9706_v59, %v13071_v32 }
 0x38c   : > { %6891 = vst [vmem:[%s13077_s20 + $0x220] sm:$0xff] %v6819_v49  ;;  %v6749_v30 = vadd.f32 %v9707_v3, %v13071_v32 }
 0x38d   : > { %v6822_v5 = vmax.f32 %v6750_v43, 0.0 }
 0x38e   : > { %v6821_v24 = vmax.f32 %v6749_v30, 0.0 }
 0x38f   : > { %6894 = vst [vmem:[%s13077_s20 + $0x238] sm:$0xff] %v6822_v5 }
 0x390   : > { %6893 = vst [vmem:[%s13077_s20 + $0x230] sm:$0xff] %v6821_v24 }
 0x391 PF: > { %s13_s12 = sadd.s32 1, %s10477_s12  }
 0x392   : > { %p10_p4 = scmp.ge.s32.totalorder %s13_s12, 4  }
 0x394   :  { %12 = sbr.rel (!%p10_p4) target bundleno = 1 (0x1), region = 72 }

// kernel: net_forward.7
= control target key start
LH: loop header
LB: loop body
LE: loop exit
PB: predicated region body
PF: predicated region fallthrough
CT: control target
= control target key end

     0   :  { %vm16495_vm0 = vmmov 0   ;;  %s20556_s1 = inlined_call_operand.vmem [shape: bf16[18432,128], index: 1, kind: input, shape index: {}]   ;;  %s20557_s0 = inlined_call_operand.vmem [shape: f32[8,18432], index: 0, kind: input, shape index: {}]   ;;  %s20558_s2 = inlined_call_operand.vmem [shape: f32[1,128], index: 2, kind: input, shape index: {}]   ;;  %s20559_s3 = inlined_call_operand.vmem [shape: f32[128,128], index: 3, kind: input, shape index: {}]   ;;  %s20560_s4 = inlined_call_operand.vmem [shape: f32[1,128], index: 4, kind: input, shape index: {}]   ;;  %s20561_s5 = inlined_call_operand.vmem [shape: f32[8,128], index: 5, kind: output, shape index: {}]  }
   0x1   :  { %v15338_v0 = vld [vmem:[%s20556_s1 + $0x40] sm:$0xff]   ;;  %v15342_v4 = vld [vmem:[%s20556_s1 + $0x48] sm:$0xff]   ;;  %v15346_v8 = vld [vmem:[%s20556_s1 + $0x50] sm:$0xff]  }
   0x2   :  { %v15339_v1 = vld [vmem:[%s20556_s1 + $0xc0] sm:$0xff]   ;;  %13675 = vmatprep.subr.bf16.mxu0 %v15338_v0  ;;  %v15343_v5 = vld [vmem:[%s20556_s1 + $0xc8] sm:$0xff]   ;;  %v15347_v9 = vld [vmem:[%s20556_s1 + $0xd0] sm:$0xff]  }
   0x3   :  { %v15340_v2 = vld [vmem:[%s20556_s1] sm:$0xff]   ;;  %13697 = vmatprep.subr.bf16.mxu1 %v15339_v1  ;;  %v15344_v6 = vld [vmem:[%s20556_s1 + $0x8] sm:$0xff]   ;;  %v15348_v10 = vld [vmem:[%s20556_s1 + $0x10] sm:$0xff]  }
   0x4   :  { %v15341_v3 = vld [vmem:[%s20556_s1 + $0x80] sm:$0xff]   ;;  %13676 = vmatpush3.bf16.msra.mxu0 %v15340_v2  ;;  %v15345_v7 = vld [vmem:[%s20556_s1 + $0x88] sm:$0xff]   ;;  %v15349_v11 = vld [vmem:[%s20556_s1 + $0x90] sm:$0xff]  }
   0x5   :  { %13698 = vmatpush3.bf16.msra.mxu1 %v15341_v3  ;;  %13677 = vmatprep.subr.bf16.mxu0 %v15342_v4  ;;  %v15350_v12 = vld [vmem:[%s20556_s1 + $0x58] sm:$0xff]   ;;  %v15354_v16 = vld [vmem:[%s20556_s1 + $0x60] sm:$0xff]   ;;  %v15358_v20 = vld [vmem:[%s20556_s1 + $0x68] sm:$0xff]  }
   0x6   :  { %13699 = vmatprep.subr.bf16.mxu1 %v15343_v5  ;;  %v15351_v13 = vld [vmem:[%s20556_s1 + $0xd8] sm:$0xff]   ;;  %v15355_v17 = vld [vmem:[%s20556_s1 + $0xe0] sm:$0xff]   ;;  %v15359_v21 = vld [vmem:[%s20556_s1 + $0xe8] sm:$0xff]  }
   0x7   :  { %v15352_v14 = vld [vmem:[%s20556_s1 + $0x18] sm:$0xff]   ;;  %v15356_v18 = vld [vmem:[%s20556_s1 + $0x20] sm:$0xff]   ;;  %v15360_v22 = vld [vmem:[%s20556_s1 + $0x28] sm:$0xff]  }
   0x8   :  { %13678 = vmatpush3.bf16.msra.mxu0 %v15344_v6  ;;  %v15353_v15 = vld [vmem:[%s20556_s1 + $0x98] sm:$0xff]   ;;  %v15357_v19 = vld [vmem:[%s20556_s1 + $0xa0] sm:$0xff]   ;;  %v15361_v23 = vld [vmem:[%s20556_s1 + $0xa8] sm:$0xff]  }
   0x9   :  { %13700 = vmatpush3.bf16.msra.mxu1 %v15345_v7  ;;  %13679 = vmatprep.subr.bf16.mxu0 %v15346_v8  ;;  %v15362_v24 = vld [vmem:[%s20556_s1 + $0x70] sm:$0xff]   ;;  %v15366_v28 = vld [vmem:[%s20556_s1 + $0x78] sm:$0xff]   ;;  %v22_v32 = vld [vmem:[%s20557_s0 + $0x8] sm:$0xff] }
   0xa   :  { %13701 = vmatprep.subr.bf16.mxu1 %v15347_v9  ;;  %v15363_v25 = vld [vmem:[%s20556_s1 + $0xf0] sm:$0xff]   ;;  %v15367_v29 = vld [vmem:[%s20556_s1 + $0xf8] sm:$0xff]   ;;  %v21_v34 = vld [vmem:[%s20557_s0] sm:$0xff]  ;;  %v166_v35 = vpack.c.bf16 %v22_v32, %v22_v32 }
   0xb   :  { %v15364_v26 = vld [vmem:[%s20556_s1 + $0x30] sm:$0xff]   ;;  %v15368_v30 = vld [vmem:[%s20556_s1 + $0x38] sm:$0xff]   ;;  %v165_v37 = vpack.c.bf16 %v21_v34, %v21_v34  ;;  %v15370_v40 = vld [vmem:[%s20556_s1 + $0x140] sm:$0xff]  }
   0xc   :  { %13680 = vmatpush3.bf16.msra.mxu0 %v15348_v10  ;;  %v15365_v27 = vld [vmem:[%s20556_s1 + $0xb0] sm:$0xff]   ;;  %v15369_v31 = vld [vmem:[%s20556_s1 + $0xb8] sm:$0xff]   ;;  %9564 = vmatprep.mubr.bf16.mxu0 %v166_v35  ;;  %v15371_v41 = vld [vmem:[%s20556_s1 + $0x1c0] sm:$0xff]  }
   0xd   :  { %13702 = vmatpush3.bf16.msra.mxu1 %v15349_v11  ;;  %13681 = vmatprep.subr.bf16.mxu0 %v15350_v12  ;;  %v24_v33 = vld [vmem:[%s20557_s0 + $0x18] sm:$0xff]  ;;  %v23_v38 = vld [vmem:[%s20557_s0 + $0x10] sm:$0xff]  ;;  %v15372_v42 = vld [vmem:[%s20556_s1 + $0x100] sm:$0xff]  }
   0xe   :  { %13703 = vmatprep.subr.bf16.mxu1 %v15351_v13  ;;  %v168_v36 = vpack.c.bf16 %v24_v33, %v24_v33  ;;  %v167_v39 = vpack.c.bf16 %v23_v38, %v23_v38  ;;  %v15373_v43 = vld [vmem:[%s20556_s1 + $0x180] sm:$0xff]   ;;  %v15374_v44 = vld [vmem:[%s20556_s1 + $0x148] sm:$0xff]   ;;  %v15378_v48 = vld [vmem:[%s20556_s1 + $0x150] sm:$0xff]  }
   0xf   :  { %v15375_v45 = vld [vmem:[%s20556_s1 + $0x1c8] sm:$0xff]   ;;  %v15379_v49 = vld [vmem:[%s20556_s1 + $0x1d0] sm:$0xff]   ;;  %v15382_v52 = vld [vmem:[%s20556_s1 + $0x158] sm:$0xff]  }
  0x10   :  { %13682 = vmatpush3.bf16.msra.mxu0 %v15352_v14  ;;  %9604 = vmatprep.mubr.bf16.mxu1 %v168_v36  ;;  %v15376_v46 = vld [vmem:[%s20556_s1 + $0x108] sm:$0xff]   ;;  %v15380_v50 = vld [vmem:[%s20556_s1 + $0x110] sm:$0xff]   ;;  %v15383_v53 = vld [vmem:[%s20556_s1 + $0x1d8] sm:$0xff]  }
  0x11   :  { %13704 = vmatpush3.bf16.msra.mxu1 %v15353_v15  ;;  %13683 = vmatprep.subr.bf16.mxu0 %v15354_v16  ;;  %v15377_v47 = vld [vmem:[%s20556_s1 + $0x188] sm:$0xff]   ;;  %v15381_v51 = vld [vmem:[%s20556_s1 + $0x190] sm:$0xff]   ;;  %v15384_v54 = vld [vmem:[%s20556_s1 + $0x118] sm:$0xff]  }
  0x12   :  { %13705 = vmatprep.subr.bf16.mxu1 %v15355_v17  ;;  %v15385_v55 = vld [vmem:[%s20556_s1 + $0x198] sm:$0xff]   ;;  %v15386_v56 = vld [vmem:[%s20556_s1 + $0x160] sm:$0xff]   ;;  %v15390_v60 = vld [vmem:[%s20556_s1 + $0x168] sm:$0xff]  }
  0x13   :  { %v15387_v57 = vld [vmem:[%s20556_s1 + $0x1e0] sm:$0xff]   ;;  %v15391_v61 = vld [vmem:[%s20556_s1 + $0x1e8] sm:$0xff]   ;;  %v15394_v0 = vld [vmem:[%s20556_s1 + $0x170] sm:$0xff]  }
  0x14   :  { %13684 = vmatpush3.bf16.msra.mxu0 %v15356_v18  ;;  %v15388_v58 = vld [vmem:[%s20556_s1 + $0x120] sm:$0xff]   ;;  %v15392_v62 = vld [vmem:[%s20556_s1 + $0x128] sm:$0xff]   ;;  %v15395_v1 = vld [vmem:[%s20556_s1 + $0x1f0] sm:$0xff]  }
  0x15   :  { %13706 = vmatpush3.bf16.msra.mxu1 %v15357_v19  ;;  %13685 = vmatprep.subr.bf16.mxu0 %v15358_v20  ;;  %v15389_v59 = vld [vmem:[%s20556_s1 + $0x1a0] sm:$0xff]   ;;  %v15393_v63 = vld [vmem:[%s20556_s1 + $0x1a8] sm:$0xff]   ;;  %v15396_v2 = vld [vmem:[%s20556_s1 + $0x130] sm:$0xff]  }
  0x16   :  { %13707 = vmatprep.subr.bf16.mxu1 %v15359_v21  ;;  %v15397_v3 = vld [vmem:[%s20556_s1 + $0x1b0] sm:$0xff]   ;;  %v15398_v4 = vld [vmem:[%s20556_s1 + $0x178] sm:$0xff]   ;;  %v26_v8 = vld [vmem:[%s20557_s0 + $0x28] sm:$0xff] }
  0x17   :  { %v15399_v5 = vld [vmem:[%s20556_s1 + $0x1f8] sm:$0xff]   ;;  %v170_v10 = vpack.c.bf16 %v26_v8, %v26_v8  ;;  %v25_v12 = vld [vmem:[%s20557_s0 + $0x20] sm:$0xff]  ;;  %v27_v13 = vld [vmem:[%s20557_s0 + $0x30] sm:$0xff] }
  0x18   :  { %13686 = vmatpush3.bf16.msra.mxu0 %v15360_v22  ;;  %v15400_v6 = vld [vmem:[%s20556_s1 + $0x138] sm:$0xff]   ;;  %v169_v14 = vpack.c.bf16 %v25_v12, %v25_v12  ;;  %v171_v15 = vpack.c.bf16 %v27_v13, %v27_v13  ;;  %v15402_v16 = vld [vmem:[%s20556_s1 + $0x240] sm:$0xff]   ;;  %v15406_v20 = vld [vmem:[%s20556_s1 + $0x248] sm:$0xff]  }
  0x19   :  { %13708 = vmatpush3.bf16.msra.mxu1 %v15361_v23  ;;  %13687 = vmatprep.subr.bf16.mxu0 %v15362_v24  ;;  %v15401_v7 = vld [vmem:[%s20556_s1 + $0x1b8] sm:$0xff]   ;;  %v15403_v17 = vld [vmem:[%s20556_s1 + $0x2c0] sm:$0xff]   ;;  %v15407_v21 = vld [vmem:[%s20556_s1 + $0x2c8] sm:$0xff]  }
  0x1a   :  { %13709 = vmatprep.subr.bf16.mxu1 %v15363_v25  ;;  %v28_v9 = vld [vmem:[%s20557_s0 + $0x38] sm:$0xff]  ;;  %v15404_v18 = vld [vmem:[%s20556_s1 + $0x200] sm:$0xff]   ;;  %v15408_v22 = vld [vmem:[%s20556_s1 + $0x208] sm:$0xff]  }
  0x1b   :  { %v172_v11 = vpack.c.bf16 %v28_v9, %v28_v9  ;;  %v15405_v19 = vld [vmem:[%s20556_s1 + $0x280] sm:$0xff]   ;;  %v15409_v23 = vld [vmem:[%s20556_s1 + $0x288] sm:$0xff]   ;;  %v15410_v24 = vld [vmem:[%s20556_s1 + $0x250] sm:$0xff]  }
  0x1c   :  { %13688 = vmatpush3.bf16.msra.mxu0 %v15364_v26  ;;  %v15411_v25 = vld [vmem:[%s20556_s1 + $0x2d0] sm:$0xff]   ;;  %v15418_v32 = vld [vmem:[%s20556_s1 + $0x260] sm:$0xff]   ;;  %v15422_v36 = vld [vmem:[%s20556_s1 + $0x268] sm:$0xff]  }
  0x1d   :  { %13710 = vmatpush3.bf16.msra.mxu1 %v15365_v27  ;;  %13689 = vmatprep.subr.bf16.mxu0 %v15366_v28  ;;  %v15412_v26 = vld [vmem:[%s20556_s1 + $0x210] sm:$0xff]   ;;  %v15414_v28 = vld [vmem:[%s20556_s1 + $0x258] sm:$0xff]   ;;  %v15419_v33 = vld [vmem:[%s20556_s1 + $0x2e0] sm:$0xff]  }
  0x1e   :  { %13711 = vmatprep.subr.bf16.mxu1 %v15367_v29  ;;  %v15413_v27 = vld [vmem:[%s20556_s1 + $0x290] sm:$0xff]   ;;  %v15415_v29 = vld [vmem:[%s20556_s1 + $0x2d8] sm:$0xff]   ;;  %v15420_v34 = vld [vmem:[%s20556_s1 + $0x220] sm:$0xff]  }
  0x1f   :  { %v15421_v35 = vld [vmem:[%s20556_s1 + $0x2a0] sm:$0xff]   ;;  %v15424_v38 = vld [vmem:[%s20556_s1 + $0x228] sm:$0xff]  }
  0x20   :  { %13690 = vmatpush3.bf16.msra.mxu0 %v15368_v30  ;;  %v15416_v30 = vld [vmem:[%s20556_s1 + $0x218] sm:$0xff]   ;;  %v15450_v8 = vld [vmem:[%s20556_s1 + $0x360] sm:$0xff]   ;;  %v15454_v12 = vld [vmem:[%s20556_s1 + $0x368] sm:$0xff]  }
  0x21   :  { %13712 = vmatpush3.bf16.msra.mxu1 %v15369_v31  ;;  %13719 = vmatprep.subr.bf16.mxu0 %v15370_v40  ;;  %v15417_v31 = vld [vmem:[%s20556_s1 + $0x298] sm:$0xff]   ;;  %v15426_v40 = vld [vmem:[%s20556_s1 + $0x270] sm:$0xff]   ;;  %v15451_v9 = vld [vmem:[%s20556_s1 + $0x3e0] sm:$0xff]  }
  0x22   :  { %13741 = vmatprep.subr.bf16.mxu1 %v15371_v41  ;;  %v15427_v41 = vld [vmem:[%s20556_s1 + $0x2f0] sm:$0xff]   ;;  %v15455_v13 = vld [vmem:[%s20556_s1 + $0x3e8] sm:$0xff]  }
  0x23   :  { %9565 = vmatmul.mubr.bf16.vlgmr.msra.gmra.mrb[0].mxu0 %v165_v37  ;;  %v15423_v37 = vld [vmem:[%s20556_s1 + $0x2e8] sm:$0xff]  }
  0x24   :  { %9605 = vmatmul.mubr.bf16.vlgmr.msra.gmra.mrb[0].mxu1 %v167_v39  ;;  %13720 = vmatpush3.bf16.msra.mxu0 %v15372_v42  ;;  %v15425_v39 = vld [vmem:[%s20556_s1 + $0x2a8] sm:$0xff]   ;;  %v15428_v42 = vld [vmem:[%s20556_s1 + $0x230] sm:$0xff]  }
  0x25   :  { %13742 = vmatpush3.bf16.msra.mxu1 %v15373_v43  ;;  %13721 = vmatprep.subr.bf16.mxu0 %v15374_v44  ;;  %v15429_v43 = vld [vmem:[%s20556_s1 + $0x2b0] sm:$0xff]   ;;  %v15430_v44 = vld [vmem:[%s20556_s1 + $0x278] sm:$0xff]  }
  0x26   :  { %13743 = vmatprep.subr.bf16.mxu1 %v15375_v45  ;;  %9644 = vmatprep.mubr.bf16.mxu0 %v170_v10  ;;  %v15431_v45 = vld [vmem:[%s20556_s1 + $0x2f8] sm:$0xff]   ;;  %v15452_v10 = vld [vmem:[%s20556_s1 + $0x320] sm:$0xff]  }
  0x27   :  { %9684 = vmatprep.mubr.bf16.mxu1 %v172_v11  ;;  %v15453_v11 = vld [vmem:[%s20556_s1 + $0x3a0] sm:$0xff]  }
  0x28   :  { %13722 = vmatpush3.bf16.msra.mxu0 %v15376_v46  ;;  %v15432_v46 = vld [vmem:[%s20556_s1 + $0x238] sm:$0xff]  }
  0x29   :  { %13744 = vmatpush3.bf16.msra.mxu1 %v15377_v47  ;;  %13723 = vmatprep.subr.bf16.mxu0 %v15378_v48  ;;  %v15433_v47 = vld [vmem:[%s20556_s1 + $0x2b8] sm:$0xff]   ;;  %v30_v48 = vld [vmem:[%s20557_s0 + $0x48] sm:$0xff] }
  0x2a   :  { %13745 = vmatprep.subr.bf16.mxu1 %v15379_v49  ;;  %v174_v49 = vpack.c.bf16 %v30_v48, %v30_v48  ;;  %v15482_v48 = vld [vmem:[%s20556_s1 + $0x460] sm:$0xff]  }
  0x2c   :  { %13724 = vmatpush3.bf16.msra.mxu0 %v15380_v50  ;;  %v32_v50 = vld [vmem:[%s20557_s0 + $0x58] sm:$0xff] }
  0x2d   :  { %13746 = vmatpush3.bf16.msra.mxu1 %v15381_v51  ;;  %13725 = vmatprep.subr.bf16.mxu0 %v15382_v52  ;;  %v29_v51 = vld [vmem:[%s20557_s0 + $0x40] sm:$0xff]  ;;  %v31_v52 = vld [vmem:[%s20557_s0 + $0x50] sm:$0xff] }
  0x2e   :  { %13747 = vmatprep.subr.bf16.mxu1 %v15383_v53  ;;  %v176_v53 = vpack.c.bf16 %v32_v50, %v32_v50  ;;  %v15484_v50 = vld [vmem:[%s20556_s1 + $0x420] sm:$0xff]  }
  0x30   :  { %13726 = vmatpush3.bf16.msra.mxu0 %v15384_v54  ;;  %v173_v54 = vpack.c.bf16 %v29_v51, %v29_v51  ;;  %v15485_v51 = vld [vmem:[%s20556_s1 + $0x4a0] sm:$0xff]  }
  0x31   :  { %13748 = vmatpush3.bf16.msra.mxu1 %v15385_v55  ;;  %13727 = vmatprep.subr.bf16.mxu0 %v15386_v56  ;;  %v175_v55 = vpack.c.bf16 %v31_v52, %v31_v52  ;;  %v15434_v56 = vld [vmem:[%s20556_s1 + $0x340] sm:$0xff]   ;;  %v15486_v52 = vld [vmem:[%s20556_s1 + $0x468] sm:$0xff]  }
  0x32   :  { %13749 = vmatprep.subr.bf16.mxu1 %v15387_v57  ;;  %v15435_v57 = vld [vmem:[%s20556_s1 + $0x3c0] sm:$0xff]  }
  0x34   :  { %13728 = vmatpush3.bf16.msra.mxu0 %v15388_v58  ;;  %v15436_v58 = vld [vmem:[%s20556_s1 + $0x300] sm:$0xff]  }
  0x35   :  { %13750 = vmatpush3.bf16.msra.mxu1 %v15389_v59  ;;  %13729 = vmatprep.subr.bf16.mxu0 %v15390_v60  ;;  %v15437_v59 = vld [vmem:[%s20556_s1 + $0x380] sm:$0xff]   ;;  %v15438_v60 = vld [vmem:[%s20556_s1 + $0x348] sm:$0xff]  }
  0x36   :  { %13751 = vmatprep.subr.bf16.mxu1 %v15391_v61  ;;  %v15439_v61 = vld [vmem:[%s20556_s1 + $0x3c8] sm:$0xff]  }
  0x38   :  { %13730 = vmatpush3.bf16.msra.mxu0 %v15392_v62  ;;  %v15440_v62 = vld [vmem:[%s20556_s1 + $0x308] sm:$0xff]  }
  0x39   :  { %13752 = vmatpush3.bf16.msra.mxu1 %v15393_v63  ;;  %13731 = vmatprep.subr.bf16.mxu0 %v15394_v0  ;;  %v15441_v63 = vld [vmem:[%s20556_s1 + $0x388] sm:$0xff]   ;;  %v15442_v0 = vld [vmem:[%s20556_s1 + $0x350] sm:$0xff]  }
  0x3a   :  { %13753 = vmatprep.subr.bf16.mxu1 %v15395_v1  ;;  %v15443_v1 = vld [vmem:[%s20556_s1 + $0x3d0] sm:$0xff]  }
  0x3c   :  { %13732 = vmatpush3.bf16.msra.mxu0 %v15396_v2  ;;  %v15444_v2 = vld [vmem:[%s20556_s1 + $0x310] sm:$0xff]  }
  0x3d   :  { %13754 = vmatpush3.bf16.msra.mxu1 %v15397_v3  ;;  %13733 = vmatprep.subr.bf16.mxu0 %v15398_v4  ;;  %v15445_v3 = vld [vmem:[%s20556_s1 + $0x390] sm:$0xff]   ;;  %v15446_v4 = vld [vmem:[%s20556_s1 + $0x358] sm:$0xff]  }
  0x3e   :  { %13755 = vmatprep.subr.bf16.mxu1 %v15399_v5  ;;  %v15447_v5 = vld [vmem:[%s20556_s1 + $0x3d8] sm:$0xff]  }
  0x40   :  { %13734 = vmatpush3.bf16.msra.mxu0 %v15400_v6  ;;  %v15448_v6 = vld [vmem:[%s20556_s1 + $0x318] sm:$0xff]  }
  0x41   :  { %13756 = vmatpush3.bf16.msra.mxu1 %v15401_v7  ;;  %13763 = vmatprep.subr.bf16.mxu0 %v15402_v16  ;;  %v15449_v7 = vld [vmem:[%s20556_s1 + $0x398] sm:$0xff]   ;;  %v15458_v16 = vld [vmem:[%s20556_s1 + $0x370] sm:$0xff]  }
  0x42   :  { %13785 = vmatprep.subr.bf16.mxu1 %v15403_v17  ;;  %v15459_v17 = vld [vmem:[%s20556_s1 + $0x3f0] sm:$0xff]  }
  0x43   :  { %9645 = vmatmul.mubr.bf16.vlgmr.msra.gmra.mrb[4].mxu0 %v169_v14  ;;  %v15456_v14 = vld [vmem:[%s20556_s1 + $0x328] sm:$0xff]  }
  0x44   :  { %9685 = vmatmul.mubr.bf16.vlgmr.msra.gmra.mrb[4].mxu1 %v171_v15  ;;  %13764 = vmatpush3.bf16.msra.mxu0 %v15404_v18  ;;  %v15457_v15 = vld [vmem:[%s20556_s1 + $0x3a8] sm:$0xff]   ;;  %v15460_v18 = vld [vmem:[%s20556_s1 + $0x330] sm:$0xff]  }
  0x45   :  { %13786 = vmatpush3.bf16.msra.mxu1 %v15405_v19  ;;  %13765 = vmatprep.subr.bf16.mxu0 %v15406_v20  ;;  %v15461_v19 = vld [vmem:[%s20556_s1 + $0x3b0] sm:$0xff]   ;;  %v15462_v20 = vld [vmem:[%s20556_s1 + $0x378] sm:$0xff]  }
  0x46   :  { %13787 = vmatprep.subr.bf16.mxu1 %v15407_v21  ;;  %9724 = vmatprep.mubr.bf16.mxu0 %v174_v49  ;;  %v15463_v21 = vld [vmem:[%s20556_s1 + $0x3f8] sm:$0xff]   ;;  %v15483_v49 = vld [vmem:[%s20556_s1 + $0x4e0] sm:$0xff]  }
  0x47   :  { %9764 = vmatprep.mubr.bf16.mxu1 %v176_v53  ;;  %v15487_v53 = vld [vmem:[%s20556_s1 + $0x4e8] sm:$0xff]  }
  0x48   :  { %13766 = vmatpush3.bf16.msra.mxu0 %v15408_v22  ;;  %v15464_v22 = vld [vmem:[%s20556_s1 + $0x338] sm:$0xff]  }
  0x49   :  { %13788 = vmatpush3.bf16.msra.mxu1 %v15409_v23  ;;  %13767 = vmatprep.subr.bf16.mxu0 %v15410_v24  ;;  %v15465_v23 = vld [vmem:[%s20556_s1 + $0x3b8] sm:$0xff]   ;;  %v34_v24 = vld [vmem:[%s20557_s0 + $0x68] sm:$0xff] }
  0x4a   :  { %13789 = vmatprep.subr.bf16.mxu1 %v15411_v25  ;;  %v36_v25 = vld [vmem:[%s20557_s0 + $0x78] sm:$0xff] }
  0x4c   :  { %13768 = vmatpush3.bf16.msra.mxu0 %v15412_v26  ;;  %v33_v26 = vld [vmem:[%s20557_s0 + $0x60] sm:$0xff] }
  0x4d   :  { %13790 = vmatpush3.bf16.msra.mxu1 %v15413_v27  ;;  %13769 = vmatprep.subr.bf16.mxu0 %v15414_v28  ;;  %v178_v27 = vpack.c.bf16 %v34_v24, %v34_v24  ;;  %v180_v28 = vpack.c.bf16 %v36_v25, %v36_v25  ;;  %v15514_v24 = vld [vmem:[%s20556_s1 + $0x560] sm:$0xff]  }
  0x4e   :  { %13791 = vmatprep.subr.bf16.mxu1 %v15415_v29  ;;  %v177_v29 = vpack.c.bf16 %v33_v26, %v33_v26  ;;  %v15515_v25 = vld [vmem:[%s20556_s1 + $0x5e0] sm:$0xff]  }
  0x4f   :  { %v15516_v26 = vld [vmem:[%s20556_s1 + $0x520] sm:$0xff]  }
  0x50   :  { %13770 = vmatpush3.bf16.msra.mxu0 %v15416_v30  ;;  %v35_v30 = vld [vmem:[%s20557_s0 + $0x70] sm:$0xff] }
  0x51   :  { %13792 = vmatpush3.bf16.msra.mxu1 %v15417_v31  ;;  %13771 = vmatprep.subr.bf16.mxu0 %v15418_v32  ;;  %v179_v31 = vpack.c.bf16 %v35_v30, %v35_v30  ;;  %v15466_v32 = vld [vmem:[%s20556_s1 + $0x440] sm:$0xff]   ;;  %v15520_v30 = vld [vmem:[%s20556_s1 + $0x528] sm:$0xff]  }
  0x52   :  { %13793 = vmatprep.subr.bf16.mxu1 %v15419_v33  ;;  %v15467_v33 = vld [vmem:[%s20556_s1 + $0x4c0] sm:$0xff]  }
  0x54   :  { %13772 = vmatpush3.bf16.msra.mxu0 %v15420_v34  ;;  %v15468_v34 = vld [vmem:[%s20556_s1 + $0x400] sm:$0xff]  }
  0x55   :  { %13794 = vmatpush3.bf16.msra.mxu1 %v15421_v35  ;;  %13773 = vmatprep.subr.bf16.mxu0 %v15422_v36  ;;  %v15469_v35 = vld [vmem:[%s20556_s1 + $0x480] sm:$0xff]   ;;  %v15470_v36 = vld [vmem:[%s20556_s1 + $0x448] sm:$0xff]  }
  0x56   :  { %13795 = vmatprep.subr.bf16.mxu1 %v15423_v37  ;;  %v15471_v37 = vld [vmem:[%s20556_s1 + $0x4c8] sm:$0xff]  }
  0x58   :  { %13774 = vmatpush3.bf16.msra.mxu0 %v15424_v38  ;;  %v15472_v38 = vld [vmem:[%s20556_s1 + $0x408] sm:$0xff]  }
  0x59   :  { %13796 = vmatpush3.bf16.msra.mxu1 %v15425_v39  ;;  %13775 = vmatprep.subr.bf16.mxu0 %v15426_v40  ;;  %v15473_v39 = vld [vmem:[%s20556_s1 + $0x488] sm:$0xff]   ;;  %v15474_v40 = vld [vmem:[%s20556_s1 + $0x450] sm:$0xff]  }
  0x5a   :  { %13797 = vmatprep.subr.bf16.mxu1 %v15427_v41  ;;  %v15475_v41 = vld [vmem:[%s20556_s1 + $0x4d0] sm:$0xff]  }
  0x5c   :  { %13776 = vmatpush3.bf16.msra.mxu0 %v15428_v42  ;;  %v15476_v42 = vld [vmem:[%s20556_s1 + $0x410] sm:$0xff]  }
  0x5d   :  { %13798 = vmatpush3.bf16.msra.mxu1 %v15429_v43  ;;  %13777 = vmatprep.subr.bf16.mxu0 %v15430_v44  ;;  %v15477_v43 = vld [vmem:[%s20556_s1 + $0x490] sm:$0xff]   ;;  %v15478_v44 = vld [vmem:[%s20556_s1 + $0x458] sm:$0xff]  }
  0x5e   :  { %13799 = vmatprep.subr.bf16.mxu1 %v15431_v45  ;;  %v15479_v45 = vld [vmem:[%s20556_s1 + $0x4d8] sm:$0xff]  }
  0x60   :  { %13778 = vmatpush3.bf16.msra.mxu0 %v15432_v46  ;;  %v15480_v46 = vld [vmem:[%s20556_s1 + $0x418] sm:$0xff]  }
  0x61   :  { %13800 = vmatpush3.bf16.msra.mxu1 %v15433_v47  ;;  %13807 = vmatprep.subr.bf16.mxu0 %v15434_v56  ;;  %v15481_v47 = vld [vmem:[%s20556_s1 + $0x498] sm:$0xff]   ;;  %v15490_v56 = vld [vmem:[%s20556_s1 + $0x470] sm:$0xff]  }
  0x62   :  { %13829 = vmatprep.subr.bf16.mxu1 %v15435_v57  ;;  %v15491_v57 = vld [vmem:[%s20556_s1 + $0x4f0] sm:$0xff]  }
  0x63   :  { %9725 = vmatmul.mubr.bf16.vlgmr.msra.gmra.mrb[8].mxu0 %v173_v54  ;;  %v15488_v54 = vld [vmem:[%s20556_s1 + $0x428] sm:$0xff]  }
  0x64   :  { %9765 = vmatmul.mubr.bf16.vlgmr.msra.gmra.mrb[8].mxu1 %v175_v55  ;;  %13808 = vmatpush3.bf16.msra.mxu0 %v15436_v58  ;;  %v15489_v55 = vld [vmem:[%s20556_s1 + $0x4a8] sm:$0xff]   ;;  %v15492_v58 = vld [vmem:[%s20556_s1 + $0x430] sm:$0xff]  }
  0x65   :  { %13830 = vmatpush3.bf16.msra.mxu1 %v15437_v59  ;;  %13809 = vmatprep.subr.bf16.mxu0 %v15438_v60  ;;  %v15493_v59 = vld [vmem:[%s20556_s1 + $0x4b0] sm:$0xff]   ;;  %v15494_v60 = vld [vmem:[%s20556_s1 + $0x478] sm:$0xff]  }
  0x66   :  { %13831 = vmatprep.subr.bf16.mxu1 %v15439_v61  ;;  %9804 = vmatprep.mubr.bf16.mxu0 %v178_v27  ;;  %v15495_v61 = vld [vmem:[%s20556_s1 + $0x4f8] sm:$0xff]   ;;  %v15517_v27 = vld [vmem:[%s20556_s1 + $0x5a0] sm:$0xff]  }
  0x67   :  { %9844 = vmatprep.mubr.bf16.mxu1 %v180_v28  ;;  %v15518_v28 = vld [vmem:[%s20556_s1 + $0x568] sm:$0xff]  }
  0x68   :  { %13810 = vmatpush3.bf16.msra.mxu0 %v15440_v62  ;;  %v15496_v62 = vld [vmem:[%s20556_s1 + $0x438] sm:$0xff]  }
  0x69   :  { %13832 = vmatpush3.bf16.msra.mxu1 %v15441_v63  ;;  %13811 = vmatprep.subr.bf16.mxu0 %v15442_v0  ;;  %v15497_v63 = vld [vmem:[%s20556_s1 + $0x4b8] sm:$0xff]   ;;  %v38_v0 = vld [vmem:[%s20557_s0 + $0x88] sm:$0xff] }
  0x6a   :  { %13833 = vmatprep.subr.bf16.mxu1 %v15443_v1  ;;  %v40_v1 = vld [vmem:[%s20557_s0 + $0x98] sm:$0xff] }
  0x6c   :  { %13812 = vmatpush3.bf16.msra.mxu0 %v15444_v2  ;;  %v182_v2 = vpack.c.bf16 %v38_v0, %v38_v0  ;;  %v15546_v0 = vld [vmem:[%s20556_s1 + $0x660] sm:$0xff]  }
  0x6d   :  { %13834 = vmatpush3.bf16.msra.mxu1 %v15445_v3  ;;  %13813 = vmatprep.subr.bf16.mxu0 %v15446_v4  ;;  %v184_v3 = vpack.c.bf16 %v40_v1, %v40_v1  ;;  %v37_v4 = vld [vmem:[%s20557_s0 + $0x80] sm:$0xff] }
  0x6e   :  { %13835 = vmatprep.subr.bf16.mxu1 %v15447_v5  ;;  %v39_v5 = vld [vmem:[%s20557_s0 + $0x90] sm:$0xff]  ;;  %v15547_v1 = vld [vmem:[%s20556_s1 + $0x6e0] sm:$0xff]  }
  0x70   :  { %13814 = vmatpush3.bf16.msra.mxu0 %v15448_v6  ;;  %v181_v6 = vpack.c.bf16 %v37_v4, %v37_v4  ;;  %v15550_v4 = vld [vmem:[%s20556_s1 + $0x668] sm:$0xff]  }
  0x71   :  { %13836 = vmatpush3.bf16.msra.mxu1 %v15449_v7  ;;  %13815 = vmatprep.subr.bf16.mxu0 %v15450_v8  ;;  %v183_v7 = vpack.c.bf16 %v39_v5, %v39_v5  ;;  %v15498_v8 = vld [vmem:[%s20556_s1 + $0x540] sm:$0xff]   ;;  %v15551_v5 = vld [vmem:[%s20556_s1 + $0x6e8] sm:$0xff]  }
  0x72   :  { %13837 = vmatprep.subr.bf16.mxu1 %v15451_v9  ;;  %v15499_v9 = vld [vmem:[%s20556_s1 + $0x5c0] sm:$0xff]  }
  0x74   :  { %13816 = vmatpush3.bf16.msra.mxu0 %v15452_v10  ;;  %v15500_v10 = vld [vmem:[%s20556_s1 + $0x500] sm:$0xff]  }
  0x75   :  { %13838 = vmatpush3.bf16.msra.mxu1 %v15453_v11  ;;  %13817 = vmatprep.subr.bf16.mxu0 %v15454_v12  ;;  %v15501_v11 = vld [vmem:[%s20556_s1 + $0x580] sm:$0xff]   ;;  %v15502_v12 = vld [vmem:[%s20556_s1 + $0x548] sm:$0xff]  }
  0x76   :  { %13839 = vmatprep.subr.bf16.mxu1 %v15455_v13  ;;  %v15503_v13 = vld [vmem:[%s20556_s1 + $0x5c8] sm:$0xff]  }
  0x78   :  { %13818 = vmatpush3.bf16.msra.mxu0 %v15456_v14  ;;  %v15504_v14 = vld [vmem:[%s20556_s1 + $0x508] sm:$0xff]  }
  0x79   :  { %13840 = vmatpush3.bf16.msra.mxu1 %v15457_v15  ;;  %13819 = vmatprep.subr.bf16.mxu0 %v15458_v16  ;;  %v15505_v15 = vld [vmem:[%s20556_s1 + $0x588] sm:$0xff]   ;;  %v15506_v16 = vld [vmem:[%s20556_s1 + $0x550] sm:$0xff]  }
  0x7a   :  { %13841 = vmatprep.subr.bf16.mxu1 %v15459_v17  ;;  %v15507_v17 = vld [vmem:[%s20556_s1 + $0x5d0] sm:$0xff]  }
  0x7c   :  { %13820 = vmatpush3.bf16.msra.mxu0 %v15460_v18  ;;  %v15508_v18 = vld [vmem:[%s20556_s1 + $0x510] sm:$0xff]  }
  0x7d   :  { %13842 = vmatpush3.bf16.msra.mxu1 %v15461_v19  ;;  %13821 = vmatprep.subr.bf16.mxu0 %v15462_v20  ;;  %v15509_v19 = vld [vmem:[%s20556_s1 + $0x590] sm:$0xff]   ;;  %v15510_v20 = vld [vmem:[%s20556_s1 + $0x558] sm:$0xff]  }
  0x7e   :  { %13843 = vmatprep.subr.bf16.mxu1 %v15463_v21  ;;  %v15511_v21 = vld [vmem:[%s20556_s1 + $0x5d8] sm:$0xff]  }
  0x80   :  { %13822 = vmatpush3.bf16.msra.mxu0 %v15464_v22  ;;  %v15512_v22 = vld [vmem:[%s20556_s1 + $0x518] sm:$0xff]  }
  0x81   :  { %13844 = vmatpush3.bf16.msra.mxu1 %v15465_v23  ;;  %13851 = vmatprep.subr.bf16.mxu0 %v15466_v32  ;;  %v15513_v23 = vld [vmem:[%s20556_s1 + $0x598] sm:$0xff]   ;;  %v15522_v32 = vld [vmem:[%s20556_s1 + $0x570] sm:$0xff]  }
  0x82   :  { %13873 = vmatprep.subr.bf16.mxu1 %v15467_v33  ;;  %v15523_v33 = vld [vmem:[%s20556_s1 + $0x5f0] sm:$0xff]  }
  0x83   :  { %9805 = vmatmul.mubr.bf16.vlgmr.msra.gmra.mrb[12].mxu0 %v177_v29  ;;  %v15519_v29 = vld [vmem:[%s20556_s1 + $0x5e8] sm:$0xff]  }
  0x84   :  { %9845 = vmatmul.mubr.bf16.vlgmr.msra.gmra.mrb[12].mxu1 %v179_v31  ;;  %13852 = vmatpush3.bf16.msra.mxu0 %v15468_v34  ;;  %v15521_v31 = vld [vmem:[%s20556_s1 + $0x5a8] sm:$0xff]   ;;  %v15524_v34 = vld [vmem:[%s20556_s1 + $0x530] sm:$0xff]  }
  0x85   :  { %13874 = vmatpush3.bf16.msra.mxu1 %v15469_v35  ;;  %13853 = vmatprep.subr.bf16.mxu0 %v15470_v36  ;;  %v15525_v35 = vld [vmem:[%s20556_s1 + $0x5b0] sm:$0xff]   ;;  %v15526_v36 = vld [vmem:[%s20556_s1 + $0x578] sm:$0xff]  }
  0x86   :  { %13875 = vmatprep.subr.bf16.mxu1 %v15471_v37  ;;  %9884 = vmatprep.mubr.bf16.mxu0 %v182_v2  ;;  %v15527_v37 = vld [vmem:[%s20556_s1 + $0x5f8] sm:$0xff]   ;;  %v15548_v2 = vld [vmem:[%s20556_s1 + $0x620] sm:$0xff]  }
  0x87   :  { %9924 = vmatprep.mubr.bf16.mxu1 %v184_v3  ;;  %v15549_v3 = vld [vmem:[%s20556_s1 + $0x6a0] sm:$0xff]  }
  0x88   :  { %13854 = vmatpush3.bf16.msra.mxu0 %v15472_v38  ;;  %v15528_v38 = vld [vmem:[%s20556_s1 + $0x538] sm:$0xff]  }
  0x89   :  { %13876 = vmatpush3.bf16.msra.mxu1 %v15473_v39  ;;  %13855 = vmatprep.subr.bf16.mxu0 %v15474_v40  ;;  %v15529_v39 = vld [vmem:[%s20556_s1 + $0x5b8] sm:$0xff]   ;;  %v42_v40 = vld [vmem:[%s20557_s0 + $0xa8] sm:$0xff] }
  0x8a   :  { %13877 = vmatprep.subr.bf16.mxu1 %v15475_v41  ;;  %v186_v41 = vpack.c.bf16 %v42_v40, %v42_v40 }
  0x8c   :  { %13856 = vmatpush3.bf16.msra.mxu0 %v15476_v42  ;;  %v44_v42 = vld [vmem:[%s20557_s0 + $0xb8] sm:$0xff] }
  0x8d   :  { %13878 = vmatpush3.bf16.msra.mxu1 %v15477_v43  ;;  %13857 = vmatprep.subr.bf16.mxu0 %v15478_v44  ;;  %v41_v43 = vld [vmem:[%s20557_s0 + $0xa0] sm:$0xff]  ;;  %v43_v44 = vld [vmem:[%s20557_s0 + $0xb0] sm:$0xff] }
  0x8e   :  { %13879 = vmatprep.subr.bf16.mxu1 %v15479_v45  ;;  %v188_v45 = vpack.c.bf16 %v44_v42, %v44_v42 }
  0x90   :  { %13858 = vmatpush3.bf16.msra.mxu0 %v15480_v46  ;;  %v185_v46 = vpack.c.bf16 %v41_v43, %v41_v43  ;;  %v15578_v43 = vld [vmem:[%s20556_s1 + $0x760] sm:$0xff]  }
  0x91   :  { %13880 = vmatpush3.bf16.msra.mxu1 %v15481_v47  ;;  %13859 = vmatprep.subr.bf16.mxu0 %v15482_v48  ;;  %v187_v47 = vpack.c.bf16 %v43_v44, %v43_v44  ;;  %v15530_v48 = vld [vmem:[%s20556_s1 + $0x640] sm:$0xff]  }
  0x92   :  { %13881 = vmatprep.subr.bf16.mxu1 %v15483_v49  ;;  %v15531_v49 = vld [vmem:[%s20556_s1 + $0x6c0] sm:$0xff]  }
  0x94   :  { %13860 = vmatpush3.bf16.msra.mxu0 %v15484_v50  ;;  %v15532_v50 = vld [vmem:[%s20556_s1 + $0x600] sm:$0xff]  }
  0x95   :  { %13882 = vmatpush3.bf16.msra.mxu1 %v15485_v51  ;;  %13861 = vmatprep.subr.bf16.mxu0 %v15486_v52  ;;  %v15533_v51 = vld [vmem:[%s20556_s1 + $0x680] sm:$0xff]   ;;  %v15534_v52 = vld [vmem:[%s20556_s1 + $0x648] sm:$0xff]  }
  0x96   :  { %13883 = vmatprep.subr.bf16.mxu1 %v15487_v53  ;;  %v15535_v53 = vld [vmem:[%s20556_s1 + $0x6c8] sm:$0xff]  }
  0x98   :  { %13862 = vmatpush3.bf16.msra.mxu0 %v15488_v54  ;;  %v15536_v54 = vld [vmem:[%s20556_s1 + $0x608] sm:$0xff]  }
  0x99   :  { %13884 = vmatpush3.bf16.msra.mxu1 %v15489_v55  ;;  %13863 = vmatprep.subr.bf16.mxu0 %v15490_v56  ;;  %v15537_v55 = vld [vmem:[%s20556_s1 + $0x688] sm:$0xff]   ;;  %v15538_v56 = vld [vmem:[%s20556_s1 + $0x650] sm:$0xff]  }
  0x9a   :  { %13885 = vmatprep.subr.bf16.mxu1 %v15491_v57  ;;  %v15539_v57 = vld [vmem:[%s20556_s1 + $0x6d0] sm:$0xff]  }
  0x9c   :  { %13864 = vmatpush3.bf16.msra.mxu0 %v15492_v58  ;;  %v15540_v58 = vld [vmem:[%s20556_s1 + $0x610] sm:$0xff]  }
  0x9d   :  { %13886 = vmatpush3.bf16.msra.mxu1 %v15493_v59  ;;  %13865 = vmatprep.subr.bf16.mxu0 %v15494_v60  ;;  %v15541_v59 = vld [vmem:[%s20556_s1 + $0x690] sm:$0xff]   ;;  %v15542_v60 = vld [vmem:[%s20556_s1 + $0x658] sm:$0xff]  }
  0x9e   :  { %13887 = vmatprep.subr.bf16.mxu1 %v15495_v61  ;;  %v15543_v61 = vld [vmem:[%s20556_s1 + $0x6d8] sm:$0xff]  }
  0xa0   :  { %13866 = vmatpush3.bf16.msra.mxu0 %v15496_v62  ;;  %v15544_v62 = vld [vmem:[%s20556_s1 + $0x618] sm:$0xff]  }
  0xa1   :  { %13888 = vmatpush3.bf16.msra.mxu1 %v15497_v63  ;;  %13895 = vmatprep.subr.bf16.mxu0 %v15498_v8  ;;  %v15545_v63 = vld [vmem:[%s20556_s1 + $0x698] sm:$0xff]   ;;  %v15554_v8 = vld [vmem:[%s20556_s1 + $0x670] sm:$0xff]  }
  0xa2   :  { %13917 = vmatprep.subr.bf16.mxu1 %v15499_v9  ;;  %v15555_v9 = vld [vmem:[%s20556_s1 + $0x6f0] sm:$0xff]  }
  0xa3   :  { %9885 = vmatmul.mubr.bf16.vlgmr.msra.gmra.mrb[16].mxu0 %v181_v6  ;;  %v15552_v6 = vld [vmem:[%s20556_s1 + $0x628] sm:$0xff]  }
  0xa4   :  { %9925 = vmatmul.mubr.bf16.vlgmr.msra.gmra.mrb[16].mxu1 %v183_v7  ;;  %13896 = vmatpush3.bf16.msra.mxu0 %v15500_v10  ;;  %v15553_v7 = vld [vmem:[%s20556_s1 + $0x6a8] sm:$0xff]   ;;  %v15556_v10 = vld [vmem:[%s20556_s1 + $0x630] sm:$0xff]  }
  0xa5   :  { %13918 = vmatpush3.bf16.msra.mxu1 %v15501_v11  ;;  %13897 = vmatprep.subr.bf16.mxu0 %v15502_v12  ;;  %v15557_v11 = vld [vmem:[%s20556_s1 + $0x6b0] sm:$0xff]   ;;  %v15558_v12 = vld [vmem:[%s20556_s1 + $0x678] sm:$0xff]  }
  0xa6   :  { %13919 = vmatprep.subr.bf16.mxu1 %v15503_v13  ;;  %9964 = vmatprep.mubr.bf16.mxu0 %v186_v41  ;;  %v15559_v13 = vld [vmem:[%s20556_s1 + $0x6f8] sm:$0xff]  }
  0xa7   :  { %10004 = vmatprep.mubr.bf16.mxu1 %v188_v45  ;;  %v15577_v41 = vld [vmem:[%s20556_s1 + $0x798] sm:$0xff]  }
  0xa8   :  { %13898 = vmatpush3.bf16.msra.mxu0 %v15504_v14  ;;  %v15560_v14 = vld [vmem:[%s20556_s1 + $0x638] sm:$0xff]  }
  0xa9   :  { %13920 = vmatpush3.bf16.msra.mxu1 %v15505_v15  ;;  %13899 = vmatprep.subr.bf16.mxu0 %v15506_v16  ;;  %v15561_v15 = vld [vmem:[%s20556_s1 + $0x6b8] sm:$0xff]   ;;  %v46_v16 = vld [vmem:[%s20557_s0 + $0xc8] sm:$0xff] }
  0xaa   :  { %13921 = vmatprep.subr.bf16.mxu1 %v15507_v17  ;;  %v48_v17 = vld [vmem:[%s20557_s0 + $0xd8] sm:$0xff] }
  0xac   :  { %13900 = vmatpush3.bf16.msra.mxu0 %v15508_v18  ;;  %v45_v18 = vld [vmem:[%s20557_s0 + $0xc0] sm:$0xff] }
  0xad   :  { %13922 = vmatpush3.bf16.msra.mxu1 %v15509_v19  ;;  %13901 = vmatprep.subr.bf16.mxu0 %v15510_v20  ;;  %v190_v19 = vpack.c.bf16 %v46_v16, %v46_v16  ;;  %v192_v20 = vpack.c.bf16 %v48_v17, %v48_v17  ;;  %v15597_v16 = vld [vmem:[%s20556_s1 + $0x880] sm:$0xff]   ;;  %v15598_v17 = vld [vmem:[%s20556_s1 + $0x848] sm:$0xff]  }
  0xae   :  { %13923 = vmatprep.subr.bf16.mxu1 %v15511_v21  ;;  %v189_v21 = vpack.c.bf16 %v45_v18, %v45_v18  ;;  %v15599_v18 = vld [vmem:[%s20556_s1 + $0x8c8] sm:$0xff]  }
  0xb0   :  { %13902 = vmatpush3.bf16.msra.mxu0 %v15512_v22  ;;  %v47_v22 = vld [vmem:[%s20557_s0 + $0xd0] sm:$0xff] }
  0xb1   :  { %13924 = vmatpush3.bf16.msra.mxu1 %v15513_v23  ;;  %13903 = vmatprep.subr.bf16.mxu0 %v15514_v24  ;;  %v191_v23 = vpack.c.bf16 %v47_v22, %v47_v22  ;;  %v15562_v24 = vld [vmem:[%s20556_s1 + $0x740] sm:$0xff]   ;;  %v15603_v22 = vld [vmem:[%s20556_s1 + $0x8d0] sm:$0xff]  }
  0xb2   :  { %13925 = vmatprep.subr.bf16.mxu1 %v15515_v25  ;;  %v15563_v25 = vld [vmem:[%s20556_s1 + $0x7c0] sm:$0xff]  }
  0xb4   :  { %13904 = vmatpush3.bf16.msra.mxu0 %v15516_v26  ;;  %v15564_v26 = vld [vmem:[%s20556_s1 + $0x700] sm:$0xff]  }
  0xb5   :  { %13926 = vmatpush3.bf16.msra.mxu1 %v15517_v27  ;;  %13905 = vmatprep.subr.bf16.mxu0 %v15518_v28  ;;  %v15565_v27 = vld [vmem:[%s20556_s1 + $0x780] sm:$0xff]   ;;  %v15566_v28 = vld [vmem:[%s20556_s1 + $0x748] sm:$0xff]  }
  0xb6   :  { %13927 = vmatprep.subr.bf16.mxu1 %v15519_v29  ;;  %v15567_v29 = vld [vmem:[%s20556_s1 + $0x7c8] sm:$0xff]  }
  0xb8   :  { %13906 = vmatpush3.bf16.msra.mxu0 %v15520_v30  ;;  %v15568_v30 = vld [vmem:[%s20556_s1 + $0x708] sm:$0xff]  }
  0xb9   :  { %13928 = vmatpush3.bf16.msra.mxu1 %v15521_v31  ;;  %13907 = vmatprep.subr.bf16.mxu0 %v15522_v32  ;;  %v15569_v31 = vld [vmem:[%s20556_s1 + $0x788] sm:$0xff]   ;;  %v15570_v32 = vld [vmem:[%s20556_s1 + $0x750] sm:$0xff]  }
  0xba   :  { %13929 = vmatprep.subr.bf16.mxu1 %v15523_v33  ;;  %v15571_v33 = vld [vmem:[%s20556_s1 + $0x7d0] sm:$0xff]  }
  0xbc   :  { %13908 = vmatpush3.bf16.msra.mxu0 %v15524_v34  ;;  %v15572_v34 = vld [vmem:[%s20556_s1 + $0x710] sm:$0xff]  }
  0xbd   :  { %13930 = vmatpush3.bf16.msra.mxu1 %v15525_v35  ;;  %13909 = vmatprep.subr.bf16.mxu0 %v15526_v36  ;;  %v15573_v35 = vld [vmem:[%s20556_s1 + $0x790] sm:$0xff]   ;;  %v15574_v36 = vld [vmem:[%s20556_s1 + $0x758] sm:$0xff]  }
  0xbe   :  { %13931 = vmatprep.subr.bf16.mxu1 %v15527_v37  ;;  %v15575_v37 = vld [vmem:[%s20556_s1 + $0x7d8] sm:$0xff]  }
  0xc0   :  { %13910 = vmatpush3.bf16.msra.mxu0 %v15528_v38 }
  0xc1   :  { %13932 = vmatpush3.bf16.msra.mxu1 %v15529_v39  ;;  %13939 = vmatprep.subr.bf16.mxu0 %v15530_v48  ;;  %v15576_v39 = vld [vmem:[%s20556_s1 + $0x718] sm:$0xff]  }
  0xc2   :  { %13961 = vmatprep.subr.bf16.mxu1 %v15531_v49  ;;  %v15580_v49 = vld [vmem:[%s20556_s1 + $0x720] sm:$0xff]  }
  0xc3   :  { %9965 = vmatmul.mubr.bf16.vlgmr.msra.gmra.mrb[20].mxu0 %v185_v46  ;;  %v15579_v46 = vld [vmem:[%s20556_s1 + $0x7e0] sm:$0xff]  }
  0xc4   :  { %10005 = vmatmul.mubr.bf16.vlgmr.msra.gmra.mrb[20].mxu1 %v187_v47  ;;  %13940 = vmatpush3.bf16.msra.mxu0 %v15532_v50 }
  0xc5   :  { %13962 = vmatpush3.bf16.msra.mxu1 %v15533_v51  ;;  %13941 = vmatprep.subr.bf16.mxu0 %v15534_v52  ;;  %v15581_v51 = vld [vmem:[%s20556_s1 + $0x7a0] sm:$0xff]  }
  0xc6   :  { %13963 = vmatprep.subr.bf16.mxu1 %v15535_v53  ;;  %10044 = vmatprep.mubr.bf16.mxu0 %v190_v19  ;;  %v12521_v52 = vld [vmem:[%s20558_s2] ss:$0 sm:$0xff]  ;;  %v15600_v19 = vld [vmem:[%s20556_s1 + $0x808] sm:$0xff]  }
  0xc7   :  { %10084 = vmatprep.mubr.bf16.mxu1 %v192_v20  ;;  %v15601_v20 = vld [vmem:[%s20556_s1 + $0x888] sm:$0xff]  }
  0xc8   :  { %13942 = vmatpush3.bf16.msra.mxu0 %v15536_v54 }
  0xc9   :  { %13964 = vmatpush3.bf16.msra.mxu1 %v15537_v55  ;;  %13943 = vmatprep.subr.bf16.mxu0 %v15538_v56  ;;  %v15582_v55 = vld [vmem:[%s20556_s1 + $0x768] sm:$0xff]  }
  0xca   :  { %13965 = vmatprep.subr.bf16.mxu1 %v15539_v57  ;;  %v15583_v57 = vld [vmem:[%s20556_s1 + $0x7e8] sm:$0xff]  }
  0xcc   :  { %13944 = vmatpush3.bf16.msra.mxu0 %v15540_v58 }
  0xcd   :  { %13966 = vmatpush3.bf16.msra.mxu1 %v15541_v59  ;;  %13945 = vmatprep.subr.bf16.mxu0 %v15542_v60  ;;  %v15584_v59 = vld [vmem:[%s20556_s1 + $0x728] sm:$0xff]  }
  0xce   :  { %13967 = vmatprep.subr.bf16.mxu1 %v15543_v61  ;;  %v15585_v60 = vld [vmem:[%s20556_s1 + $0x7a8] sm:$0xff]   ;;  %v15586_v61 = vld [vmem:[%s20556_s1 + $0x770] sm:$0xff]  }
  0xd0   :  { %13946 = vmatpush3.bf16.msra.mxu0 %v15544_v62  ;;  %v15587_v62 = vld [vmem:[%s20556_s1 + $0x7f0] sm:$0xff]  }
  0xd1   :  { %13968 = vmatpush3.bf16.msra.mxu1 %v15545_v63  ;;  %13947 = vmatprep.subr.bf16.mxu0 %v15546_v0  ;;  %v15588_v63 = vld [vmem:[%s20556_s1 + $0x730] sm:$0xff]  }
  0xd2   :  { %13969 = vmatprep.subr.bf16.mxu1 %v15547_v1  ;;  %v15589_v0 = vld [vmem:[%s20556_s1 + $0x7b0] sm:$0xff]   ;;  %v15590_v1 = vld [vmem:[%s20556_s1 + $0x778] sm:$0xff]  }
  0xd4   :  { %13948 = vmatpush3.bf16.msra.mxu0 %v15548_v2  ;;  %v15591_v2 = vld [vmem:[%s20556_s1 + $0x7f8] sm:$0xff]  }
  0xd5   :  { %13970 = vmatpush3.bf16.msra.mxu1 %v15549_v3  ;;  %13949 = vmatprep.subr.bf16.mxu0 %v15550_v4  ;;  %v15592_v3 = vld [vmem:[%s20556_s1 + $0x738] sm:$0xff]  }
  0xd6   :  { %13971 = vmatprep.subr.bf16.mxu1 %v15551_v5  ;;  %v15593_v4 = vld [vmem:[%s20556_s1 + $0x7b8] sm:$0xff]   ;;  %v50_v5 = vld [vmem:[%s20557_s0 + $0xe8] sm:$0xff] }
  0xd8   :  { %13950 = vmatpush3.bf16.msra.mxu0 %v15552_v6  ;;  %v194_v6 = vpack.c.bf16 %v50_v5, %v50_v5  ;;  %v15630_v5 = vld [vmem:[%s20556_s1 + $0x948] sm:$0xff]  }
  0xd9   :  { %13972 = vmatpush3.bf16.msra.mxu1 %v15553_v7  ;;  %13951 = vmatprep.subr.bf16.mxu0 %v15554_v8  ;;  %v52_v7 = vld [vmem:[%s20557_s0 + $0xf8] sm:$0xff]  ;;  %v49_v8 = vld [vmem:[%s20557_s0 + $0xe0] sm:$0xff] }
  0xda   :  { %13973 = vmatprep.subr.bf16.mxu1 %v15555_v9  ;;  %v51_v9 = vld [vmem:[%s20557_s0 + $0xf0] sm:$0xff] }
  0xdc   :  { %13952 = vmatpush3.bf16.msra.mxu0 %v15556_v10  ;;  %v196_v10 = vpack.c.bf16 %v52_v7, %v52_v7  ;;  %v15632_v7 = vld [vmem:[%s20556_s1 + $0x908] sm:$0xff]  }
  0xdd   :  { %13974 = vmatpush3.bf16.msra.mxu1 %v15557_v11  ;;  %13953 = vmatprep.subr.bf16.mxu0 %v15558_v12  ;;  %v193_v11 = vpack.c.bf16 %v49_v8, %v49_v8  ;;  %v195_v12 = vpack.c.bf16 %v51_v9, %v51_v9  ;;  %v15633_v8 = vld [vmem:[%s20556_s1 + $0x988] sm:$0xff]   ;;  %v15634_v9 = vld [vmem:[%s20556_s1 + $0x950] sm:$0xff]  }
  0xde   :  { %13975 = vmatprep.subr.bf16.mxu1 %v15559_v13  ;;  %v15594_v13 = vld [vmem:[%s20556_s1 + $0x840] sm:$0xff]  }
  0xe0   :  { %13954 = vmatpush3.bf16.msra.mxu0 %v15560_v14  ;;  %v15595_v14 = vld [vmem:[%s20556_s1 + $0x8c0] sm:$0xff]  }
  0xe1   :  { %13976 = vmatpush3.bf16.msra.mxu1 %v15561_v15  ;;  %13983 = vmatprep.subr.bf16.mxu0 %v15562_v24  ;;  %v15596_v15 = vld [vmem:[%s20556_s1 + $0x800] sm:$0xff]   ;;  %v15605_v24 = vld [vmem:[%s20556_s1 + $0x890] sm:$0xff]  }
  0xe2   :  { %14005 = vmatprep.subr.bf16.mxu1 %v15563_v25  ;;  %v15606_v25 = vld [vmem:[%s20556_s1 + $0x858] sm:$0xff]  }
  0xe3   :  { %10045 = vmatmul.mubr.bf16.vlgmr.msra.gmra.mrb[24].mxu0 %v189_v21  ;;  %v15602_v21 = vld [vmem:[%s20556_s1 + $0x850] sm:$0xff]  }
  0xe4   :  { %10085 = vmatmul.mubr.bf16.vlgmr.msra.gmra.mrb[24].mxu1 %v191_v23  ;;  %13984 = vmatpush3.bf16.msra.mxu0 %v15564_v26  ;;  %v15604_v23 = vld [vmem:[%s20556_s1 + $0x810] sm:$0xff]   ;;  %v15607_v26 = vld [vmem:[%s20556_s1 + $0x8d8] sm:$0xff]  }
  0xe5   :  { %14006 = vmatpush3.bf16.msra.mxu1 %v15565_v27  ;;  %13985 = vmatprep.subr.bf16.mxu0 %v15566_v28  ;;  %v15608_v28 = vld [vmem:[%s20556_s1 + $0x818] sm:$0xff]  }
  0xe6   :  { %14007 = vmatprep.subr.bf16.mxu1 %v15567_v29  ;;  %10124 = vmatprep.mubr.bf16.mxu0 %v194_v6  ;;  %v15631_v6 = vld [vmem:[%s20556_s1 + $0x9c8] sm:$0xff]  }
  0xe7   :  { %10164 = vmatprep.mubr.bf16.mxu1 %v196_v10  ;;  %v15635_v10 = vld [vmem:[%s20556_s1 + $0x9d0] sm:$0xff]  }
  0xe8   :  { %13986 = vmatpush3.bf16.msra.mxu0 %v15568_v30  ;;  %v15609_v30 = vld [vmem:[%s20556_s1 + $0x898] sm:$0xff]  }
  0xe9   :  { %14008 = vmatpush3.bf16.msra.mxu1 %v15569_v31  ;;  %13987 = vmatprep.subr.bf16.mxu0 %v15570_v32  ;;  %v15610_v32 = vld [vmem:[%s20556_s1 + $0x860] sm:$0xff]  }
  0xea   :  { %14009 = vmatprep.subr.bf16.mxu1 %v15571_v33 }
  0xec   :  { %13988 = vmatpush3.bf16.msra.mxu0 %v15572_v34 }
  0xed   :  { %14010 = vmatpush3.bf16.msra.mxu1 %v15573_v35  ;;  %13989 = vmatprep.subr.bf16.mxu0 %v15574_v36  ;;  %v15611_v35 = vld [vmem:[%s20556_s1 + $0x8e0] sm:$0xff]  }
  0xee   :  { %14011 = vmatprep.subr.bf16.mxu1 %v15575_v37 }
  0xf0   :  { %13990 = vmatpush3.bf16.msra.mxu0 %v15576_v39 }
  0xf1   :  { %14012 = vmatpush3.bf16.msra.mxu1 %v15577_v41  ;;  %13991 = vmatprep.subr.bf16.mxu0 %v15578_v43  ;;  %v15613_v41 = vld [vmem:[%s20556_s1 + $0x8a0] sm:$0xff]  }
  0xf2   :  { %14013 = vmatprep.subr.bf16.mxu1 %v15579_v46  ;;  %v15615_v46 = vld [vmem:[%s20556_s1 + $0x8e8] sm:$0xff]  }
  0xf4   :  { %13992 = vmatpush3.bf16.msra.mxu0 %v15580_v49  ;;  %v15618_v49 = vld [vmem:[%s20556_s1 + $0x870] sm:$0xff]  }
  0xf5   :  { %14014 = vmatpush3.bf16.msra.mxu1 %v15581_v51  ;;  %13993 = vmatprep.subr.bf16.mxu0 %v15582_v55  ;;  %v15620_v51 = vld [vmem:[%s20556_s1 + $0x830] sm:$0xff]   ;;  %v15624_v55 = vld [vmem:[%s20556_s1 + $0x838] sm:$0xff]  }
  0xf6   :  { %v13691_v38 = vpop.f32.mrb[0].mxu0  ;;  %14015 = vmatprep.subr.bf16.mxu1 %v15583_v57  ;;  %v54_v57 = vld [vmem:[%s20557_s0 + $0x108] sm:$0xff] }
  0xf7   :  { %v13713_v40 = vpop.f32.mrb[0].mxu1  ;;  %v13692_v42 = vpop.f32.mrb[1].mxu0 }
  0xf8   :  { %v13693_v44 = vadd.f32 %v13692_v42, %v13691_v38  ;;  %v13714_v45 = vpop.f32.mrb[1].mxu1  ;;  %v13694_v48 = vpop.f32.mrb[2].mxu0  ;;  %13994 = vmatpush3.bf16.msra.mxu0 %v15584_v59  ;;  %v15612_v38 = vld [vmem:[%s20556_s1 + $0x820] sm:$0xff]  }
  0xf9   :  { %v13715_v47 = vadd.f32 %v13714_v45, %v13713_v40  ;;  %v13716_v50 = vpop.f32.mrb[2].mxu1  ;;  %v13695_v53 = vpop.f32.mrb[3].mxu0  ;;  %14016 = vmatpush3.bf16.msra.mxu1 %v15585_v60  ;;  %13995 = vmatprep.subr.bf16.mxu0 %v15586_v61  ;;  %v15617_v48 = vld [vmem:[%s20556_s1 + $0x8a8] sm:$0xff]   ;;  %v53_v59 = vld [vmem:[%s20557_s0 + $0x100] sm:$0xff]  ;;  %v198_v60 = vpack.c.bf16 %v54_v57, %v54_v57 }
  0xfa   :  { %v9567_v54 = vadd.f32 %v13693_v44, %v12521_v52  ;;  %v13717_v56 = vpop.f32.mrb[3].mxu1  ;;  %14017 = vmatprep.subr.bf16.mxu1 %v15587_v62  ;;  %v15614_v44 = vld [vmem:[%s20556_s1 + $0x868] sm:$0xff]   ;;  %v15619_v50 = vld [vmem:[%s20556_s1 + $0x8f0] sm:$0xff]   ;;  %v15622_v53 = vld [vmem:[%s20556_s1 + $0x878] sm:$0xff]   ;;  %v197_v62 = vpack.c.bf16 %v53_v59, %v53_v59 }
  0xfb   :  { %v15621_v52 = vld [vmem:[%s20556_s1 + $0x8b0] sm:$0xff]   ;;  %v15625_v56 = vld [vmem:[%s20556_s1 + $0x8b8] sm:$0xff]   ;;  %v15662_v57 = vld [vmem:[%s20556_s1 + $0xa48] sm:$0xff]  }
  0xfc   :  { %v17352_v58 = vadd.f32 %v13715_v47, %v9567_v54  ;;  %13996 = vmatpush3.bf16.msra.mxu0 %v15588_v63  ;;  %v15616_v47 = vld [vmem:[%s20556_s1 + $0x828] sm:$0xff]   ;;  %v15623_v54 = vld [vmem:[%s20556_s1 + $0x8f8] sm:$0xff]   ;;  %v55_v63 = vld [vmem:[%s20557_s0 + $0x110] sm:$0xff] }
  0xfd   :  { %14018 = vmatpush3.bf16.msra.mxu1 %v15589_v0  ;;  %13997 = vmatprep.subr.bf16.mxu0 %v15590_v1  ;;  %v199_v0 = vpack.c.bf16 %v55_v63, %v55_v63  ;;  %v15626_v1 = vld [vmem:[%s20556_s1 + $0x940] sm:$0xff]   ;;  %v15664_v59 = vld [vmem:[%s20556_s1 + $0xa08] sm:$0xff]   ;;  %v15668_v63 = vld [vmem:[%s20556_s1 + $0xa10] sm:$0xff]  }
  0xfe   :  { %14019 = vmatprep.subr.bf16.mxu1 %v15591_v2  ;;  %v15627_v2 = vld [vmem:[%s20556_s1 + $0x9c0] sm:$0xff]  }
 0x100   :  { %13998 = vmatpush3.bf16.msra.mxu0 %v15592_v3  ;;  %v15628_v3 = vld [vmem:[%s20556_s1 + $0x900] sm:$0xff]  }
 0x101   :  { %14020 = vmatpush3.bf16.msra.mxu1 %v15593_v4  ;;  %14027 = vmatprep.subr.bf16.mxu0 %v15594_v13  ;;  %v15629_v4 = vld [vmem:[%s20556_s1 + $0x980] sm:$0xff]   ;;  %v15638_v13 = vld [vmem:[%s20556_s1 + $0x958] sm:$0xff]  }
 0x102   :  { %14049 = vmatprep.subr.bf16.mxu1 %v15595_v14 }
 0x103   :  { %10125 = vmatmul.mubr.bf16.vlgmr.msra.gmra.mrb[28].mxu0 %v193_v11  ;;  %v15636_v11 = vld [vmem:[%s20556_s1 + $0x910] sm:$0xff]  }
 0x104   :  { %10165 = vmatmul.mubr.bf16.vlgmr.msra.gmra.mrb[28].mxu1 %v195_v12  ;;  %14028 = vmatpush3.bf16.msra.mxu0 %v15596_v15  ;;  %v15637_v12 = vld [vmem:[%s20556_s1 + $0x990] sm:$0xff]   ;;  %v15639_v15 = vld [vmem:[%s20556_s1 + $0x9d8] sm:$0xff]  }
 0x105   :  { %14050 = vmatpush3.bf16.msra.mxu1 %v15597_v16  ;;  %14029 = vmatprep.subr.bf16.mxu0 %v15598_v17  ;;  %v15640_v17 = vld [vmem:[%s20556_s1 + $0x918] sm:$0xff]  }
 0x106   :  { %14051 = vmatprep.subr.bf16.mxu1 %v15599_v18  ;;  %10204 = vmatprep.mubr.bf16.mxu0 %v198_v60  ;;  %v15665_v60 = vld [vmem:[%s20556_s1 + $0xa88] sm:$0xff]  }
 0x108   :  { %14030 = vmatpush3.bf16.msra.mxu0 %v15600_v19  ;;  %v15641_v19 = vld [vmem:[%s20556_s1 + $0x998] sm:$0xff]  }
 0x109   :  { %14052 = vmatpush3.bf16.msra.mxu1 %v15601_v20  ;;  %14031 = vmatprep.subr.bf16.mxu0 %v15602_v21 }
 0x10a   :  { %14053 = vmatprep.subr.bf16.mxu1 %v15603_v22  ;;  %v15642_v22 = vld [vmem:[%s20556_s1 + $0x960] sm:$0xff]  }
 0x10c   :  { %14032 = vmatpush3.bf16.msra.mxu0 %v15604_v23 }
 0x10d   :  { %14054 = vmatpush3.bf16.msra.mxu1 %v15605_v24  ;;  %14033 = vmatprep.subr.bf16.mxu0 %v15606_v25  ;;  %v15643_v25 = vld [vmem:[%s20556_s1 + $0x9e0] sm:$0xff]  }
 0x10e   :  { %14055 = vmatprep.subr.bf16.mxu1 %v15607_v26 }
 0x110   :  { %14034 = vmatpush3.bf16.msra.mxu0 %v15608_v28  ;;  %v15644_v28 = vld [vmem:[%s20556_s1 + $0x920] sm:$0xff]  }
 0x111   :  { %14056 = vmatpush3.bf16.msra.mxu1 %v15609_v30  ;;  %14035 = vmatprep.subr.bf16.mxu0 %v15610_v32  ;;  %v15645_v30 = vld [vmem:[%s20556_s1 + $0x9a0] sm:$0xff]  }
 0x112   :  { %14057 = vmatprep.subr.bf16.mxu1 %v15611_v35  ;;  %v15648_v35 = vld [vmem:[%s20556_s1 + $0x928] sm:$0xff]  }
 0x114   :  { %14036 = vmatpush3.bf16.msra.mxu0 %v15612_v38  ;;  %v15651_v38 = vld [vmem:[%s20556_s1 + $0x9f0] sm:$0xff]  }
 0x115   :  { %14058 = vmatpush3.bf16.msra.mxu1 %v15613_v41  ;;  %14037 = vmatprep.subr.bf16.mxu0 %v15614_v44  ;;  %v15654_v41 = vld [vmem:[%s20556_s1 + $0x978] sm:$0xff]  }
 0x116   :  { %v13735_v27 = vpop.f32.mrb[4].mxu0  ;;  %14059 = vmatprep.subr.bf16.mxu1 %v15615_v46  ;;  %v15657_v44 = vld [vmem:[%s20556_s1 + $0x9b8] sm:$0xff]  }
 0x117   :  { %v13757_v29 = vpop.f32.mrb[4].mxu1  ;;  %v13736_v31 = vpop.f32.mrb[5].mxu0  ;;  %v60_v46 = vld [vmem:[%s20557_s0 + $0x138] sm:$0xff] }
 0x118   :  { %v13737_v33 = vadd.f32 %v13736_v31, %v13735_v27  ;;  %v13758_v34 = vpop.f32.mrb[5].mxu1  ;;  %v13738_v37 = vpop.f32.mrb[6].mxu0  ;;  %14038 = vmatpush3.bf16.msra.mxu0 %v15616_v47 }
 0x119   :  { %v13759_v36 = vadd.f32 %v13758_v34, %v13757_v29  ;;  %v13760_v40 = vpop.f32.mrb[6].mxu1  ;;  %v13739_v42 = vpop.f32.mrb[7].mxu0  ;;  %14060 = vmatpush3.bf16.msra.mxu1 %v15617_v48  ;;  %14039 = vmatprep.subr.bf16.mxu0 %v15618_v49  ;;  %v15647_v34 = vld [vmem:[%s20556_s1 + $0x9e8] sm:$0xff]   ;;  %v15650_v37 = vld [vmem:[%s20556_s1 + $0x970] sm:$0xff]   ;;  %v204_v48 = vpack.c.bf16 %v60_v46, %v60_v46  ;;  %v57_v49 = vld [vmem:[%s20557_s0 + $0x120] sm:$0xff] }
 0x11a   :  { %v9647_v39 = vadd.f32 %v13737_v33, %v17352_v58  ;;  %v13761_v45 = vpop.f32.mrb[7].mxu1  ;;  %14061 = vmatprep.subr.bf16.mxu1 %v15619_v50  ;;  %v56_v58 = vld [vmem:[%s20557_s0 + $0x118] sm:$0xff]  ;;  %v15646_v33 = vld [vmem:[%s20556_s1 + $0x968] sm:$0xff]   ;;  %v15653_v40 = vld [vmem:[%s20556_s1 + $0x9b0] sm:$0xff]  }
 0x11b   :  { %v200_v61 = vpack.c.bf16 %v56_v58, %v56_v58  ;;  %v15655_v42 = vld [vmem:[%s20556_s1 + $0x9f8] sm:$0xff]   ;;  %v58_v45 = vld [vmem:[%s20557_s0 + $0x128] sm:$0xff]  ;;  %v59_v50 = vld [vmem:[%s20557_s0 + $0x130] sm:$0xff] }
 0x11c   :  { %v17457_v43 = vadd.f32 %v13759_v36, %v9647_v39  ;;  %14040 = vmatpush3.bf16.msra.mxu0 %v15620_v51  ;;  %v15649_v36 = vld [vmem:[%s20556_s1 + $0x9a8] sm:$0xff]   ;;  %v15652_v39 = vld [vmem:[%s20556_s1 + $0x930] sm:$0xff]   ;;  %v202_v47 = vpack.c.bf16 %v58_v45, %v58_v45  ;;  %v201_v51 = vpack.c.bf16 %v57_v49, %v57_v49 }
 0x11d   :  { %14062 = vmatpush3.bf16.msra.mxu1 %v15621_v52  ;;  %14041 = vmatprep.subr.bf16.mxu0 %v15622_v53  ;;  %v203_v52 = vpack.c.bf16 %v59_v50, %v59_v50  ;;  %v15658_v53 = vld [vmem:[%s20556_s1 + $0xa40] sm:$0xff]   ;;  %v15663_v58 = vld [vmem:[%s20556_s1 + $0xac8] sm:$0xff]   ;;  %v15698_v49 = vld [vmem:[%s20556_s1 + $0xb50] sm:$0xff]  }
 0x11e   :  { %14063 = vmatprep.subr.bf16.mxu1 %v15623_v54  ;;  %10244 = vmatprep.mubr.bf16.mxu1 %v200_v61  ;;  %v15659_v54 = vld [vmem:[%s20556_s1 + $0xac0] sm:$0xff]   ;;  %v15666_v61 = vld [vmem:[%s20556_s1 + $0xa50] sm:$0xff]   ;;  %v15694_v45 = vld [vmem:[%s20556_s1 + $0xb48] sm:$0xff]  }
 0x11f   :  { %v15695_v46 = vld [vmem:[%s20556_s1 + $0xbc8] sm:$0xff]   ;;  %v15699_v50 = vld [vmem:[%s20556_s1 + $0xbd0] sm:$0xff]  }
 0x120   :  { %14042 = vmatpush3.bf16.msra.mxu0 %v15624_v55  ;;  %v15660_v55 = vld [vmem:[%s20556_s1 + $0xa00] sm:$0xff]  }
 0x121   :  { %14064 = vmatpush3.bf16.msra.mxu1 %v15625_v56  ;;  %14071 = vmatprep.subr.bf16.mxu0 %v15626_v1  ;;  %v15661_v56 = vld [vmem:[%s20556_s1 + $0xa80] sm:$0xff]   ;;  %v15670_v1 = vld [vmem:[%s20556_s1 + $0xa58] sm:$0xff]  }
 0x122   :  { %14093 = vmatprep.subr.bf16.mxu1 %v15627_v2  ;;  %v15671_v2 = vld [vmem:[%s20556_s1 + $0xad8] sm:$0xff]  }
 0x123   :  { %10205 = vmatmul.mubr.bf16.vlgmr.msra.gmra.mrb[32].mxu0 %v197_v62  ;;  %v15667_v62 = vld [vmem:[%s20556_s1 + $0xad0] sm:$0xff]  }
 0x124   :  { %10245 = vmatmul.mubr.bf16.vlgmr.msra.gmra.mrb[32].mxu1 %v199_v0  ;;  %14072 = vmatpush3.bf16.msra.mxu0 %v15628_v3  ;;  %v15669_v0 = vld [vmem:[%s20556_s1 + $0xa90] sm:$0xff]  }
 0x125   :  { %14094 = vmatpush3.bf16.msra.mxu1 %v15629_v4  ;;  %14073 = vmatprep.subr.bf16.mxu0 %v15630_v5  ;;  %v15672_v4 = vld [vmem:[%s20556_s1 + $0xa18] sm:$0xff]  }
 0x126   :  { %14095 = vmatprep.subr.bf16.mxu1 %v15631_v6  ;;  %10284 = vmatprep.mubr.bf16.mxu0 %v202_v47  ;;  %v15673_v6 = vld [vmem:[%s20556_s1 + $0xa98] sm:$0xff]   ;;  %v15696_v47 = vld [vmem:[%s20556_s1 + $0xb08] sm:$0xff]  }
 0x127   :  { %10324 = vmatprep.mubr.bf16.mxu1 %v204_v48  ;;  %v15697_v48 = vld [vmem:[%s20556_s1 + $0xb88] sm:$0xff]  }
 0x128   :  { %14074 = vmatpush3.bf16.msra.mxu0 %v15632_v7 }
 0x129   :  { %14096 = vmatpush3.bf16.msra.mxu1 %v15633_v8  ;;  %14075 = vmatprep.subr.bf16.mxu0 %v15634_v9  ;;  %v15674_v8 = vld [vmem:[%s20556_s1 + $0xa60] sm:$0xff]  }
 0x12a   :  { %14097 = vmatprep.subr.bf16.mxu1 %v15635_v10 }
 0x12c   :  { %14076 = vmatpush3.bf16.msra.mxu0 %v15636_v11  ;;  %v15675_v11 = vld [vmem:[%s20556_s1 + $0xae0] sm:$0xff]  }
 0x12d   :  { %14098 = vmatpush3.bf16.msra.mxu1 %v15637_v12  ;;  %14077 = vmatprep.subr.bf16.mxu0 %v15638_v13 }
 0x12e   :  { %14099 = vmatprep.subr.bf16.mxu1 %v15639_v15 }
 0x130   :  { %14078 = vmatpush3.bf16.msra.mxu0 %v15640_v17  ;;  %v15677_v17 = vld [vmem:[%s20556_s1 + $0xaa0] sm:$0xff]  }
 0x131   :  { %14100 = vmatpush3.bf16.msra.mxu1 %v15641_v19  ;;  %14079 = vmatprep.subr.bf16.mxu0 %v15642_v22  ;;  %v15679_v22 = vld [vmem:[%s20556_s1 + $0xae8] sm:$0xff]  }
 0x132   :  { %14101 = vmatprep.subr.bf16.mxu1 %v15643_v25  ;;  %v15682_v25 = vld [vmem:[%s20556_s1 + $0xa70] sm:$0xff]  }
 0x134   :  { %14080 = vmatpush3.bf16.msra.mxu0 %v15644_v28  ;;  %v15685_v28 = vld [vmem:[%s20556_s1 + $0xab0] sm:$0xff]  }
 0x135   :  { %14102 = vmatpush3.bf16.msra.mxu1 %v15645_v30  ;;  %14081 = vmatprep.subr.bf16.mxu0 %v15646_v33  ;;  %v15687_v30 = vld [vmem:[%s20556_s1 + $0xaf8] sm:$0xff]   ;;  %v62_v33 = vld [vmem:[%s20557_s0 + $0x148] sm:$0xff] }
 0x136   :  { %v13779_v14 = vpop.f32.mrb[8].mxu0  ;;  %14103 = vmatprep.subr.bf16.mxu1 %v15647_v34  ;;  %v206_v34 = vpack.c.bf16 %v62_v33, %v62_v33  ;;  %v15726_v33 = vld [vmem:[%s20556_s1 + $0xc48] sm:$0xff]  }
 0x137   :  { %v13801_v16 = vpop.f32.mrb[8].mxu1  ;;  %v13780_v18 = vpop.f32.mrb[9].mxu0 }
 0x138   :  { %v13781_v20 = vadd.f32 %v13780_v18, %v13779_v14  ;;  %v13802_v21 = vpop.f32.mrb[9].mxu1  ;;  %v13782_v24 = vpop.f32.mrb[10].mxu0  ;;  %14082 = vmatpush3.bf16.msra.mxu0 %v15648_v35  ;;  %v15676_v14 = vld [vmem:[%s20556_s1 + $0xa20] sm:$0xff]   ;;  %v64_v35 = vld [vmem:[%s20557_s0 + $0x158] sm:$0xff] }
 0x139   :  { %v13803_v23 = vadd.f32 %v13802_v21, %v13801_v16  ;;  %v13804_v27 = vpop.f32.mrb[10].mxu1  ;;  %v13783_v29 = vpop.f32.mrb[11].mxu0  ;;  %14104 = vmatpush3.bf16.msra.mxu1 %v15649_v36  ;;  %14083 = vmatprep.subr.bf16.mxu0 %v15650_v37  ;;  %v15681_v24 = vld [vmem:[%s20556_s1 + $0xaa8] sm:$0xff]   ;;  %v61_v36 = vld [vmem:[%s20557_s0 + $0x140] sm:$0xff]  ;;  %v63_v37 = vld [vmem:[%s20557_s0 + $0x150] sm:$0xff] }
 0x13a   :  { %v9727_v26 = vadd.f32 %v13781_v20, %v17457_v43  ;;  %v13805_v32 = vpop.f32.mrb[11].mxu1  ;;  %14105 = vmatprep.subr.bf16.mxu1 %v15651_v38  ;;  %v15656_v43 = vld [vmem:[%s20556_s1 + $0x938] sm:$0xff]   ;;  %v15678_v20 = vld [vmem:[%s20556_s1 + $0xa68] sm:$0xff]   ;;  %v15684_v27 = vld [vmem:[%s20556_s1 + $0xa30] sm:$0xff]   ;;  %v208_v38 = vpack.c.bf16 %v64_v35, %v64_v35 }
 0x13b   :  { %v15686_v29 = vld [vmem:[%s20556_s1 + $0xa78] sm:$0xff]   ;;  %v15728_v35 = vld [vmem:[%s20556_s1 + $0xc08] sm:$0xff]  }
 0x13c   :  { %v17568_v31 = vadd.f32 %v13803_v23, %v9727_v26  ;;  %14084 = vmatpush3.bf16.msra.mxu0 %v15652_v39  ;;  %v15680_v23 = vld [vmem:[%s20556_s1 + $0xa28] sm:$0xff]   ;;  %v15683_v26 = vld [vmem:[%s20556_s1 + $0xaf0] sm:$0xff]   ;;  %v15689_v32 = vld [vmem:[%s20556_s1 + $0xab8] sm:$0xff]   ;;  %v205_v39 = vpack.c.bf16 %v61_v36, %v61_v36 }
 0x13d   :  { %14106 = vmatpush3.bf16.msra.mxu1 %v15653_v40  ;;  %14085 = vmatprep.subr.bf16.mxu0 %v15654_v41  ;;  %v207_v40 = vpack.c.bf16 %v63_v37, %v63_v37  ;;  %v15690_v41 = vld [vmem:[%s20556_s1 + $0xb40] sm:$0xff]   ;;  %v15729_v36 = vld [vmem:[%s20556_s1 + $0xc88] sm:$0xff]   ;;  %v15730_v37 = vld [vmem:[%s20556_s1 + $0xc50] sm:$0xff]  }
 0x13e   :  { %14107 = vmatprep.subr.bf16.mxu1 %v15655_v42  ;;  %v15691_v42 = vld [vmem:[%s20556_s1 + $0xbc0] sm:$0xff]  }
 0x140   :  { %14086 = vmatpush3.bf16.msra.mxu0 %v15656_v43  ;;  %v15692_v43 = vld [vmem:[%s20556_s1 + $0xb00] sm:$0xff]  }
 0x141   :  { %14108 = vmatpush3.bf16.msra.mxu1 %v15657_v44  ;;  %14115 = vmatprep.subr.bf16.mxu0 %v15658_v53  ;;  %v15693_v44 = vld [vmem:[%s20556_s1 + $0xb80] sm:$0xff]   ;;  %v15702_v53 = vld [vmem:[%s20556_s1 + $0xb58] sm:$0xff]  }
 0x142   :  { %14137 = vmatprep.subr.bf16.mxu1 %v15659_v54  ;;  %v15703_v54 = vld [vmem:[%s20556_s1 + $0xbd8] sm:$0xff]  }
 0x143   :  { %10285 = vmatmul.mubr.bf16.vlgmr.msra.gmra.mrb[36].mxu0 %v201_v51  ;;  %v15700_v51 = vld [vmem:[%s20556_s1 + $0xb10] sm:$0xff]  }
 0x144   :  { %10325 = vmatmul.mubr.bf16.vlgmr.msra.gmra.mrb[36].mxu1 %v203_v52  ;;  %14116 = vmatpush3.bf16.msra.mxu0 %v15660_v55  ;;  %v15701_v52 = vld [vmem:[%s20556_s1 + $0xb90] sm:$0xff]  }
 0x145   :  { %14138 = vmatpush3.bf16.msra.mxu1 %v15661_v56  ;;  %14117 = vmatprep.subr.bf16.mxu0 %v15662_v57  ;;  %v15704_v56 = vld [vmem:[%s20556_s1 + $0xb18] sm:$0xff]  }
 0x146   :  { %14139 = vmatprep.subr.bf16.mxu1 %v15663_v58  ;;  %10364 = vmatprep.mubr.bf16.mxu0 %v206_v34  ;;  %v15705_v58 = vld [vmem:[%s20556_s1 + $0xb98] sm:$0xff]   ;;  %v15727_v34 = vld [vmem:[%s20556_s1 + $0xcc8] sm:$0xff]  }
 0x147   :  { %10404 = vmatprep.mubr.bf16.mxu1 %v208_v38  ;;  %v15731_v38 = vld [vmem:[%s20556_s1 + $0xcd0] sm:$0xff]  }
 0x148   :  { %14118 = vmatpush3.bf16.msra.mxu0 %v15664_v59 }
 0x149   :  { %14140 = vmatpush3.bf16.msra.mxu1 %v15665_v60  ;;  %14119 = vmatprep.subr.bf16.mxu0 %v15666_v61  ;;  %v15706_v60 = vld [vmem:[%s20556_s1 + $0xb60] sm:$0xff]  }
 0x14a   :  { %14141 = vmatprep.subr.bf16.mxu1 %v15667_v62 }
 0x14c   :  { %14120 = vmatpush3.bf16.msra.mxu0 %v15668_v63  ;;  %v15707_v63 = vld [vmem:[%s20556_s1 + $0xbe0] sm:$0xff]  }
 0x14d   :  { %14142 = vmatpush3.bf16.msra.mxu1 %v15669_v0  ;;  %14121 = vmatprep.subr.bf16.mxu0 %v15670_v1 }
 0x14e   :  { %14143 = vmatprep.subr.bf16.mxu1 %v15671_v2  ;;  %v15708_v2 = vld [vmem:[%s20556_s1 + $0xb20] sm:$0xff]  }
 0x150   :  { %14122 = vmatpush3.bf16.msra.mxu0 %v15672_v4 }
 0x151   :  { %14144 = vmatpush3.bf16.msra.mxu1 %v15673_v6  ;;  %14123 = vmatprep.subr.bf16.mxu0 %v15674_v8  ;;  %v15710_v8 = vld [vmem:[%s20556_s1 + $0xb68] sm:$0xff]  }
 0x152   :  { %14145 = vmatprep.subr.bf16.mxu1 %v15675_v11  ;;  %v15712_v11 = vld [vmem:[%s20556_s1 + $0xb28] sm:$0xff]  }
 0x154   :  { %14124 = vmatpush3.bf16.msra.mxu0 %v15676_v14  ;;  %v15715_v14 = vld [vmem:[%s20556_s1 + $0xbf0] sm:$0xff]  }
 0x155   :  { %14146 = vmatpush3.bf16.msra.mxu1 %v15677_v17  ;;  %14125 = vmatprep.subr.bf16.mxu0 %v15678_v20  ;;  %v15718_v17 = vld [vmem:[%s20556_s1 + $0xb78] sm:$0xff]  }
 0x156   :  { %v13823_v3 = vpop.f32.mrb[12].mxu0  ;;  %14147 = vmatprep.subr.bf16.mxu1 %v15679_v22  ;;  %v15721_v20 = vld [vmem:[%s20556_s1 + $0xbb8] sm:$0xff]  }
 0x157   :  { %v13845_v5 = vpop.f32.mrb[12].mxu1  ;;  %v13824_v7 = vpop.f32.mrb[13].mxu0  ;;  %v68_v22 = vld [vmem:[%s20557_s0 + $0x178] sm:$0xff] }
 0x158   :  { %v13825_v9 = vadd.f32 %v13824_v7, %v13823_v3  ;;  %v13846_v10 = vpop.f32.mrb[13].mxu1  ;;  %v13826_v13 = vpop.f32.mrb[14].mxu0  ;;  %14126 = vmatpush3.bf16.msra.mxu0 %v15680_v23  ;;  %v65_v23 = vld [vmem:[%s20557_s0 + $0x160] sm:$0xff] }
 0x159   :  { %v13847_v12 = vadd.f32 %v13846_v10, %v13845_v5  ;;  %v13848_v16 = vpop.f32.mrb[14].mxu1  ;;  %v13827_v18 = vpop.f32.mrb[15].mxu0  ;;  %14148 = vmatpush3.bf16.msra.mxu1 %v15681_v24  ;;  %14127 = vmatprep.subr.bf16.mxu0 %v15682_v25  ;;  %v15709_v5 = vld [vmem:[%s20556_s1 + $0xba0] sm:$0xff]   ;;  %v15711_v10 = vld [vmem:[%s20556_s1 + $0xbe8] sm:$0xff]   ;;  %v15714_v13 = vld [vmem:[%s20556_s1 + $0xb70] sm:$0xff]   ;;  %v212_v25 = vpack.c.bf16 %v68_v22, %v68_v22 }
 0x15a   :  { %v9807_v15 = vadd.f32 %v13825_v9, %v17568_v31  ;;  %v13849_v21 = vpop.f32.mrb[15].mxu1  ;;  %14149 = vmatprep.subr.bf16.mxu1 %v15683_v26  ;;  %v15688_v31 = vld [vmem:[%s20556_s1 + $0xa38] sm:$0xff]   ;;  %v15717_v16 = vld [vmem:[%s20556_s1 + $0xbb0] sm:$0xff]   ;;  %v209_v26 = vpack.c.bf16 %v65_v23, %v65_v23  ;;  %v15759_v22 = vld [vmem:[%s20556_s1 + $0xdc8] sm:$0xff]  }
 0x15b   :  { %v15719_v18 = vld [vmem:[%s20556_s1 + $0xbf8] sm:$0xff]   ;;  %v66_v21 = vld [vmem:[%s20557_s0 + $0x168] sm:$0xff] }
 0x15c   :  { %v17679_v19 = vadd.f32 %v13847_v12, %v9807_v15  ;;  %14128 = vmatpush3.bf16.msra.mxu0 %v15684_v27  ;;  %v15713_v12 = vld [vmem:[%s20556_s1 + $0xba8] sm:$0xff]   ;;  %v15716_v15 = vld [vmem:[%s20556_s1 + $0xb30] sm:$0xff]   ;;  %v210_v24 = vpack.c.bf16 %v66_v21, %v66_v21 }
 0x15d   :  { %14150 = vmatpush3.bf16.msra.mxu1 %v15685_v28  ;;  %14129 = vmatprep.subr.bf16.mxu0 %v15686_v29  ;;  %v67_v27 = vld [vmem:[%s20557_s0 + $0x170] sm:$0xff]  ;;  %v15722_v29 = vld [vmem:[%s20556_s1 + $0xc40] sm:$0xff]   ;;  %v15758_v21 = vld [vmem:[%s20556_s1 + $0xd48] sm:$0xff]  }
 0x15e   :  { %14151 = vmatprep.subr.bf16.mxu1 %v15687_v30  ;;  %v211_v28 = vpack.c.bf16 %v67_v27, %v67_v27  ;;  %v15723_v30 = vld [vmem:[%s20556_s1 + $0xcc0] sm:$0xff]   ;;  %v15760_v23 = vld [vmem:[%s20556_s1 + $0xd08] sm:$0xff]   ;;  %v15764_v27 = vld [vmem:[%s20556_s1 + $0xd10] sm:$0xff]  }
 0x160   :  { %14130 = vmatpush3.bf16.msra.mxu0 %v15688_v31  ;;  %v15724_v31 = vld [vmem:[%s20556_s1 + $0xc00] sm:$0xff]  }
 0x161   :  { %14152 = vmatpush3.bf16.msra.mxu1 %v15689_v32  ;;  %14159 = vmatprep.subr.bf16.mxu0 %v15690_v41  ;;  %v15725_v32 = vld [vmem:[%s20556_s1 + $0xc80] sm:$0xff]   ;;  %v15734_v41 = vld [vmem:[%s20556_s1 + $0xc58] sm:$0xff]  }
 0x162   :  { %14181 = vmatprep.subr.bf16.mxu1 %v15691_v42 }
 0x163   :  { %10365 = vmatmul.mubr.bf16.vlgmr.msra.gmra.mrb[40].mxu0 %v205_v39  ;;  %v15732_v39 = vld [vmem:[%s20556_s1 + $0xc10] sm:$0xff]  }
 0x164   :  { %10405 = vmatmul.mubr.bf16.vlgmr.msra.gmra.mrb[40].mxu1 %v207_v40  ;;  %14160 = vmatpush3.bf16.msra.mxu0 %v15692_v43  ;;  %v15733_v40 = vld [vmem:[%s20556_s1 + $0xc90] sm:$0xff]   ;;  %v15735_v43 = vld [vmem:[%s20556_s1 + $0xcd8] sm:$0xff]  }
 0x165   :  { %14182 = vmatpush3.bf16.msra.mxu1 %v15693_v44  ;;  %14161 = vmatprep.subr.bf16.mxu0 %v15694_v45  ;;  %v15736_v45 = vld [vmem:[%s20556_s1 + $0xc18] sm:$0xff]  }
 0x166   :  { %14183 = vmatprep.subr.bf16.mxu1 %v15695_v46  ;;  %10444 = vmatprep.mubr.bf16.mxu0 %v210_v24  ;;  %v15761_v24 = vld [vmem:[%s20556_s1 + $0xd88] sm:$0xff]  }
 0x167   :  { %10484 = vmatprep.mubr.bf16.mxu1 %v212_v25  ;;  %v15762_v25 = vld [vmem:[%s20556_s1 + $0xd50] sm:$0xff]  }
 0x168   :  { %14162 = vmatpush3.bf16.msra.mxu0 %v15696_v47  ;;  %v15737_v47 = vld [vmem:[%s20556_s1 + $0xc98] sm:$0xff]  }
 0x169   :  { %14184 = vmatpush3.bf16.msra.mxu1 %v15697_v48  ;;  %14163 = vmatprep.subr.bf16.mxu0 %v15698_v49 }
 0x16a   :  { %14185 = vmatprep.subr.bf16.mxu1 %v15699_v50  ;;  %v15738_v50 = vld [vmem:[%s20556_s1 + $0xc60] sm:$0xff]  }
 0x16c   :  { %14164 = vmatpush3.bf16.msra.mxu0 %v15700_v51 }
 0x16d   :  { %14186 = vmatpush3.bf16.msra.mxu1 %v15701_v52  ;;  %14165 = vmatprep.subr.bf16.mxu0 %v15702_v53  ;;  %v15739_v53 = vld [vmem:[%s20556_s1 + $0xce0] sm:$0xff]  }
 0x16e   :  { %14187 = vmatprep.subr.bf16.mxu1 %v15703_v54 }
 0x170   :  { %14166 = vmatpush3.bf16.msra.mxu0 %v15704_v56  ;;  %v15740_v56 = vld [vmem:[%s20556_s1 + $0xc20] sm:$0xff]  }
 0x171   :  { %14188 = vmatpush3.bf16.msra.mxu1 %v15705_v58  ;;  %14167 = vmatprep.subr.bf16.mxu0 %v15706_v60  ;;  %v15741_v58 = vld [vmem:[%s20556_s1 + $0xca0] sm:$0xff]  }
 0x172   :  { %14189 = vmatprep.subr.bf16.mxu1 %v15707_v63  ;;  %v15744_v63 = vld [vmem:[%s20556_s1 + $0xc28] sm:$0xff]  }
 0x174   :  { %14168 = vmatpush3.bf16.msra.mxu0 %v15708_v2  ;;  %v15747_v2 = vld [vmem:[%s20556_s1 + $0xcf0] sm:$0xff]  }
 0x175   :  { %14190 = vmatpush3.bf16.msra.mxu1 %v15709_v5  ;;  %14169 = vmatprep.subr.bf16.mxu0 %v15710_v8  ;;  %v15750_v5 = vld [vmem:[%s20556_s1 + $0xc78] sm:$0xff]  }
 0x176   :  { %v13867_v55 = vpop.f32.mrb[16].mxu0  ;;  %14191 = vmatprep.subr.bf16.mxu1 %v15711_v10  ;;  %v15753_v8 = vld [vmem:[%s20556_s1 + $0xcb8] sm:$0xff]  }
 0x177   :  { %v13889_v57 = vpop.f32.mrb[16].mxu1  ;;  %v13868_v59 = vpop.f32.mrb[17].mxu0  ;;  %v72_v10 = vld [vmem:[%s20557_s0 + $0x198] sm:$0xff] }
 0x178   :  { %v13869_v61 = vadd.f32 %v13868_v59, %v13867_v55  ;;  %v13890_v62 = vpop.f32.mrb[17].mxu1  ;;  %v13870_v1 = vpop.f32.mrb[18].mxu0  ;;  %14170 = vmatpush3.bf16.msra.mxu0 %v15712_v11 }
 0x179   :  { %v13891_v0 = vadd.f32 %v13890_v62, %v13889_v57  ;;  %v13892_v4 = vpop.f32.mrb[18].mxu1  ;;  %v13871_v6 = vpop.f32.mrb[19].mxu0  ;;  %14192 = vmatpush3.bf16.msra.mxu1 %v15713_v12  ;;  %14171 = vmatprep.subr.bf16.mxu0 %v15714_v13  ;;  %v15743_v62 = vld [vmem:[%s20556_s1 + $0xce8] sm:$0xff]   ;;  %v15746_v1 = vld [vmem:[%s20556_s1 + $0xc70] sm:$0xff]   ;;  %v216_v12 = vpack.c.bf16 %v72_v10, %v72_v10  ;;  %v69_v13 = vld [vmem:[%s20557_s0 + $0x180] sm:$0xff] }
 0x17a   :  { %v9887_v3 = vadd.f32 %v13869_v61, %v17679_v19  ;;  %v13893_v9 = vpop.f32.mrb[19].mxu1  ;;  %14193 = vmatprep.subr.bf16.mxu1 %v15715_v14  ;;  %v15720_v19 = vld [vmem:[%s20556_s1 + $0xb38] sm:$0xff]   ;;  %v15742_v61 = vld [vmem:[%s20556_s1 + $0xc68] sm:$0xff]   ;;  %v15749_v4 = vld [vmem:[%s20556_s1 + $0xcb0] sm:$0xff]  }
 0x17b   :  { %v15751_v6 = vld [vmem:[%s20556_s1 + $0xcf8] sm:$0xff]   ;;  %v70_v9 = vld [vmem:[%s20557_s0 + $0x188] sm:$0xff]  ;;  %v71_v14 = vld [vmem:[%s20557_s0 + $0x190] sm:$0xff] }
 0x17c   :  { %v17790_v7 = vadd.f32 %v13891_v0, %v9887_v3  ;;  %14172 = vmatpush3.bf16.msra.mxu0 %v15716_v15  ;;  %v15745_v0 = vld [vmem:[%s20556_s1 + $0xca8] sm:$0xff]   ;;  %v15748_v3 = vld [vmem:[%s20556_s1 + $0xc30] sm:$0xff]   ;;  %v214_v11 = vpack.c.bf16 %v70_v9, %v70_v9  ;;  %v213_v15 = vpack.c.bf16 %v69_v13, %v69_v13 }
 0x17d   :  { %14194 = vmatpush3.bf16.msra.mxu1 %v15717_v16  ;;  %14173 = vmatprep.subr.bf16.mxu0 %v15718_v17  ;;  %v215_v16 = vpack.c.bf16 %v71_v14, %v71_v14  ;;  %v15754_v17 = vld [vmem:[%s20556_s1 + $0xd40] sm:$0xff]   ;;  %v15790_v9 = vld [vmem:[%s20556_s1 + $0xe48] sm:$0xff]   ;;  %v15794_v13 = vld [vmem:[%s20556_s1 + $0xe50] sm:$0xff]  }
 0x17e   :  { %14195 = vmatprep.subr.bf16.mxu1 %v15719_v18  ;;  %v15755_v18 = vld [vmem:[%s20556_s1 + $0xdc0] sm:$0xff]   ;;  %v15791_v10 = vld [vmem:[%s20556_s1 + $0xec8] sm:$0xff]   ;;  %v15795_v14 = vld [vmem:[%s20556_s1 + $0xed0] sm:$0xff]  }
 0x180   :  { %14174 = vmatpush3.bf16.msra.mxu0 %v15720_v19  ;;  %v15756_v19 = vld [vmem:[%s20556_s1 + $0xd00] sm:$0xff]  }
 0x181   :  { %14196 = vmatpush3.bf16.msra.mxu1 %v15721_v20  ;;  %14203 = vmatprep.subr.bf16.mxu0 %v15722_v29  ;;  %v15757_v20 = vld [vmem:[%s20556_s1 + $0xd80] sm:$0xff]   ;;  %v15766_v29 = vld [vmem:[%s20556_s1 + $0xd58] sm:$0xff]  }
 0x182   :  { %14225 = vmatprep.subr.bf16.mxu1 %v15723_v30  ;;  %v15767_v30 = vld [vmem:[%s20556_s1 + $0xdd8] sm:$0xff]  }
 0x183   :  { %10445 = vmatmul.mubr.bf16.vlgmr.msra.gmra.mrb[44].mxu0 %v209_v26  ;;  %v15763_v26 = vld [vmem:[%s20556_s1 + $0xdd0] sm:$0xff]  }
 0x184   :  { %10485 = vmatmul.mubr.bf16.vlgmr.msra.gmra.mrb[44].mxu1 %v211_v28  ;;  %14204 = vmatpush3.bf16.msra.mxu0 %v15724_v31  ;;  %v15765_v28 = vld [vmem:[%s20556_s1 + $0xd90] sm:$0xff]  }
 0x185   :  { %14226 = vmatpush3.bf16.msra.mxu1 %v15725_v32  ;;  %14205 = vmatprep.subr.bf16.mxu0 %v15726_v33  ;;  %v15768_v32 = vld [vmem:[%s20556_s1 + $0xd18] sm:$0xff]  }
 0x186   :  { %14227 = vmatprep.subr.bf16.mxu1 %v15727_v34  ;;  %10524 = vmatprep.mubr.bf16.mxu0 %v214_v11  ;;  %v15769_v34 = vld [vmem:[%s20556_s1 + $0xd98] sm:$0xff]   ;;  %v15792_v11 = vld [vmem:[%s20556_s1 + $0xe08] sm:$0xff]  }
 0x187   :  { %10564 = vmatprep.mubr.bf16.mxu1 %v216_v12  ;;  %v15793_v12 = vld [vmem:[%s20556_s1 + $0xe88] sm:$0xff]  }
 0x188   :  { %14206 = vmatpush3.bf16.msra.mxu0 %v15728_v35 }
 0x189   :  { %14228 = vmatpush3.bf16.msra.mxu1 %v15729_v36  ;;  %14207 = vmatprep.subr.bf16.mxu0 %v15730_v37  ;;  %v15770_v36 = vld [vmem:[%s20556_s1 + $0xd60] sm:$0xff]  }
 0x18a   :  { %14229 = vmatprep.subr.bf16.mxu1 %v15731_v38 }
 0x18c   :  { %14208 = vmatpush3.bf16.msra.mxu0 %v15732_v39  ;;  %v15771_v39 = vld [vmem:[%s20556_s1 + $0xde0] sm:$0xff]  }
 0x18d   :  { %14230 = vmatpush3.bf16.msra.mxu1 %v15733_v40  ;;  %14209 = vmatprep.subr.bf16.mxu0 %v15734_v41 }
 0x18e   :  { %14231 = vmatprep.subr.bf16.mxu1 %v15735_v43 }
 0x190   :  { %14210 = vmatpush3.bf16.msra.mxu0 %v15736_v45  ;;  %v15773_v45 = vld [vmem:[%s20556_s1 + $0xda0] sm:$0xff]  }
 0x191   :  { %14232 = vmatpush3.bf16.msra.mxu1 %v15737_v47  ;;  %14211 = vmatprep.subr.bf16.mxu0 %v15738_v50  ;;  %v15775_v50 = vld [vmem:[%s20556_s1 + $0xde8] sm:$0xff]  }
 0x192   :  { %14233 = vmatprep.subr.bf16.mxu1 %v15739_v53  ;;  %v15778_v53 = vld [vmem:[%s20556_s1 + $0xd70] sm:$0xff]  }
 0x194   :  { %14212 = vmatpush3.bf16.msra.mxu0 %v15740_v56  ;;  %v15781_v56 = vld [vmem:[%s20556_s1 + $0xdb0] sm:$0xff]  }
 0x195   :  { %14234 = vmatpush3.bf16.msra.mxu1 %v15741_v58  ;;  %14213 = vmatprep.subr.bf16.mxu0 %v15742_v61  ;;  %v15783_v58 = vld [vmem:[%s20556_s1 + $0xdf8] sm:$0xff]   ;;  %v74_v61 = vld [vmem:[%s20557_s0 + $0x1a8] sm:$0xff] }
 0x196   :  { %v13911_v42 = vpop.f32.mrb[20].mxu0  ;;  %14235 = vmatprep.subr.bf16.mxu1 %v15743_v62  ;;  %v218_v62 = vpack.c.bf16 %v74_v61, %v74_v61  ;;  %v15822_v61 = vld [vmem:[%s20556_s1 + $0xf48] sm:$0xff]  }
 0x197   :  { %v13933_v44 = vpop.f32.mrb[20].mxu1  ;;  %v13912_v46 = vpop.f32.mrb[21].mxu0 }
 0x198   :  { %v13913_v48 = vadd.f32 %v13912_v46, %v13911_v42  ;;  %v13934_v49 = vpop.f32.mrb[21].mxu1  ;;  %v13914_v52 = vpop.f32.mrb[22].mxu0  ;;  %14214 = vmatpush3.bf16.msra.mxu0 %v15744_v63  ;;  %v15772_v42 = vld [vmem:[%s20556_s1 + $0xd20] sm:$0xff]   ;;  %v76_v63 = vld [vmem:[%s20557_s0 + $0x1b8] sm:$0xff] }
 0x199   :  { %v13935_v51 = vadd.f32 %v13934_v49, %v13933_v44  ;;  %v13936_v55 = vpop.f32.mrb[22].mxu1  ;;  %v13915_v57 = vpop.f32.mrb[23].mxu0  ;;  %14236 = vmatpush3.bf16.msra.mxu1 %v15745_v0  ;;  %14215 = vmatprep.subr.bf16.mxu0 %v15746_v1  ;;  %v15777_v52 = vld [vmem:[%s20556_s1 + $0xda8] sm:$0xff]   ;;  %v73_v0 = vld [vmem:[%s20557_s0 + $0x1a0] sm:$0xff]  ;;  %v75_v1 = vld [vmem:[%s20557_s0 + $0x1b0] sm:$0xff] }
 0x19a   :  { %v9967_v54 = vadd.f32 %v13913_v48, %v17790_v7  ;;  %v13937_v60 = vpop.f32.mrb[23].mxu1  ;;  %14237 = vmatprep.subr.bf16.mxu1 %v15747_v2  ;;  %v15752_v7 = vld [vmem:[%s20556_s1 + $0xc38] sm:$0xff]   ;;  %v15774_v48 = vld [vmem:[%s20556_s1 + $0xd68] sm:$0xff]   ;;  %v15780_v55 = vld [vmem:[%s20556_s1 + $0xd30] sm:$0xff]   ;;  %v220_v2 = vpack.c.bf16 %v76_v63, %v76_v63 }
 0x19b   :  { %v15782_v57 = vld [vmem:[%s20556_s1 + $0xd78] sm:$0xff]   ;;  %v15824_v63 = vld [vmem:[%s20556_s1 + $0xf08] sm:$0xff]  }
 0x19c   :  { %v17901_v59 = vadd.f32 %v13935_v51, %v9967_v54  ;;  %14216 = vmatpush3.bf16.msra.mxu0 %v15748_v3  ;;  %v15776_v51 = vld [vmem:[%s20556_s1 + $0xd28] sm:$0xff]   ;;  %v15779_v54 = vld [vmem:[%s20556_s1 + $0xdf0] sm:$0xff]   ;;  %v15785_v60 = vld [vmem:[%s20556_s1 + $0xdb8] sm:$0xff]   ;;  %v217_v3 = vpack.c.bf16 %v73_v0, %v73_v0 }
 0x19d   :  { %14238 = vmatpush3.bf16.msra.mxu1 %v15749_v4  ;;  %14217 = vmatprep.subr.bf16.mxu0 %v15750_v5  ;;  %v219_v4 = vpack.c.bf16 %v75_v1, %v75_v1  ;;  %v15786_v5 = vld [vmem:[%s20556_s1 + $0xe40] sm:$0xff]   ;;  %v15825_v0 = vld [vmem:[%s20556_s1 + $0xf88] sm:$0xff]   ;;  %v15826_v1 = vld [vmem:[%s20556_s1 + $0xf50] sm:$0xff]  }
 0x19e   :  { %14239 = vmatprep.subr.bf16.mxu1 %v15751_v6  ;;  %v15787_v6 = vld [vmem:[%s20556_s1 + $0xec0] sm:$0xff]  }
 0x1a0   :  { %14218 = vmatpush3.bf16.msra.mxu0 %v15752_v7  ;;  %v15788_v7 = vld [vmem:[%s20556_s1 + $0xe00] sm:$0xff]  }
 0x1a1   :  { %14240 = vmatpush3.bf16.msra.mxu1 %v15753_v8  ;;  %14247 = vmatprep.subr.bf16.mxu0 %v15754_v17  ;;  %v15789_v8 = vld [vmem:[%s20556_s1 + $0xe80] sm:$0xff]   ;;  %v15798_v17 = vld [vmem:[%s20556_s1 + $0xe58] sm:$0xff]  }
 0x1a2   :  { %14269 = vmatprep.subr.bf16.mxu1 %v15755_v18  ;;  %v15799_v18 = vld [vmem:[%s20556_s1 + $0xed8] sm:$0xff]  }
 0x1a3   :  { %10525 = vmatmul.mubr.bf16.vlgmr.msra.gmra.mrb[48].mxu0 %v213_v15  ;;  %v15796_v15 = vld [vmem:[%s20556_s1 + $0xe10] sm:$0xff]  }
 0x1a4   :  { %10565 = vmatmul.mubr.bf16.vlgmr.msra.gmra.mrb[48].mxu1 %v215_v16  ;;  %14248 = vmatpush3.bf16.msra.mxu0 %v15756_v19  ;;  %v15797_v16 = vld [vmem:[%s20556_s1 + $0xe90] sm:$0xff]  }
 0x1a5   :  { %14270 = vmatpush3.bf16.msra.mxu1 %v15757_v20  ;;  %14249 = vmatprep.subr.bf16.mxu0 %v15758_v21  ;;  %v15800_v20 = vld [vmem:[%s20556_s1 + $0xe18] sm:$0xff]  }
 0x1a6   :  { %14271 = vmatprep.subr.bf16.mxu1 %v15759_v22  ;;  %10604 = vmatprep.mubr.bf16.mxu0 %v218_v62  ;;  %v15801_v22 = vld [vmem:[%s20556_s1 + $0xe98] sm:$0xff]   ;;  %v15823_v62 = vld [vmem:[%s20556_s1 + $0xfc8] sm:$0xff]  }
 0x1a7   :  { %10644 = vmatprep.mubr.bf16.mxu1 %v220_v2  ;;  %v15827_v2 = vld [vmem:[%s20556_s1 + $0xfd0] sm:$0xff]  }
 0x1a8   :  { %14250 = vmatpush3.bf16.msra.mxu0 %v15760_v23 }
 0x1a9   :  { %14272 = vmatpush3.bf16.msra.mxu1 %v15761_v24  ;;  %14251 = vmatprep.subr.bf16.mxu0 %v15762_v25  ;;  %v15802_v24 = vld [vmem:[%s20556_s1 + $0xe60] sm:$0xff]  }
 0x1aa   :  { %14273 = vmatprep.subr.bf16.mxu1 %v15763_v26 }
 0x1ac   :  { %14252 = vmatpush3.bf16.msra.mxu0 %v15764_v27  ;;  %v15803_v27 = vld [vmem:[%s20556_s1 + $0xee0] sm:$0xff]  }
 0x1ad   :  { %14274 = vmatpush3.bf16.msra.mxu1 %v15765_v28  ;;  %14253 = vmatprep.subr.bf16.mxu0 %v15766_v29 }
 0x1ae   :  { %14275 = vmatprep.subr.bf16.mxu1 %v15767_v30  ;;  %v15804_v30 = vld [vmem:[%s20556_s1 + $0xe20] sm:$0xff]  }
 0x1b0   :  { %14254 = vmatpush3.bf16.msra.mxu0 %v15768_v32 }
 0x1b1   :  { %14276 = vmatpush3.bf16.msra.mxu1 %v15769_v34  ;;  %14255 = vmatprep.subr.bf16.mxu0 %v15770_v36  ;;  %v15806_v36 = vld [vmem:[%s20556_s1 + $0xe68] sm:$0xff]  }
 0x1b2   :  { %14277 = vmatprep.subr.bf16.mxu1 %v15771_v39  ;;  %v15808_v39 = vld [vmem:[%s20556_s1 + $0xe28] sm:$0xff]  }
 0x1b4   :  { %14256 = vmatpush3.bf16.msra.mxu0 %v15772_v42  ;;  %v15811_v42 = vld [vmem:[%s20556_s1 + $0xef0] sm:$0xff]  }
 0x1b5   :  { %14278 = vmatpush3.bf16.msra.mxu1 %v15773_v45  ;;  %14257 = vmatprep.subr.bf16.mxu0 %v15774_v48  ;;  %v15814_v45 = vld [vmem:[%s20556_s1 + $0xe78] sm:$0xff]  }
 0x1b6   :  { %v13955_v31 = vpop.f32.mrb[24].mxu0  ;;  %14279 = vmatprep.subr.bf16.mxu1 %v15775_v50  ;;  %v15817_v48 = vld [vmem:[%s20556_s1 + $0xeb8] sm:$0xff]  }
 0x1b7   :  { %v13977_v33 = vpop.f32.mrb[24].mxu1  ;;  %v13956_v35 = vpop.f32.mrb[25].mxu0  ;;  %v80_v50 = vld [vmem:[%s20557_s0 + $0x1d8] sm:$0xff] }
 0x1b8   :  { %v13957_v37 = vadd.f32 %v13956_v35, %v13955_v31  ;;  %v13978_v38 = vpop.f32.mrb[25].mxu1  ;;  %v13958_v41 = vpop.f32.mrb[26].mxu0  ;;  %14258 = vmatpush3.bf16.msra.mxu0 %v15776_v51  ;;  %v77_v51 = vld [vmem:[%s20557_s0 + $0x1c0] sm:$0xff] }
 0x1b9   :  { %v13979_v40 = vadd.f32 %v13978_v38, %v13977_v33  ;;  %v13980_v44 = vpop.f32.mrb[26].mxu1  ;;  %v13959_v46 = vpop.f32.mrb[27].mxu0  ;;  %14280 = vmatpush3.bf16.msra.mxu1 %v15777_v52  ;;  %14259 = vmatprep.subr.bf16.mxu0 %v15778_v53  ;;  %v15805_v33 = vld [vmem:[%s20556_s1 + $0xea0] sm:$0xff]   ;;  %v15807_v38 = vld [vmem:[%s20556_s1 + $0xee8] sm:$0xff]   ;;  %v15810_v41 = vld [vmem:[%s20556_s1 + $0xe70] sm:$0xff]   ;;  %v224_v53 = vpack.c.bf16 %v80_v50, %v80_v50 }
 0x1ba   :  { %v10047_v43 = vadd.f32 %v13957_v37, %v17901_v59  ;;  %v13981_v49 = vpop.f32.mrb[27].mxu1  ;;  %14281 = vmatprep.subr.bf16.mxu1 %v15779_v54  ;;  %v15784_v59 = vld [vmem:[%s20556_s1 + $0xd38] sm:$0xff]   ;;  %v15813_v44 = vld [vmem:[%s20556_s1 + $0xeb0] sm:$0xff]   ;;  %v221_v54 = vpack.c.bf16 %v77_v51, %v77_v51  ;;  %v15855_v50 = vld [vmem:[%s20556_s1 + $0x10c8] sm:$0xff]  }
 0x1bb   :  { %v15815_v46 = vld [vmem:[%s20556_s1 + $0xef8] sm:$0xff]   ;;  %v78_v49 = vld [vmem:[%s20557_s0 + $0x1c8] sm:$0xff] }
 0x1bc   :  { %v18012_v47 = vadd.f32 %v13979_v40, %v10047_v43  ;;  %14260 = vmatpush3.bf16.msra.mxu0 %v15780_v55  ;;  %v15809_v40 = vld [vmem:[%s20556_s1 + $0xea8] sm:$0xff]   ;;  %v15812_v43 = vld [vmem:[%s20556_s1 + $0xe30] sm:$0xff]   ;;  %v222_v52 = vpack.c.bf16 %v78_v49, %v78_v49 }
 0x1bd   :  { %14282 = vmatpush3.bf16.msra.mxu1 %v15781_v56  ;;  %14261 = vmatprep.subr.bf16.mxu0 %v15782_v57  ;;  %v79_v55 = vld [vmem:[%s20557_s0 + $0x1d0] sm:$0xff]  ;;  %v15818_v57 = vld [vmem:[%s20556_s1 + $0xf40] sm:$0xff]   ;;  %v15854_v49 = vld [vmem:[%s20556_s1 + $0x1048] sm:$0xff]  }
 0x1be   :  { %14283 = vmatprep.subr.bf16.mxu1 %v15783_v58  ;;  %v223_v56 = vpack.c.bf16 %v79_v55, %v79_v55  ;;  %v15819_v58 = vld [vmem:[%s20556_s1 + $0xfc0] sm:$0xff]   ;;  %v15856_v51 = vld [vmem:[%s20556_s1 + $0x1008] sm:$0xff]   ;;  %v15860_v55 = vld [vmem:[%s20556_s1 + $0x1010] sm:$0xff]  }
 0x1c0   :  { %14262 = vmatpush3.bf16.msra.mxu0 %v15784_v59  ;;  %v15820_v59 = vld [vmem:[%s20556_s1 + $0xf00] sm:$0xff]  }
 0x1c1   :  { %14284 = vmatpush3.bf16.msra.mxu1 %v15785_v60  ;;  %14291 = vmatprep.subr.bf16.mxu0 %v15786_v5  ;;  %v15821_v60 = vld [vmem:[%s20556_s1 + $0xf80] sm:$0xff]   ;;  %v15830_v5 = vld [vmem:[%s20556_s1 + $0xf58] sm:$0xff]  }
 0x1c2   :  { %14313 = vmatprep.subr.bf16.mxu1 %v15787_v6  ;;  %v15831_v6 = vld [vmem:[%s20556_s1 + $0xfd8] sm:$0xff]  }
 0x1c3   :  { %10605 = vmatmul.mubr.bf16.vlgmr.msra.gmra.mrb[52].mxu0 %v217_v3  ;;  %v15828_v3 = vld [vmem:[%s20556_s1 + $0xf10] sm:$0xff]  }
 0x1c4   :  { %10645 = vmatmul.mubr.bf16.vlgmr.msra.gmra.mrb[52].mxu1 %v219_v4  ;;  %14292 = vmatpush3.bf16.msra.mxu0 %v15788_v7  ;;  %v15829_v4 = vld [vmem:[%s20556_s1 + $0xf90] sm:$0xff]  }
 0x1c5   :  { %14314 = vmatpush3.bf16.msra.mxu1 %v15789_v8  ;;  %14293 = vmatprep.subr.bf16.mxu0 %v15790_v9  ;;  %v15832_v8 = vld [vmem:[%s20556_s1 + $0xf18] sm:$0xff]  }
 0x1c6   :  { %14315 = vmatprep.subr.bf16.mxu1 %v15791_v10  ;;  %10684 = vmatprep.mubr.bf16.mxu0 %v222_v52  ;;  %v15833_v10 = vld [vmem:[%s20556_s1 + $0xf98] sm:$0xff]   ;;  %v15857_v52 = vld [vmem:[%s20556_s1 + $0x1088] sm:$0xff]  }
 0x1c7   :  { %10724 = vmatprep.mubr.bf16.mxu1 %v224_v53  ;;  %v15858_v53 = vld [vmem:[%s20556_s1 + $0x1050] sm:$0xff]  }
 0x1c8   :  { %14294 = vmatpush3.bf16.msra.mxu0 %v15792_v11 }
 0x1c9   :  { %14316 = vmatpush3.bf16.msra.mxu1 %v15793_v12  ;;  %14295 = vmatprep.subr.bf16.mxu0 %v15794_v13  ;;  %v15834_v12 = vld [vmem:[%s20556_s1 + $0xf60] sm:$0xff]  }
 0x1ca   :  { %14317 = vmatprep.subr.bf16.mxu1 %v15795_v14 }
 0x1cc   :  { %14296 = vmatpush3.bf16.msra.mxu0 %v15796_v15  ;;  %v15835_v15 = vld [vmem:[%s20556_s1 + $0xfe0] sm:$0xff]  }
 0x1cd   :  { %14318 = vmatpush3.bf16.msra.mxu1 %v15797_v16  ;;  %14297 = vmatprep.subr.bf16.mxu0 %v15798_v17 }
 0x1ce   :  { %14319 = vmatprep.subr.bf16.mxu1 %v15799_v18  ;;  %v15836_v18 = vld [vmem:[%s20556_s1 + $0xf20] sm:$0xff]  }
 0x1d0   :  { %14298 = vmatpush3.bf16.msra.mxu0 %v15800_v20 }
 0x1d1   :  { %14320 = vmatpush3.bf16.msra.mxu1 %v15801_v22  ;;  %14299 = vmatprep.subr.bf16.mxu0 %v15802_v24  ;;  %v15838_v24 = vld [vmem:[%s20556_s1 + $0xf68] sm:$0xff]  }
 0x1d2   :  { %14321 = vmatprep.subr.bf16.mxu1 %v15803_v27  ;;  %v15840_v27 = vld [vmem:[%s20556_s1 + $0xf28] sm:$0xff]  }
 0x1d4   :  { %14300 = vmatpush3.bf16.msra.mxu0 %v15804_v30  ;;  %v15843_v30 = vld [vmem:[%s20556_s1 + $0xff0] sm:$0xff]  }
 0x1d5   :  { %14322 = vmatpush3.bf16.msra.mxu1 %v15805_v33  ;;  %14301 = vmatprep.subr.bf16.mxu0 %v15806_v36  ;;  %v15846_v33 = vld [vmem:[%s20556_s1 + $0xf78] sm:$0xff]  }
 0x1d6   :  { %v13999_v19 = vpop.f32.mrb[28].mxu0  ;;  %14323 = vmatprep.subr.bf16.mxu1 %v15807_v38  ;;  %v15849_v36 = vld [vmem:[%s20556_s1 + $0xfb8] sm:$0xff]  }
 0x1d7   :  { %v14021_v21 = vpop.f32.mrb[28].mxu1  ;;  %v14000_v23 = vpop.f32.mrb[29].mxu0  ;;  %v84_v38 = vld [vmem:[%s20557_s0 + $0x1f8] sm:$0xff] }
 0x1d8   :  { %v14001_v25 = vadd.f32 %v14000_v23, %v13999_v19  ;;  %v14022_v26 = vpop.f32.mrb[29].mxu1  ;;  %v14002_v29 = vpop.f32.mrb[30].mxu0  ;;  %14302 = vmatpush3.bf16.msra.mxu0 %v15808_v39 }
 0x1d9   :  { %v14023_v28 = vadd.f32 %v14022_v26, %v14021_v21  ;;  %v14024_v32 = vpop.f32.mrb[30].mxu1  ;;  %v14003_v34 = vpop.f32.mrb[31].mxu0  ;;  %14324 = vmatpush3.bf16.msra.mxu1 %v15809_v40  ;;  %14303 = vmatprep.subr.bf16.mxu0 %v15810_v41  ;;  %v15837_v21 = vld [vmem:[%s20556_s1 + $0xfa0] sm:$0xff]   ;;  %v15839_v26 = vld [vmem:[%s20556_s1 + $0xfe8] sm:$0xff]   ;;  %v15842_v29 = vld [vmem:[%s20556_s1 + $0xf70] sm:$0xff]   ;;  %v228_v40 = vpack.c.bf16 %v84_v38, %v84_v38 }
 0x1da   :  { %v10127_v31 = vadd.f32 %v14001_v25, %v18012_v47  ;;  %v14025_v37 = vpop.f32.mrb[31].mxu1  ;;  %14325 = vmatprep.subr.bf16.mxu1 %v15811_v42  ;;  %v15816_v47 = vld [vmem:[%s20556_s1 + $0xe38] sm:$0xff]   ;;  %v15845_v32 = vld [vmem:[%s20556_s1 + $0xfb0] sm:$0xff]   ;;  %v81_v41 = vld [vmem:[%s20557_s0 + $0x1e0] sm:$0xff] }
 0x1db   :  { %v15847_v34 = vld [vmem:[%s20556_s1 + $0xff8] sm:$0xff]   ;;  %v82_v37 = vld [vmem:[%s20557_s0 + $0x1e8] sm:$0xff]  ;;  %v83_v42 = vld [vmem:[%s20557_s0 + $0x1f0] sm:$0xff] }
 0x1dc   :  { %v18123_v35 = vadd.f32 %v14023_v28, %v10127_v31  ;;  %14304 = vmatpush3.bf16.msra.mxu0 %v15812_v43  ;;  %v15841_v28 = vld [vmem:[%s20556_s1 + $0xfa8] sm:$0xff]   ;;  %v15844_v31 = vld [vmem:[%s20556_s1 + $0xf30] sm:$0xff]   ;;  %v226_v39 = vpack.c.bf16 %v82_v37, %v82_v37  ;;  %v225_v43 = vpack.c.bf16 %v81_v41, %v81_v41 }
 0x1dd   :  { %14326 = vmatpush3.bf16.msra.mxu1 %v15813_v44  ;;  %14305 = vmatprep.subr.bf16.mxu0 %v15814_v45  ;;  %v227_v44 = vpack.c.bf16 %v83_v42, %v83_v42  ;;  %v15850_v45 = vld [vmem:[%s20556_s1 + $0x1040] sm:$0xff]   ;;  %v15886_v37 = vld [vmem:[%s20556_s1 + $0x1148] sm:$0xff]   ;;  %v15890_v41 = vld [vmem:[%s20556_s1 + $0x1150] sm:$0xff]  }
 0x1de   :  { %14327 = vmatprep.subr.bf16.mxu1 %v15815_v46  ;;  %v15851_v46 = vld [vmem:[%s20556_s1 + $0x10c0] sm:$0xff]   ;;  %v15887_v38 = vld [vmem:[%s20556_s1 + $0x11c8] sm:$0xff]   ;;  %v15891_v42 = vld [vmem:[%s20556_s1 + $0x11d0] sm:$0xff]  }
 0x1e0   :  { %14306 = vmatpush3.bf16.msra.mxu0 %v15816_v47  ;;  %v15852_v47 = vld [vmem:[%s20556_s1 + $0x1000] sm:$0xff]  }
 0x1e1   :  { %14328 = vmatpush3.bf16.msra.mxu1 %v15817_v48  ;;  %14335 = vmatprep.subr.bf16.mxu0 %v15818_v57  ;;  %v15853_v48 = vld [vmem:[%s20556_s1 + $0x1080] sm:$0xff]   ;;  %v15862_v57 = vld [vmem:[%s20556_s1 + $0x1058] sm:$0xff]  }
 0x1e2   :  { %14357 = vmatprep.subr.bf16.mxu1 %v15819_v58  ;;  %v15863_v58 = vld [vmem:[%s20556_s1 + $0x10d8] sm:$0xff]  }
 0x1e3   :  { %10685 = vmatmul.mubr.bf16.vlgmr.msra.gmra.mrb[56].mxu0 %v221_v54  ;;  %v15859_v54 = vld [vmem:[%s20556_s1 + $0x10d0] sm:$0xff]  }
 0x1e4   :  { %10725 = vmatmul.mubr.bf16.vlgmr.msra.gmra.mrb[56].mxu1 %v223_v56  ;;  %14336 = vmatpush3.bf16.msra.mxu0 %v15820_v59  ;;  %v15861_v56 = vld [vmem:[%s20556_s1 + $0x1090] sm:$0xff]  }
 0x1e5   :  { %14358 = vmatpush3.bf16.msra.mxu1 %v15821_v60  ;;  %14337 = vmatprep.subr.bf16.mxu0 %v15822_v61  ;;  %v15864_v60 = vld [vmem:[%s20556_s1 + $0x1018] sm:$0xff]  }
 0x1e6   :  { %14359 = vmatprep.subr.bf16.mxu1 %v15823_v62  ;;  %10764 = vmatprep.mubr.bf16.mxu0 %v226_v39  ;;  %v15865_v62 = vld [vmem:[%s20556_s1 + $0x1098] sm:$0xff]   ;;  %v15888_v39 = vld [vmem:[%s20556_s1 + $0x1108] sm:$0xff]  }
 0x1e7   :  { %10804 = vmatprep.mubr.bf16.mxu1 %v228_v40  ;;  %v15889_v40 = vld [vmem:[%s20556_s1 + $0x1188] sm:$0xff]  }
 0x1e8   :  { %14338 = vmatpush3.bf16.msra.mxu0 %v15824_v63 }
 0x1e9   :  { %14360 = vmatpush3.bf16.msra.mxu1 %v15825_v0  ;;  %14339 = vmatprep.subr.bf16.mxu0 %v15826_v1  ;;  %v15866_v0 = vld [vmem:[%s20556_s1 + $0x1060] sm:$0xff]  }
 0x1ea   :  { %14361 = vmatprep.subr.bf16.mxu1 %v15827_v2 }
 0x1ec   :  { %14340 = vmatpush3.bf16.msra.mxu0 %v15828_v3  ;;  %v15867_v3 = vld [vmem:[%s20556_s1 + $0x10e0] sm:$0xff]  }
 0x1ed   :  { %14362 = vmatpush3.bf16.msra.mxu1 %v15829_v4  ;;  %14341 = vmatprep.subr.bf16.mxu0 %v15830_v5 }
 0x1ee   :  { %14363 = vmatprep.subr.bf16.mxu1 %v15831_v6  ;;  %v15868_v6 = vld [vmem:[%s20556_s1 + $0x1020] sm:$0xff]  }
 0x1f0   :  { %14342 = vmatpush3.bf16.msra.mxu0 %v15832_v8 }
 0x1f1   :  { %14364 = vmatpush3.bf16.msra.mxu1 %v15833_v10  ;;  %14343 = vmatprep.subr.bf16.mxu0 %v15834_v12  ;;  %v15870_v12 = vld [vmem:[%s20556_s1 + $0x1068] sm:$0xff]  }
 0x1f2   :  { %14365 = vmatprep.subr.bf16.mxu1 %v15835_v15  ;;  %v15872_v15 = vld [vmem:[%s20556_s1 + $0x1028] sm:$0xff]  }
 0x1f4   :  { %14344 = vmatpush3.bf16.msra.mxu0 %v15836_v18  ;;  %v15875_v18 = vld [vmem:[%s20556_s1 + $0x10f0] sm:$0xff]  }
 0x1f5   :  { %14366 = vmatpush3.bf16.msra.mxu1 %v15837_v21  ;;  %14345 = vmatprep.subr.bf16.mxu0 %v15838_v24  ;;  %v15878_v21 = vld [vmem:[%s20556_s1 + $0x1078] sm:$0xff]  }
 0x1f6   :  { %v14043_v7 = vpop.f32.mrb[32].mxu0  ;;  %14367 = vmatprep.subr.bf16.mxu1 %v15839_v26  ;;  %v15881_v24 = vld [vmem:[%s20556_s1 + $0x10b8] sm:$0xff]  }
 0x1f7   :  { %v14065_v9 = vpop.f32.mrb[32].mxu1  ;;  %v14044_v11 = vpop.f32.mrb[33].mxu0 }
 0x1f8   :  { %v14045_v13 = vadd.f32 %v14044_v11, %v14043_v7  ;;  %v14066_v14 = vpop.f32.mrb[33].mxu1  ;;  %v14046_v17 = vpop.f32.mrb[34].mxu0  ;;  %14346 = vmatpush3.bf16.msra.mxu0 %v15840_v27  ;;  %v88_v27 = vld [vmem:[%s20557_s0 + $0x218] sm:$0xff] }
 0x1f9   :  { %v14067_v16 = vadd.f32 %v14066_v14, %v14065_v9  ;;  %v14068_v20 = vpop.f32.mrb[34].mxu1  ;;  %v14047_v22 = vpop.f32.mrb[35].mxu0  ;;  %14368 = vmatpush3.bf16.msra.mxu1 %v15841_v28  ;;  %14347 = vmatprep.subr.bf16.mxu0 %v15842_v29  ;;  %v15869_v9 = vld [vmem:[%s20556_s1 + $0x10a0] sm:$0xff]   ;;  %v15871_v14 = vld [vmem:[%s20556_s1 + $0x10e8] sm:$0xff]   ;;  %v15874_v17 = vld [vmem:[%s20556_s1 + $0x1070] sm:$0xff]  }
 0x1fa   :  { %v10207_v19 = vadd.f32 %v14045_v13, %v18123_v35  ;;  %v14069_v25 = vpop.f32.mrb[35].mxu1  ;;  %14369 = vmatprep.subr.bf16.mxu1 %v15843_v30  ;;  %v15848_v35 = vld [vmem:[%s20556_s1 + $0xf38] sm:$0xff]   ;;  %v15877_v20 = vld [vmem:[%s20556_s1 + $0x10b0] sm:$0xff]   ;;  %v85_v28 = vld [vmem:[%s20557_s0 + $0x200] sm:$0xff]  ;;  %v232_v30 = vpack.c.bf16 %v88_v27, %v88_v27 }
 0x1fb   :  { %v15879_v22 = vld [vmem:[%s20556_s1 + $0x10f8] sm:$0xff]   ;;  %v86_v25 = vld [vmem:[%s20557_s0 + $0x208] sm:$0xff]  ;;  %v87_v29 = vld [vmem:[%s20557_s0 + $0x210] sm:$0xff] }
 0x1fc   :  { %v18234_v23 = vadd.f32 %v14067_v16, %v10207_v19  ;;  %14348 = vmatpush3.bf16.msra.mxu0 %v15844_v31  ;;  %v15873_v16 = vld [vmem:[%s20556_s1 + $0x10a8] sm:$0xff]   ;;  %v15876_v19 = vld [vmem:[%s20556_s1 + $0x1030] sm:$0xff]   ;;  %v230_v26 = vpack.c.bf16 %v86_v25, %v86_v25  ;;  %v229_v31 = vpack.c.bf16 %v85_v28, %v85_v28 }
 0x1fd   :  { %14370 = vmatpush3.bf16.msra.mxu1 %v15845_v32  ;;  %14349 = vmatprep.subr.bf16.mxu0 %v15846_v33  ;;  %v231_v32 = vpack.c.bf16 %v87_v29, %v87_v29  ;;  %v15882_v33 = vld [vmem:[%s20556_s1 + $0x1140] sm:$0xff]   ;;  %v15918_v25 = vld [vmem:[%s20556_s1 + $0x1248] sm:$0xff]   ;;  %v15922_v29 = vld [vmem:[%s20556_s1 + $0x1250] sm:$0xff]  }
 0x1fe   :  { %14371 = vmatprep.subr.bf16.mxu1 %v15847_v34  ;;  %v15883_v34 = vld [vmem:[%s20556_s1 + $0x11c0] sm:$0xff]   ;;  %v15920_v27 = vld [vmem:[%s20556_s1 + $0x1208] sm:$0xff]  }
 0x1ff   :  { %v15921_v28 = vld [vmem:[%s20556_s1 + $0x1288] sm:$0xff]  }
 0x200   :  { %14350 = vmatpush3.bf16.msra.mxu0 %v15848_v35  ;;  %v15884_v35 = vld [vmem:[%s20556_s1 + $0x1100] sm:$0xff]  }
 0x201   :  { %14372 = vmatpush3.bf16.msra.mxu1 %v15849_v36  ;;  %14379 = vmatprep.subr.bf16.mxu0 %v15850_v45  ;;  %v15885_v36 = vld [vmem:[%s20556_s1 + $0x1180] sm:$0xff]   ;;  %v15894_v45 = vld [vmem:[%s20556_s1 + $0x1158] sm:$0xff]  }
 0x202   :  { %14401 = vmatprep.subr.bf16.mxu1 %v15851_v46  ;;  %v15895_v46 = vld [vmem:[%s20556_s1 + $0x11d8] sm:$0xff]  }
 0x203   :  { %10765 = vmatmul.mubr.bf16.vlgmr.msra.gmra.mrb[60].mxu0 %v225_v43  ;;  %v15892_v43 = vld [vmem:[%s20556_s1 + $0x1110] sm:$0xff]  }
 0x204   :  { %10805 = vmatmul.mubr.bf16.vlgmr.msra.gmra.mrb[60].mxu1 %v227_v44  ;;  %14380 = vmatpush3.bf16.msra.mxu0 %v15852_v47  ;;  %v15893_v44 = vld [vmem:[%s20556_s1 + $0x1190] sm:$0xff]  }
 0x205   :  { %14402 = vmatpush3.bf16.msra.mxu1 %v15853_v48  ;;  %14381 = vmatprep.subr.bf16.mxu0 %v15854_v49  ;;  %v15896_v48 = vld [vmem:[%s20556_s1 + $0x1118] sm:$0xff]  }
 0x206   :  { %14403 = vmatprep.subr.bf16.mxu1 %v15855_v50  ;;  %10844 = vmatprep.mubr.bf16.mxu0 %v230_v26  ;;  %v15897_v50 = vld [vmem:[%s20556_s1 + $0x1198] sm:$0xff]   ;;  %v15919_v26 = vld [vmem:[%s20556_s1 + $0x12c8] sm:$0xff]  }
 0x207   :  { %10884 = vmatprep.mubr.bf16.mxu1 %v232_v30  ;;  %v15923_v30 = vld [vmem:[%s20556_s1 + $0x12d0] sm:$0xff]  }
 0x208   :  { %14382 = vmatpush3.bf16.msra.mxu0 %v15856_v51 }
 0x209   :  { %14404 = vmatpush3.bf16.msra.mxu1 %v15857_v52  ;;  %14383 = vmatprep.subr.bf16.mxu0 %v15858_v53  ;;  %v15898_v52 = vld [vmem:[%s20556_s1 + $0x1160] sm:$0xff]  }
 0x20a   :  { %14405 = vmatprep.subr.bf16.mxu1 %v15859_v54 }
 0x20c   :  { %14384 = vmatpush3.bf16.msra.mxu0 %v15860_v55  ;;  %v15899_v55 = vld [vmem:[%s20556_s1 + $0x11e0] sm:$0xff]  }
 0x20d   :  { %14406 = vmatpush3.bf16.msra.mxu1 %v15861_v56  ;;  %14385 = vmatprep.subr.bf16.mxu0 %v15862_v57 }
 0x20e   :  { %14407 = vmatprep.subr.bf16.mxu1 %v15863_v58  ;;  %v15900_v58 = vld [vmem:[%s20556_s1 + $0x1120] sm:$0xff]  }
 0x210   :  { %14386 = vmatpush3.bf16.msra.mxu0 %v15864_v60 }
 0x211   :  { %14408 = vmatpush3.bf16.msra.mxu1 %v15865_v62  ;;  %14387 = vmatprep.subr.bf16.mxu0 %v15866_v0  ;;  %v15902_v0 = vld [vmem:[%s20556_s1 + $0x1168] sm:$0xff]  }
 0x212   :  { %14409 = vmatprep.subr.bf16.mxu1 %v15867_v3  ;;  %v15904_v3 = vld [vmem:[%s20556_s1 + $0x1128] sm:$0xff]  }
 0x214   :  { %14388 = vmatpush3.bf16.msra.mxu0 %v15868_v6  ;;  %v15907_v6 = vld [vmem:[%s20556_s1 + $0x11f0] sm:$0xff]  }
 0x215   :  { %14410 = vmatpush3.bf16.msra.mxu1 %v15869_v9  ;;  %14389 = vmatprep.subr.bf16.mxu0 %v15870_v12  ;;  %v15910_v9 = vld [vmem:[%s20556_s1 + $0x1178] sm:$0xff]  }
 0x216   :  { %v14087_v59 = vpop.f32.mrb[36].mxu0  ;;  %14411 = vmatprep.subr.bf16.mxu1 %v15871_v14  ;;  %v15913_v12 = vld [vmem:[%s20556_s1 + $0x11b8] sm:$0xff]  }
 0x217   :  { %v14109_v61 = vpop.f32.mrb[36].mxu1  ;;  %v14088_v63 = vpop.f32.mrb[37].mxu0  ;;  %v92_v14 = vld [vmem:[%s20557_s0 + $0x238] sm:$0xff] }
 0x218   :  { %v14089_v1 = vadd.f32 %v14088_v63, %v14087_v59  ;;  %v14110_v2 = vpop.f32.mrb[37].mxu1  ;;  %v14090_v5 = vpop.f32.mrb[38].mxu0  ;;  %14390 = vmatpush3.bf16.msra.mxu0 %v15872_v15  ;;  %v89_v15 = vld [vmem:[%s20557_s0 + $0x220] sm:$0xff] }
 0x219   :  { %v14111_v4 = vadd.f32 %v14110_v2, %v14109_v61  ;;  %v14112_v8 = vpop.f32.mrb[38].mxu1  ;;  %v14091_v10 = vpop.f32.mrb[39].mxu0  ;;  %14412 = vmatpush3.bf16.msra.mxu1 %v15873_v16  ;;  %14391 = vmatprep.subr.bf16.mxu0 %v15874_v17  ;;  %v15901_v61 = vld [vmem:[%s20556_s1 + $0x11a0] sm:$0xff]   ;;  %v15903_v2 = vld [vmem:[%s20556_s1 + $0x11e8] sm:$0xff]   ;;  %v15906_v5 = vld [vmem:[%s20556_s1 + $0x1170] sm:$0xff]   ;;  %v236_v17 = vpack.c.bf16 %v92_v14, %v92_v14 }
 0x21a   :  { %v10287_v7 = vadd.f32 %v14089_v1, %v18234_v23  ;;  %v14113_v13 = vpop.f32.mrb[39].mxu1  ;;  %14413 = vmatprep.subr.bf16.mxu1 %v15875_v18  ;;  %v15880_v23 = vld [vmem:[%s20556_s1 + $0x1038] sm:$0xff]   ;;  %v15909_v8 = vld [vmem:[%s20556_s1 + $0x11b0] sm:$0xff]   ;;  %v233_v18 = vpack.c.bf16 %v89_v15, %v89_v15  ;;  %v15951_v14 = vld [vmem:[%s20556_s1 + $0x13c8] sm:$0xff]  }
 0x21b   :  { %v15911_v10 = vld [vmem:[%s20556_s1 + $0x11f8] sm:$0xff]   ;;  %v90_v13 = vld [vmem:[%s20557_s0 + $0x228] sm:$0xff] }
 0x21c   :  { %v18345_v11 = vadd.f32 %v14111_v4, %v10287_v7  ;;  %14392 = vmatpush3.bf16.msra.mxu0 %v15876_v19  ;;  %v15905_v4 = vld [vmem:[%s20556_s1 + $0x11a8] sm:$0xff]   ;;  %v15908_v7 = vld [vmem:[%s20556_s1 + $0x1130] sm:$0xff]   ;;  %v234_v16 = vpack.c.bf16 %v90_v13, %v90_v13 }
 0x21d   :  { %14414 = vmatpush3.bf16.msra.mxu1 %v15877_v20  ;;  %14393 = vmatprep.subr.bf16.mxu0 %v15878_v21  ;;  %v91_v19 = vld [vmem:[%s20557_s0 + $0x230] sm:$0xff]  ;;  %v15914_v21 = vld [vmem:[%s20556_s1 + $0x1240] sm:$0xff]   ;;  %v15950_v13 = vld [vmem:[%s20556_s1 + $0x1348] sm:$0xff]  }
 0x21e   :  { %14415 = vmatprep.subr.bf16.mxu1 %v15879_v22  ;;  %v235_v20 = vpack.c.bf16 %v91_v19, %v91_v19  ;;  %v15915_v22 = vld [vmem:[%s20556_s1 + $0x12c0] sm:$0xff]   ;;  %v15952_v15 = vld [vmem:[%s20556_s1 + $0x1308] sm:$0xff]   ;;  %v15956_v19 = vld [vmem:[%s20556_s1 + $0x1310] sm:$0xff]  }
 0x220   :  { %14394 = vmatpush3.bf16.msra.mxu0 %v15880_v23  ;;  %v15916_v23 = vld [vmem:[%s20556_s1 + $0x1200] sm:$0xff]  }
 0x221   :  { %14416 = vmatpush3.bf16.msra.mxu1 %v15881_v24  ;;  %14423 = vmatprep.subr.bf16.mxu0 %v15882_v33  ;;  %v15917_v24 = vld [vmem:[%s20556_s1 + $0x1280] sm:$0xff]   ;;  %v15926_v33 = vld [vmem:[%s20556_s1 + $0x1258] sm:$0xff]  }
 0x222   :  { %14445 = vmatprep.subr.bf16.mxu1 %v15883_v34  ;;  %v15927_v34 = vld [vmem:[%s20556_s1 + $0x12d8] sm:$0xff]  }
 0x223   :  { %10845 = vmatmul.mubr.bf16.vlgmr.msra.gmra.mrb[64].mxu0 %v229_v31  ;;  %v15924_v31 = vld [vmem:[%s20556_s1 + $0x1210] sm:$0xff]  }
 0x224   :  { %10885 = vmatmul.mubr.bf16.vlgmr.msra.gmra.mrb[64].mxu1 %v231_v32  ;;  %14424 = vmatpush3.bf16.msra.mxu0 %v15884_v35  ;;  %v15925_v32 = vld [vmem:[%s20556_s1 + $0x1290] sm:$0xff]  }
 0x225   :  { %14446 = vmatpush3.bf16.msra.mxu1 %v15885_v36  ;;  %14425 = vmatprep.subr.bf16.mxu0 %v15886_v37  ;;  %v15928_v36 = vld [vmem:[%s20556_s1 + $0x1218] sm:$0xff]  }
 0x226   :  { %14447 = vmatprep.subr.bf16.mxu1 %v15887_v38  ;;  %10924 = vmatprep.mubr.bf16.mxu0 %v234_v16  ;;  %v15929_v38 = vld [vmem:[%s20556_s1 + $0x1298] sm:$0xff]   ;;  %v15953_v16 = vld [vmem:[%s20556_s1 + $0x1388] sm:$0xff]  }
 0x227   :  { %10964 = vmatprep.mubr.bf16.mxu1 %v236_v17  ;;  %v15954_v17 = vld [vmem:[%s20556_s1 + $0x1350] sm:$0xff]  }
 0x228   :  { %14426 = vmatpush3.bf16.msra.mxu0 %v15888_v39 }
 0x229   :  { %14448 = vmatpush3.bf16.msra.mxu1 %v15889_v40  ;;  %14427 = vmatprep.subr.bf16.mxu0 %v15890_v41  ;;  %v15930_v40 = vld [vmem:[%s20556_s1 + $0x1260] sm:$0xff]  }
 0x22a   :  { %14449 = vmatprep.subr.bf16.mxu1 %v15891_v42 }
 0x22c   :  { %14428 = vmatpush3.bf16.msra.mxu0 %v15892_v43  ;;  %v15931_v43 = vld [vmem:[%s20556_s1 + $0x12e0] sm:$0xff]  }
 0x22d   :  { %14450 = vmatpush3.bf16.msra.mxu1 %v15893_v44  ;;  %14429 = vmatprep.subr.bf16.mxu0 %v15894_v45 }
 0x22e   :  { %14451 = vmatprep.subr.bf16.mxu1 %v15895_v46  ;;  %v15932_v46 = vld [vmem:[%s20556_s1 + $0x1220] sm:$0xff]  }
 0x230   :  { %14430 = vmatpush3.bf16.msra.mxu0 %v15896_v48 }
 0x231   :  { %14452 = vmatpush3.bf16.msra.mxu1 %v15897_v50  ;;  %14431 = vmatprep.subr.bf16.mxu0 %v15898_v52  ;;  %v15934_v52 = vld [vmem:[%s20556_s1 + $0x1268] sm:$0xff]  }
 0x232   :  { %14453 = vmatprep.subr.bf16.mxu1 %v15899_v55  ;;  %v15936_v55 = vld [vmem:[%s20556_s1 + $0x1228] sm:$0xff]  }
 0x234   :  { %14432 = vmatpush3.bf16.msra.mxu0 %v15900_v58  ;;  %v15939_v58 = vld [vmem:[%s20556_s1 + $0x12f0] sm:$0xff]  }
 0x235   :  { %14454 = vmatpush3.bf16.msra.mxu1 %v15901_v61  ;;  %14433 = vmatprep.subr.bf16.mxu0 %v15902_v0  ;;  %v15942_v61 = vld [vmem:[%s20556_s1 + $0x1278] sm:$0xff]  }
 0x236   :  { %v14131_v47 = vpop.f32.mrb[40].mxu0  ;;  %14455 = vmatprep.subr.bf16.mxu1 %v15903_v2  ;;  %v15945_v0 = vld [vmem:[%s20556_s1 + $0x12b8] sm:$0xff]  }
 0x237   :  { %v14153_v49 = vpop.f32.mrb[40].mxu1  ;;  %v14132_v51 = vpop.f32.mrb[41].mxu0  ;;  %v96_v2 = vld [vmem:[%s20557_s0 + $0x258] sm:$0xff] }
 0x238   :  { %v14133_v53 = vadd.f32 %v14132_v51, %v14131_v47  ;;  %v14154_v54 = vpop.f32.mrb[41].mxu1  ;;  %v14134_v57 = vpop.f32.mrb[42].mxu0  ;;  %14434 = vmatpush3.bf16.msra.mxu0 %v15904_v3 }
 0x239   :  { %v14155_v56 = vadd.f32 %v14154_v54, %v14153_v49  ;;  %v14156_v60 = vpop.f32.mrb[42].mxu1  ;;  %v14135_v62 = vpop.f32.mrb[43].mxu0  ;;  %14456 = vmatpush3.bf16.msra.mxu1 %v15905_v4  ;;  %14435 = vmatprep.subr.bf16.mxu0 %v15906_v5  ;;  %v15933_v49 = vld [vmem:[%s20556_s1 + $0x12a0] sm:$0xff]   ;;  %v15935_v54 = vld [vmem:[%s20556_s1 + $0x12e8] sm:$0xff]   ;;  %v15938_v57 = vld [vmem:[%s20556_s1 + $0x1270] sm:$0xff]   ;;  %v240_v4 = vpack.c.bf16 %v96_v2, %v96_v2 }
 0x23a   :  { %v10367_v59 = vadd.f32 %v14133_v53, %v18345_v11  ;;  %v14157_v1 = vpop.f32.mrb[43].mxu1  ;;  %14457 = vmatprep.subr.bf16.mxu1 %v15907_v6  ;;  %v15912_v11 = vld [vmem:[%s20556_s1 + $0x1138] sm:$0xff]   ;;  %v15941_v60 = vld [vmem:[%s20556_s1 + $0x12b0] sm:$0xff]   ;;  %v93_v5 = vld [vmem:[%s20557_s0 + $0x240] sm:$0xff] }
 0x23b   :  { %v15943_v62 = vld [vmem:[%s20556_s1 + $0x12f8] sm:$0xff]   ;;  %v94_v1 = vld [vmem:[%s20557_s0 + $0x248] sm:$0xff]  ;;  %v95_v6 = vld [vmem:[%s20557_s0 + $0x250] sm:$0xff] }
 0x23c   :  { %v18456_v63 = vadd.f32 %v14155_v56, %v10367_v59  ;;  %14436 = vmatpush3.bf16.msra.mxu0 %v15908_v7  ;;  %v15937_v56 = vld [vmem:[%s20556_s1 + $0x12a8] sm:$0xff]   ;;  %v15940_v59 = vld [vmem:[%s20556_s1 + $0x1230] sm:$0xff]   ;;  %v238_v3 = vpack.c.bf16 %v94_v1, %v94_v1  ;;  %v237_v7 = vpack.c.bf16 %v93_v5, %v93_v5 }
 0x23d   :  { %14458 = vmatpush3.bf16.msra.mxu1 %v15909_v8  ;;  %14437 = vmatprep.subr.bf16.mxu0 %v15910_v9  ;;  %v239_v8 = vpack.c.bf16 %v95_v6, %v95_v6  ;;  %v15946_v9 = vld [vmem:[%s20556_s1 + $0x1340] sm:$0xff]   ;;  %v15982_v1 = vld [vmem:[%s20556_s1 + $0x1448] sm:$0xff]   ;;  %v15986_v5 = vld [vmem:[%s20556_s1 + $0x1450] sm:$0xff]  }
 0x23e   :  { %14459 = vmatprep.subr.bf16.mxu1 %v15911_v10  ;;  %v15947_v10 = vld [vmem:[%s20556_s1 + $0x13c0] sm:$0xff]   ;;  %v15983_v2 = vld [vmem:[%s20556_s1 + $0x14c8] sm:$0xff]   ;;  %v15987_v6 = vld [vmem:[%s20556_s1 + $0x14d0] sm:$0xff]  }
 0x240   :  { %14438 = vmatpush3.bf16.msra.mxu0 %v15912_v11  ;;  %v15948_v11 = vld [vmem:[%s20556_s1 + $0x1300] sm:$0xff]  }
 0x241   :  { %14460 = vmatpush3.bf16.msra.mxu1 %v15913_v12  ;;  %14467 = vmatprep.subr.bf16.mxu0 %v15914_v21  ;;  %v15949_v12 = vld [vmem:[%s20556_s1 + $0x1380] sm:$0xff]   ;;  %v15958_v21 = vld [vmem:[%s20556_s1 + $0x1358] sm:$0xff]  }
 0x242   :  { %14489 = vmatprep.subr.bf16.mxu1 %v15915_v22  ;;  %v15959_v22 = vld [vmem:[%s20556_s1 + $0x13d8] sm:$0xff]  }
 0x243   :  { %10925 = vmatmul.mubr.bf16.vlgmr.msra.gmra.mrb[68].mxu0 %v233_v18  ;;  %v15955_v18 = vld [vmem:[%s20556_s1 + $0x13d0] sm:$0xff]  }
 0x244   :  { %10965 = vmatmul.mubr.bf16.vlgmr.msra.gmra.mrb[68].mxu1 %v235_v20  ;;  %14468 = vmatpush3.bf16.msra.mxu0 %v15916_v23  ;;  %v15957_v20 = vld [vmem:[%s20556_s1 + $0x1390] sm:$0xff]  }
 0x245   :  { %14490 = vmatpush3.bf16.msra.mxu1 %v15917_v24  ;;  %14469 = vmatprep.subr.bf16.mxu0 %v15918_v25  ;;  %v15960_v24 = vld [vmem:[%s20556_s1 + $0x1318] sm:$0xff]  }
 0x246   :  { %14491 = vmatprep.subr.bf16.mxu1 %v15919_v26  ;;  %11004 = vmatprep.mubr.bf16.mxu0 %v238_v3  ;;  %v15961_v26 = vld [vmem:[%s20556_s1 + $0x1398] sm:$0xff]   ;;  %v15984_v3 = vld [vmem:[%s20556_s1 + $0x1408] sm:$0xff]  }
 0x247   :  { %11044 = vmatprep.mubr.bf16.mxu1 %v240_v4  ;;  %v15985_v4 = vld [vmem:[%s20556_s1 + $0x1488] sm:$0xff]  }
 0x248   :  { %14470 = vmatpush3.bf16.msra.mxu0 %v15920_v27 }
 0x249   :  { %14492 = vmatpush3.bf16.msra.mxu1 %v15921_v28  ;;  %14471 = vmatprep.subr.bf16.mxu0 %v15922_v29  ;;  %v15962_v28 = vld [vmem:[%s20556_s1 + $0x1360] sm:$0xff]  }
 0x24a   :  { %14493 = vmatprep.subr.bf16.mxu1 %v15923_v30 }
 0x24c   :  { %14472 = vmatpush3.bf16.msra.mxu0 %v15924_v31  ;;  %v15963_v31 = vld [vmem:[%s20556_s1 + $0x13e0] sm:$0xff]  }
 0x24d   :  { %14494 = vmatpush3.bf16.msra.mxu1 %v15925_v32  ;;  %14473 = vmatprep.subr.bf16.mxu0 %v15926_v33 }
 0x24e   :  { %14495 = vmatprep.subr.bf16.mxu1 %v15927_v34  ;;  %v15964_v34 = vld [vmem:[%s20556_s1 + $0x1320] sm:$0xff]  }
 0x250   :  { %14474 = vmatpush3.bf16.msra.mxu0 %v15928_v36 }
 0x251   :  { %14496 = vmatpush3.bf16.msra.mxu1 %v15929_v38  ;;  %14475 = vmatprep.subr.bf16.mxu0 %v15930_v40  ;;  %v15966_v40 = vld [vmem:[%s20556_s1 + $0x1368] sm:$0xff]  }
 0x252   :  { %14497 = vmatprep.subr.bf16.mxu1 %v15931_v43  ;;  %v15968_v43 = vld [vmem:[%s20556_s1 + $0x1328] sm:$0xff]  }
 0x254   :  { %14476 = vmatpush3.bf16.msra.mxu0 %v15932_v46  ;;  %v15971_v46 = vld [vmem:[%s20556_s1 + $0x13f0] sm:$0xff]  }
 0x255   :  { %14498 = vmatpush3.bf16.msra.mxu1 %v15933_v49  ;;  %14477 = vmatprep.subr.bf16.mxu0 %v15934_v52  ;;  %v15974_v49 = vld [vmem:[%s20556_s1 + $0x1378] sm:$0xff]  }
 0x256   :  { %v14175_v35 = vpop.f32.mrb[44].mxu0  ;;  %14499 = vmatprep.subr.bf16.mxu1 %v15935_v54  ;;  %v15977_v52 = vld [vmem:[%s20556_s1 + $0x13b8] sm:$0xff]  }
 0x257   :  { %v14197_v37 = vpop.f32.mrb[44].mxu1  ;;  %v14176_v39 = vpop.f32.mrb[45].mxu0 }
 0x258   :  { %v14177_v41 = vadd.f32 %v14176_v39, %v14175_v35  ;;  %v14198_v42 = vpop.f32.mrb[45].mxu1  ;;  %v14178_v45 = vpop.f32.mrb[46].mxu0  ;;  %14478 = vmatpush3.bf16.msra.mxu0 %v15936_v55  ;;  %v100_v55 = vld [vmem:[%s20557_s0 + $0x278] sm:$0xff] }
 0x259   :  { %v14199_v44 = vadd.f32 %v14198_v42, %v14197_v37  ;;  %v14200_v48 = vpop.f32.mrb[46].mxu1  ;;  %v14179_v50 = vpop.f32.mrb[47].mxu0  ;;  %14500 = vmatpush3.bf16.msra.mxu1 %v15937_v56  ;;  %14479 = vmatprep.subr.bf16.mxu0 %v15938_v57  ;;  %v15965_v37 = vld [vmem:[%s20556_s1 + $0x13a0] sm:$0xff]   ;;  %v15967_v42 = vld [vmem:[%s20556_s1 + $0x13e8] sm:$0xff]   ;;  %v15970_v45 = vld [vmem:[%s20556_s1 + $0x1370] sm:$0xff]  }
 0x25a   :  { %v10447_v47 = vadd.f32 %v14177_v41, %v18456_v63  ;;  %v14201_v53 = vpop.f32.mrb[47].mxu1  ;;  %14501 = vmatprep.subr.bf16.mxu1 %v15939_v58  ;;  %v15944_v63 = vld [vmem:[%s20556_s1 + $0x1238] sm:$0xff]   ;;  %v15973_v48 = vld [vmem:[%s20556_s1 + $0x13b0] sm:$0xff]   ;;  %v97_v56 = vld [vmem:[%s20557_s0 + $0x260] sm:$0xff]  ;;  %v244_v58 = vpack.c.bf16 %v100_v55, %v100_v55 }
 0x25b   :  { %v15975_v50 = vld [vmem:[%s20556_s1 + $0x13f8] sm:$0xff]   ;;  %v98_v53 = vld [vmem:[%s20557_s0 + $0x268] sm:$0xff]  ;;  %v99_v57 = vld [vmem:[%s20557_s0 + $0x270] sm:$0xff] }
 0x25c   :  { %v18567_v51 = vadd.f32 %v14199_v44, %v10447_v47  ;;  %14480 = vmatpush3.bf16.msra.mxu0 %v15940_v59  ;;  %v15969_v44 = vld [vmem:[%s20556_s1 + $0x13a8] sm:$0xff]   ;;  %v15972_v47 = vld [vmem:[%s20556_s1 + $0x1330] sm:$0xff]   ;;  %v242_v54 = vpack.c.bf16 %v98_v53, %v98_v53  ;;  %v241_v59 = vpack.c.bf16 %v97_v56, %v97_v56 }
 0x25d   :  { %14502 = vmatpush3.bf16.msra.mxu1 %v15941_v60  ;;  %14481 = vmatprep.subr.bf16.mxu0 %v15942_v61  ;;  %v243_v60 = vpack.c.bf16 %v99_v57, %v99_v57  ;;  %v15978_v61 = vld [vmem:[%s20556_s1 + $0x1440] sm:$0xff]   ;;  %v16014_v53 = vld [vmem:[%s20556_s1 + $0x1548] sm:$0xff]   ;;  %v16018_v57 = vld [vmem:[%s20556_s1 + $0x1550] sm:$0xff]  }
 0x25e   :  { %14503 = vmatprep.subr.bf16.mxu1 %v15943_v62  ;;  %v15979_v62 = vld [vmem:[%s20556_s1 + $0x14c0] sm:$0xff]   ;;  %v16016_v55 = vld [vmem:[%s20556_s1 + $0x1508] sm:$0xff]  }
 0x25f   :  { %v16017_v56 = vld [vmem:[%s20556_s1 + $0x1588] sm:$0xff]  }
 0x260   :  { %14482 = vmatpush3.bf16.msra.mxu0 %v15944_v63  ;;  %v15980_v63 = vld [vmem:[%s20556_s1 + $0x1400] sm:$0xff]  }
 0x261   :  { %14504 = vmatpush3.bf16.msra.mxu1 %v15945_v0  ;;  %14511 = vmatprep.subr.bf16.mxu0 %v15946_v9  ;;  %v15981_v0 = vld [vmem:[%s20556_s1 + $0x1480] sm:$0xff]   ;;  %v15990_v9 = vld [vmem:[%s20556_s1 + $0x1458] sm:$0xff]  }
 0x262   :  { %14533 = vmatprep.subr.bf16.mxu1 %v15947_v10  ;;  %v15991_v10 = vld [vmem:[%s20556_s1 + $0x14d8] sm:$0xff]  }
 0x263   :  { %11005 = vmatmul.mubr.bf16.vlgmr.msra.gmra.mrb[72].mxu0 %v237_v7  ;;  %v15988_v7 = vld [vmem:[%s20556_s1 + $0x1410] sm:$0xff]  }
 0x264   :  { %11045 = vmatmul.mubr.bf16.vlgmr.msra.gmra.mrb[72].mxu1 %v239_v8  ;;  %14512 = vmatpush3.bf16.msra.mxu0 %v15948_v11  ;;  %v15989_v8 = vld [vmem:[%s20556_s1 + $0x1490] sm:$0xff]  }
 0x265   :  { %14534 = vmatpush3.bf16.msra.mxu1 %v15949_v12  ;;  %14513 = vmatprep.subr.bf16.mxu0 %v15950_v13  ;;  %v15992_v12 = vld [vmem:[%s20556_s1 + $0x1418] sm:$0xff]  }
 0x266   :  { %14535 = vmatprep.subr.bf16.mxu1 %v15951_v14  ;;  %11084 = vmatprep.mubr.bf16.mxu0 %v242_v54  ;;  %v15993_v14 = vld [vmem:[%s20556_s1 + $0x1498] sm:$0xff]   ;;  %v16015_v54 = vld [vmem:[%s20556_s1 + $0x15c8] sm:$0xff]  }
 0x267   :  { %11124 = vmatprep.mubr.bf16.mxu1 %v244_v58  ;;  %v16019_v58 = vld [vmem:[%s20556_s1 + $0x15d0] sm:$0xff]  }
 0x268   :  { %14514 = vmatpush3.bf16.msra.mxu0 %v15952_v15 }
 0x269   :  { %14536 = vmatpush3.bf16.msra.mxu1 %v15953_v16  ;;  %14515 = vmatprep.subr.bf16.mxu0 %v15954_v17  ;;  %v15994_v16 = vld [vmem:[%s20556_s1 + $0x1460] sm:$0xff]  }
 0x26a   :  { %14537 = vmatprep.subr.bf16.mxu1 %v15955_v18 }
 0x26c   :  { %14516 = vmatpush3.bf16.msra.mxu0 %v15956_v19  ;;  %v15995_v19 = vld [vmem:[%s20556_s1 + $0x14e0] sm:$0xff]  }
 0x26d   :  { %14538 = vmatpush3.bf16.msra.mxu1 %v15957_v20  ;;  %14517 = vmatprep.subr.bf16.mxu0 %v15958_v21 }
 0x26e   :  { %14539 = vmatprep.subr.bf16.mxu1 %v15959_v22  ;;  %v15996_v22 = vld [vmem:[%s20556_s1 + $0x1420] sm:$0xff]  }
 0x270   :  { %14518 = vmatpush3.bf16.msra.mxu0 %v15960_v24 }
 0x271   :  { %14540 = vmatpush3.bf16.msra.mxu1 %v15961_v26  ;;  %14519 = vmatprep.subr.bf16.mxu0 %v15962_v28  ;;  %v15998_v28 = vld [vmem:[%s20556_s1 + $0x1468] sm:$0xff]  }
 0x272   :  { %14541 = vmatprep.subr.bf16.mxu1 %v15963_v31  ;;  %v16000_v31 = vld [vmem:[%s20556_s1 + $0x1428] sm:$0xff]  }
 0x274   :  { %14520 = vmatpush3.bf16.msra.mxu0 %v15964_v34  ;;  %v16003_v34 = vld [vmem:[%s20556_s1 + $0x14f0] sm:$0xff]  }
 0x275   :  { %14542 = vmatpush3.bf16.msra.mxu1 %v15965_v37  ;;  %14521 = vmatprep.subr.bf16.mxu0 %v15966_v40  ;;  %v16006_v37 = vld [vmem:[%s20556_s1 + $0x1478] sm:$0xff]  }
 0x276   :  { %v14219_v23 = vpop.f32.mrb[48].mxu0  ;;  %14543 = vmatprep.subr.bf16.mxu1 %v15967_v42  ;;  %v16009_v40 = vld [vmem:[%s20556_s1 + $0x14b8] sm:$0xff]  }
 0x277   :  { %v14241_v25 = vpop.f32.mrb[48].mxu1  ;;  %v14220_v27 = vpop.f32.mrb[49].mxu0  ;;  %v104_v42 = vld [vmem:[%s20557_s0 + $0x298] sm:$0xff] }
 0x278   :  { %v14221_v29 = vadd.f32 %v14220_v27, %v14219_v23  ;;  %v14242_v30 = vpop.f32.mrb[49].mxu1  ;;  %v14222_v33 = vpop.f32.mrb[50].mxu0  ;;  %14522 = vmatpush3.bf16.msra.mxu0 %v15968_v43  ;;  %v101_v43 = vld [vmem:[%s20557_s0 + $0x280] sm:$0xff] }
 0x279   :  { %v14243_v32 = vadd.f32 %v14242_v30, %v14241_v25  ;;  %v14244_v36 = vpop.f32.mrb[50].mxu1  ;;  %v14223_v38 = vpop.f32.mrb[51].mxu0  ;;  %14544 = vmatpush3.bf16.msra.mxu1 %v15969_v44  ;;  %14523 = vmatprep.subr.bf16.mxu0 %v15970_v45  ;;  %v15997_v25 = vld [vmem:[%s20556_s1 + $0x14a0] sm:$0xff]   ;;  %v15999_v30 = vld [vmem:[%s20556_s1 + $0x14e8] sm:$0xff]   ;;  %v16002_v33 = vld [vmem:[%s20556_s1 + $0x1470] sm:$0xff]   ;;  %v248_v45 = vpack.c.bf16 %v104_v42, %v104_v42 }
 0x27a   :  { %v10527_v35 = vadd.f32 %v14221_v29, %v18567_v51  ;;  %v14245_v41 = vpop.f32.mrb[51].mxu1  ;;  %14545 = vmatprep.subr.bf16.mxu1 %v15971_v46  ;;  %v15976_v51 = vld [vmem:[%s20556_s1 + $0x1338] sm:$0xff]   ;;  %v16005_v36 = vld [vmem:[%s20556_s1 + $0x14b0] sm:$0xff]   ;;  %v245_v46 = vpack.c.bf16 %v101_v43, %v101_v43  ;;  %v16047_v42 = vld [vmem:[%s20556_s1 + $0x16c8] sm:$0xff]  }
 0x27b   :  { %v16007_v38 = vld [vmem:[%s20556_s1 + $0x14f8] sm:$0xff]   ;;  %v102_v41 = vld [vmem:[%s20557_s0 + $0x288] sm:$0xff] }
 0x27c   :  { %v18678_v39 = vadd.f32 %v14243_v32, %v10527_v35  ;;  %14524 = vmatpush3.bf16.msra.mxu0 %v15972_v47  ;;  %v16001_v32 = vld [vmem:[%s20556_s1 + $0x14a8] sm:$0xff]   ;;  %v16004_v35 = vld [vmem:[%s20556_s1 + $0x1430] sm:$0xff]   ;;  %v246_v44 = vpack.c.bf16 %v102_v41, %v102_v41 }
 0x27d   :  { %14546 = vmatpush3.bf16.msra.mxu1 %v15973_v48  ;;  %14525 = vmatprep.subr.bf16.mxu0 %v15974_v49  ;;  %v103_v47 = vld [vmem:[%s20557_s0 + $0x290] sm:$0xff]  ;;  %v16010_v49 = vld [vmem:[%s20556_s1 + $0x1540] sm:$0xff]   ;;  %v16046_v41 = vld [vmem:[%s20556_s1 + $0x1648] sm:$0xff]  }
 0x27e   :  { %14547 = vmatprep.subr.bf16.mxu1 %v15975_v50  ;;  %v247_v48 = vpack.c.bf16 %v103_v47, %v103_v47  ;;  %v16011_v50 = vld [vmem:[%s20556_s1 + $0x15c0] sm:$0xff]   ;;  %v16048_v43 = vld [vmem:[%s20556_s1 + $0x1608] sm:$0xff]   ;;  %v16052_v47 = vld [vmem:[%s20556_s1 + $0x1610] sm:$0xff]  }
 0x280   :  { %14526 = vmatpush3.bf16.msra.mxu0 %v15976_v51  ;;  %v16012_v51 = vld [vmem:[%s20556_s1 + $0x1500] sm:$0xff]  }
 0x281   :  { %14548 = vmatpush3.bf16.msra.mxu1 %v15977_v52  ;;  %14555 = vmatprep.subr.bf16.mxu0 %v15978_v61  ;;  %v16013_v52 = vld [vmem:[%s20556_s1 + $0x1580] sm:$0xff]   ;;  %v16022_v61 = vld [vmem:[%s20556_s1 + $0x1558] sm:$0xff]  }
 0x282   :  { %14577 = vmatprep.subr.bf16.mxu1 %v15979_v62  ;;  %v16023_v62 = vld [vmem:[%s20556_s1 + $0x15d8] sm:$0xff]  }
 0x283   :  { %11085 = vmatmul.mubr.bf16.vlgmr.msra.gmra.mrb[76].mxu0 %v241_v59  ;;  %v16020_v59 = vld [vmem:[%s20556_s1 + $0x1510] sm:$0xff]  }
 0x284   :  { %11125 = vmatmul.mubr.bf16.vlgmr.msra.gmra.mrb[76].mxu1 %v243_v60  ;;  %14556 = vmatpush3.bf16.msra.mxu0 %v15980_v63  ;;  %v16021_v60 = vld [vmem:[%s20556_s1 + $0x1590] sm:$0xff]  }
 0x285   :  { %14578 = vmatpush3.bf16.msra.mxu1 %v15981_v0  ;;  %14557 = vmatprep.subr.bf16.mxu0 %v15982_v1  ;;  %v16024_v0 = vld [vmem:[%s20556_s1 + $0x1518] sm:$0xff]  }
 0x286   :  { %14579 = vmatprep.subr.bf16.mxu1 %v15983_v2  ;;  %11164 = vmatprep.mubr.bf16.mxu0 %v246_v44  ;;  %v16025_v2 = vld [vmem:[%s20556_s1 + $0x1598] sm:$0xff]   ;;  %v16049_v44 = vld [vmem:[%s20556_s1 + $0x1688] sm:$0xff]  }
 0x287   :  { %11204 = vmatprep.mubr.bf16.mxu1 %v248_v45  ;;  %v16050_v45 = vld [vmem:[%s20556_s1 + $0x1650] sm:$0xff]  }
 0x288   :  { %14558 = vmatpush3.bf16.msra.mxu0 %v15984_v3 }
 0x289   :  { %14580 = vmatpush3.bf16.msra.mxu1 %v15985_v4  ;;  %14559 = vmatprep.subr.bf16.mxu0 %v15986_v5  ;;  %v16026_v4 = vld [vmem:[%s20556_s1 + $0x1560] sm:$0xff]  }
 0x28a   :  { %14581 = vmatprep.subr.bf16.mxu1 %v15987_v6 }
 0x28c   :  { %14560 = vmatpush3.bf16.msra.mxu0 %v15988_v7  ;;  %v16027_v7 = vld [vmem:[%s20556_s1 + $0x15e0] sm:$0xff]  }
 0x28d   :  { %14582 = vmatpush3.bf16.msra.mxu1 %v15989_v8  ;;  %14561 = vmatprep.subr.bf16.mxu0 %v15990_v9 }
 0x28e   :  { %14583 = vmatprep.subr.bf16.mxu1 %v15991_v10  ;;  %v16028_v10 = vld [vmem:[%s20556_s1 + $0x1520] sm:$0xff]  }
 0x290   :  { %14562 = vmatpush3.bf16.msra.mxu0 %v15992_v12 }
 0x291   :  { %14584 = vmatpush3.bf16.msra.mxu1 %v15993_v14  ;;  %14563 = vmatprep.subr.bf16.mxu0 %v15994_v16  ;;  %v16030_v16 = vld [vmem:[%s20556_s1 + $0x1568] sm:$0xff]  }
 0x292   :  { %14585 = vmatprep.subr.bf16.mxu1 %v15995_v19  ;;  %v16032_v19 = vld [vmem:[%s20556_s1 + $0x1528] sm:$0xff]  }
 0x294   :  { %14564 = vmatpush3.bf16.msra.mxu0 %v15996_v22  ;;  %v16035_v22 = vld [vmem:[%s20556_s1 + $0x15f0] sm:$0xff]  }
 0x295   :  { %14586 = vmatpush3.bf16.msra.mxu1 %v15997_v25  ;;  %14565 = vmatprep.subr.bf16.mxu0 %v15998_v28  ;;  %v16038_v25 = vld [vmem:[%s20556_s1 + $0x1578] sm:$0xff]  }
 0x296   :  { %v14263_v11 = vpop.f32.mrb[52].mxu0  ;;  %14587 = vmatprep.subr.bf16.mxu1 %v15999_v30  ;;  %v16041_v28 = vld [vmem:[%s20556_s1 + $0x15b8] sm:$0xff]  }
 0x297   :  { %v14285_v13 = vpop.f32.mrb[52].mxu1  ;;  %v14264_v15 = vpop.f32.mrb[53].mxu0  ;;  %v108_v30 = vld [vmem:[%s20557_s0 + $0x2b8] sm:$0xff] }
 0x298   :  { %v14265_v17 = vadd.f32 %v14264_v15, %v14263_v11  ;;  %v14286_v18 = vpop.f32.mrb[53].mxu1  ;;  %v14266_v21 = vpop.f32.mrb[54].mxu0  ;;  %14566 = vmatpush3.bf16.msra.mxu0 %v16000_v31 }
 0x299   :  { %v14287_v20 = vadd.f32 %v14286_v18, %v14285_v13  ;;  %v14288_v24 = vpop.f32.mrb[54].mxu1  ;;  %v14267_v26 = vpop.f32.mrb[55].mxu0  ;;  %14588 = vmatpush3.bf16.msra.mxu1 %v16001_v32  ;;  %14567 = vmatprep.subr.bf16.mxu0 %v16002_v33  ;;  %v16029_v13 = vld [vmem:[%s20556_s1 + $0x15a0] sm:$0xff]   ;;  %v16031_v18 = vld [vmem:[%s20556_s1 + $0x15e8] sm:$0xff]   ;;  %v16034_v21 = vld [vmem:[%s20556_s1 + $0x1570] sm:$0xff]   ;;  %v252_v32 = vpack.c.bf16 %v108_v30, %v108_v30 }
 0x29a   :  { %v10607_v23 = vadd.f32 %v14265_v17, %v18678_v39  ;;  %v14289_v29 = vpop.f32.mrb[55].mxu1  ;;  %14589 = vmatprep.subr.bf16.mxu1 %v16003_v34  ;;  %v16008_v39 = vld [vmem:[%s20556_s1 + $0x1438] sm:$0xff]   ;;  %v16037_v24 = vld [vmem:[%s20556_s1 + $0x15b0] sm:$0xff]   ;;  %v105_v33 = vld [vmem:[%s20557_s0 + $0x2a0] sm:$0xff] }
 0x29b   :  { %v16039_v26 = vld [vmem:[%s20556_s1 + $0x15f8] sm:$0xff]   ;;  %v106_v29 = vld [vmem:[%s20557_s0 + $0x2a8] sm:$0xff]  ;;  %v107_v34 = vld [vmem:[%s20557_s0 + $0x2b0] sm:$0xff] }
 0x29c   :  { %v18789_v27 = vadd.f32 %v14287_v20, %v10607_v23  ;;  %14568 = vmatpush3.bf16.msra.mxu0 %v16004_v35  ;;  %v16033_v20 = vld [vmem:[%s20556_s1 + $0x15a8] sm:$0xff]   ;;  %v16036_v23 = vld [vmem:[%s20556_s1 + $0x1530] sm:$0xff]   ;;  %v250_v31 = vpack.c.bf16 %v106_v29, %v106_v29  ;;  %v249_v35 = vpack.c.bf16 %v105_v33, %v105_v33 }
 0x29d   :  { %14590 = vmatpush3.bf16.msra.mxu1 %v16005_v36  ;;  %14569 = vmatprep.subr.bf16.mxu0 %v16006_v37  ;;  %v251_v36 = vpack.c.bf16 %v107_v34, %v107_v34  ;;  %v16042_v37 = vld [vmem:[%s20556_s1 + $0x1640] sm:$0xff]   ;;  %v16078_v29 = vld [vmem:[%s20556_s1 + $0x1748] sm:$0xff]   ;;  %v16082_v33 = vld [vmem:[%s20556_s1 + $0x1750] sm:$0xff]  }
 0x29e   :  { %14591 = vmatprep.subr.bf16.mxu1 %v16007_v38  ;;  %v16043_v38 = vld [vmem:[%s20556_s1 + $0x16c0] sm:$0xff]   ;;  %v16079_v30 = vld [vmem:[%s20556_s1 + $0x17c8] sm:$0xff]   ;;  %v16083_v34 = vld [vmem:[%s20556_s1 + $0x17d0] sm:$0xff]  }
 0x2a0   :  { %14570 = vmatpush3.bf16.msra.mxu0 %v16008_v39  ;;  %v16044_v39 = vld [vmem:[%s20556_s1 + $0x1600] sm:$0xff]  }
 0x2a1   :  { %14592 = vmatpush3.bf16.msra.mxu1 %v16009_v40  ;;  %14599 = vmatprep.subr.bf16.mxu0 %v16010_v49  ;;  %v16045_v40 = vld [vmem:[%s20556_s1 + $0x1680] sm:$0xff]   ;;  %v16054_v49 = vld [vmem:[%s20556_s1 + $0x1658] sm:$0xff]  }
 0x2a2   :  { %14621 = vmatprep.subr.bf16.mxu1 %v16011_v50  ;;  %v16055_v50 = vld [vmem:[%s20556_s1 + $0x16d8] sm:$0xff]  }
 0x2a3   :  { %11165 = vmatmul.mubr.bf16.vlgmr.msra.gmra.mrb[80].mxu0 %v245_v46  ;;  %v16051_v46 = vld [vmem:[%s20556_s1 + $0x16d0] sm:$0xff]  }
 0x2a4   :  { %11205 = vmatmul.mubr.bf16.vlgmr.msra.gmra.mrb[80].mxu1 %v247_v48  ;;  %14600 = vmatpush3.bf16.msra.mxu0 %v16012_v51  ;;  %v16053_v48 = vld [vmem:[%s20556_s1 + $0x1690] sm:$0xff]  }
 0x2a5   :  { %14622 = vmatpush3.bf16.msra.mxu1 %v16013_v52  ;;  %14601 = vmatprep.subr.bf16.mxu0 %v16014_v53  ;;  %v16056_v52 = vld [vmem:[%s20556_s1 + $0x1618] sm:$0xff]  }
 0x2a6   :  { %14623 = vmatprep.subr.bf16.mxu1 %v16015_v54  ;;  %11244 = vmatprep.mubr.bf16.mxu0 %v250_v31  ;;  %v16057_v54 = vld [vmem:[%s20556_s1 + $0x1698] sm:$0xff]   ;;  %v16080_v31 = vld [vmem:[%s20556_s1 + $0x1708] sm:$0xff]  }
 0x2a7   :  { %11284 = vmatprep.mubr.bf16.mxu1 %v252_v32  ;;  %v16081_v32 = vld [vmem:[%s20556_s1 + $0x1788] sm:$0xff]  }
 0x2a8   :  { %14602 = vmatpush3.bf16.msra.mxu0 %v16016_v55 }
 0x2a9   :  { %14624 = vmatpush3.bf16.msra.mxu1 %v16017_v56  ;;  %14603 = vmatprep.subr.bf16.mxu0 %v16018_v57  ;;  %v16058_v56 = vld [vmem:[%s20556_s1 + $0x1660] sm:$0xff]  }
 0x2aa   :  { %14625 = vmatprep.subr.bf16.mxu1 %v16019_v58 }
 0x2ac   :  { %14604 = vmatpush3.bf16.msra.mxu0 %v16020_v59  ;;  %v16059_v59 = vld [vmem:[%s20556_s1 + $0x16e0] sm:$0xff]  }
 0x2ad   :  { %14626 = vmatpush3.bf16.msra.mxu1 %v16021_v60  ;;  %14605 = vmatprep.subr.bf16.mxu0 %v16022_v61 }
 0x2ae   :  { %14627 = vmatprep.subr.bf16.mxu1 %v16023_v62  ;;  %v16060_v62 = vld [vmem:[%s20556_s1 + $0x1620] sm:$0xff]  }
 0x2b0   :  { %14606 = vmatpush3.bf16.msra.mxu0 %v16024_v0 }
 0x2b1   :  { %14628 = vmatpush3.bf16.msra.mxu1 %v16025_v2  ;;  %14607 = vmatprep.subr.bf16.mxu0 %v16026_v4  ;;  %v16062_v4 = vld [vmem:[%s20556_s1 + $0x1668] sm:$0xff]  }
 0x2b2   :  { %14629 = vmatprep.subr.bf16.mxu1 %v16027_v7  ;;  %v16064_v7 = vld [vmem:[%s20556_s1 + $0x1628] sm:$0xff]  }
 0x2b4   :  { %14608 = vmatpush3.bf16.msra.mxu0 %v16028_v10  ;;  %v16067_v10 = vld [vmem:[%s20556_s1 + $0x16f0] sm:$0xff]  }
 0x2b5   :  { %14630 = vmatpush3.bf16.msra.mxu1 %v16029_v13  ;;  %14609 = vmatprep.subr.bf16.mxu0 %v16030_v16  ;;  %v16070_v13 = vld [vmem:[%s20556_s1 + $0x1678] sm:$0xff]  }
 0x2b6   :  { %v14307_v63 = vpop.f32.mrb[56].mxu0  ;;  %14631 = vmatprep.subr.bf16.mxu1 %v16031_v18  ;;  %v16073_v16 = vld [vmem:[%s20556_s1 + $0x16b8] sm:$0xff]  }
 0x2b7   :  { %v14329_v1 = vpop.f32.mrb[56].mxu1  ;;  %v14308_v3 = vpop.f32.mrb[57].mxu0 }
 0x2b8   :  { %v14309_v5 = vadd.f32 %v14308_v3, %v14307_v63  ;;  %v14330_v6 = vpop.f32.mrb[57].mxu1  ;;  %v14310_v9 = vpop.f32.mrb[58].mxu0  ;;  %14610 = vmatpush3.bf16.msra.mxu0 %v16032_v19  ;;  %v112_v19 = vld [vmem:[%s20557_s0 + $0x2d8] sm:$0xff] }
 0x2b9   :  { %v14331_v8 = vadd.f32 %v14330_v6, %v14329_v1  ;;  %v14332_v12 = vpop.f32.mrb[58].mxu1  ;;  %v14311_v14 = vpop.f32.mrb[59].mxu0  ;;  %14632 = vmatpush3.bf16.msra.mxu1 %v16033_v20  ;;  %14611 = vmatprep.subr.bf16.mxu0 %v16034_v21  ;;  %v16061_v1 = vld [vmem:[%s20556_s1 + $0x16a0] sm:$0xff]   ;;  %v16063_v6 = vld [vmem:[%s20556_s1 + $0x16e8] sm:$0xff]   ;;  %v16066_v9 = vld [vmem:[%s20556_s1 + $0x1670] sm:$0xff]  }
 0x2ba   :  { %v10687_v11 = vadd.f32 %v14309_v5, %v18789_v27  ;;  %v14333_v17 = vpop.f32.mrb[59].mxu1  ;;  %14633 = vmatprep.subr.bf16.mxu1 %v16035_v22  ;;  %v16040_v27 = vld [vmem:[%s20556_s1 + $0x1538] sm:$0xff]   ;;  %v16069_v12 = vld [vmem:[%s20556_s1 + $0x16b0] sm:$0xff]   ;;  %v109_v20 = vld [vmem:[%s20557_s0 + $0x2c0] sm:$0xff]  ;;  %v256_v22 = vpack.c.bf16 %v112_v19, %v112_v19 }
 0x2bb   :  { %v16071_v14 = vld [vmem:[%s20556_s1 + $0x16f8] sm:$0xff]   ;;  %v110_v17 = vld [vmem:[%s20557_s0 + $0x2c8] sm:$0xff]  ;;  %v111_v21 = vld [vmem:[%s20557_s0 + $0x2d0] sm:$0xff] }
 0x2bc   :  { %v18900_v15 = vadd.f32 %v14331_v8, %v10687_v11  ;;  %14612 = vmatpush3.bf16.msra.mxu0 %v16036_v23  ;;  %v16065_v8 = vld [vmem:[%s20556_s1 + $0x16a8] sm:$0xff]   ;;  %v16068_v11 = vld [vmem:[%s20556_s1 + $0x1630] sm:$0xff]   ;;  %v254_v18 = vpack.c.bf16 %v110_v17, %v110_v17  ;;  %v253_v23 = vpack.c.bf16 %v109_v20, %v109_v20 }
 0x2bd   :  { %14634 = vmatpush3.bf16.msra.mxu1 %v16037_v24  ;;  %14613 = vmatprep.subr.bf16.mxu0 %v16038_v25  ;;  %v255_v24 = vpack.c.bf16 %v111_v21, %v111_v21  ;;  %v16074_v25 = vld [vmem:[%s20556_s1 + $0x1740] sm:$0xff]   ;;  %v16110_v17 = vld [vmem:[%s20556_s1 + $0x1848] sm:$0xff]   ;;  %v16114_v21 = vld [vmem:[%s20556_s1 + $0x1850] sm:$0xff]  }
 0x2be   :  { %14635 = vmatprep.subr.bf16.mxu1 %v16039_v26  ;;  %v16075_v26 = vld [vmem:[%s20556_s1 + $0x17c0] sm:$0xff]   ;;  %v16112_v19 = vld [vmem:[%s20556_s1 + $0x1808] sm:$0xff]  }
 0x2bf   :  { %v16113_v20 = vld [vmem:[%s20556_s1 + $0x1888] sm:$0xff]  }
 0x2c0   :  { %14614 = vmatpush3.bf16.msra.mxu0 %v16040_v27  ;;  %v16076_v27 = vld [vmem:[%s20556_s1 + $0x1700] sm:$0xff]  }
 0x2c1   :  { %14636 = vmatpush3.bf16.msra.mxu1 %v16041_v28  ;;  %14643 = vmatprep.subr.bf16.mxu0 %v16042_v37  ;;  %v16077_v28 = vld [vmem:[%s20556_s1 + $0x1780] sm:$0xff]   ;;  %v16086_v37 = vld [vmem:[%s20556_s1 + $0x1758] sm:$0xff]  }
 0x2c2   :  { %14665 = vmatprep.subr.bf16.mxu1 %v16043_v38  ;;  %v16087_v38 = vld [vmem:[%s20556_s1 + $0x17d8] sm:$0xff]  }
 0x2c3   :  { %11245 = vmatmul.mubr.bf16.vlgmr.msra.gmra.mrb[84].mxu0 %v249_v35  ;;  %v16084_v35 = vld [vmem:[%s20556_s1 + $0x1710] sm:$0xff]  }
 0x2c4   :  { %11285 = vmatmul.mubr.bf16.vlgmr.msra.gmra.mrb[84].mxu1 %v251_v36  ;;  %14644 = vmatpush3.bf16.msra.mxu0 %v16044_v39  ;;  %v16085_v36 = vld [vmem:[%s20556_s1 + $0x1790] sm:$0xff]  }
 0x2c5   :  { %14666 = vmatpush3.bf16.msra.mxu1 %v16045_v40  ;;  %14645 = vmatprep.subr.bf16.mxu0 %v16046_v41  ;;  %v16088_v40 = vld [vmem:[%s20556_s1 + $0x1718] sm:$0xff]  }
 0x2c6   :  { %14667 = vmatprep.subr.bf16.mxu1 %v16047_v42  ;;  %11324 = vmatprep.mubr.bf16.mxu0 %v254_v18  ;;  %v16089_v42 = vld [vmem:[%s20556_s1 + $0x1798] sm:$0xff]   ;;  %v16111_v18 = vld [vmem:[%s20556_s1 + $0x18c8] sm:$0xff]  }
 0x2c7   :  { %11364 = vmatprep.mubr.bf16.mxu1 %v256_v22  ;;  %v16115_v22 = vld [vmem:[%s20556_s1 + $0x18d0] sm:$0xff]  }
 0x2c8   :  { %14646 = vmatpush3.bf16.msra.mxu0 %v16048_v43 }
 0x2c9   :  { %14668 = vmatpush3.bf16.msra.mxu1 %v16049_v44  ;;  %14647 = vmatprep.subr.bf16.mxu0 %v16050_v45  ;;  %v16090_v44 = vld [vmem:[%s20556_s1 + $0x1760] sm:$0xff]  }
 0x2ca   :  { %14669 = vmatprep.subr.bf16.mxu1 %v16051_v46 }
 0x2cc   :  { %14648 = vmatpush3.bf16.msra.mxu0 %v16052_v47  ;;  %v16091_v47 = vld [vmem:[%s20556_s1 + $0x17e0] sm:$0xff]  }
 0x2cd   :  { %14670 = vmatpush3.bf16.msra.mxu1 %v16053_v48  ;;  %14649 = vmatprep.subr.bf16.mxu0 %v16054_v49 }
 0x2ce   :  { %14671 = vmatprep.subr.bf16.mxu1 %v16055_v50  ;;  %v16092_v50 = vld [vmem:[%s20556_s1 + $0x1720] sm:$0xff]  }
 0x2d0   :  { %14650 = vmatpush3.bf16.msra.mxu0 %v16056_v52 }
 0x2d1   :  { %14672 = vmatpush3.bf16.msra.mxu1 %v16057_v54  ;;  %14651 = vmatprep.subr.bf16.mxu0 %v16058_v56  ;;  %v16094_v56 = vld [vmem:[%s20556_s1 + $0x1768] sm:$0xff]  }
 0x2d2   :  { %14673 = vmatprep.subr.bf16.mxu1 %v16059_v59  ;;  %v16096_v59 = vld [vmem:[%s20556_s1 + $0x1728] sm:$0xff]  }
 0x2d4   :  { %14652 = vmatpush3.bf16.msra.mxu0 %v16060_v62  ;;  %v16099_v62 = vld [vmem:[%s20556_s1 + $0x17f0] sm:$0xff]  }
 0x2d5   :  { %14674 = vmatpush3.bf16.msra.mxu1 %v16061_v1  ;;  %14653 = vmatprep.subr.bf16.mxu0 %v16062_v4  ;;  %v16102_v1 = vld [vmem:[%s20556_s1 + $0x1778] sm:$0xff]  }
 0x2d6   :  { %v14351_v51 = vpop.f32.mrb[60].mxu0  ;;  %14675 = vmatprep.subr.bf16.mxu1 %v16063_v6  ;;  %v16105_v4 = vld [vmem:[%s20556_s1 + $0x17b8] sm:$0xff]  }
 0x2d7   :  { %v14373_v53 = vpop.f32.mrb[60].mxu1  ;;  %v14352_v55 = vpop.f32.mrb[61].mxu0  ;;  %v116_v6 = vld [vmem:[%s20557_s0 + $0x2f8] sm:$0xff] }
 0x2d8   :  { %v14353_v57 = vadd.f32 %v14352_v55, %v14351_v51  ;;  %v14374_v58 = vpop.f32.mrb[61].mxu1  ;;  %v14354_v61 = vpop.f32.mrb[62].mxu0  ;;  %14654 = vmatpush3.bf16.msra.mxu0 %v16064_v7  ;;  %v113_v7 = vld [vmem:[%s20557_s0 + $0x2e0] sm:$0xff] }
 0x2d9   :  { %v14375_v60 = vadd.f32 %v14374_v58, %v14373_v53  ;;  %v14376_v0 = vpop.f32.mrb[62].mxu1  ;;  %v14355_v2 = vpop.f32.mrb[63].mxu0  ;;  %14676 = vmatpush3.bf16.msra.mxu1 %v16065_v8  ;;  %14655 = vmatprep.subr.bf16.mxu0 %v16066_v9  ;;  %v16093_v53 = vld [vmem:[%s20556_s1 + $0x17a0] sm:$0xff]   ;;  %v16095_v58 = vld [vmem:[%s20556_s1 + $0x17e8] sm:$0xff]   ;;  %v16098_v61 = vld [vmem:[%s20556_s1 + $0x1770] sm:$0xff]   ;;  %v260_v9 = vpack.c.bf16 %v116_v6, %v116_v6 }
 0x2da   :  { %v10767_v63 = vadd.f32 %v14353_v57, %v18900_v15  ;;  %v14377_v5 = vpop.f32.mrb[63].mxu1  ;;  %14677 = vmatprep.subr.bf16.mxu1 %v16067_v10  ;;  %v16072_v15 = vld [vmem:[%s20556_s1 + $0x1638] sm:$0xff]   ;;  %v16101_v0 = vld [vmem:[%s20556_s1 + $0x17b0] sm:$0xff]   ;;  %v257_v10 = vpack.c.bf16 %v113_v7, %v113_v7  ;;  %v16143_v6 = vld [vmem:[%s20556_s1 + $0x19c8] sm:$0xff]  }
 0x2db   :  { %v16103_v2 = vld [vmem:[%s20556_s1 + $0x17f8] sm:$0xff]   ;;  %v114_v5 = vld [vmem:[%s20557_s0 + $0x2e8] sm:$0xff] }
 0x2dc   :  { %v19011_v3 = vadd.f32 %v14375_v60, %v10767_v63  ;;  %14656 = vmatpush3.bf16.msra.mxu0 %v16068_v11  ;;  %v16097_v60 = vld [vmem:[%s20556_s1 + $0x17a8] sm:$0xff]   ;;  %v16100_v63 = vld [vmem:[%s20556_s1 + $0x1730] sm:$0xff]   ;;  %v258_v8 = vpack.c.bf16 %v114_v5, %v114_v5 }
 0x2dd   :  { %14678 = vmatpush3.bf16.msra.mxu1 %v16069_v12  ;;  %14657 = vmatprep.subr.bf16.mxu0 %v16070_v13  ;;  %v115_v11 = vld [vmem:[%s20557_s0 + $0x2f0] sm:$0xff]  ;;  %v16106_v13 = vld [vmem:[%s20556_s1 + $0x1840] sm:$0xff]   ;;  %v16142_v5 = vld [vmem:[%s20556_s1 + $0x1948] sm:$0xff]  }
 0x2de   :  { %14679 = vmatprep.subr.bf16.mxu1 %v16071_v14  ;;  %v259_v12 = vpack.c.bf16 %v115_v11, %v115_v11  ;;  %v16107_v14 = vld [vmem:[%s20556_s1 + $0x18c0] sm:$0xff]   ;;  %v16144_v7 = vld [vmem:[%s20556_s1 + $0x1908] sm:$0xff]   ;;  %v16148_v11 = vld [vmem:[%s20556_s1 + $0x1910] sm:$0xff]  }
 0x2e0   :  { %14658 = vmatpush3.bf16.msra.mxu0 %v16072_v15  ;;  %v16108_v15 = vld [vmem:[%s20556_s1 + $0x1800] sm:$0xff]  }
 0x2e1   :  { %14680 = vmatpush3.bf16.msra.mxu1 %v16073_v16  ;;  %14687 = vmatprep.subr.bf16.mxu0 %v16074_v25  ;;  %v16109_v16 = vld [vmem:[%s20556_s1 + $0x1880] sm:$0xff]   ;;  %v16118_v25 = vld [vmem:[%s20556_s1 + $0x1858] sm:$0xff]  }
 0x2e2   :  { %14709 = vmatprep.subr.bf16.mxu1 %v16075_v26  ;;  %v16119_v26 = vld [vmem:[%s20556_s1 + $0x18d8] sm:$0xff]  }
 0x2e3   :  { %11325 = vmatmul.mubr.bf16.vlgmr.msra.gmra.mrb[88].mxu0 %v253_v23  ;;  %v16116_v23 = vld [vmem:[%s20556_s1 + $0x1810] sm:$0xff]  }
 0x2e4   :  { %11365 = vmatmul.mubr.bf16.vlgmr.msra.gmra.mrb[88].mxu1 %v255_v24  ;;  %14688 = vmatpush3.bf16.msra.mxu0 %v16076_v27  ;;  %v16117_v24 = vld [vmem:[%s20556_s1 + $0x1890] sm:$0xff]  }
 0x2e5   :  { %14710 = vmatpush3.bf16.msra.mxu1 %v16077_v28  ;;  %14689 = vmatprep.subr.bf16.mxu0 %v16078_v29  ;;  %v16120_v28 = vld [vmem:[%s20556_s1 + $0x1818] sm:$0xff]  }
 0x2e6   :  { %14711 = vmatprep.subr.bf16.mxu1 %v16079_v30  ;;  %11404 = vmatprep.mubr.bf16.mxu0 %v258_v8  ;;  %v16121_v30 = vld [vmem:[%s20556_s1 + $0x1898] sm:$0xff]   ;;  %v16145_v8 = vld [vmem:[%s20556_s1 + $0x1988] sm:$0xff]  }
 0x2e7   :  { %11444 = vmatprep.mubr.bf16.mxu1 %v260_v9  ;;  %v16146_v9 = vld [vmem:[%s20556_s1 + $0x1950] sm:$0xff]  }
 0x2e8   :  { %14690 = vmatpush3.bf16.msra.mxu0 %v16080_v31 }
 0x2e9   :  { %14712 = vmatpush3.bf16.msra.mxu1 %v16081_v32  ;;  %14691 = vmatprep.subr.bf16.mxu0 %v16082_v33  ;;  %v16122_v32 = vld [vmem:[%s20556_s1 + $0x1860] sm:$0xff]  }
 0x2ea   :  { %14713 = vmatprep.subr.bf16.mxu1 %v16083_v34 }
 0x2ec   :  { %14692 = vmatpush3.bf16.msra.mxu0 %v16084_v35  ;;  %v16123_v35 = vld [vmem:[%s20556_s1 + $0x18e0] sm:$0xff]  }
 0x2ed   :  { %14714 = vmatpush3.bf16.msra.mxu1 %v16085_v36  ;;  %14693 = vmatprep.subr.bf16.mxu0 %v16086_v37 }
 0x2ee   :  { %14715 = vmatprep.subr.bf16.mxu1 %v16087_v38  ;;  %v16124_v38 = vld [vmem:[%s20556_s1 + $0x1820] sm:$0xff]  }
 0x2f0   :  { %14694 = vmatpush3.bf16.msra.mxu0 %v16088_v40 }
 0x2f1   :  { %14716 = vmatpush3.bf16.msra.mxu1 %v16089_v42  ;;  %14695 = vmatprep.subr.bf16.mxu0 %v16090_v44  ;;  %v16126_v44 = vld [vmem:[%s20556_s1 + $0x1868] sm:$0xff]  }
 0x2f2   :  { %14717 = vmatprep.subr.bf16.mxu1 %v16091_v47  ;;  %v16128_v47 = vld [vmem:[%s20556_s1 + $0x1828] sm:$0xff]  }
 0x2f4   :  { %14696 = vmatpush3.bf16.msra.mxu0 %v16092_v50  ;;  %v16131_v50 = vld [vmem:[%s20556_s1 + $0x18f0] sm:$0xff]  }
 0x2f5   :  { %14718 = vmatpush3.bf16.msra.mxu1 %v16093_v53  ;;  %14697 = vmatprep.subr.bf16.mxu0 %v16094_v56  ;;  %v16134_v53 = vld [vmem:[%s20556_s1 + $0x1878] sm:$0xff]  }
 0x2f6   :  { %v14395_v39 = vpop.f32.mrb[64].mxu0  ;;  %14719 = vmatprep.subr.bf16.mxu1 %v16095_v58  ;;  %v16137_v56 = vld [vmem:[%s20556_s1 + $0x18b8] sm:$0xff]  }
 0x2f7   :  { %v14417_v41 = vpop.f32.mrb[64].mxu1  ;;  %v14396_v43 = vpop.f32.mrb[65].mxu0  ;;  %v120_v58 = vld [vmem:[%s20557_s0 + $0x318] sm:$0xff] }
 0x2f8   :  { %v14397_v45 = vadd.f32 %v14396_v43, %v14395_v39  ;;  %v14418_v46 = vpop.f32.mrb[65].mxu1  ;;  %v14398_v49 = vpop.f32.mrb[66].mxu0  ;;  %14698 = vmatpush3.bf16.msra.mxu0 %v16096_v59 }
 0x2f9   :  { %v14419_v48 = vadd.f32 %v14418_v46, %v14417_v41  ;;  %v14420_v52 = vpop.f32.mrb[66].mxu1  ;;  %v14399_v54 = vpop.f32.mrb[67].mxu0  ;;  %14720 = vmatpush3.bf16.msra.mxu1 %v16097_v60  ;;  %14699 = vmatprep.subr.bf16.mxu0 %v16098_v61  ;;  %v16125_v41 = vld [vmem:[%s20556_s1 + $0x18a0] sm:$0xff]   ;;  %v16127_v46 = vld [vmem:[%s20556_s1 + $0x18e8] sm:$0xff]   ;;  %v16130_v49 = vld [vmem:[%s20556_s1 + $0x1870] sm:$0xff]   ;;  %v264_v60 = vpack.c.bf16 %v120_v58, %v120_v58 }
 0x2fa   :  { %v10847_v51 = vadd.f32 %v14397_v45, %v19011_v3  ;;  %v14421_v57 = vpop.f32.mrb[67].mxu1  ;;  %14721 = vmatprep.subr.bf16.mxu1 %v16099_v62  ;;  %v16104_v3 = vld [vmem:[%s20556_s1 + $0x1738] sm:$0xff]   ;;  %v16133_v52 = vld [vmem:[%s20556_s1 + $0x18b0] sm:$0xff]   ;;  %v117_v61 = vld [vmem:[%s20557_s0 + $0x300] sm:$0xff] }
 0x2fb   :  { %v16135_v54 = vld [vmem:[%s20556_s1 + $0x18f8] sm:$0xff]   ;;  %v118_v57 = vld [vmem:[%s20557_s0 + $0x308] sm:$0xff]  ;;  %v119_v62 = vld [vmem:[%s20557_s0 + $0x310] sm:$0xff] }
 0x2fc   :  { %v19122_v55 = vadd.f32 %v14419_v48, %v10847_v51  ;;  %14700 = vmatpush3.bf16.msra.mxu0 %v16100_v63  ;;  %v16129_v48 = vld [vmem:[%s20556_s1 + $0x18a8] sm:$0xff]   ;;  %v16132_v51 = vld [vmem:[%s20556_s1 + $0x1830] sm:$0xff]   ;;  %v262_v59 = vpack.c.bf16 %v118_v57, %v118_v57  ;;  %v261_v63 = vpack.c.bf16 %v117_v61, %v117_v61 }
 0x2fd   :  { %14722 = vmatpush3.bf16.msra.mxu1 %v16101_v0  ;;  %14701 = vmatprep.subr.bf16.mxu0 %v16102_v1  ;;  %v263_v0 = vpack.c.bf16 %v119_v62, %v119_v62  ;;  %v16138_v1 = vld [vmem:[%s20556_s1 + $0x1940] sm:$0xff]   ;;  %v16174_v57 = vld [vmem:[%s20556_s1 + $0x1a48] sm:$0xff]   ;;  %v16178_v61 = vld [vmem:[%s20556_s1 + $0x1a50] sm:$0xff]  }
 0x2fe   :  { %14723 = vmatprep.subr.bf16.mxu1 %v16103_v2  ;;  %v16139_v2 = vld [vmem:[%s20556_s1 + $0x19c0] sm:$0xff]   ;;  %v16175_v58 = vld [vmem:[%s20556_s1 + $0x1ac8] sm:$0xff]   ;;  %v16179_v62 = vld [vmem:[%s20556_s1 + $0x1ad0] sm:$0xff]  }
 0x300   :  { %14702 = vmatpush3.bf16.msra.mxu0 %v16104_v3  ;;  %v16140_v3 = vld [vmem:[%s20556_s1 + $0x1900] sm:$0xff]  }
 0x301   :  { %14724 = vmatpush3.bf16.msra.mxu1 %v16105_v4  ;;  %14731 = vmatprep.subr.bf16.mxu0 %v16106_v13  ;;  %v16141_v4 = vld [vmem:[%s20556_s1 + $0x1980] sm:$0xff]   ;;  %v16150_v13 = vld [vmem:[%s20556_s1 + $0x1958] sm:$0xff]  }
 0x302   :  { %14753 = vmatprep.subr.bf16.mxu1 %v16107_v14  ;;  %v16151_v14 = vld [vmem:[%s20556_s1 + $0x19d8] sm:$0xff]  }
 0x303   :  { %11405 = vmatmul.mubr.bf16.vlgmr.msra.gmra.mrb[92].mxu0 %v257_v10  ;;  %v16147_v10 = vld [vmem:[%s20556_s1 + $0x19d0] sm:$0xff]  }
 0x304   :  { %11445 = vmatmul.mubr.bf16.vlgmr.msra.gmra.mrb[92].mxu1 %v259_v12  ;;  %14732 = vmatpush3.bf16.msra.mxu0 %v16108_v15  ;;  %v16149_v12 = vld [vmem:[%s20556_s1 + $0x1990] sm:$0xff]  }
 0x305   :  { %14754 = vmatpush3.bf16.msra.mxu1 %v16109_v16  ;;  %14733 = vmatprep.subr.bf16.mxu0 %v16110_v17  ;;  %v16152_v16 = vld [vmem:[%s20556_s1 + $0x1918] sm:$0xff]  }
 0x306   :  { %14755 = vmatprep.subr.bf16.mxu1 %v16111_v18  ;;  %11484 = vmatprep.mubr.bf16.mxu0 %v262_v59  ;;  %v16153_v18 = vld [vmem:[%s20556_s1 + $0x1998] sm:$0xff]   ;;  %v16176_v59 = vld [vmem:[%s20556_s1 + $0x1a08] sm:$0xff]  }
 0x307   :  { %11524 = vmatprep.mubr.bf16.mxu1 %v264_v60  ;;  %v16177_v60 = vld [vmem:[%s20556_s1 + $0x1a88] sm:$0xff]  }
 0x308   :  { %14734 = vmatpush3.bf16.msra.mxu0 %v16112_v19 }
 0x309   :  { %14756 = vmatpush3.bf16.msra.mxu1 %v16113_v20  ;;  %14735 = vmatprep.subr.bf16.mxu0 %v16114_v21  ;;  %v16154_v20 = vld [vmem:[%s20556_s1 + $0x1960] sm:$0xff]  }
 0x30a   :  { %14757 = vmatprep.subr.bf16.mxu1 %v16115_v22 }
 0x30c   :  { %14736 = vmatpush3.bf16.msra.mxu0 %v16116_v23  ;;  %v16155_v23 = vld [vmem:[%s20556_s1 + $0x19e0] sm:$0xff]  }
 0x30d   :  { %14758 = vmatpush3.bf16.msra.mxu1 %v16117_v24  ;;  %14737 = vmatprep.subr.bf16.mxu0 %v16118_v25 }
 0x30e   :  { %14759 = vmatprep.subr.bf16.mxu1 %v16119_v26  ;;  %v16156_v26 = vld [vmem:[%s20556_s1 + $0x1920] sm:$0xff]  }
 0x310   :  { %14738 = vmatpush3.bf16.msra.mxu0 %v16120_v28 }
 0x311   :  { %14760 = vmatpush3.bf16.msra.mxu1 %v16121_v30  ;;  %14739 = vmatprep.subr.bf16.mxu0 %v16122_v32  ;;  %v16158_v32 = vld [vmem:[%s20556_s1 + $0x1968] sm:$0xff]  }
 0x312   :  { %14761 = vmatprep.subr.bf16.mxu1 %v16123_v35  ;;  %v16160_v35 = vld [vmem:[%s20556_s1 + $0x1928] sm:$0xff]  }
 0x314   :  { %14740 = vmatpush3.bf16.msra.mxu0 %v16124_v38  ;;  %v16163_v38 = vld [vmem:[%s20556_s1 + $0x19f0] sm:$0xff]  }
 0x315   :  { %14762 = vmatpush3.bf16.msra.mxu1 %v16125_v41  ;;  %14741 = vmatprep.subr.bf16.mxu0 %v16126_v44  ;;  %v16166_v41 = vld [vmem:[%s20556_s1 + $0x1978] sm:$0xff]  }
 0x316   :  { %v14439_v27 = vpop.f32.mrb[68].mxu0  ;;  %14763 = vmatprep.subr.bf16.mxu1 %v16127_v46  ;;  %v16169_v44 = vld [vmem:[%s20556_s1 + $0x19b8] sm:$0xff]  }
 0x317   :  { %v14461_v29 = vpop.f32.mrb[68].mxu1  ;;  %v14440_v31 = vpop.f32.mrb[69].mxu0 }
 0x318   :  { %v14441_v33 = vadd.f32 %v14440_v31, %v14439_v27  ;;  %v14462_v34 = vpop.f32.mrb[69].mxu1  ;;  %v14442_v37 = vpop.f32.mrb[70].mxu0  ;;  %14742 = vmatpush3.bf16.msra.mxu0 %v16128_v47  ;;  %v124_v47 = vld [vmem:[%s20557_s0 + $0x338] sm:$0xff] }
 0x319   :  { %v14463_v36 = vadd.f32 %v14462_v34, %v14461_v29  ;;  %v14464_v40 = vpop.f32.mrb[70].mxu1  ;;  %v14443_v42 = vpop.f32.mrb[71].mxu0  ;;  %14764 = vmatpush3.bf16.msra.mxu1 %v16129_v48  ;;  %14743 = vmatprep.subr.bf16.mxu0 %v16130_v49  ;;  %v16157_v29 = vld [vmem:[%s20556_s1 + $0x19a0] sm:$0xff]   ;;  %v16159_v34 = vld [vmem:[%s20556_s1 + $0x19e8] sm:$0xff]   ;;  %v16162_v37 = vld [vmem:[%s20556_s1 + $0x1970] sm:$0xff]  }
 0x31a   :  { %v10927_v39 = vadd.f32 %v14441_v33, %v19122_v55  ;;  %v14465_v45 = vpop.f32.mrb[71].mxu1  ;;  %14765 = vmatprep.subr.bf16.mxu1 %v16131_v50  ;;  %v16136_v55 = vld [vmem:[%s20556_s1 + $0x1838] sm:$0xff]   ;;  %v16165_v40 = vld [vmem:[%s20556_s1 + $0x19b0] sm:$0xff]   ;;  %v121_v48 = vld [vmem:[%s20557_s0 + $0x320] sm:$0xff]  ;;  %v268_v50 = vpack.c.bf16 %v124_v47, %v124_v47 }
 0x31b   :  { %v16167_v42 = vld [vmem:[%s20556_s1 + $0x19f8] sm:$0xff]   ;;  %v122_v45 = vld [vmem:[%s20557_s0 + $0x328] sm:$0xff]  ;;  %v123_v49 = vld [vmem:[%s20557_s0 + $0x330] sm:$0xff] }
 0x31c   :  { %v19233_v43 = vadd.f32 %v14463_v36, %v10927_v39  ;;  %14744 = vmatpush3.bf16.msra.mxu0 %v16132_v51  ;;  %v16161_v36 = vld [vmem:[%s20556_s1 + $0x19a8] sm:$0xff]   ;;  %v16164_v39 = vld [vmem:[%s20556_s1 + $0x1930] sm:$0xff]   ;;  %v266_v46 = vpack.c.bf16 %v122_v45, %v122_v45  ;;  %v265_v51 = vpack.c.bf16 %v121_v48, %v121_v48 }
 0x31d   :  { %14766 = vmatpush3.bf16.msra.mxu1 %v16133_v52  ;;  %14745 = vmatprep.subr.bf16.mxu0 %v16134_v53  ;;  %v267_v52 = vpack.c.bf16 %v123_v49, %v123_v49  ;;  %v16170_v53 = vld [vmem:[%s20556_s1 + $0x1a40] sm:$0xff]   ;;  %v16206_v45 = vld [vmem:[%s20556_s1 + $0x1b48] sm:$0xff]   ;;  %v16210_v49 = vld [vmem:[%s20556_s1 + $0x1b50] sm:$0xff]  }
 0x31e   :  { %14767 = vmatprep.subr.bf16.mxu1 %v16135_v54  ;;  %v16171_v54 = vld [vmem:[%s20556_s1 + $0x1ac0] sm:$0xff]   ;;  %v16208_v47 = vld [vmem:[%s20556_s1 + $0x1b08] sm:$0xff]  }
 0x31f   :  { %v16209_v48 = vld [vmem:[%s20556_s1 + $0x1b88] sm:$0xff]  }
 0x320   :  { %14746 = vmatpush3.bf16.msra.mxu0 %v16136_v55  ;;  %v16172_v55 = vld [vmem:[%s20556_s1 + $0x1a00] sm:$0xff]  }
 0x321   :  { %14768 = vmatpush3.bf16.msra.mxu1 %v16137_v56  ;;  %14775 = vmatprep.subr.bf16.mxu0 %v16138_v1  ;;  %v16173_v56 = vld [vmem:[%s20556_s1 + $0x1a80] sm:$0xff]   ;;  %v16182_v1 = vld [vmem:[%s20556_s1 + $0x1a58] sm:$0xff]  }
 0x322   :  { %14797 = vmatprep.subr.bf16.mxu1 %v16139_v2  ;;  %v16183_v2 = vld [vmem:[%s20556_s1 + $0x1ad8] sm:$0xff]  }
 0x323   :  { %11485 = vmatmul.mubr.bf16.vlgmr.msra.gmra.mrb[96].mxu0 %v261_v63  ;;  %v16180_v63 = vld [vmem:[%s20556_s1 + $0x1a10] sm:$0xff]  }
 0x324   :  { %11525 = vmatmul.mubr.bf16.vlgmr.msra.gmra.mrb[96].mxu1 %v263_v0  ;;  %14776 = vmatpush3.bf16.msra.mxu0 %v16140_v3  ;;  %v16181_v0 = vld [vmem:[%s20556_s1 + $0x1a90] sm:$0xff]  }
 0x325   :  { %14798 = vmatpush3.bf16.msra.mxu1 %v16141_v4  ;;  %14777 = vmatprep.subr.bf16.mxu0 %v16142_v5  ;;  %v16184_v4 = vld [vmem:[%s20556_s1 + $0x1a18] sm:$0xff]  }
 0x326   :  { %14799 = vmatprep.subr.bf16.mxu1 %v16143_v6  ;;  %11564 = vmatprep.mubr.bf16.mxu0 %v266_v46  ;;  %v16185_v6 = vld [vmem:[%s20556_s1 + $0x1a98] sm:$0xff]   ;;  %v16207_v46 = vld [vmem:[%s20556_s1 + $0x1bc8] sm:$0xff]  }
 0x327   :  { %11604 = vmatprep.mubr.bf16.mxu1 %v268_v50  ;;  %v16211_v50 = vld [vmem:[%s20556_s1 + $0x1bd0] sm:$0xff]  }
 0x328   :  { %14778 = vmatpush3.bf16.msra.mxu0 %v16144_v7 }
 0x329   :  { %14800 = vmatpush3.bf16.msra.mxu1 %v16145_v8  ;;  %14779 = vmatprep.subr.bf16.mxu0 %v16146_v9  ;;  %v16186_v8 = vld [vmem:[%s20556_s1 + $0x1a60] sm:$0xff]  }
 0x32a   :  { %14801 = vmatprep.subr.bf16.mxu1 %v16147_v10 }
 0x32c   :  { %14780 = vmatpush3.bf16.msra.mxu0 %v16148_v11  ;;  %v16187_v11 = vld [vmem:[%s20556_s1 + $0x1ae0] sm:$0xff]  }
 0x32d   :  { %14802 = vmatpush3.bf16.msra.mxu1 %v16149_v12  ;;  %14781 = vmatprep.subr.bf16.mxu0 %v16150_v13 }
 0x32e   :  { %14803 = vmatprep.subr.bf16.mxu1 %v16151_v14  ;;  %v16188_v14 = vld [vmem:[%s20556_s1 + $0x1a20] sm:$0xff]  }
 0x330   :  { %14782 = vmatpush3.bf16.msra.mxu0 %v16152_v16 }
 0x331   :  { %14804 = vmatpush3.bf16.msra.mxu1 %v16153_v18  ;;  %14783 = vmatprep.subr.bf16.mxu0 %v16154_v20  ;;  %v16190_v20 = vld [vmem:[%s20556_s1 + $0x1a68] sm:$0xff]  }
 0x332   :  { %14805 = vmatprep.subr.bf16.mxu1 %v16155_v23  ;;  %v16192_v23 = vld [vmem:[%s20556_s1 + $0x1a28] sm:$0xff]  }
 0x334   :  { %14784 = vmatpush3.bf16.msra.mxu0 %v16156_v26  ;;  %v16195_v26 = vld [vmem:[%s20556_s1 + $0x1af0] sm:$0xff]  }
 0x335   :  { %14806 = vmatpush3.bf16.msra.mxu1 %v16157_v29  ;;  %14785 = vmatprep.subr.bf16.mxu0 %v16158_v32  ;;  %v16198_v29 = vld [vmem:[%s20556_s1 + $0x1a78] sm:$0xff]  }
 0x336   :  { %v14483_v15 = vpop.f32.mrb[72].mxu0  ;;  %14807 = vmatprep.subr.bf16.mxu1 %v16159_v34  ;;  %v16201_v32 = vld [vmem:[%s20556_s1 + $0x1ab8] sm:$0xff]  }
 0x337   :  { %v14505_v17 = vpop.f32.mrb[72].mxu1  ;;  %v14484_v19 = vpop.f32.mrb[73].mxu0  ;;  %v128_v34 = vld [vmem:[%s20557_s0 + $0x358] sm:$0xff] }
 0x338   :  { %v14485_v21 = vadd.f32 %v14484_v19, %v14483_v15  ;;  %v14506_v22 = vpop.f32.mrb[73].mxu1  ;;  %v14486_v25 = vpop.f32.mrb[74].mxu0  ;;  %14786 = vmatpush3.bf16.msra.mxu0 %v16160_v35  ;;  %v125_v35 = vld [vmem:[%s20557_s0 + $0x340] sm:$0xff] }
 0x339   :  { %v14507_v24 = vadd.f32 %v14506_v22, %v14505_v17  ;;  %v14508_v28 = vpop.f32.mrb[74].mxu1  ;;  %v14487_v30 = vpop.f32.mrb[75].mxu0  ;;  %14808 = vmatpush3.bf16.msra.mxu1 %v16161_v36  ;;  %14787 = vmatprep.subr.bf16.mxu0 %v16162_v37  ;;  %v16189_v17 = vld [vmem:[%s20556_s1 + $0x1aa0] sm:$0xff]   ;;  %v16191_v22 = vld [vmem:[%s20556_s1 + $0x1ae8] sm:$0xff]   ;;  %v16194_v25 = vld [vmem:[%s20556_s1 + $0x1a70] sm:$0xff]   ;;  %v272_v37 = vpack.c.bf16 %v128_v34, %v128_v34 }
 0x33a   :  { %v11007_v27 = vadd.f32 %v14485_v21, %v19233_v43  ;;  %v14509_v33 = vpop.f32.mrb[75].mxu1  ;;  %14809 = vmatprep.subr.bf16.mxu1 %v16163_v38  ;;  %v16168_v43 = vld [vmem:[%s20556_s1 + $0x1938] sm:$0xff]   ;;  %v16197_v28 = vld [vmem:[%s20556_s1 + $0x1ab0] sm:$0xff]   ;;  %v269_v38 = vpack.c.bf16 %v125_v35, %v125_v35  ;;  %v16239_v34 = vld [vmem:[%s20556_s1 + $0x1cc8] sm:$0xff]  }
 0x33b   :  { %v16199_v30 = vld [vmem:[%s20556_s1 + $0x1af8] sm:$0xff]   ;;  %v126_v33 = vld [vmem:[%s20557_s0 + $0x348] sm:$0xff] }
 0x33c   :  { %v19344_v31 = vadd.f32 %v14507_v24, %v11007_v27  ;;  %14788 = vmatpush3.bf16.msra.mxu0 %v16164_v39  ;;  %v16193_v24 = vld [vmem:[%s20556_s1 + $0x1aa8] sm:$0xff]   ;;  %v16196_v27 = vld [vmem:[%s20556_s1 + $0x1a30] sm:$0xff]   ;;  %v270_v36 = vpack.c.bf16 %v126_v33, %v126_v33 }
 0x33d   :  { %14810 = vmatpush3.bf16.msra.mxu1 %v16165_v40  ;;  %14789 = vmatprep.subr.bf16.mxu0 %v16166_v41  ;;  %v127_v39 = vld [vmem:[%s20557_s0 + $0x350] sm:$0xff]  ;;  %v16202_v41 = vld [vmem:[%s20556_s1 + $0x1b40] sm:$0xff]   ;;  %v16238_v33 = vld [vmem:[%s20556_s1 + $0x1c48] sm:$0xff]  }
 0x33e   :  { %14811 = vmatprep.subr.bf16.mxu1 %v16167_v42  ;;  %v271_v40 = vpack.c.bf16 %v127_v39, %v127_v39  ;;  %v16203_v42 = vld [vmem:[%s20556_s1 + $0x1bc0] sm:$0xff]   ;;  %v16240_v35 = vld [vmem:[%s20556_s1 + $0x1c08] sm:$0xff]   ;;  %v16244_v39 = vld [vmem:[%s20556_s1 + $0x1c10] sm:$0xff]  }
 0x340   :  { %14790 = vmatpush3.bf16.msra.mxu0 %v16168_v43  ;;  %v16204_v43 = vld [vmem:[%s20556_s1 + $0x1b00] sm:$0xff]  }
 0x341   :  { %14812 = vmatpush3.bf16.msra.mxu1 %v16169_v44  ;;  %14819 = vmatprep.subr.bf16.mxu0 %v16170_v53  ;;  %v16205_v44 = vld [vmem:[%s20556_s1 + $0x1b80] sm:$0xff]   ;;  %v16214_v53 = vld [vmem:[%s20556_s1 + $0x1b58] sm:$0xff]  }
 0x342   :  { %14841 = vmatprep.subr.bf16.mxu1 %v16171_v54  ;;  %v16215_v54 = vld [vmem:[%s20556_s1 + $0x1bd8] sm:$0xff]  }
 0x343   :  { %11565 = vmatmul.mubr.bf16.vlgmr.msra.gmra.mrb[100].mxu0 %v265_v51  ;;  %v16212_v51 = vld [vmem:[%s20556_s1 + $0x1b10] sm:$0xff]  }
 0x344   :  { %11605 = vmatmul.mubr.bf16.vlgmr.msra.gmra.mrb[100].mxu1 %v267_v52  ;;  %14820 = vmatpush3.bf16.msra.mxu0 %v16172_v55  ;;  %v16213_v52 = vld [vmem:[%s20556_s1 + $0x1b90] sm:$0xff]  }
 0x345   :  { %14842 = vmatpush3.bf16.msra.mxu1 %v16173_v56  ;;  %14821 = vmatprep.subr.bf16.mxu0 %v16174_v57  ;;  %v16216_v56 = vld [vmem:[%s20556_s1 + $0x1b18] sm:$0xff]  }
 0x346   :  { %14843 = vmatprep.subr.bf16.mxu1 %v16175_v58  ;;  %11644 = vmatprep.mubr.bf16.mxu0 %v270_v36  ;;  %v16217_v58 = vld [vmem:[%s20556_s1 + $0x1b98] sm:$0xff]   ;;  %v16241_v36 = vld [vmem:[%s20556_s1 + $0x1c88] sm:$0xff]  }
 0x347   :  { %11684 = vmatprep.mubr.bf16.mxu1 %v272_v37  ;;  %v16242_v37 = vld [vmem:[%s20556_s1 + $0x1c50] sm:$0xff]  }
 0x348   :  { %14822 = vmatpush3.bf16.msra.mxu0 %v16176_v59 }
 0x349   :  { %14844 = vmatpush3.bf16.msra.mxu1 %v16177_v60  ;;  %14823 = vmatprep.subr.bf16.mxu0 %v16178_v61  ;;  %v16218_v60 = vld [vmem:[%s20556_s1 + $0x1b60] sm:$0xff]  }
 0x34a   :  { %14845 = vmatprep.subr.bf16.mxu1 %v16179_v62 }
 0x34c   :  { %14824 = vmatpush3.bf16.msra.mxu0 %v16180_v63  ;;  %v16219_v63 = vld [vmem:[%s20556_s1 + $0x1be0] sm:$0xff]  }
 0x34d   :  { %14846 = vmatpush3.bf16.msra.mxu1 %v16181_v0  ;;  %14825 = vmatprep.subr.bf16.mxu0 %v16182_v1 }
 0x34e   :  { %14847 = vmatprep.subr.bf16.mxu1 %v16183_v2  ;;  %v16220_v2 = vld [vmem:[%s20556_s1 + $0x1b20] sm:$0xff]  }
 0x350   :  { %14826 = vmatpush3.bf16.msra.mxu0 %v16184_v4 }
 0x351   :  { %14848 = vmatpush3.bf16.msra.mxu1 %v16185_v6  ;;  %14827 = vmatprep.subr.bf16.mxu0 %v16186_v8  ;;  %v16222_v8 = vld [vmem:[%s20556_s1 + $0x1b68] sm:$0xff]  }
 0x352   :  { %14849 = vmatprep.subr.bf16.mxu1 %v16187_v11  ;;  %v16224_v11 = vld [vmem:[%s20556_s1 + $0x1b28] sm:$0xff]  }
 0x354   :  { %14828 = vmatpush3.bf16.msra.mxu0 %v16188_v14  ;;  %v16227_v14 = vld [vmem:[%s20556_s1 + $0x1bf0] sm:$0xff]  }
 0x355   :  { %14850 = vmatpush3.bf16.msra.mxu1 %v16189_v17  ;;  %14829 = vmatprep.subr.bf16.mxu0 %v16190_v20  ;;  %v16230_v17 = vld [vmem:[%s20556_s1 + $0x1b78] sm:$0xff]  }
 0x356   :  { %v14527_v3 = vpop.f32.mrb[76].mxu0  ;;  %14851 = vmatprep.subr.bf16.mxu1 %v16191_v22  ;;  %v16233_v20 = vld [vmem:[%s20556_s1 + $0x1bb8] sm:$0xff]  }
 0x357   :  { %v14549_v5 = vpop.f32.mrb[76].mxu1  ;;  %v14528_v7 = vpop.f32.mrb[77].mxu0  ;;  %v132_v22 = vld [vmem:[%s20557_s0 + $0x378] sm:$0xff] }
 0x358   :  { %v14529_v9 = vadd.f32 %v14528_v7, %v14527_v3  ;;  %v14550_v10 = vpop.f32.mrb[77].mxu1  ;;  %v14530_v13 = vpop.f32.mrb[78].mxu0  ;;  %14830 = vmatpush3.bf16.msra.mxu0 %v16192_v23 }
 0x359   :  { %v14551_v12 = vadd.f32 %v14550_v10, %v14549_v5  ;;  %v14552_v16 = vpop.f32.mrb[78].mxu1  ;;  %v14531_v18 = vpop.f32.mrb[79].mxu0  ;;  %14852 = vmatpush3.bf16.msra.mxu1 %v16193_v24  ;;  %14831 = vmatprep.subr.bf16.mxu0 %v16194_v25  ;;  %v16221_v5 = vld [vmem:[%s20556_s1 + $0x1ba0] sm:$0xff]   ;;  %v16223_v10 = vld [vmem:[%s20556_s1 + $0x1be8] sm:$0xff]   ;;  %v16226_v13 = vld [vmem:[%s20556_s1 + $0x1b70] sm:$0xff]   ;;  %v276_v24 = vpack.c.bf16 %v132_v22, %v132_v22 }
 0x35a   :  { %v11087_v15 = vadd.f32 %v14529_v9, %v19344_v31  ;;  %v14553_v21 = vpop.f32.mrb[79].mxu1  ;;  %14853 = vmatprep.subr.bf16.mxu1 %v16195_v26  ;;  %v16200_v31 = vld [vmem:[%s20556_s1 + $0x1a38] sm:$0xff]   ;;  %v16229_v16 = vld [vmem:[%s20556_s1 + $0x1bb0] sm:$0xff]   ;;  %v129_v25 = vld [vmem:[%s20557_s0 + $0x360] sm:$0xff] }
 0x35b   :  { %v16231_v18 = vld [vmem:[%s20556_s1 + $0x1bf8] sm:$0xff]   ;;  %v130_v21 = vld [vmem:[%s20557_s0 + $0x368] sm:$0xff]  ;;  %v131_v26 = vld [vmem:[%s20557_s0 + $0x370] sm:$0xff] }
 0x35c   :  { %v19455_v19 = vadd.f32 %v14551_v12, %v11087_v15  ;;  %14832 = vmatpush3.bf16.msra.mxu0 %v16196_v27  ;;  %v16225_v12 = vld [vmem:[%s20556_s1 + $0x1ba8] sm:$0xff]   ;;  %v16228_v15 = vld [vmem:[%s20556_s1 + $0x1b30] sm:$0xff]   ;;  %v274_v23 = vpack.c.bf16 %v130_v21, %v130_v21  ;;  %v273_v27 = vpack.c.bf16 %v129_v25, %v129_v25 }
 0x35d   :  { %14854 = vmatpush3.bf16.msra.mxu1 %v16197_v28  ;;  %14833 = vmatprep.subr.bf16.mxu0 %v16198_v29  ;;  %v275_v28 = vpack.c.bf16 %v131_v26, %v131_v26  ;;  %v16234_v29 = vld [vmem:[%s20556_s1 + $0x1c40] sm:$0xff]   ;;  %v16270_v21 = vld [vmem:[%s20556_s1 + $0x1d48] sm:$0xff]   ;;  %v16274_v25 = vld [vmem:[%s20556_s1 + $0x1d50] sm:$0xff]  }
 0x35e   :  { %14855 = vmatprep.subr.bf16.mxu1 %v16199_v30  ;;  %v16235_v30 = vld [vmem:[%s20556_s1 + $0x1cc0] sm:$0xff]   ;;  %v16271_v22 = vld [vmem:[%s20556_s1 + $0x1dc8] sm:$0xff]   ;;  %v16275_v26 = vld [vmem:[%s20556_s1 + $0x1dd0] sm:$0xff]  }
 0x360   :  { %14834 = vmatpush3.bf16.msra.mxu0 %v16200_v31  ;;  %v16236_v31 = vld [vmem:[%s20556_s1 + $0x1c00] sm:$0xff]  }
 0x361   :  { %14856 = vmatpush3.bf16.msra.mxu1 %v16201_v32  ;;  %14863 = vmatprep.subr.bf16.mxu0 %v16202_v41  ;;  %v16237_v32 = vld [vmem:[%s20556_s1 + $0x1c80] sm:$0xff]   ;;  %v16246_v41 = vld [vmem:[%s20556_s1 + $0x1c58] sm:$0xff]  }
 0x362   :  { %14885 = vmatprep.subr.bf16.mxu1 %v16203_v42  ;;  %v16247_v42 = vld [vmem:[%s20556_s1 + $0x1cd8] sm:$0xff]  }
 0x363   :  { %11645 = vmatmul.mubr.bf16.vlgmr.msra.gmra.mrb[104].mxu0 %v269_v38  ;;  %v16243_v38 = vld [vmem:[%s20556_s1 + $0x1cd0] sm:$0xff]  }
 0x364   :  { %11685 = vmatmul.mubr.bf16.vlgmr.msra.gmra.mrb[104].mxu1 %v271_v40  ;;  %14864 = vmatpush3.bf16.msra.mxu0 %v16204_v43  ;;  %v16245_v40 = vld [vmem:[%s20556_s1 + $0x1c90] sm:$0xff]  }
 0x365   :  { %14886 = vmatpush3.bf16.msra.mxu1 %v16205_v44  ;;  %14865 = vmatprep.subr.bf16.mxu0 %v16206_v45  ;;  %v16248_v44 = vld [vmem:[%s20556_s1 + $0x1c18] sm:$0xff]  }
 0x366   :  { %14887 = vmatprep.subr.bf16.mxu1 %v16207_v46  ;;  %11724 = vmatprep.mubr.bf16.mxu0 %v274_v23  ;;  %v16249_v46 = vld [vmem:[%s20556_s1 + $0x1c98] sm:$0xff]   ;;  %v16272_v23 = vld [vmem:[%s20556_s1 + $0x1d08] sm:$0xff]  }
 0x367   :  { %11764 = vmatprep.mubr.bf16.mxu1 %v276_v24  ;;  %v16273_v24 = vld [vmem:[%s20556_s1 + $0x1d88] sm:$0xff]  }
 0x368   :  { %14866 = vmatpush3.bf16.msra.mxu0 %v16208_v47 }
 0x369   :  { %14888 = vmatpush3.bf16.msra.mxu1 %v16209_v48  ;;  %14867 = vmatprep.subr.bf16.mxu0 %v16210_v49  ;;  %v16250_v48 = vld [vmem:[%s20556_s1 + $0x1c60] sm:$0xff]  }
 0x36a   :  { %14889 = vmatprep.subr.bf16.mxu1 %v16211_v50 }
 0x36c   :  { %14868 = vmatpush3.bf16.msra.mxu0 %v16212_v51  ;;  %v16251_v51 = vld [vmem:[%s20556_s1 + $0x1ce0] sm:$0xff]  }
 0x36d   :  { %14890 = vmatpush3.bf16.msra.mxu1 %v16213_v52  ;;  %14869 = vmatprep.subr.bf16.mxu0 %v16214_v53 }
 0x36e   :  { %14891 = vmatprep.subr.bf16.mxu1 %v16215_v54  ;;  %v16252_v54 = vld [vmem:[%s20556_s1 + $0x1c20] sm:$0xff]  }
 0x370   :  { %14870 = vmatpush3.bf16.msra.mxu0 %v16216_v56 }
 0x371   :  { %14892 = vmatpush3.bf16.msra.mxu1 %v16217_v58  ;;  %14871 = vmatprep.subr.bf16.mxu0 %v16218_v60  ;;  %v16254_v60 = vld [vmem:[%s20556_s1 + $0x1c68] sm:$0xff]  }
 0x372   :  { %14893 = vmatprep.subr.bf16.mxu1 %v16219_v63  ;;  %v16256_v63 = vld [vmem:[%s20556_s1 + $0x1c28] sm:$0xff]  }
 0x374   :  { %14872 = vmatpush3.bf16.msra.mxu0 %v16220_v2  ;;  %v16259_v2 = vld [vmem:[%s20556_s1 + $0x1cf0] sm:$0xff]  }
 0x375   :  { %14894 = vmatpush3.bf16.msra.mxu1 %v16221_v5  ;;  %14873 = vmatprep.subr.bf16.mxu0 %v16222_v8  ;;  %v16262_v5 = vld [vmem:[%s20556_s1 + $0x1c78] sm:$0xff]  }
 0x376   :  { %v14571_v55 = vpop.f32.mrb[80].mxu0  ;;  %14895 = vmatprep.subr.bf16.mxu1 %v16223_v10  ;;  %v16265_v8 = vld [vmem:[%s20556_s1 + $0x1cb8] sm:$0xff]  }
 0x377   :  { %v14593_v57 = vpop.f32.mrb[80].mxu1  ;;  %v14572_v59 = vpop.f32.mrb[81].mxu0 }
 0x378   :  { %v14573_v61 = vadd.f32 %v14572_v59, %v14571_v55  ;;  %v14594_v62 = vpop.f32.mrb[81].mxu1  ;;  %v14574_v1 = vpop.f32.mrb[82].mxu0  ;;  %14874 = vmatpush3.bf16.msra.mxu0 %v16224_v11  ;;  %v136_v11 = vld [vmem:[%s20557_s0 + $0x398] sm:$0xff] }
 0x379   :  { %v14595_v0 = vadd.f32 %v14594_v62, %v14593_v57  ;;  %v14596_v4 = vpop.f32.mrb[82].mxu1  ;;  %v14575_v6 = vpop.f32.mrb[83].mxu0  ;;  %14896 = vmatpush3.bf16.msra.mxu1 %v16225_v12  ;;  %14875 = vmatprep.subr.bf16.mxu0 %v16226_v13  ;;  %v16253_v57 = vld [vmem:[%s20556_s1 + $0x1ca0] sm:$0xff]   ;;  %v16255_v62 = vld [vmem:[%s20556_s1 + $0x1ce8] sm:$0xff]   ;;  %v16258_v1 = vld [vmem:[%s20556_s1 + $0x1c70] sm:$0xff]  }
 0x37a   :  { %v11167_v3 = vadd.f32 %v14573_v61, %v19455_v19  ;;  %v14597_v9 = vpop.f32.mrb[83].mxu1  ;;  %14897 = vmatprep.subr.bf16.mxu1 %v16227_v14  ;;  %v16232_v19 = vld [vmem:[%s20556_s1 + $0x1b38] sm:$0xff]   ;;  %v16261_v4 = vld [vmem:[%s20556_s1 + $0x1cb0] sm:$0xff]   ;;  %v133_v12 = vld [vmem:[%s20557_s0 + $0x380] sm:$0xff]  ;;  %v280_v14 = vpack.c.bf16 %v136_v11, %v136_v11 }
 0x37b   :  { %v16263_v6 = vld [vmem:[%s20556_s1 + $0x1cf8] sm:$0xff]   ;;  %v134_v9 = vld [vmem:[%s20557_s0 + $0x388] sm:$0xff]  ;;  %v135_v13 = vld [vmem:[%s20557_s0 + $0x390] sm:$0xff] }
 0x37c   :  { %v19566_v7 = vadd.f32 %v14595_v0, %v11167_v3  ;;  %14876 = vmatpush3.bf16.msra.mxu0 %v16228_v15  ;;  %v16257_v0 = vld [vmem:[%s20556_s1 + $0x1ca8] sm:$0xff]   ;;  %v16260_v3 = vld [vmem:[%s20556_s1 + $0x1c30] sm:$0xff]   ;;  %v278_v10 = vpack.c.bf16 %v134_v9, %v134_v9  ;;  %v277_v15 = vpack.c.bf16 %v133_v12, %v133_v12 }
 0x37d   :  { %14898 = vmatpush3.bf16.msra.mxu1 %v16229_v16  ;;  %14877 = vmatprep.subr.bf16.mxu0 %v16230_v17  ;;  %v279_v16 = vpack.c.bf16 %v135_v13, %v135_v13  ;;  %v16266_v17 = vld [vmem:[%s20556_s1 + $0x1d40] sm:$0xff]   ;;  %v16302_v9 = vld [vmem:[%s20556_s1 + $0x1e48] sm:$0xff]   ;;  %v16306_v13 = vld [vmem:[%s20556_s1 + $0x1e50] sm:$0xff]  }
 0x37e   :  { %14899 = vmatprep.subr.bf16.mxu1 %v16231_v18  ;;  %v16267_v18 = vld [vmem:[%s20556_s1 + $0x1dc0] sm:$0xff]   ;;  %v16304_v11 = vld [vmem:[%s20556_s1 + $0x1e08] sm:$0xff]  }
 0x37f   :  { %v16305_v12 = vld [vmem:[%s20556_s1 + $0x1e88] sm:$0xff]  }
 0x380   :  { %14878 = vmatpush3.bf16.msra.mxu0 %v16232_v19  ;;  %v16268_v19 = vld [vmem:[%s20556_s1 + $0x1d00] sm:$0xff]  }
 0x381   :  { %14900 = vmatpush3.bf16.msra.mxu1 %v16233_v20  ;;  %14907 = vmatprep.subr.bf16.mxu0 %v16234_v29  ;;  %v16269_v20 = vld [vmem:[%s20556_s1 + $0x1d80] sm:$0xff]   ;;  %v16278_v29 = vld [vmem:[%s20556_s1 + $0x1d58] sm:$0xff]  }
 0x382   :  { %14929 = vmatprep.subr.bf16.mxu1 %v16235_v30  ;;  %v16279_v30 = vld [vmem:[%s20556_s1 + $0x1dd8] sm:$0xff]  }
 0x383   :  { %11725 = vmatmul.mubr.bf16.vlgmr.msra.gmra.mrb[108].mxu0 %v273_v27  ;;  %v16276_v27 = vld [vmem:[%s20556_s1 + $0x1d10] sm:$0xff]  }
 0x384   :  { %11765 = vmatmul.mubr.bf16.vlgmr.msra.gmra.mrb[108].mxu1 %v275_v28  ;;  %14908 = vmatpush3.bf16.msra.mxu0 %v16236_v31  ;;  %v16277_v28 = vld [vmem:[%s20556_s1 + $0x1d90] sm:$0xff]  }
 0x385   :  { %14930 = vmatpush3.bf16.msra.mxu1 %v16237_v32  ;;  %14909 = vmatprep.subr.bf16.mxu0 %v16238_v33  ;;  %v16280_v32 = vld [vmem:[%s20556_s1 + $0x1d18] sm:$0xff]  }
 0x386   :  { %14931 = vmatprep.subr.bf16.mxu1 %v16239_v34  ;;  %11804 = vmatprep.mubr.bf16.mxu0 %v278_v10  ;;  %v16281_v34 = vld [vmem:[%s20556_s1 + $0x1d98] sm:$0xff]   ;;  %v16303_v10 = vld [vmem:[%s20556_s1 + $0x1ec8] sm:$0xff]  }
 0x387   :  { %11844 = vmatprep.mubr.bf16.mxu1 %v280_v14  ;;  %v16307_v14 = vld [vmem:[%s20556_s1 + $0x1ed0] sm:$0xff]  }
 0x388   :  { %14910 = vmatpush3.bf16.msra.mxu0 %v16240_v35 }
 0x389   :  { %14932 = vmatpush3.bf16.msra.mxu1 %v16241_v36  ;;  %14911 = vmatprep.subr.bf16.mxu0 %v16242_v37  ;;  %v16282_v36 = vld [vmem:[%s20556_s1 + $0x1d60] sm:$0xff]  }
 0x38a   :  { %14933 = vmatprep.subr.bf16.mxu1 %v16243_v38 }
 0x38c   :  { %14912 = vmatpush3.bf16.msra.mxu0 %v16244_v39  ;;  %v16283_v39 = vld [vmem:[%s20556_s1 + $0x1de0] sm:$0xff]  }
 0x38d   :  { %14934 = vmatpush3.bf16.msra.mxu1 %v16245_v40  ;;  %14913 = vmatprep.subr.bf16.mxu0 %v16246_v41 }
 0x38e   :  { %14935 = vmatprep.subr.bf16.mxu1 %v16247_v42  ;;  %v16284_v42 = vld [vmem:[%s20556_s1 + $0x1d20] sm:$0xff]  }
 0x390   :  { %14914 = vmatpush3.bf16.msra.mxu0 %v16248_v44 }
 0x391   :  { %14936 = vmatpush3.bf16.msra.mxu1 %v16249_v46  ;;  %14915 = vmatprep.subr.bf16.mxu0 %v16250_v48  ;;  %v16286_v48 = vld [vmem:[%s20556_s1 + $0x1d68] sm:$0xff]  }
 0x392   :  { %14937 = vmatprep.subr.bf16.mxu1 %v16251_v51  ;;  %v16288_v51 = vld [vmem:[%s20556_s1 + $0x1d28] sm:$0xff]  }
 0x394   :  { %14916 = vmatpush3.bf16.msra.mxu0 %v16252_v54  ;;  %v16291_v54 = vld [vmem:[%s20556_s1 + $0x1df0] sm:$0xff]  }
 0x395   :  { %14938 = vmatpush3.bf16.msra.mxu1 %v16253_v57  ;;  %14917 = vmatprep.subr.bf16.mxu0 %v16254_v60  ;;  %v16294_v57 = vld [vmem:[%s20556_s1 + $0x1d78] sm:$0xff]  }
 0x396   :  { %v14615_v43 = vpop.f32.mrb[84].mxu0  ;;  %14939 = vmatprep.subr.bf16.mxu1 %v16255_v62  ;;  %v16297_v60 = vld [vmem:[%s20556_s1 + $0x1db8] sm:$0xff]  }
 0x397   :  { %v14637_v45 = vpop.f32.mrb[84].mxu1  ;;  %v14616_v47 = vpop.f32.mrb[85].mxu0  ;;  %v140_v62 = vld [vmem:[%s20557_s0 + $0x3b8] sm:$0xff] }
 0x398   :  { %v14617_v49 = vadd.f32 %v14616_v47, %v14615_v43  ;;  %v14638_v50 = vpop.f32.mrb[85].mxu1  ;;  %v14618_v53 = vpop.f32.mrb[86].mxu0  ;;  %14918 = vmatpush3.bf16.msra.mxu0 %v16256_v63  ;;  %v137_v63 = vld [vmem:[%s20557_s0 + $0x3a0] sm:$0xff] }
 0x399   :  { %v14639_v52 = vadd.f32 %v14638_v50, %v14637_v45  ;;  %v14640_v56 = vpop.f32.mrb[86].mxu1  ;;  %v14619_v58 = vpop.f32.mrb[87].mxu0  ;;  %14940 = vmatpush3.bf16.msra.mxu1 %v16257_v0  ;;  %14919 = vmatprep.subr.bf16.mxu0 %v16258_v1  ;;  %v16285_v45 = vld [vmem:[%s20556_s1 + $0x1da0] sm:$0xff]   ;;  %v16287_v50 = vld [vmem:[%s20556_s1 + $0x1de8] sm:$0xff]   ;;  %v16290_v53 = vld [vmem:[%s20556_s1 + $0x1d70] sm:$0xff]   ;;  %v284_v1 = vpack.c.bf16 %v140_v62, %v140_v62 }
 0x39a   :  { %v11247_v55 = vadd.f32 %v14617_v49, %v19566_v7  ;;  %v14641_v61 = vpop.f32.mrb[87].mxu1  ;;  %14941 = vmatprep.subr.bf16.mxu1 %v16259_v2  ;;  %v16264_v7 = vld [vmem:[%s20556_s1 + $0x1c38] sm:$0xff]   ;;  %v16293_v56 = vld [vmem:[%s20556_s1 + $0x1db0] sm:$0xff]   ;;  %v281_v2 = vpack.c.bf16 %v137_v63, %v137_v63  ;;  %v16335_v62 = vld [vmem:[%s20556_s1 + $0x1fc8] sm:$0xff]  }
 0x39b   :  { %v16295_v58 = vld [vmem:[%s20556_s1 + $0x1df8] sm:$0xff]   ;;  %v138_v61 = vld [vmem:[%s20557_s0 + $0x3a8] sm:$0xff] }
 0x39c   :  { %v19677_v59 = vadd.f32 %v14639_v52, %v11247_v55  ;;  %14920 = vmatpush3.bf16.msra.mxu0 %v16260_v3  ;;  %v16289_v52 = vld [vmem:[%s20556_s1 + $0x1da8] sm:$0xff]   ;;  %v16292_v55 = vld [vmem:[%s20556_s1 + $0x1d30] sm:$0xff]   ;;  %v282_v0 = vpack.c.bf16 %v138_v61, %v138_v61 }
 0x39d   :  { %14942 = vmatpush3.bf16.msra.mxu1 %v16261_v4  ;;  %14921 = vmatprep.subr.bf16.mxu0 %v16262_v5  ;;  %v139_v3 = vld [vmem:[%s20557_s0 + $0x3b0] sm:$0xff]  ;;  %v16298_v5 = vld [vmem:[%s20556_s1 + $0x1e40] sm:$0xff]   ;;  %v16334_v61 = vld [vmem:[%s20556_s1 + $0x1f48] sm:$0xff]  }
 0x39e   :  { %14943 = vmatprep.subr.bf16.mxu1 %v16263_v6  ;;  %v283_v4 = vpack.c.bf16 %v139_v3, %v139_v3  ;;  %v16299_v6 = vld [vmem:[%s20556_s1 + $0x1ec0] sm:$0xff]   ;;  %v16336_v63 = vld [vmem:[%s20556_s1 + $0x1f08] sm:$0xff]   ;;  %v16340_v3 = vld [vmem:[%s20556_s1 + $0x1f10] sm:$0xff]  }
 0x3a0   :  { %14922 = vmatpush3.bf16.msra.mxu0 %v16264_v7  ;;  %v16300_v7 = vld [vmem:[%s20556_s1 + $0x1e00] sm:$0xff]  }
 0x3a1   :  { %14944 = vmatpush3.bf16.msra.mxu1 %v16265_v8  ;;  %14951 = vmatprep.subr.bf16.mxu0 %v16266_v17  ;;  %v16301_v8 = vld [vmem:[%s20556_s1 + $0x1e80] sm:$0xff]   ;;  %v16310_v17 = vld [vmem:[%s20556_s1 + $0x1e58] sm:$0xff]  }
 0x3a2   :  { %14973 = vmatprep.subr.bf16.mxu1 %v16267_v18  ;;  %v16311_v18 = vld [vmem:[%s20556_s1 + $0x1ed8] sm:$0xff]  }
 0x3a3   :  { %11805 = vmatmul.mubr.bf16.vlgmr.msra.gmra.mrb[112].mxu0 %v277_v15  ;;  %v16308_v15 = vld [vmem:[%s20556_s1 + $0x1e10] sm:$0xff]  }
 0x3a4   :  { %11845 = vmatmul.mubr.bf16.vlgmr.msra.gmra.mrb[112].mxu1 %v279_v16  ;;  %14952 = vmatpush3.bf16.msra.mxu0 %v16268_v19  ;;  %v16309_v16 = vld [vmem:[%s20556_s1 + $0x1e90] sm:$0xff]  }
 0x3a5   :  { %14974 = vmatpush3.bf16.msra.mxu1 %v16269_v20  ;;  %14953 = vmatprep.subr.bf16.mxu0 %v16270_v21  ;;  %v16312_v20 = vld [vmem:[%s20556_s1 + $0x1e18] sm:$0xff]  }
 0x3a6   :  { %14975 = vmatprep.subr.bf16.mxu1 %v16271_v22  ;;  %11884 = vmatprep.mubr.bf16.mxu0 %v282_v0  ;;  %v16313_v22 = vld [vmem:[%s20556_s1 + $0x1e98] sm:$0xff]   ;;  %v16337_v0 = vld [vmem:[%s20556_s1 + $0x1f88] sm:$0xff]  }
 0x3a7   :  { %11924 = vmatprep.mubr.bf16.mxu1 %v284_v1  ;;  %v16338_v1 = vld [vmem:[%s20556_s1 + $0x1f50] sm:$0xff]  }
 0x3a8   :  { %14954 = vmatpush3.bf16.msra.mxu0 %v16272_v23 }
 0x3a9   :  { %14976 = vmatpush3.bf16.msra.mxu1 %v16273_v24  ;;  %14955 = vmatprep.subr.bf16.mxu0 %v16274_v25  ;;  %v16314_v24 = vld [vmem:[%s20556_s1 + $0x1e60] sm:$0xff]  }
 0x3aa   :  { %14977 = vmatprep.subr.bf16.mxu1 %v16275_v26 }
 0x3ac   :  { %14956 = vmatpush3.bf16.msra.mxu0 %v16276_v27  ;;  %v16315_v27 = vld [vmem:[%s20556_s1 + $0x1ee0] sm:$0xff]  }
 0x3ad   :  { %14978 = vmatpush3.bf16.msra.mxu1 %v16277_v28  ;;  %14957 = vmatprep.subr.bf16.mxu0 %v16278_v29 }
 0x3ae   :  { %14979 = vmatprep.subr.bf16.mxu1 %v16279_v30  ;;  %v16316_v30 = vld [vmem:[%s20556_s1 + $0x1e20] sm:$0xff]  }
 0x3b0   :  { %14958 = vmatpush3.bf16.msra.mxu0 %v16280_v32 }
 0x3b1   :  { %14980 = vmatpush3.bf16.msra.mxu1 %v16281_v34  ;;  %14959 = vmatprep.subr.bf16.mxu0 %v16282_v36  ;;  %v16318_v36 = vld [vmem:[%s20556_s1 + $0x1e68] sm:$0xff]  }
 0x3b2   :  { %14981 = vmatprep.subr.bf16.mxu1 %v16283_v39  ;;  %v16320_v39 = vld [vmem:[%s20556_s1 + $0x1e28] sm:$0xff]  }
 0x3b4   :  { %14960 = vmatpush3.bf16.msra.mxu0 %v16284_v42  ;;  %v16323_v42 = vld [vmem:[%s20556_s1 + $0x1ef0] sm:$0xff]  }
 0x3b5   :  { %14982 = vmatpush3.bf16.msra.mxu1 %v16285_v45  ;;  %14961 = vmatprep.subr.bf16.mxu0 %v16286_v48  ;;  %v16326_v45 = vld [vmem:[%s20556_s1 + $0x1e78] sm:$0xff]  }
 0x3b6   :  { %v14659_v31 = vpop.f32.mrb[88].mxu0  ;;  %14983 = vmatprep.subr.bf16.mxu1 %v16287_v50  ;;  %v16329_v48 = vld [vmem:[%s20556_s1 + $0x1eb8] sm:$0xff]  }
 0x3b7   :  { %v14681_v33 = vpop.f32.mrb[88].mxu1  ;;  %v14660_v35 = vpop.f32.mrb[89].mxu0  ;;  %v144_v50 = vld [vmem:[%s20557_s0 + $0x3d8] sm:$0xff] }
 0x3b8   :  { %v14661_v37 = vadd.f32 %v14660_v35, %v14659_v31  ;;  %v14682_v38 = vpop.f32.mrb[89].mxu1  ;;  %v14662_v41 = vpop.f32.mrb[90].mxu0  ;;  %14962 = vmatpush3.bf16.msra.mxu0 %v16288_v51 }
 0x3b9   :  { %v14683_v40 = vadd.f32 %v14682_v38, %v14681_v33  ;;  %v14684_v44 = vpop.f32.mrb[90].mxu1  ;;  %v14663_v46 = vpop.f32.mrb[91].mxu0  ;;  %14984 = vmatpush3.bf16.msra.mxu1 %v16289_v52  ;;  %14963 = vmatprep.subr.bf16.mxu0 %v16290_v53  ;;  %v16317_v33 = vld [vmem:[%s20556_s1 + $0x1ea0] sm:$0xff]   ;;  %v16319_v38 = vld [vmem:[%s20556_s1 + $0x1ee8] sm:$0xff]   ;;  %v16322_v41 = vld [vmem:[%s20556_s1 + $0x1e70] sm:$0xff]   ;;  %v288_v52 = vpack.c.bf16 %v144_v50, %v144_v50 }
 0x3ba   :  { %v11327_v43 = vadd.f32 %v14661_v37, %v19677_v59  ;;  %v14685_v49 = vpop.f32.mrb[91].mxu1  ;;  %14985 = vmatprep.subr.bf16.mxu1 %v16291_v54  ;;  %v16296_v59 = vld [vmem:[%s20556_s1 + $0x1d38] sm:$0xff]   ;;  %v16325_v44 = vld [vmem:[%s20556_s1 + $0x1eb0] sm:$0xff]   ;;  %v141_v53 = vld [vmem:[%s20557_s0 + $0x3c0] sm:$0xff] }
 0x3bb   :  { %v16327_v46 = vld [vmem:[%s20556_s1 + $0x1ef8] sm:$0xff]   ;;  %v142_v49 = vld [vmem:[%s20557_s0 + $0x3c8] sm:$0xff]  ;;  %v143_v54 = vld [vmem:[%s20557_s0 + $0x3d0] sm:$0xff] }
 0x3bc   :  { %v19788_v47 = vadd.f32 %v14683_v40, %v11327_v43  ;;  %14964 = vmatpush3.bf16.msra.mxu0 %v16292_v55  ;;  %v16321_v40 = vld [vmem:[%s20556_s1 + $0x1ea8] sm:$0xff]   ;;  %v16324_v43 = vld [vmem:[%s20556_s1 + $0x1e30] sm:$0xff]   ;;  %v286_v51 = vpack.c.bf16 %v142_v49, %v142_v49  ;;  %v285_v55 = vpack.c.bf16 %v141_v53, %v141_v53 }
 0x3bd   :  { %14986 = vmatpush3.bf16.msra.mxu1 %v16293_v56  ;;  %14965 = vmatprep.subr.bf16.mxu0 %v16294_v57  ;;  %v287_v56 = vpack.c.bf16 %v143_v54, %v143_v54  ;;  %v16330_v57 = vld [vmem:[%s20556_s1 + $0x1f40] sm:$0xff]   ;;  %v16366_v49 = vld [vmem:[%s20556_s1 + $0x2048] sm:$0xff]   ;;  %v16370_v53 = vld [vmem:[%s20556_s1 + $0x2050] sm:$0xff]  }
 0x3be   :  { %14987 = vmatprep.subr.bf16.mxu1 %v16295_v58  ;;  %v16331_v58 = vld [vmem:[%s20556_s1 + $0x1fc0] sm:$0xff]   ;;  %v16367_v50 = vld [vmem:[%s20556_s1 + $0x20c8] sm:$0xff]   ;;  %v16371_v54 = vld [vmem:[%s20556_s1 + $0x20d0] sm:$0xff]  }
 0x3c0   :  { %14966 = vmatpush3.bf16.msra.mxu0 %v16296_v59  ;;  %v16332_v59 = vld [vmem:[%s20556_s1 + $0x1f00] sm:$0xff]  }
 0x3c1   :  { %14988 = vmatpush3.bf16.msra.mxu1 %v16297_v60  ;;  %14995 = vmatprep.subr.bf16.mxu0 %v16298_v5  ;;  %v16333_v60 = vld [vmem:[%s20556_s1 + $0x1f80] sm:$0xff]   ;;  %v16342_v5 = vld [vmem:[%s20556_s1 + $0x1f58] sm:$0xff]  }
 0x3c2   :  { %15017 = vmatprep.subr.bf16.mxu1 %v16299_v6  ;;  %v16343_v6 = vld [vmem:[%s20556_s1 + $0x1fd8] sm:$0xff]  }
 0x3c3   :  { %11885 = vmatmul.mubr.bf16.vlgmr.msra.gmra.mrb[116].mxu0 %v281_v2  ;;  %v16339_v2 = vld [vmem:[%s20556_s1 + $0x1fd0] sm:$0xff]  }
 0x3c4   :  { %11925 = vmatmul.mubr.bf16.vlgmr.msra.gmra.mrb[116].mxu1 %v283_v4  ;;  %14996 = vmatpush3.bf16.msra.mxu0 %v16300_v7  ;;  %v16341_v4 = vld [vmem:[%s20556_s1 + $0x1f90] sm:$0xff]  }
 0x3c5   :  { %15018 = vmatpush3.bf16.msra.mxu1 %v16301_v8  ;;  %14997 = vmatprep.subr.bf16.mxu0 %v16302_v9  ;;  %v16344_v8 = vld [vmem:[%s20556_s1 + $0x1f18] sm:$0xff]  }
 0x3c6   :  { %15019 = vmatprep.subr.bf16.mxu1 %v16303_v10  ;;  %11964 = vmatprep.mubr.bf16.mxu0 %v286_v51  ;;  %v16345_v10 = vld [vmem:[%s20556_s1 + $0x1f98] sm:$0xff]   ;;  %v16368_v51 = vld [vmem:[%s20556_s1 + $0x2008] sm:$0xff]  }
 0x3c7   :  { %12004 = vmatprep.mubr.bf16.mxu1 %v288_v52  ;;  %v16369_v52 = vld [vmem:[%s20556_s1 + $0x2088] sm:$0xff]  }
 0x3c8   :  { %14998 = vmatpush3.bf16.msra.mxu0 %v16304_v11 }
 0x3c9   :  { %15020 = vmatpush3.bf16.msra.mxu1 %v16305_v12  ;;  %14999 = vmatprep.subr.bf16.mxu0 %v16306_v13  ;;  %v16346_v12 = vld [vmem:[%s20556_s1 + $0x1f60] sm:$0xff]  }
 0x3ca   :  { %15021 = vmatprep.subr.bf16.mxu1 %v16307_v14 }
 0x3cc   :  { %15000 = vmatpush3.bf16.msra.mxu0 %v16308_v15  ;;  %v16347_v15 = vld [vmem:[%s20556_s1 + $0x1fe0] sm:$0xff]  }
 0x3cd   :  { %15022 = vmatpush3.bf16.msra.mxu1 %v16309_v16  ;;  %15001 = vmatprep.subr.bf16.mxu0 %v16310_v17 }
 0x3ce   :  { %15023 = vmatprep.subr.bf16.mxu1 %v16311_v18  ;;  %v16348_v18 = vld [vmem:[%s20556_s1 + $0x1f20] sm:$0xff]  }
 0x3d0   :  { %15002 = vmatpush3.bf16.msra.mxu0 %v16312_v20 }
 0x3d1   :  { %15024 = vmatpush3.bf16.msra.mxu1 %v16313_v22  ;;  %15003 = vmatprep.subr.bf16.mxu0 %v16314_v24  ;;  %v16350_v24 = vld [vmem:[%s20556_s1 + $0x1f68] sm:$0xff]  }
 0x3d2   :  { %15025 = vmatprep.subr.bf16.mxu1 %v16315_v27  ;;  %v16352_v27 = vld [vmem:[%s20556_s1 + $0x1f28] sm:$0xff]  }
 0x3d4   :  { %15004 = vmatpush3.bf16.msra.mxu0 %v16316_v30  ;;  %v16355_v30 = vld [vmem:[%s20556_s1 + $0x1ff0] sm:$0xff]  }
 0x3d5   :  { %15026 = vmatpush3.bf16.msra.mxu1 %v16317_v33  ;;  %15005 = vmatprep.subr.bf16.mxu0 %v16318_v36  ;;  %v16358_v33 = vld [vmem:[%s20556_s1 + $0x1f78] sm:$0xff]  }
 0x3d6   :  { %v14703_v19 = vpop.f32.mrb[92].mxu0  ;;  %15027 = vmatprep.subr.bf16.mxu1 %v16319_v38  ;;  %v16361_v36 = vld [vmem:[%s20556_s1 + $0x1fb8] sm:$0xff]  }
 0x3d7   :  { %v14725_v21 = vpop.f32.mrb[92].mxu1  ;;  %v14704_v23 = vpop.f32.mrb[93].mxu0 }
 0x3d8   :  { %v14705_v25 = vadd.f32 %v14704_v23, %v14703_v19  ;;  %v14726_v26 = vpop.f32.mrb[93].mxu1  ;;  %v14706_v29 = vpop.f32.mrb[94].mxu0  ;;  %15006 = vmatpush3.bf16.msra.mxu0 %v16320_v39  ;;  %v148_v39 = vld [vmem:[%s20557_s0 + $0x3f8] sm:$0xff] }
 0x3d9   :  { %v14727_v28 = vadd.f32 %v14726_v26, %v14725_v21  ;;  %v14728_v32 = vpop.f32.mrb[94].mxu1  ;;  %v14707_v34 = vpop.f32.mrb[95].mxu0  ;;  %15028 = vmatpush3.bf16.msra.mxu1 %v16321_v40  ;;  %15007 = vmatprep.subr.bf16.mxu0 %v16322_v41  ;;  %v16349_v21 = vld [vmem:[%s20556_s1 + $0x1fa0] sm:$0xff]   ;;  %v16351_v26 = vld [vmem:[%s20556_s1 + $0x1fe8] sm:$0xff]   ;;  %v16354_v29 = vld [vmem:[%s20556_s1 + $0x1f70] sm:$0xff]  }
 0x3da   :  { %v11407_v31 = vadd.f32 %v14705_v25, %v19788_v47  ;;  %v14729_v37 = vpop.f32.mrb[95].mxu1  ;;  %15029 = vmatprep.subr.bf16.mxu1 %v16323_v42  ;;  %v16328_v47 = vld [vmem:[%s20556_s1 + $0x1e38] sm:$0xff]   ;;  %v16357_v32 = vld [vmem:[%s20556_s1 + $0x1fb0] sm:$0xff]   ;;  %v145_v40 = vld [vmem:[%s20557_s0 + $0x3e0] sm:$0xff]  ;;  %v292_v42 = vpack.c.bf16 %v148_v39, %v148_v39 }
 0x3db   :  { %v16359_v34 = vld [vmem:[%s20556_s1 + $0x1ff8] sm:$0xff]   ;;  %v146_v37 = vld [vmem:[%s20557_s0 + $0x3e8] sm:$0xff]  ;;  %v147_v41 = vld [vmem:[%s20557_s0 + $0x3f0] sm:$0xff] }
 0x3dc   :  { %v19899_v35 = vadd.f32 %v14727_v28, %v11407_v31  ;;  %15008 = vmatpush3.bf16.msra.mxu0 %v16324_v43  ;;  %v16353_v28 = vld [vmem:[%s20556_s1 + $0x1fa8] sm:$0xff]   ;;  %v16356_v31 = vld [vmem:[%s20556_s1 + $0x1f30] sm:$0xff]   ;;  %v290_v38 = vpack.c.bf16 %v146_v37, %v146_v37  ;;  %v289_v43 = vpack.c.bf16 %v145_v40, %v145_v40 }
 0x3dd   :  { %15030 = vmatpush3.bf16.msra.mxu1 %v16325_v44  ;;  %15009 = vmatprep.subr.bf16.mxu0 %v16326_v45  ;;  %v291_v44 = vpack.c.bf16 %v147_v41, %v147_v41  ;;  %v16362_v45 = vld [vmem:[%s20556_s1 + $0x2040] sm:$0xff]   ;;  %v16398_v37 = vld [vmem:[%s20556_s1 + $0x2148] sm:$0xff]   ;;  %v16402_v41 = vld [vmem:[%s20556_s1 + $0x2150] sm:$0xff]  }
 0x3de   :  { %15031 = vmatprep.subr.bf16.mxu1 %v16327_v46  ;;  %v16363_v46 = vld [vmem:[%s20556_s1 + $0x20c0] sm:$0xff]   ;;  %v16400_v39 = vld [vmem:[%s20556_s1 + $0x2108] sm:$0xff]  }
 0x3df   :  { %v16401_v40 = vld [vmem:[%s20556_s1 + $0x2188] sm:$0xff]  }
 0x3e0   :  { %15010 = vmatpush3.bf16.msra.mxu0 %v16328_v47  ;;  %v16364_v47 = vld [vmem:[%s20556_s1 + $0x2000] sm:$0xff]  }
 0x3e1   :  { %15032 = vmatpush3.bf16.msra.mxu1 %v16329_v48  ;;  %15039 = vmatprep.subr.bf16.mxu0 %v16330_v57  ;;  %v16365_v48 = vld [vmem:[%s20556_s1 + $0x2080] sm:$0xff]   ;;  %v16374_v57 = vld [vmem:[%s20556_s1 + $0x2058] sm:$0xff]  }
 0x3e2   :  { %15061 = vmatprep.subr.bf16.mxu1 %v16331_v58  ;;  %v16375_v58 = vld [vmem:[%s20556_s1 + $0x20d8] sm:$0xff]  }
 0x3e3   :  { %11965 = vmatmul.mubr.bf16.vlgmr.msra.gmra.mrb[120].mxu0 %v285_v55  ;;  %v16372_v55 = vld [vmem:[%s20556_s1 + $0x2010] sm:$0xff]  }
 0x3e4   :  { %12005 = vmatmul.mubr.bf16.vlgmr.msra.gmra.mrb[120].mxu1 %v287_v56  ;;  %15040 = vmatpush3.bf16.msra.mxu0 %v16332_v59  ;;  %v16373_v56 = vld [vmem:[%s20556_s1 + $0x2090] sm:$0xff]  }
 0x3e5   :  { %15062 = vmatpush3.bf16.msra.mxu1 %v16333_v60  ;;  %15041 = vmatprep.subr.bf16.mxu0 %v16334_v61  ;;  %v16376_v60 = vld [vmem:[%s20556_s1 + $0x2018] sm:$0xff]  }
 0x3e6   :  { %15063 = vmatprep.subr.bf16.mxu1 %v16335_v62  ;;  %12044 = vmatprep.mubr.bf16.mxu0 %v290_v38  ;;  %v16377_v62 = vld [vmem:[%s20556_s1 + $0x2098] sm:$0xff]   ;;  %v16399_v38 = vld [vmem:[%s20556_s1 + $0x21c8] sm:$0xff]  }
 0x3e7   :  { %12084 = vmatprep.mubr.bf16.mxu1 %v292_v42  ;;  %v16403_v42 = vld [vmem:[%s20556_s1 + $0x21d0] sm:$0xff]  }
 0x3e8   :  { %15042 = vmatpush3.bf16.msra.mxu0 %v16336_v63 }
 0x3e9   :  { %15064 = vmatpush3.bf16.msra.mxu1 %v16337_v0  ;;  %15043 = vmatprep.subr.bf16.mxu0 %v16338_v1  ;;  %v16378_v0 = vld [vmem:[%s20556_s1 + $0x2060] sm:$0xff]  }
 0x3ea   :  { %15065 = vmatprep.subr.bf16.mxu1 %v16339_v2 }
 0x3ec   :  { %15044 = vmatpush3.bf16.msra.mxu0 %v16340_v3  ;;  %v16379_v3 = vld [vmem:[%s20556_s1 + $0x20e0] sm:$0xff]  }
 0x3ed   :  { %15066 = vmatpush3.bf16.msra.mxu1 %v16341_v4  ;;  %15045 = vmatprep.subr.bf16.mxu0 %v16342_v5 }
 0x3ee   :  { %15067 = vmatprep.subr.bf16.mxu1 %v16343_v6  ;;  %v16380_v6 = vld [vmem:[%s20556_s1 + $0x2020] sm:$0xff]  }
 0x3f0   :  { %15046 = vmatpush3.bf16.msra.mxu0 %v16344_v8 }
 0x3f1   :  { %15068 = vmatpush3.bf16.msra.mxu1 %v16345_v10  ;;  %15047 = vmatprep.subr.bf16.mxu0 %v16346_v12  ;;  %v16382_v12 = vld [vmem:[%s20556_s1 + $0x2068] sm:$0xff]  }
 0x3f2   :  { %15069 = vmatprep.subr.bf16.mxu1 %v16347_v15  ;;  %v16384_v15 = vld [vmem:[%s20556_s1 + $0x2028] sm:$0xff]  }
 0x3f4   :  { %15048 = vmatpush3.bf16.msra.mxu0 %v16348_v18  ;;  %v16387_v18 = vld [vmem:[%s20556_s1 + $0x20f0] sm:$0xff]  }
 0x3f5   :  { %15070 = vmatpush3.bf16.msra.mxu1 %v16349_v21  ;;  %15049 = vmatprep.subr.bf16.mxu0 %v16350_v24  ;;  %v16390_v21 = vld [vmem:[%s20556_s1 + $0x2078] sm:$0xff]  }
 0x3f6   :  { %v14747_v7 = vpop.f32.mrb[96].mxu0  ;;  %15071 = vmatprep.subr.bf16.mxu1 %v16351_v26  ;;  %v16393_v24 = vld [vmem:[%s20556_s1 + $0x20b8] sm:$0xff]  }
 0x3f7   :  { %v14769_v9 = vpop.f32.mrb[96].mxu1  ;;  %v14748_v11 = vpop.f32.mrb[97].mxu0  ;;  %v152_v26 = vld [vmem:[%s20557_s0 + $0x418] sm:$0xff] }
 0x3f8   :  { %v14749_v13 = vadd.f32 %v14748_v11, %v14747_v7  ;;  %v14770_v14 = vpop.f32.mrb[97].mxu1  ;;  %v14750_v17 = vpop.f32.mrb[98].mxu0  ;;  %15050 = vmatpush3.bf16.msra.mxu0 %v16352_v27  ;;  %v149_v27 = vld [vmem:[%s20557_s0 + $0x400] sm:$0xff] }
 0x3f9   :  { %v14771_v16 = vadd.f32 %v14770_v14, %v14769_v9  ;;  %v14772_v20 = vpop.f32.mrb[98].mxu1  ;;  %v14751_v22 = vpop.f32.mrb[99].mxu0  ;;  %15072 = vmatpush3.bf16.msra.mxu1 %v16353_v28  ;;  %15051 = vmatprep.subr.bf16.mxu0 %v16354_v29  ;;  %v16381_v9 = vld [vmem:[%s20556_s1 + $0x20a0] sm:$0xff]   ;;  %v16383_v14 = vld [vmem:[%s20556_s1 + $0x20e8] sm:$0xff]   ;;  %v16386_v17 = vld [vmem:[%s20556_s1 + $0x2070] sm:$0xff]   ;;  %v296_v29 = vpack.c.bf16 %v152_v26, %v152_v26 }
 0x3fa   :  { %v11487_v19 = vadd.f32 %v14749_v13, %v19899_v35  ;;  %v14773_v25 = vpop.f32.mrb[99].mxu1  ;;  %15073 = vmatprep.subr.bf16.mxu1 %v16355_v30  ;;  %v16360_v35 = vld [vmem:[%s20556_s1 + $0x1f38] sm:$0xff]   ;;  %v16389_v20 = vld [vmem:[%s20556_s1 + $0x20b0] sm:$0xff]   ;;  %v293_v30 = vpack.c.bf16 %v149_v27, %v149_v27  ;;  %v16431_v26 = vld [vmem:[%s20556_s1 + $0x22c8] sm:$0xff]  }
 0x3fb   :  { %v16391_v22 = vld [vmem:[%s20556_s1 + $0x20f8] sm:$0xff]   ;;  %v150_v25 = vld [vmem:[%s20557_s0 + $0x408] sm:$0xff] }
 0x3fc   :  { %v20010_v23 = vadd.f32 %v14771_v16, %v11487_v19  ;;  %15052 = vmatpush3.bf16.msra.mxu0 %v16356_v31  ;;  %v16385_v16 = vld [vmem:[%s20556_s1 + $0x20a8] sm:$0xff]   ;;  %v16388_v19 = vld [vmem:[%s20556_s1 + $0x2030] sm:$0xff]   ;;  %v294_v28 = vpack.c.bf16 %v150_v25, %v150_v25 }
 0x3fd   :  { %15074 = vmatpush3.bf16.msra.mxu1 %v16357_v32  ;;  %15053 = vmatprep.subr.bf16.mxu0 %v16358_v33  ;;  %v151_v31 = vld [vmem:[%s20557_s0 + $0x410] sm:$0xff]  ;;  %v16394_v33 = vld [vmem:[%s20556_s1 + $0x2140] sm:$0xff]   ;;  %v16430_v25 = vld [vmem:[%s20556_s1 + $0x2248] sm:$0xff]  }
 0x3fe   :  { %15075 = vmatprep.subr.bf16.mxu1 %v16359_v34  ;;  %v295_v32 = vpack.c.bf16 %v151_v31, %v151_v31  ;;  %v16395_v34 = vld [vmem:[%s20556_s1 + $0x21c0] sm:$0xff]   ;;  %v16432_v27 = vld [vmem:[%s20556_s1 + $0x2208] sm:$0xff]   ;;  %v16436_v31 = vld [vmem:[%s20556_s1 + $0x2210] sm:$0xff]  }
 0x400   :  { %15054 = vmatpush3.bf16.msra.mxu0 %v16360_v35  ;;  %v16396_v35 = vld [vmem:[%s20556_s1 + $0x2100] sm:$0xff]  }
 0x401   :  { %15076 = vmatpush3.bf16.msra.mxu1 %v16361_v36  ;;  %15083 = vmatprep.subr.bf16.mxu0 %v16362_v45  ;;  %v16397_v36 = vld [vmem:[%s20556_s1 + $0x2180] sm:$0xff]   ;;  %v16406_v45 = vld [vmem:[%s20556_s1 + $0x2158] sm:$0xff]  }
 0x402   :  { %15105 = vmatprep.subr.bf16.mxu1 %v16363_v46  ;;  %v16407_v46 = vld [vmem:[%s20556_s1 + $0x21d8] sm:$0xff]  }
 0x403   :  { %12045 = vmatmul.mubr.bf16.vlgmr.msra.gmra.mrb[124].mxu0 %v289_v43  ;;  %v16404_v43 = vld [vmem:[%s20556_s1 + $0x2110] sm:$0xff]  }
 0x404   :  { %12085 = vmatmul.mubr.bf16.vlgmr.msra.gmra.mrb[124].mxu1 %v291_v44  ;;  %15084 = vmatpush3.bf16.msra.mxu0 %v16364_v47  ;;  %v16405_v44 = vld [vmem:[%s20556_s1 + $0x2190] sm:$0xff]  }
 0x405   :  { %15106 = vmatpush3.bf16.msra.mxu1 %v16365_v48  ;;  %15085 = vmatprep.subr.bf16.mxu0 %v16366_v49  ;;  %v16408_v48 = vld [vmem:[%s20556_s1 + $0x2118] sm:$0xff]  }
 0x406   :  { %15107 = vmatprep.subr.bf16.mxu1 %v16367_v50  ;;  %12124 = vmatprep.mubr.bf16.mxu0 %v294_v28  ;;  %v16409_v50 = vld [vmem:[%s20556_s1 + $0x2198] sm:$0xff]   ;;  %v16433_v28 = vld [vmem:[%s20556_s1 + $0x2288] sm:$0xff]  }
 0x407   :  { %12164 = vmatprep.mubr.bf16.mxu1 %v296_v29  ;;  %v16434_v29 = vld [vmem:[%s20556_s1 + $0x2250] sm:$0xff]  }
 0x408   :  { %15086 = vmatpush3.bf16.msra.mxu0 %v16368_v51 }
 0x409   :  { %15108 = vmatpush3.bf16.msra.mxu1 %v16369_v52  ;;  %15087 = vmatprep.subr.bf16.mxu0 %v16370_v53  ;;  %v16410_v52 = vld [vmem:[%s20556_s1 + $0x2160] sm:$0xff]  }
 0x40a   :  { %15109 = vmatprep.subr.bf16.mxu1 %v16371_v54 }
 0x40c   :  { %15088 = vmatpush3.bf16.msra.mxu0 %v16372_v55  ;;  %v16411_v55 = vld [vmem:[%s20556_s1 + $0x21e0] sm:$0xff]  }
 0x40d   :  { %15110 = vmatpush3.bf16.msra.mxu1 %v16373_v56  ;;  %15089 = vmatprep.subr.bf16.mxu0 %v16374_v57 }
 0x40e   :  { %15111 = vmatprep.subr.bf16.mxu1 %v16375_v58  ;;  %v16412_v58 = vld [vmem:[%s20556_s1 + $0x2120] sm:$0xff]  }
 0x410   :  { %15090 = vmatpush3.bf16.msra.mxu0 %v16376_v60 }
 0x411   :  { %15112 = vmatpush3.bf16.msra.mxu1 %v16377_v62  ;;  %15091 = vmatprep.subr.bf16.mxu0 %v16378_v0  ;;  %v16414_v0 = vld [vmem:[%s20556_s1 + $0x2168] sm:$0xff]  }
 0x412   :  { %15113 = vmatprep.subr.bf16.mxu1 %v16379_v3  ;;  %v16416_v3 = vld [vmem:[%s20556_s1 + $0x2128] sm:$0xff]  }
 0x414   :  { %15092 = vmatpush3.bf16.msra.mxu0 %v16380_v6  ;;  %v16419_v6 = vld [vmem:[%s20556_s1 + $0x21f0] sm:$0xff]  }
 0x415   :  { %15114 = vmatpush3.bf16.msra.mxu1 %v16381_v9  ;;  %15093 = vmatprep.subr.bf16.mxu0 %v16382_v12  ;;  %v16422_v9 = vld [vmem:[%s20556_s1 + $0x2178] sm:$0xff]  }
 0x416   :  { %v14791_v59 = vpop.f32.mrb[100].mxu0  ;;  %15115 = vmatprep.subr.bf16.mxu1 %v16383_v14  ;;  %v16425_v12 = vld [vmem:[%s20556_s1 + $0x21b8] sm:$0xff]  }
 0x417   :  { %v14813_v61 = vpop.f32.mrb[100].mxu1  ;;  %v14792_v63 = vpop.f32.mrb[101].mxu0  ;;  %v156_v14 = vld [vmem:[%s20557_s0 + $0x438] sm:$0xff] }
 0x418   :  { %v14793_v1 = vadd.f32 %v14792_v63, %v14791_v59  ;;  %v14814_v2 = vpop.f32.mrb[101].mxu1  ;;  %v14794_v5 = vpop.f32.mrb[102].mxu0  ;;  %15094 = vmatpush3.bf16.msra.mxu0 %v16384_v15 }
 0x419   :  { %v14815_v4 = vadd.f32 %v14814_v2, %v14813_v61  ;;  %v14816_v8 = vpop.f32.mrb[102].mxu1  ;;  %v14795_v10 = vpop.f32.mrb[103].mxu0  ;;  %15116 = vmatpush3.bf16.msra.mxu1 %v16385_v16  ;;  %15095 = vmatprep.subr.bf16.mxu0 %v16386_v17  ;;  %v16413_v61 = vld [vmem:[%s20556_s1 + $0x21a0] sm:$0xff]   ;;  %v16415_v2 = vld [vmem:[%s20556_s1 + $0x21e8] sm:$0xff]   ;;  %v16418_v5 = vld [vmem:[%s20556_s1 + $0x2170] sm:$0xff]   ;;  %v300_v16 = vpack.c.bf16 %v156_v14, %v156_v14 }
 0x41a   :  { %v11567_v7 = vadd.f32 %v14793_v1, %v20010_v23  ;;  %v14817_v13 = vpop.f32.mrb[103].mxu1  ;;  %15117 = vmatprep.subr.bf16.mxu1 %v16387_v18  ;;  %v16392_v23 = vld [vmem:[%s20556_s1 + $0x2038] sm:$0xff]   ;;  %v16421_v8 = vld [vmem:[%s20556_s1 + $0x21b0] sm:$0xff]   ;;  %v153_v17 = vld [vmem:[%s20557_s0 + $0x420] sm:$0xff] }
 0x41b   :  { %v16423_v10 = vld [vmem:[%s20556_s1 + $0x21f8] sm:$0xff]   ;;  %v154_v13 = vld [vmem:[%s20557_s0 + $0x428] sm:$0xff]  ;;  %v155_v18 = vld [vmem:[%s20557_s0 + $0x430] sm:$0xff] }
 0x41c   :  { %v20121_v11 = vadd.f32 %v14815_v4, %v11567_v7  ;;  %15096 = vmatpush3.bf16.msra.mxu0 %v16388_v19  ;;  %v16417_v4 = vld [vmem:[%s20556_s1 + $0x21a8] sm:$0xff]   ;;  %v16420_v7 = vld [vmem:[%s20556_s1 + $0x2130] sm:$0xff]   ;;  %v298_v15 = vpack.c.bf16 %v154_v13, %v154_v13  ;;  %v297_v19 = vpack.c.bf16 %v153_v17, %v153_v17 }
 0x41d   :  { %15118 = vmatpush3.bf16.msra.mxu1 %v16389_v20  ;;  %15097 = vmatprep.subr.bf16.mxu0 %v16390_v21  ;;  %v299_v20 = vpack.c.bf16 %v155_v18, %v155_v18  ;;  %v16426_v21 = vld [vmem:[%s20556_s1 + $0x2240] sm:$0xff]   ;;  %v16462_v13 = vld [vmem:[%s20556_s1 + $0x2348] sm:$0xff]   ;;  %v16466_v17 = vld [vmem:[%s20556_s1 + $0x2350] sm:$0xff]  }
 0x41e   :  { %15119 = vmatprep.subr.bf16.mxu1 %v16391_v22  ;;  %v16427_v22 = vld [vmem:[%s20556_s1 + $0x22c0] sm:$0xff]   ;;  %v16463_v14 = vld [vmem:[%s20556_s1 + $0x23c8] sm:$0xff]   ;;  %v16467_v18 = vld [vmem:[%s20556_s1 + $0x23d0] sm:$0xff]  }
 0x420   :  { %15098 = vmatpush3.bf16.msra.mxu0 %v16392_v23  ;;  %v16428_v23 = vld [vmem:[%s20556_s1 + $0x2200] sm:$0xff]  }
 0x421   :  { %15120 = vmatpush3.bf16.msra.mxu1 %v16393_v24  ;;  %15127 = vmatprep.subr.bf16.mxu0 %v16394_v33  ;;  %v16429_v24 = vld [vmem:[%s20556_s1 + $0x2280] sm:$0xff]   ;;  %v16438_v33 = vld [vmem:[%s20556_s1 + $0x2258] sm:$0xff]  }
 0x422   :  { %15149 = vmatprep.subr.bf16.mxu1 %v16395_v34  ;;  %v16439_v34 = vld [vmem:[%s20556_s1 + $0x22d8] sm:$0xff]  }
 0x423   :  { %12125 = vmatmul.mubr.bf16.vlgmr.msra.gmra.mrb[128].mxu0 %v293_v30  ;;  %v16435_v30 = vld [vmem:[%s20556_s1 + $0x22d0] sm:$0xff]  }
 0x424   :  { %12165 = vmatmul.mubr.bf16.vlgmr.msra.gmra.mrb[128].mxu1 %v295_v32  ;;  %15128 = vmatpush3.bf16.msra.mxu0 %v16396_v35  ;;  %v16437_v32 = vld [vmem:[%s20556_s1 + $0x2290] sm:$0xff]  }
 0x425   :  { %15150 = vmatpush3.bf16.msra.mxu1 %v16397_v36  ;;  %15129 = vmatprep.subr.bf16.mxu0 %v16398_v37  ;;  %v16440_v36 = vld [vmem:[%s20556_s1 + $0x2218] sm:$0xff]  }
 0x426   :  { %15151 = vmatprep.subr.bf16.mxu1 %v16399_v38  ;;  %12204 = vmatprep.mubr.bf16.mxu0 %v298_v15  ;;  %v16441_v38 = vld [vmem:[%s20556_s1 + $0x2298] sm:$0xff]   ;;  %v16464_v15 = vld [vmem:[%s20556_s1 + $0x2308] sm:$0xff]  }
 0x427   :  { %12244 = vmatprep.mubr.bf16.mxu1 %v300_v16  ;;  %v16465_v16 = vld [vmem:[%s20556_s1 + $0x2388] sm:$0xff]  }
 0x428   :  { %15130 = vmatpush3.bf16.msra.mxu0 %v16400_v39 }
 0x429   :  { %15152 = vmatpush3.bf16.msra.mxu1 %v16401_v40  ;;  %15131 = vmatprep.subr.bf16.mxu0 %v16402_v41  ;;  %v16442_v40 = vld [vmem:[%s20556_s1 + $0x2260] sm:$0xff]  }
 0x42a   :  { %15153 = vmatprep.subr.bf16.mxu1 %v16403_v42 }
 0x42c   :  { %15132 = vmatpush3.bf16.msra.mxu0 %v16404_v43  ;;  %v16443_v43 = vld [vmem:[%s20556_s1 + $0x22e0] sm:$0xff]  }
 0x42d   :  { %15154 = vmatpush3.bf16.msra.mxu1 %v16405_v44  ;;  %15133 = vmatprep.subr.bf16.mxu0 %v16406_v45 }
 0x42e   :  { %15155 = vmatprep.subr.bf16.mxu1 %v16407_v46  ;;  %v16444_v46 = vld [vmem:[%s20556_s1 + $0x2220] sm:$0xff]  }
 0x430   :  { %15134 = vmatpush3.bf16.msra.mxu0 %v16408_v48 }
 0x431   :  { %15156 = vmatpush3.bf16.msra.mxu1 %v16409_v50  ;;  %15135 = vmatprep.subr.bf16.mxu0 %v16410_v52  ;;  %v16446_v52 = vld [vmem:[%s20556_s1 + $0x2268] sm:$0xff]  }
 0x432   :  { %15157 = vmatprep.subr.bf16.mxu1 %v16411_v55  ;;  %v16448_v55 = vld [vmem:[%s20556_s1 + $0x2228] sm:$0xff]  }
 0x434   :  { %15136 = vmatpush3.bf16.msra.mxu0 %v16412_v58  ;;  %v16451_v58 = vld [vmem:[%s20556_s1 + $0x22f0] sm:$0xff]  }
 0x435   :  { %15158 = vmatpush3.bf16.msra.mxu1 %v16413_v61  ;;  %15137 = vmatprep.subr.bf16.mxu0 %v16414_v0  ;;  %v16454_v61 = vld [vmem:[%s20556_s1 + $0x2278] sm:$0xff]  }
 0x436   :  { %v14835_v47 = vpop.f32.mrb[104].mxu0  ;;  %15159 = vmatprep.subr.bf16.mxu1 %v16415_v2  ;;  %v16457_v0 = vld [vmem:[%s20556_s1 + $0x22b8] sm:$0xff]  }
 0x437   :  { %v14857_v49 = vpop.f32.mrb[104].mxu1  ;;  %v14836_v51 = vpop.f32.mrb[105].mxu0 }
 0x438   :  { %v14837_v53 = vadd.f32 %v14836_v51, %v14835_v47  ;;  %v14858_v54 = vpop.f32.mrb[105].mxu1  ;;  %v14838_v57 = vpop.f32.mrb[106].mxu0  ;;  %15138 = vmatpush3.bf16.msra.mxu0 %v16416_v3  ;;  %v160_v3 = vld [vmem:[%s20557_s0 + $0x458] sm:$0xff] }
 0x439   :  { %v14859_v56 = vadd.f32 %v14858_v54, %v14857_v49  ;;  %v14860_v60 = vpop.f32.mrb[106].mxu1  ;;  %v14839_v62 = vpop.f32.mrb[107].mxu0  ;;  %15160 = vmatpush3.bf16.msra.mxu1 %v16417_v4  ;;  %15139 = vmatprep.subr.bf16.mxu0 %v16418_v5  ;;  %v16445_v49 = vld [vmem:[%s20556_s1 + $0x22a0] sm:$0xff]   ;;  %v16447_v54 = vld [vmem:[%s20556_s1 + $0x22e8] sm:$0xff]   ;;  %v16450_v57 = vld [vmem:[%s20556_s1 + $0x2270] sm:$0xff]  }
 0x43a   :  { %v11647_v59 = vadd.f32 %v14837_v53, %v20121_v11  ;;  %v14861_v1 = vpop.f32.mrb[107].mxu1  ;;  %15161 = vmatprep.subr.bf16.mxu1 %v16419_v6  ;;  %v16424_v11 = vld [vmem:[%s20556_s1 + $0x2138] sm:$0xff]   ;;  %v16453_v60 = vld [vmem:[%s20556_s1 + $0x22b0] sm:$0xff]   ;;  %v157_v4 = vld [vmem:[%s20557_s0 + $0x440] sm:$0xff]  ;;  %v304_v6 = vpack.c.bf16 %v160_v3, %v160_v3 }
 0x43b   :  { %v16455_v62 = vld [vmem:[%s20556_s1 + $0x22f8] sm:$0xff]   ;;  %v158_v1 = vld [vmem:[%s20557_s0 + $0x448] sm:$0xff]  ;;  %v159_v5 = vld [vmem:[%s20557_s0 + $0x450] sm:$0xff] }
 0x43c   :  { %v20232_v63 = vadd.f32 %v14859_v56, %v11647_v59  ;;  %15140 = vmatpush3.bf16.msra.mxu0 %v16420_v7  ;;  %v16449_v56 = vld [vmem:[%s20556_s1 + $0x22a8] sm:$0xff]   ;;  %v16452_v59 = vld [vmem:[%s20556_s1 + $0x2230] sm:$0xff]   ;;  %v302_v2 = vpack.c.bf16 %v158_v1, %v158_v1  ;;  %v301_v7 = vpack.c.bf16 %v157_v4, %v157_v4 }
 0x43d   :  { %15162 = vmatpush3.bf16.msra.mxu1 %v16421_v8  ;;  %15141 = vmatprep.subr.bf16.mxu0 %v16422_v9  ;;  %v303_v8 = vpack.c.bf16 %v159_v5, %v159_v5  ;;  %v16458_v9 = vld [vmem:[%s20556_s1 + $0x2340] sm:$0xff]  }
 0x43e   :  { %15163 = vmatprep.subr.bf16.mxu1 %v16423_v10  ;;  %v16459_v10 = vld [vmem:[%s20556_s1 + $0x23c0] sm:$0xff]  }
 0x440   :  { %15142 = vmatpush3.bf16.msra.mxu0 %v16424_v11  ;;  %v16460_v11 = vld [vmem:[%s20556_s1 + $0x2300] sm:$0xff]  }
 0x441   :  { %15164 = vmatpush3.bf16.msra.mxu1 %v16425_v12  ;;  %15171 = vmatprep.subr.bf16.mxu0 %v16426_v21  ;;  %v16461_v12 = vld [vmem:[%s20556_s1 + $0x2380] sm:$0xff]   ;;  %v16470_v21 = vld [vmem:[%s20556_s1 + $0x2358] sm:$0xff]  }
 0x442   :  { %15193 = vmatprep.subr.bf16.mxu1 %v16427_v22  ;;  %v16471_v22 = vld [vmem:[%s20556_s1 + $0x23d8] sm:$0xff]  }
 0x443   :  { %12205 = vmatmul.mubr.bf16.vlgmr.msra.gmra.mrb[132].mxu0 %v297_v19  ;;  %v16468_v19 = vld [vmem:[%s20556_s1 + $0x2310] sm:$0xff]  }
 0x444   :  { %12245 = vmatmul.mubr.bf16.vlgmr.msra.gmra.mrb[132].mxu1 %v299_v20  ;;  %15172 = vmatpush3.bf16.msra.mxu0 %v16428_v23  ;;  %v16469_v20 = vld [vmem:[%s20556_s1 + $0x2390] sm:$0xff]  }
 0x445   :  { %15194 = vmatpush3.bf16.msra.mxu1 %v16429_v24  ;;  %15173 = vmatprep.subr.bf16.mxu0 %v16430_v25  ;;  %v16472_v24 = vld [vmem:[%s20556_s1 + $0x2318] sm:$0xff]  }
 0x446   :  { %15195 = vmatprep.subr.bf16.mxu1 %v16431_v26  ;;  %12284 = vmatprep.mubr.bf16.mxu0 %v302_v2  ;;  %v16473_v26 = vld [vmem:[%s20556_s1 + $0x2398] sm:$0xff]  }
 0x447   :  { %12324 = vmatprep.mubr.bf16.mxu1 %v304_v6 }
 0x448   :  { %15174 = vmatpush3.bf16.msra.mxu0 %v16432_v27 }
 0x449   :  { %15196 = vmatpush3.bf16.msra.mxu1 %v16433_v28  ;;  %15175 = vmatprep.subr.bf16.mxu0 %v16434_v29  ;;  %v16474_v28 = vld [vmem:[%s20556_s1 + $0x2360] sm:$0xff]  }
 0x44a   :  { %15197 = vmatprep.subr.bf16.mxu1 %v16435_v30 }
 0x44c   :  { %15176 = vmatpush3.bf16.msra.mxu0 %v16436_v31  ;;  %v16475_v31 = vld [vmem:[%s20556_s1 + $0x23e0] sm:$0xff]  }
 0x44d   :  { %15198 = vmatpush3.bf16.msra.mxu1 %v16437_v32  ;;  %15177 = vmatprep.subr.bf16.mxu0 %v16438_v33 }
 0x44e   :  { %15199 = vmatprep.subr.bf16.mxu1 %v16439_v34  ;;  %v16476_v34 = vld [vmem:[%s20556_s1 + $0x2320] sm:$0xff]  }
 0x450   :  { %15178 = vmatpush3.bf16.msra.mxu0 %v16440_v36 }
 0x451   :  { %15200 = vmatpush3.bf16.msra.mxu1 %v16441_v38  ;;  %15179 = vmatprep.subr.bf16.mxu0 %v16442_v40  ;;  %v16478_v40 = vld [vmem:[%s20556_s1 + $0x2368] sm:$0xff]  }
 0x452   :  { %15201 = vmatprep.subr.bf16.mxu1 %v16443_v43  ;;  %v16480_v43 = vld [vmem:[%s20556_s1 + $0x2328] sm:$0xff]  }
 0x454   :  { %15180 = vmatpush3.bf16.msra.mxu0 %v16444_v46  ;;  %v16483_v46 = vld [vmem:[%s20556_s1 + $0x23f0] sm:$0xff]  }
 0x455   :  { %15202 = vmatpush3.bf16.msra.mxu1 %v16445_v49  ;;  %15181 = vmatprep.subr.bf16.mxu0 %v16446_v52  ;;  %v16486_v49 = vld [vmem:[%s20556_s1 + $0x2378] sm:$0xff]  }
 0x456   :  { %v14879_v35 = vpop.f32.mrb[108].mxu0  ;;  %15203 = vmatprep.subr.bf16.mxu1 %v16447_v54  ;;  %v16489_v52 = vld [vmem:[%s20556_s1 + $0x23b8] sm:$0xff]  }
 0x457   :  { %v14901_v37 = vpop.f32.mrb[108].mxu1  ;;  %v14880_v39 = vpop.f32.mrb[109].mxu0  ;;  %v164_v54 = vld [vmem:[%s20557_s0 + $0x478] sm:$0xff] }
 0x458   :  { %v14881_v41 = vadd.f32 %v14880_v39, %v14879_v35  ;;  %v14902_v42 = vpop.f32.mrb[109].mxu1  ;;  %v14882_v45 = vpop.f32.mrb[110].mxu0  ;;  %15182 = vmatpush3.bf16.msra.mxu0 %v16448_v55  ;;  %v161_v55 = vld [vmem:[%s20557_s0 + $0x460] sm:$0xff] }
 0x459   :  { %v14903_v44 = vadd.f32 %v14902_v42, %v14901_v37  ;;  %v14904_v48 = vpop.f32.mrb[110].mxu1  ;;  %v14883_v50 = vpop.f32.mrb[111].mxu0  ;;  %15204 = vmatpush3.bf16.msra.mxu1 %v16449_v56  ;;  %15183 = vmatprep.subr.bf16.mxu0 %v16450_v57  ;;  %v16477_v37 = vld [vmem:[%s20556_s1 + $0x23a0] sm:$0xff]   ;;  %v16479_v42 = vld [vmem:[%s20556_s1 + $0x23e8] sm:$0xff]   ;;  %v16482_v45 = vld [vmem:[%s20556_s1 + $0x2370] sm:$0xff]   ;;  %v308_v57 = vpack.c.bf16 %v164_v54, %v164_v54 }
 0x45a   :  { %v11727_v47 = vadd.f32 %v14881_v41, %v20232_v63  ;;  %v14905_v53 = vpop.f32.mrb[111].mxu1  ;;  %15205 = vmatprep.subr.bf16.mxu1 %v16451_v58  ;;  %v16456_v63 = vld [vmem:[%s20556_s1 + $0x2238] sm:$0xff]   ;;  %v16485_v48 = vld [vmem:[%s20556_s1 + $0x23b0] sm:$0xff]   ;;  %v305_v58 = vpack.c.bf16 %v161_v55, %v161_v55 }
 0x45b   :  { %v16487_v50 = vld [vmem:[%s20556_s1 + $0x23f8] sm:$0xff]   ;;  %v162_v53 = vld [vmem:[%s20557_s0 + $0x468] sm:$0xff]  ;;  %v12427_v55 = vld [vmem:[%s20559_s3 + $0x70] sm:$0xff] }
 0x45c   :  { %v20343_v51 = vadd.f32 %v14903_v44, %v11727_v47  ;;  %15184 = vmatpush3.bf16.msra.mxu0 %v16452_v59  ;;  %v16481_v44 = vld [vmem:[%s20556_s1 + $0x23a8] sm:$0xff]   ;;  %v16484_v47 = vld [vmem:[%s20556_s1 + $0x2330] sm:$0xff]   ;;  %v306_v56 = vpack.c.bf16 %v162_v53, %v162_v53 }
 0x45d   :  { %15206 = vmatpush3.bf16.msra.mxu1 %v16453_v60  ;;  %15185 = vmatprep.subr.bf16.mxu0 %v16454_v61  ;;  %v163_v59 = vld [vmem:[%s20557_s0 + $0x470] sm:$0xff]  ;;  %v12426_v53 = vld [vmem:[%s20559_s3 + $0x68] sm:$0xff] }
 0x45e   :  { %15207 = vmatprep.subr.bf16.mxu1 %v16455_v62  ;;  %v307_v60 = vpack.c.bf16 %v163_v59, %v163_v59 }
 0x460   :  { %15186 = vmatpush3.bf16.msra.mxu0 %v16456_v63 }
 0x461   :  { %15208 = vmatpush3.bf16.msra.mxu1 %v16457_v0  ;;  %15215 = vmatprep.subr.bf16.mxu0 %v16458_v9 }
 0x462   :  { %15237 = vmatprep.subr.bf16.mxu1 %v16459_v10 }
 0x463   :  { %12285 = vmatmul.mubr.bf16.vlgmr.msra.gmra.mrb[136].mxu0 %v301_v7 }
 0x464   :  { %12325 = vmatmul.mubr.bf16.vlgmr.msra.gmra.mrb[136].mxu1 %v303_v8  ;;  %15216 = vmatpush3.bf16.msra.mxu0 %v16460_v11 }
 0x465   :  { %15238 = vmatpush3.bf16.msra.mxu1 %v16461_v12  ;;  %15217 = vmatprep.subr.bf16.mxu0 %v16462_v13 }
 0x466   :  { %15239 = vmatprep.subr.bf16.mxu1 %v16463_v14  ;;  %12364 = vmatprep.mubr.bf16.mxu0 %v306_v56  ;;  %v12428_v56 = vld [vmem:[%s20559_s3 + $0x78] sm:$0xff] }
 0x467   :  { %12404 = vmatprep.mubr.bf16.mxu1 %v308_v57  ;;  %v15333_v57 = vpack.c.bf16 %v12428_v56, %v12427_v55 }
 0x468   :  { %15218 = vmatpush3.bf16.msra.mxu0 %v16464_v15 }
 0x469   :  { %15240 = vmatpush3.bf16.msra.mxu1 %v16465_v16  ;;  %15219 = vmatprep.subr.bf16.mxu0 %v16466_v17 }
 0x46a   :  { %15241 = vmatprep.subr.bf16.mxu1 %v16467_v18 }
 0x46c   :  { %15220 = vmatpush3.bf16.msra.mxu0 %v16468_v19 }
 0x46d   :  { %15242 = vmatpush3.bf16.msra.mxu1 %v16469_v20  ;;  %15221 = vmatprep.subr.bf16.mxu0 %v16470_v21  ;;  %v16494_v21 = vmov 0.0|0.0  }
 0x46e   :  { %15243 = vmatprep.subr.bf16.mxu1 %v16471_v22  ;;  %v12413_v22 = vld [vmem:[%s20559_s3] sm:$0xff] }
 0x470   :  { %15222 = vmatpush3.bf16.msra.mxu0 %v16472_v24  ;;  %v12415_v24 = vld [vmem:[%s20559_s3 + $0x10] sm:$0xff] }
 0x471   :  { %15244 = vmatpush3.bf16.msra.mxu1 %v16473_v26  ;;  %15223 = vmatprep.subr.bf16.mxu0 %v16474_v28  ;;  %v12416_v26 = vld [vmem:[%s20559_s3 + $0x18] sm:$0xff]  ;;  %v12417_v28 = vld [vmem:[%s20559_s3 + $0x20] sm:$0xff] }
 0x472   :  { %15245 = vmatprep.subr.bf16.mxu1 %v16475_v31  ;;  %v12419_v31 = vld [vmem:[%s20559_s3 + $0x30] sm:$0xff] }
 0x474   :  { %15224 = vmatpush3.bf16.msra.mxu0 %v16476_v34  ;;  %v12421_v34 = vld [vmem:[%s20559_s3 + $0x40] sm:$0xff] }
 0x475   :  { %15246 = vmatpush3.bf16.msra.mxu1 %v16477_v37  ;;  %15225 = vmatprep.subr.bf16.mxu0 %v16478_v40  ;;  %v12423_v37 = vld [vmem:[%s20559_s3 + $0x50] sm:$0xff] }
 0x476   :  { %v14923_v23 = vpop.f32.mrb[112].mxu0  ;;  %15247 = vmatprep.subr.bf16.mxu1 %v16479_v42 }
 0x477   :  { %v14945_v25 = vpop.f32.mrb[112].mxu1  ;;  %v14924_v27 = vpop.f32.mrb[113].mxu0 }
 0x478   :  { %v14925_v29 = vadd.f32 %v14924_v27, %v14923_v23  ;;  %v14946_v30 = vpop.f32.mrb[113].mxu1  ;;  %v14926_v33 = vpop.f32.mrb[114].mxu0  ;;  %15226 = vmatpush3.bf16.msra.mxu0 %v16480_v43  ;;  %v12414_v23 = vld [vmem:[%s20559_s3 + $0x8] sm:$0xff]  ;;  %v15315_v27 = vpack.c.bf16 %v12416_v26, %v12415_v24 }
 0x479   :  { %v14947_v32 = vadd.f32 %v14946_v30, %v14945_v25  ;;  %v14948_v36 = vpop.f32.mrb[114].mxu1  ;;  %v14927_v38 = vpop.f32.mrb[115].mxu0  ;;  %15248 = vmatpush3.bf16.msra.mxu1 %v16481_v44  ;;  %15227 = vmatprep.subr.bf16.mxu0 %v16482_v45  ;;  %v15312_v25 = vpack.c.bf16 %v12414_v23, %v12413_v22 }
 0x47a   :  { %v11807_v35 = vadd.f32 %v14925_v29, %v20343_v51  ;;  %v14949_v41 = vpop.f32.mrb[115].mxu1  ;;  %15249 = vmatprep.subr.bf16.mxu1 %v16483_v46  ;;  %v16488_v51 = vld [vmem:[%s20556_s1 + $0x2338] sm:$0xff]   ;;  %v12418_v29 = vld [vmem:[%s20559_s3 + $0x28] sm:$0xff] }
 0x47b   :  { %v15318_v30 = vpack.c.bf16 %v12418_v29, %v12417_v28  ;;  %v12424_v38 = vld [vmem:[%s20559_s3 + $0x58] sm:$0xff] }
 0x47c   :  { %v11847_v39 = vadd.f32 %v14947_v32, %v11807_v35  ;;  %15228 = vmatpush3.bf16.msra.mxu0 %v16484_v47  ;;  %v12420_v32 = vld [vmem:[%s20559_s3 + $0x38] sm:$0xff]  ;;  %v12422_v35 = vld [vmem:[%s20559_s3 + $0x48] sm:$0xff] }
 0x47d   :  { %15250 = vmatpush3.bf16.msra.mxu1 %v16485_v48  ;;  %15229 = vmatprep.subr.bf16.mxu0 %v16486_v49  ;;  %v15321_v33 = vpack.c.bf16 %v12420_v32, %v12419_v31  ;;  %v15324_v36 = vpack.c.bf16 %v12422_v35, %v12421_v34 }
 0x47e   :  { %15251 = vmatprep.subr.bf16.mxu1 %v16487_v50 }
 0x480   :  { %15230 = vmatpush3.bf16.msra.mxu0 %v16488_v51 }
 0x481   :  { %15252 = vmatpush3.bf16.msra.mxu1 %v16489_v52  ;;  %15311 = vmatprep.subr.bf16.mxu0 %v16494_v21  ;;  %v12425_v52 = vld [vmem:[%s20559_s3 + $0x60] sm:$0xff] }
 0x482   :  { %v15330_v54 = vpack.c.bf16 %v12426_v53, %v12425_v52 }
 0x483   :  { %12365 = vmatmul.mubr.bf16.vlgmr.msra.gmra.mrb[140].mxu0 %v305_v58  ;;  %v16496_v58 = vmov 0.0  }
 0x484   :  { %12405 = vmatmul.mubr.bf16.vlgmr.msra.gmra.mrb[140].mxu1 %v307_v60  ;;  %15313 = vmatpush3.bf16.msra.mxu0 %v15312_v25 }
 0x485   :  { %15314 = vmatprep.subr.bf16.mxu0 %v16494_v21  ;;  %15308 = vmatprep.mubr.msk.f32.mxu0 %vm16495_vm0, %v16496_v58 }
 0x488   :  { %15316 = vmatpush3.bf16.msra.mxu0 %v15315_v27 }
 0x489   :  { %15317 = vmatprep.subr.bf16.mxu0 %v16494_v21 }
 0x48c   :  { %15319 = vmatpush3.bf16.msra.mxu0 %v15318_v30 }
 0x48d   :  { %15320 = vmatprep.subr.bf16.mxu0 %v16494_v21 }
 0x490   :  { %15322 = vmatpush3.bf16.msra.mxu0 %v15321_v33 }
 0x491   :  { %15323 = vmatprep.subr.bf16.mxu0 %v16494_v21 }
 0x494   :  { %15325 = vmatpush3.bf16.msra.mxu0 %v15324_v36 }
 0x495   :  { %15326 = vmatprep.subr.bf16.mxu0 %v16494_v21 }
 0x496   :  { %v14967_v61 = vpop.f32.mrb[116].mxu0 }
 0x497   :  { %v14989_v62 = vpop.f32.mrb[116].mxu1  ;;  %v14968_v63 = vpop.f32.mrb[117].mxu0 }
 0x498   :  { %v14990_v0 = vpop.f32.mrb[117].mxu1  ;;  %v14969_v1 = vadd.f32 %v14968_v63, %v14967_v61  ;;  %v14970_v3 = vpop.f32.mrb[118].mxu0 }
 0x499   :  { %v14991_v2 = vadd.f32 %v14990_v0, %v14989_v62  ;;  %v14992_v4 = vpop.f32.mrb[118].mxu1  ;;  %v14971_v5 = vpop.f32.mrb[119].mxu0 }
 0x49a   :  { %v14993_v6 = vpop.f32.mrb[119].mxu1  ;;  %v11887_v7 = vadd.f32 %v14969_v1, %v11847_v39  ;;  %v15327_v39 = vpack.c.bf16 %v12424_v38, %v12423_v37 }
 0x49c   :  { %v11927_v8 = vadd.f32 %v14991_v2, %v11887_v7  ;;  %15328 = vmatpush3.bf16.msra.mxu0 %v15327_v39 }
 0x49d   :  { %15329 = vmatprep.subr.bf16.mxu0 %v16494_v21 }
 0x4a0   :  { %15331 = vmatpush3.bf16.msra.mxu0 %v15330_v54 }
 0x4a1   :  { %15332 = vmatprep.subr.bf16.mxu0 %v16494_v21 }
 0x4a4   :  { %15334 = vmatpush3.bf16.msra.mxu0 %v15333_v57 }
 0x4b6   :  { %v15011_v9 = vpop.f32.mrb[120].mxu0 }
 0x4b7   :  { %v15033_v10 = vpop.f32.mrb[120].mxu1  ;;  %v15012_v11 = vpop.f32.mrb[121].mxu0 }
 0x4b8   :  { %v15013_v12 = vadd.f32 %v15012_v11, %v15011_v9  ;;  %v15034_v13 = vpop.f32.mrb[121].mxu1  ;;  %v15014_v14 = vpop.f32.mrb[122].mxu0 }
 0x4b9   :  { %v15035_v15 = vadd.f32 %v15034_v13, %v15033_v10  ;;  %v15036_v16 = vpop.f32.mrb[122].mxu1  ;;  %v15015_v17 = vpop.f32.mrb[123].mxu0 }
 0x4ba   :  { %v11967_v18 = vadd.f32 %v15013_v12, %v11927_v8  ;;  %v15037_v19 = vpop.f32.mrb[123].mxu1 }
 0x4bc   :  { %v12007_v20 = vadd.f32 %v15035_v15, %v11967_v18 }
 0x4d6   :  { %v15055_v40 = vpop.f32.mrb[124].mxu0 }
 0x4d7   :  { %v15077_v41 = vpop.f32.mrb[124].mxu1  ;;  %v15056_v42 = vpop.f32.mrb[125].mxu0 }
 0x4d8   :  { %v15057_v43 = vadd.f32 %v15056_v42, %v15055_v40  ;;  %v15078_v44 = vpop.f32.mrb[125].mxu1  ;;  %v15058_v45 = vpop.f32.mrb[126].mxu0 }
 0x4d9   :  { %v15079_v46 = vadd.f32 %v15078_v44, %v15077_v41  ;;  %v15080_v47 = vpop.f32.mrb[126].mxu1  ;;  %v15059_v48 = vpop.f32.mrb[127].mxu0  ;;  %v13674_v44 = vld [vmem:[%s20560_s4] ss:$0 sm:$0xff] }
 0x4da   :  { %v12047_v49 = vadd.f32 %v15057_v43, %v12007_v20  ;;  %v15081_v50 = vpop.f32.mrb[127].mxu1 }
 0x4dc   :  { %v12087_v51 = vadd.f32 %v15079_v46, %v12047_v49 }
 0x4f6   :  { %v15099_v59 = vpop.f32.mrb[128].mxu0 }
 0x4f7   :  { %v15121_v60 = vpop.f32.mrb[128].mxu1  ;;  %v15100_v61 = vpop.f32.mrb[129].mxu0 }
 0x4f8   :  { %v15122_v62 = vpop.f32.mrb[129].mxu1  ;;  %v15101_v63 = vadd.f32 %v15100_v61, %v15099_v59  ;;  %v15102_v1 = vpop.f32.mrb[130].mxu0 }
 0x4f9   :  { %v15123_v0 = vadd.f32 %v15122_v62, %v15121_v60  ;;  %v15124_v2 = vpop.f32.mrb[130].mxu1  ;;  %v15103_v3 = vpop.f32.mrb[131].mxu0 }
 0x4fa   :  { %v15125_v4 = vpop.f32.mrb[131].mxu1  ;;  %v12127_v5 = vadd.f32 %v15101_v63, %v12087_v51 }
 0x4fc   :  { %v12167_v6 = vadd.f32 %v15123_v0, %v12127_v5 }
 0x516   :  { %v15143_v7 = vpop.f32.mrb[132].mxu0 }
 0x517   :  { %v15165_v8 = vpop.f32.mrb[132].mxu1  ;;  %v15144_v9 = vpop.f32.mrb[133].mxu0 }
 0x518   :  { %v15145_v10 = vadd.f32 %v15144_v9, %v15143_v7  ;;  %v15166_v11 = vpop.f32.mrb[133].mxu1  ;;  %v15146_v12 = vpop.f32.mrb[134].mxu0 }
 0x519   :  { %v15167_v13 = vadd.f32 %v15166_v11, %v15165_v8  ;;  %v15168_v14 = vpop.f32.mrb[134].mxu1  ;;  %v15147_v15 = vpop.f32.mrb[135].mxu0 }
 0x51a   :  { %v12207_v16 = vadd.f32 %v15145_v10, %v12167_v6  ;;  %v15169_v17 = vpop.f32.mrb[135].mxu1 }
 0x51c   :  { %v12247_v18 = vadd.f32 %v15167_v13, %v12207_v16 }
 0x536   :  { %v15187_v19 = vpop.f32.mrb[136].mxu0 }
 0x537   :  { %v15209_v20 = vpop.f32.mrb[136].mxu1  ;;  %v15188_v21 = vpop.f32.mrb[137].mxu0 }
 0x538   :  { %v15189_v22 = vadd.f32 %v15188_v21, %v15187_v19  ;;  %v15210_v23 = vpop.f32.mrb[137].mxu1  ;;  %v15190_v24 = vpop.f32.mrb[138].mxu0 }
 0x539   :  { %v15211_v25 = vadd.f32 %v15210_v23, %v15209_v20  ;;  %v15212_v26 = vpop.f32.mrb[138].mxu1  ;;  %v15191_v27 = vpop.f32.mrb[139].mxu0 }
 0x53a   :  { %v12287_v28 = vadd.f32 %v15189_v22, %v12247_v18  ;;  %v15213_v29 = vpop.f32.mrb[139].mxu1 }
 0x53c   :  { %v12327_v30 = vadd.f32 %v15211_v25, %v12287_v28 }
 0x556   :  { %v15231_v31 = vpop.f32.mrb[140].mxu0 }
 0x557   :  { %v15253_v32 = vpop.f32.mrb[140].mxu1  ;;  %v15232_v33 = vpop.f32.mrb[141].mxu0 }
 0x558   :  { %v15254_v34 = vpop.f32.mrb[141].mxu1  ;;  %v15233_v35 = vadd.f32 %v15232_v33, %v15231_v31  ;;  %v15234_v37 = vpop.f32.mrb[142].mxu0 }
 0x559   :  { %v15255_v36 = vadd.f32 %v15254_v34, %v15253_v32  ;;  %v15256_v38 = vpop.f32.mrb[142].mxu1  ;;  %v15235_v39 = vpop.f32.mrb[143].mxu0 }
 0x55a   :  { %v15257_v40 = vpop.f32.mrb[143].mxu1  ;;  %v12367_v41 = vadd.f32 %v15233_v35, %v12327_v30 }
 0x55c   :  { %v12407_v42 = vadd.f32 %v15255_v36, %v12367_v41 }
 0x55e   :  { %v12412_v43 = vmax.f32 %v12407_v42, 0.0 }
 0x560   :  { %15309 = vmatmul.mubr.f32.vlgmr.msra.gmra.mrb[144].mxu0 %v12412_v43 }
 0x633   :  { %v12502_v45 = vpop.f32.mrb[144].mxu0 }
 0x634   :  { %v12503_v46 = vadd.f32 %v13674_v44, %v12502_v45  ;;  %v15310_v47 = vpop.f32.mrb[145].mxu0 }
 0x636   :  { %12506 = vmax.xlane.f32.xlu0 %v12503_v46 }
 0x6c3   :  { %v12507_v48 = vpop.xlane.xlu0 %12506 }
 0x6c4   :  { %v12508_v49 = vsub.f32 %v12503_v46, %v12507_v48 }
 0x6c6   :  { %v12509_v50 = vmul.f32 1.442695, %v12508_v49 }
 0x6c8   :  { %16490 = vpow2.f32 %v12509_v50 }
 0x6d2   :  { %v16491_v51 = vpop.eup %16490 }
 0x6d3   :  { %12511 = vadd.xlane.f32.xlu0 %v16491_v51 }
 0x760   :  { %v12512_v52 = vpop.xlane.xlu0 %12511 }
 0x761   :  { %16492 = vlog2.f32 %v12512_v52 }
 0x76b   :  { %v16493_v53 = vpop.eup %16492 }
 0x76c   :  { %v12514_v54 = vmul.f32 0.6931472, %v16493_v53 }
 0x76e   :  { %v12515_v55 = vsub.f32 %v12508_v49, %v12514_v54 }
 0x770   :  { %12516 = vst [vmem:[%s20561_s5] sm:$0xff] %v12515_v55 }

</bundles_post_ra>
